<compile_context>
chip_gen: v7x
topology: tpu7x:2x2x1
jax: 0.10.0
libtpu: 0.0.40
codegen_flags: <defaults>
</compile_context>

<pallas_src>
import jax
import jax.numpy as jnp
from jax import lax
from jax.experimental import pallas as pl
from jax.experimental.pallas import tpu as pltpu


def _basic_block_kernel(x_ref, w1_ref, w2_ref,
                        s1_ref, b1_ref, s2_ref, b2_ref, out_ref):
    """One batch-tile per grid step.

    x_ref  : (NB, H, W, Cin)  bf16 input (also serves as the residual)
    w1_ref : (9*Cin, P)       bf16 conv1 weights, row = (dy*3+dx)*Cin + c
    w2_ref : (9*P,   P)       bf16 conv2 weights
    s*/b*  : (1, P)           f32 folded BN scale / bias
    out_ref: (NB, H, W, P)    f32
    """
    NB, H, W, C = x_ref.shape
    P = out_ref.shape[3]
    M = NB * H * W

    x = x_ref[...].astype(jnp.float32)          # (NB, H, W, C); also residual

    def pad_hw(a):
        # zero-pad H and W by 1 on each side, in VMEM (no wrapper pad pass)
        nb, h, w, c = a.shape
        zr = jnp.zeros((nb, 1, w, c), a.dtype)
        a = jnp.concatenate([zr, a, zr], axis=1)
        zc = jnp.zeros((nb, h + 2, 1, c), a.dtype)
        return jnp.concatenate([zc, a, zc], axis=2)

    def im2col_bf16(a):
        # (NB, H+2, W+2, c) -> (NB*H*W, 9*c), tap order t = dy*3 + dx;
        # cast to bf16 for the MXU (accumulation stays f32).
        c = a.shape[-1]
        taps = [a[:, dy:dy + H, dx:dx + W, :]
                for dy in range(3) for dx in range(3)]
        return jnp.concatenate(taps, axis=-1).reshape(M, 9 * c).astype(jnp.bfloat16)

    # ---- conv1 as ONE MXU matmul (K = 9*Cin) + bn1 + relu ----
    acc1 = jnp.dot(im2col_bf16(pad_hw(x)), w1_ref[...],
                   preferred_element_type=jnp.float32)            # (M, P) f32
    out1 = jnp.maximum(acc1 * s1_ref[...] + b1_ref[...], 0.0)

    # ---- conv2 as ONE MXU matmul (K = 9*P) ----
    y = out1.reshape(NB, H, W, P)
    acc2 = jnp.dot(im2col_bf16(pad_hw(y)), w2_ref[...],
                   preferred_element_type=jnp.float32)            # (M, P) f32

    # ---- bn2 + residual add + relu ----
    out2 = acc2 * s2_ref[...] + b2_ref[...] + x.reshape(M, C)
    out_ref[...] = jnp.maximum(out2, 0.0).reshape(NB, H, W, P).astype(out_ref.dtype)


def basic_block_pallas(x_nchw, w1, w2, bn1, bn2, eps=1e-5, batch_tile=None):
    """x_nchw: (N, C, H, W);  w1: (P, C, 3, 3);  w2: (P, P, 3, 3);
    bn* = (gamma, beta, running_mean, running_var), each (P,).  BN eval mode."""
    N, C, H, W = x_nchw.shape
    P = w1.shape[0]
    assert C == P, "downsample is None -> inplanes must equal planes (stride=1)"

    # NCHW -> NHWC; bf16 activations halve the input DMA.
    # TODO(synk): keep NHWC end-to-end in the surrounding model to also drop
    # the two boundary transposes (each is a full HBM pass).
    x = jnp.transpose(x_nchw, (0, 2, 3, 1)).astype(jnp.bfloat16)

    # (P, Cin, 3, 3) -> (9*Cin, P), row index = (dy*3+dx)*Cin + c (im2col order)
    w1_t = jnp.transpose(w1, (2, 3, 1, 0)).reshape(9 * C, P).astype(jnp.bfloat16)
    w2_t = jnp.transpose(w2, (2, 3, 1, 0)).reshape(9 * P, P).astype(jnp.bfloat16)

    def fold_bn(bn):
        gamma, beta, mean, var = bn
        scale = gamma / jnp.sqrt(var + eps)
        bias = beta - mean * scale
        return (scale.reshape(1, P).astype(jnp.float32),
                bias.reshape(1, P).astype(jnp.float32))

    s1, b1 = fold_bn(bn1)
    s2, b2 = fold_bn(bn2)

    # Fold several images into one grid step while keeping the per-step
    # footprint (input + im2col patches + intermediates + output) modest.
    if batch_tile is None:
        per_image = H * W * (2 * C + 2 * P + 4 * P) * 4   # rough bytes incl. patches
        budget = 8 * 1024 * 1024
        batch_tile = 1
        for nb in range(1, N + 1):
            if N % nb == 0 and nb * per_image <= budget:
                batch_tile = nb
    NB = batch_tile
    assert N % NB == 0

    full = lambda shape: pl.BlockSpec(shape, lambda n: (0,) * len(shape))

    out_nhwc = pl.pallas_call(
        _basic_block_kernel,
        out_shape=jax.ShapeDtypeStruct((N, H, W, P), jnp.float32),
        grid_spec=pltpu.PrefetchScalarGridSpec(
            num_scalar_prefetch=0,
            grid=(N // NB,),
            in_specs=[
                pl.BlockSpec((NB, H, W, C), lambda n: (n, 0, 0, 0)),
                full((9 * C, P)),
                full((9 * P, P)),
                full((1, P)), full((1, P)), full((1, P)), full((1, P)),
            ],
            out_specs=pl.BlockSpec((NB, H, W, P), lambda n: (n, 0, 0, 0)),
        ),
        compiler_params=pltpu.CompilerParams(
            dimension_semantics=("parallel",),
            vmem_limit_bytes=48 * 1024 * 1024),
    )(x, w1_t, w2_t, s1, b1, s2, b2)

    # NHWC -> NCHW
    return jnp.transpose(out_nhwc, (0, 3, 1, 2)).astype(x_nchw.dtype)


def basic_block_reference(x_nchw, w1, w2, bn1, bn2, eps=1e-5):
    """Pure-JAX f32 reference mirroring the PyTorch forward (BN in eval mode)."""
    def conv(x, w):
        return lax.conv_general_dilated(
            x, w, window_strides=(1, 1), padding=((1, 1), (1, 1)),
            dimension_numbers=("NCHW", "OIHW", "NCHW"))

    def bn(x, p):
        gamma, beta, mean, var = p
        scale = (gamma / jnp.sqrt(var + eps)).reshape(1, -1, 1, 1)
        bias = (beta - mean * gamma / jnp.sqrt(var + eps)).reshape(1, -1, 1, 1)
        return x * scale + bias

    out = jax.nn.relu(bn(conv(x_nchw, w1), bn1))
    out = bn(conv(out, w2), bn2)
    out = out + x_nchw
    return jax.nn.relu(out)


if __name__ == "__main__":
    key = jax.random.PRNGKey(0)
    N, C, H, W = 2, 8, 16, 16      # inplanes == planes == 8, stride=1, no downsample
    P = C

    keys = jax.random.split(key, 8)
    x = jax.random.normal(keys[0], (N, C, H, W), jnp.float32)
    w1 = jax.random.normal(keys[1], (P, C, 3, 3), jnp.float32) * 0.1
    w2 = jax.random.normal(keys[2], (P, P, 3, 3), jnp.float32) * 0.1

    bn1 = (jax.random.uniform(keys[3], (P,), jnp.float32, 0.5, 1.5),   # gamma
           jax.random.normal(keys[4], (P,), jnp.float32) * 0.1,        # beta
           jax.random.normal(keys[5], (P,), jnp.float32) * 0.1,        # running_mean
           jax.random.uniform(keys[6], (P,), jnp.float32, 0.5, 1.5))   # running_var
    bn2 = (jnp.ones((P,), jnp.float32),
           jnp.zeros((P,), jnp.float32),
           jax.random.normal(keys[7], (P,), jnp.float32) * 0.1,
           jnp.full((P,), 1.2, jnp.float32))

    out = jax.block_until_ready(basic_block_pallas(x, w1, w2, bn1, bn2))
    ref = jax.block_until_ready(basic_block_reference(x, w1, w2, bn1, bn2))

    assert out.shape == ref.shape == (N, C, H, W)
    # bf16 MXU operands (f32 accumulation) -> tolerance looser than pure-f32.
    max_err = float(jnp.max(jnp.abs(out - ref)))
    assert jnp.allclose(out, ref, atol=5e-2, rtol=5e-2), max_err

    print("KERNEL_OK")
</pallas_src>

<mosaic_0001>
module attributes {stable_mosaic.version = 11 : i64} {
  func.func @_basic_block_kernel(%arg0: i32, %arg1: memref<2x16x16x8xbf16, #tpu.memory_space<vmem>>, %arg2: memref<72x8xbf16, #tpu.memory_space<vmem>>, %arg3: memref<72x8xbf16, #tpu.memory_space<vmem>>, %arg4: memref<1x8xf32, #tpu.memory_space<vmem>>, %arg5: memref<1x8xf32, #tpu.memory_space<vmem>>, %arg6: memref<1x8xf32, #tpu.memory_space<vmem>>, %arg7: memref<1x8xf32, #tpu.memory_space<vmem>>, %arg8: memref<2x16x16x8xf32, #tpu.memory_space<vmem>>) attributes {dimension_semantics = [#tpu.dimension_semantics<parallel>], iteration_bounds = array<i64: 1>, scalar_prefetch = 0 : i64, scratch_operands = 0 : i64, tpu.core_type = #tpu.core_type<tc>, window_params = [{transform_indices = @transform_0, window_bounds = array<i64: 2, 16, 16, 8>}, {pipeline_mode = #tpu.pipeline_mode<synchronous>, transform_indices = @transform_1, window_bounds = array<i64: 72, 8>}, {pipeline_mode = #tpu.pipeline_mode<synchronous>, transform_indices = @transform_2, window_bounds = array<i64: 72, 8>}, {pipeline_mode = #tpu.pipeline_mode<synchronous>, transform_indices = @transform_3, window_bounds = array<i64: 1, 8>}, {pipeline_mode = #tpu.pipeline_mode<synchronous>, transform_indices = @transform_4, window_bounds = array<i64: 1, 8>}, {pipeline_mode = #tpu.pipeline_mode<synchronous>, transform_indices = @transform_5, window_bounds = array<i64: 1, 8>}, {pipeline_mode = #tpu.pipeline_mode<synchronous>, transform_indices = @transform_6, window_bounds = array<i64: 1, 8>}, {transform_indices = @transform_7, window_bounds = array<i64: 2, 16, 16, 8>}]} {
    %c0 = arith.constant 0 : index
    %c0_0 = arith.constant 0 : index
    %c0_1 = arith.constant 0 : index
    %c0_2 = arith.constant 0 : index
    %0 = vector.load %arg1[%c0, %c0_0, %c0_1, %c0_2] : memref<2x16x16x8xbf16, #tpu.memory_space<vmem>>, vector<2x16x16x8xbf16>
    %1 = arith.extf %0 : vector<2x16x16x8xbf16> to vector<2x16x16x8xf32>
    %cst = arith.constant 0.000000e+00 : f32
    %2 = vector.broadcast %cst : f32 to vector<2x1x16x8xf32>
    %3 = tpu.concatenate %2, %1, %2 in 1 : vector<2x1x16x8xf32>, vector<2x16x16x8xf32>, vector<2x1x16x8xf32> -> vector<2x18x16x8xf32>
    %cst_3 = arith.constant 0.000000e+00 : f32
    %4 = vector.broadcast %cst_3 : f32 to vector<2x18x1x8xf32>
    %5 = tpu.concatenate %4, %3, %4 in 2 : vector<2x18x1x8xf32>, vector<2x18x16x8xf32>, vector<2x18x1x8xf32> -> vector<2x18x18x8xf32>
    %6 = vector.extract_strided_slice %5 {offsets = [0, 0, 0, 0], sizes = [2, 16, 16, 8], strides = [1, 1, 1, 1]} : vector<2x18x18x8xf32> to vector<2x16x16x8xf32>
    %7 = vector.extract_strided_slice %5 {offsets = [0, 0, 1, 0], sizes = [2, 16, 16, 8], strides = [1, 1, 1, 1]} : vector<2x18x18x8xf32> to vector<2x16x16x8xf32>
    %8 = vector.extract_strided_slice %5 {offsets = [0, 0, 2, 0], sizes = [2, 16, 16, 8], strides = [1, 1, 1, 1]} : vector<2x18x18x8xf32> to vector<2x16x16x8xf32>
    %9 = vector.extract_strided_slice %5 {offsets = [0, 1, 0, 0], sizes = [2, 16, 16, 8], strides = [1, 1, 1, 1]} : vector<2x18x18x8xf32> to vector<2x16x16x8xf32>
    %10 = vector.extract_strided_slice %5 {offsets = [0, 1, 1, 0], sizes = [2, 16, 16, 8], strides = [1, 1, 1, 1]} : vector<2x18x18x8xf32> to vector<2x16x16x8xf32>
    %11 = vector.extract_strided_slice %5 {offsets = [0, 1, 2, 0], sizes = [2, 16, 16, 8], strides = [1, 1, 1, 1]} : vector<2x18x18x8xf32> to vector<2x16x16x8xf32>
    %12 = vector.extract_strided_slice %5 {offsets = [0, 2, 0, 0], sizes = [2, 16, 16, 8], strides = [1, 1, 1, 1]} : vector<2x18x18x8xf32> to vector<2x16x16x8xf32>
    %13 = vector.extract_strided_slice %5 {offsets = [0, 2, 1, 0], sizes = [2, 16, 16, 8], strides = [1, 1, 1, 1]} : vector<2x18x18x8xf32> to vector<2x16x16x8xf32>
    %14 = vector.extract_strided_slice %5 {offsets = [0, 2, 2, 0], sizes = [2, 16, 16, 8], strides = [1, 1, 1, 1]} : vector<2x18x18x8xf32> to vector<2x16x16x8xf32>
    %15 = tpu.concatenate %6, %7, %8, %9, %10, %11, %12, %13, %14 in 3 : vector<2x16x16x8xf32>, vector<2x16x16x8xf32>, vector<2x16x16x8xf32>, vector<2x16x16x8xf32>, vector<2x16x16x8xf32>, vector<2x16x16x8xf32>, vector<2x16x16x8xf32>, vector<2x16x16x8xf32>, vector<2x16x16x8xf32> -> vector<2x16x16x72xf32>
    %16 = vector.shape_cast %15 : vector<2x16x16x72xf32> to vector<512x72xf32>
    %17 = arith.truncf %16 : vector<512x72xf32> to vector<512x72xbf16>
    %c0_4 = arith.constant 0 : index
    %c0_5 = arith.constant 0 : index
    %18 = vector.load %arg2[%c0_4, %c0_5] : memref<72x8xbf16, #tpu.memory_space<vmem>>, vector<72x8xbf16>
    %cst_6 = arith.constant dense<0.000000e+00> : vector<512x8xf32>
    %19 = tpu.matmul %17, %18, %cst_6 {dimension_numbers = #tpu.dot_dimension_numbers<[1], [0], [0], [1], [0, 0, 1, 1], [], []>} : vector<512x72xbf16>, vector<72x8xbf16>, vector<512x8xf32> -> vector<512x8xf32>
    %c0_7 = arith.constant 0 : index
    %c0_8 = arith.constant 0 : index
    %20 = vector.load %arg4[%c0_7, %c0_8] : memref<1x8xf32, #tpu.memory_space<vmem>>, vector<1x8xf32>
    %21 = vector.broadcast %20 : vector<1x8xf32> to vector<512x8xf32>
    %22 = arith.mulf %19, %21 : vector<512x8xf32>
    %c0_9 = arith.constant 0 : index
    %c0_10 = arith.constant 0 : index
    %23 = vector.load %arg5[%c0_9, %c0_10] : memref<1x8xf32, #tpu.memory_space<vmem>>, vector<1x8xf32>
    %24 = vector.broadcast %23 : vector<1x8xf32> to vector<512x8xf32>
    %25 = arith.addf %22, %24 : vector<512x8xf32>
    %cst_11 = arith.constant 0.000000e+00 : f32
    %26 = vector.broadcast %cst_11 : f32 to vector<512x8xf32>
    %27 = arith.maximumf %25, %26 : vector<512x8xf32>
    %28 = vector.shape_cast %27 : vector<512x8xf32> to vector<2x16x16x8xf32>
    %cst_12 = arith.constant 0.000000e+00 : f32
    %29 = vector.broadcast %cst_12 : f32 to vector<2x1x16x8xf32>
    %30 = tpu.concatenate %29, %28, %29 in 1 : vector<2x1x16x8xf32>, vector<2x16x16x8xf32>, vector<2x1x16x8xf32> -> vector<2x18x16x8xf32>
    %cst_13 = arith.constant 0.000000e+00 : f32
    %31 = vector.broadcast %cst_13 : f32 to vector<2x18x1x8xf32>
    %32 = tpu.concatenate %31, %30, %31 in 2 : vector<2x18x1x8xf32>, vector<2x18x16x8xf32>, vector<2x18x1x8xf32> -> vector<2x18x18x8xf32>
    %33 = vector.extract_strided_slice %32 {offsets = [0, 0, 0, 0], sizes = [2, 16, 16, 8], strides = [1, 1, 1, 1]} : vector<2x18x18x8xf32> to vector<2x16x16x8xf32>
    %34 = vector.extract_strided_slice %32 {offsets = [0, 0, 1, 0], sizes = [2, 16, 16, 8], strides = [1, 1, 1, 1]} : vector<2x18x18x8xf32> to vector<2x16x16x8xf32>
    %35 = vector.extract_strided_slice %32 {offsets = [0, 0, 2, 0], sizes = [2, 16, 16, 8], strides = [1, 1, 1, 1]} : vector<2x18x18x8xf32> to vector<2x16x16x8xf32>
    %36 = vector.extract_strided_slice %32 {offsets = [0, 1, 0, 0], sizes = [2, 16, 16, 8], strides = [1, 1, 1, 1]} : vector<2x18x18x8xf32> to vector<2x16x16x8xf32>
    %37 = vector.extract_strided_slice %32 {offsets = [0, 1, 1, 0], sizes = [2, 16, 16, 8], strides = [1, 1, 1, 1]} : vector<2x18x18x8xf32> to vector<2x16x16x8xf32>
    %38 = vector.extract_strided_slice %32 {offsets = [0, 1, 2, 0], sizes = [2, 16, 16, 8], strides = [1, 1, 1, 1]} : vector<2x18x18x8xf32> to vector<2x16x16x8xf32>
    %39 = vector.extract_strided_slice %32 {offsets = [0, 2, 0, 0], sizes = [2, 16, 16, 8], strides = [1, 1, 1, 1]} : vector<2x18x18x8xf32> to vector<2x16x16x8xf32>
    %40 = vector.extract_strided_slice %32 {offsets = [0, 2, 1, 0], sizes = [2, 16, 16, 8], strides = [1, 1, 1, 1]} : vector<2x18x18x8xf32> to vector<2x16x16x8xf32>
    %41 = vector.extract_strided_slice %32 {offsets = [0, 2, 2, 0], sizes = [2, 16, 16, 8], strides = [1, 1, 1, 1]} : vector<2x18x18x8xf32> to vector<2x16x16x8xf32>
    %42 = tpu.concatenate %33, %34, %35, %36, %37, %38, %39, %40, %41 in 3 : vector<2x16x16x8xf32>, vector<2x16x16x8xf32>, vector<2x16x16x8xf32>, vector<2x16x16x8xf32>, vector<2x16x16x8xf32>, vector<2x16x16x8xf32>, vector<2x16x16x8xf32>, vector<2x16x16x8xf32>, vector<2x16x16x8xf32> -> vector<2x16x16x72xf32>
    %43 = vector.shape_cast %42 : vector<2x16x16x72xf32> to vector<512x72xf32>
    %44 = arith.truncf %43 : vector<512x72xf32> to vector<512x72xbf16>
    %c0_14 = arith.constant 0 : index
    %c0_15 = arith.constant 0 : index
    %45 = vector.load %arg3[%c0_14, %c0_15] : memref<72x8xbf16, #tpu.memory_space<vmem>>, vector<72x8xbf16>
    %cst_16 = arith.constant dense<0.000000e+00> : vector<512x8xf32>
    %46 = tpu.matmul %44, %45, %cst_16 {dimension_numbers = #tpu.dot_dimension_numbers<[1], [0], [0], [1], [0, 0, 1, 1], [], []>} : vector<512x72xbf16>, vector<72x8xbf16>, vector<512x8xf32> -> vector<512x8xf32>
    %c0_17 = arith.constant 0 : index
    %c0_18 = arith.constant 0 : index
    %47 = vector.load %arg6[%c0_17, %c0_18] : memref<1x8xf32, #tpu.memory_space<vmem>>, vector<1x8xf32>
    %48 = vector.broadcast %47 : vector<1x8xf32> to vector<512x8xf32>
    %49 = arith.mulf %46, %48 : vector<512x8xf32>
    %c0_19 = arith.constant 0 : index
    %c0_20 = arith.constant 0 : index
    %50 = vector.load %arg7[%c0_19, %c0_20] : memref<1x8xf32, #tpu.memory_space<vmem>>, vector<1x8xf32>
    %51 = vector.broadcast %50 : vector<1x8xf32> to vector<512x8xf32>
    %52 = arith.addf %49, %51 : vector<512x8xf32>
    %53 = vector.shape_cast %1 : vector<2x16x16x8xf32> to vector<512x8xf32>
    %54 = arith.addf %52, %53 : vector<512x8xf32>
    %cst_21 = arith.constant 0.000000e+00 : f32
    %55 = vector.broadcast %cst_21 : f32 to vector<512x8xf32>
    %56 = arith.maximumf %54, %55 : vector<512x8xf32>
    %57 = vector.shape_cast %56 : vector<512x8xf32> to vector<2x16x16x8xf32>
    %c0_22 = arith.constant 0 : index
    %c0_23 = arith.constant 0 : index
    %c0_24 = arith.constant 0 : index
    %c0_25 = arith.constant 0 : index
    %58 = vector.load %arg8[%c0_22, %c0_23, %c0_24, %c0_25] : memref<2x16x16x8xf32, #tpu.memory_space<vmem>>, vector<2x16x16x8xf32>
    tpu.vector_store %arg8[%c0_22, %c0_23, %c0_24, %c0_25], %57 {strides = array<i32>} : memref<2x16x16x8xf32, #tpu.memory_space<vmem>>, vector<2x16x16x8xf32>,
    return
  }
  func.func @transform_0(%arg0: i32) -> (i32, i32, i32, i32) {
    %c0_i32 = arith.constant 0 : i32
    %c0_i32_0 = arith.constant 0 : i32
    %c0_i32_1 = arith.constant 0 : i32
    %c0_i32_2 = arith.constant 0 : i32
    return %arg0, %c0_i32, %c0_i32_0, %c0_i32_1 : i32, i32, i32, i32
  }
  func.func @transform_1(%arg0: i32) -> (i32, i32) {
    %c0_i32 = arith.constant 0 : i32
    %c0_i32_0 = arith.constant 0 : i32
    %c0_i32_1 = arith.constant 0 : i32
    return %c0_i32, %c0_i32_0 : i32, i32
  }
  func.func @transform_2(%arg0: i32) -> (i32, i32) {
    %c0_i32 = arith.constant 0 : i32
    %c0_i32_0 = arith.constant 0 : i32
    %c0_i32_1 = arith.constant 0 : i32
    return %c0_i32, %c0_i32_0 : i32, i32
  }
  func.func @transform_3(%arg0: i32) -> (i32, i32) {
    %c0_i32 = arith.constant 0 : i32
    %c0_i32_0 = arith.constant 0 : i32
    %c0_i32_1 = arith.constant 0 : i32
    return %c0_i32, %c0_i32_0 : i32, i32
  }
  func.func @transform_4(%arg0: i32) -> (i32, i32) {
    %c0_i32 = arith.constant 0 : i32
    %c0_i32_0 = arith.constant 0 : i32
    %c0_i32_1 = arith.constant 0 : i32
    return %c0_i32, %c0_i32_0 : i32, i32
  }
  func.func @transform_5(%arg0: i32) -> (i32, i32) {
    %c0_i32 = arith.constant 0 : i32
    %c0_i32_0 = arith.constant 0 : i32
    %c0_i32_1 = arith.constant 0 : i32
    return %c0_i32, %c0_i32_0 : i32, i32
  }
  func.func @transform_6(%arg0: i32) -> (i32, i32) {
    %c0_i32 = arith.constant 0 : i32
    %c0_i32_0 = arith.constant 0 : i32
    %c0_i32_1 = arith.constant 0 : i32
    return %c0_i32, %c0_i32_0 : i32, i32
  }
  func.func @transform_7(%arg0: i32) -> (i32, i32, i32, i32) {
    %c0_i32 = arith.constant 0 : i32
    %c0_i32_0 = arith.constant 0 : i32
    %c0_i32_1 = arith.constant 0 : i32
    %c0_i32_2 = arith.constant 0 : i32
    return %arg0, %c0_i32, %c0_i32_0, %c0_i32_1 : i32, i32, i32, i32
  }
}

</mosaic_0001>

<bundles_post_ra>
// kernel: tpu_custom_call.1
= control target key start
LH: loop header
LB: loop body
LE: loop exit
PB: predicated region body
PF: predicated region fallthrough
CT: control target
= control target key end

     0   :  { %vm220_vm0 = vcmask 1040384   ;;  %v10008_v0 = vmov 0.0   ;;  %vm543_vm1 = vcmask 1046528   ;;  %s10009_s30 = smov 8   ;;  %vm885_vm2 = vcmask 1045504   ;;  %s10010_s18 = smov 16   ;;  %s17926_s0 = inlined_call_operand.vmem [shape: bf16[2,16,16,8], index: 0, kind: input, shape index: {}]   ;;  %s17927_s1 = inlined_call_operand.vmem [shape: bf16[72,8], index: 1, kind: input, shape index: {}]   ;;  %s17928_s3 = inlined_call_operand.vmem [shape: f32[1,8], index: 3, kind: input, shape index: {}]   ;;  %s17929_s4 = inlined_call_operand.vmem [shape: f32[1,8], index: 4, kind: input, shape index: {}]   ;;  %s17930_s2 = inlined_call_operand.vmem [shape: bf16[72,8], index: 2, kind: input, shape index: {}]   ;;  %s17931_s5 = inlined_call_operand.vmem [shape: f32[1,8], index: 5, kind: input, shape index: {}]   ;;  %s17932_s6 = inlined_call_operand.vmem [shape: f32[1,8], index: 6, kind: input, shape index: {}]   ;;  %s17933_s7 = inlined_call_operand.vmem [shape: f32[2,16,16,8], index: 7, kind: output, shape index: {}]  }
   0x1   :  { %v10057_v1 = vrot.slane %v10008_v0, 7  ;;  %v10062_v2 = vld [vmem:[%s17926_s0 + $0x8] sm:$0xff]   ;;  %v10067_v3 = vld [vmem:[%s17926_s0] sm:$0xff]   ;;  %v10072_v4 = vld [vmem:[%s17926_s0 + $0x10] sm:$0xff]   ;;  %s10011_s19 = smov 24   ;;  %s10013_s24 = smov 40  }
   0x2   :  { %18894 = vst [vmem:[#allocation3_spill] sm:$0xff] %v10062_v2  ;;  %18895 = vst [vmem:[#allocation4_spill] sm:$0xff] %v10067_v3  ;;  %v17951_v5 = vunpack.c.l.bf16 %v10062_v2  ;;  %v17949_v6 = vunpack.c.h.bf16 %v10062_v2  ;;  %v17950_v7 = vunpack.c.l.bf16 %v10067_v3  ;;  %v17948_v8 = vunpack.c.h.bf16 %v10067_v3  ;;  %v10138_v39 = vld [vmem:[%s17926_s0 + $0x18] sm:$0xff]   ;;  %v10150_v44 = vld [vmem:[%s17926_s0 + $0x20] sm:$0xff]   ;;  %s10014_s25 = smov 48   ;;  %s10015_s26 = smov 56  }
   0x3   :  { %18893 = vst [vmem:[#allocation2_spill] sm:$0xff] %v10057_v1  ;;  %18896 = vst [vmem:[#allocation5_spill] sm:$0xff] %v10072_v4  ;;  %v10080_v9 = vsel %vm220_vm0, 0.0, %v10057_v1  ;;  %v10084_v10 = vsel %vm220_vm0, %v10057_v1, 0.0  ;;  %v545_v11 = vrot.slane %v10057_v1, 1  ;;  %v17946_v12 = vunpack.c.l.bf16 %v10072_v4  ;;  %v10163_v49 = vld [vmem:[%s17926_s0 + $0x28] sm:$0xff]  }
   0x4   :  { %18897 = vst [vmem:[#allocation6_spill] sm:$0xff] %v10080_v9  ;;  %v544_v13 = vrot.slane %v10080_v9, 1  ;;  %v547_v14 = vrot.slane %v10084_v10, 1  ;;  %v226_v15 = vrot.slane %v17951_v5, 7  ;;  %v227_v16 = vrot.slane %v17949_v6, 7  ;;  %18903 = vst [vmem:[#allocation12_spill] sm:$0xff] %v10138_v39 }
   0x5   :  { %v223_v17 = vrot.slane %v17950_v7, 7  ;;  %v224_v18 = vrot.slane %v17948_v8, 7  ;;  %v17940_v19 = vunpack.c.h.bf16 %v10072_v4  ;;  %v229_v23 = vrot.slane %v17946_v12, 7  ;;  %18906 = vst [vmem:[#allocation15_spill] sm:$0xff] %v10150_v44  ;;  %18908 = vst [vmem:[#allocation17_spill] sm:$0xff] %v10163_v49  ;;  %v10179_v58 = vld [vmem:[%s17926_s0 + $0x30] sm:$0xff]  }
   0x6   :  { %v546_v20 = vsel %vm543_vm1, %v544_v13, %v545_v11  ;;  %v548_v21 = vsel %vm543_vm1, %v545_v11, %v547_v14  ;;  %v10102_v22 = vsel %vm220_vm0, 0.0, %v226_v15  ;;  %v10109_v25 = vsel %vm220_vm0, %v226_v15, %v227_v16  ;;  %18910 = vst [vmem:[#allocation19_spill] sm:$0xff] %v10179_v58 }
   0x7   :  { %18898 = vst [vmem:[#allocation7_spill] sm:$0xff] %v10102_v22  ;;  %v10106_v24 = vpack.i.bf16 %v548_v21, %v546_v20  ;;  %18900 = vst [vmem:[#allocation9_spill] sm:$0xff] %v10109_v25  ;;  %v10112_v26 = vsel %vm220_vm0, %v227_v16, 0.0  ;;  %v554_v28 = vrot.slane %v10102_v22, 1  ;;  %v555_v29 = vrot.slane %v10109_v25, 1 }
   0x8   :  { %v557_v30 = vrot.slane %v10112_v26, 1  ;;  %v10121_v31 = vsel %vm220_vm0, %v223_v17, %v224_v18  ;;  %v10124_v32 = vsel %vm220_vm0, 0.0, %v223_v17  ;;  %v10127_v33 = vsel %vm220_vm0, %v224_v18, 0.0 }
   0x9   :  { %18899 = vst [vmem:[#allocation8_spill] sm:$0xff] %v10106_v24  ;;  %7512 = vrot.lane.b32.xlu0 %v10106_v24, %s10009_s30  ;;  %18901 = vst [vmem:[#allocation10_spill] sm:$0xff] %v10121_v31  ;;  %v230_v34 = vrot.slane %v17940_v19, 7  ;;  %v556_v35 = vsel %vm543_vm1, %v554_v28, %v555_v29  ;;  %v549_v37 = vrot.slane %v10124_v32, 1  ;;  %v550_v38 = vrot.slane %v10121_v31, 1 }
   0xa   :  { %18902 = vst [vmem:[#allocation11_spill] sm:$0xff] %v10124_v32  ;;  %v558_v36 = vsel %vm543_vm1, %v555_v29, %v557_v30  ;;  %v552_v42 = vrot.slane %v10127_v33, 1  ;;  %v10154_v46 = vsel %vm220_vm0, 0.0, %v229_v23  ;;  %v17947_v53 = vunpack.c.l.bf16 %v10138_v39 }
   0xb   :  { %v10141_v41 = vpack.i.bf16 %v558_v36, %v556_v35  ;;  %v10145_v43 = vsel %vm220_vm0, %v229_v23, %v230_v34  ;;  %v551_v45 = vsel %vm543_vm1, %v549_v37, %v550_v38  ;;  %18907 = vst [vmem:[#allocation16_spill] sm:$0xff] %v10154_v46  ;;  %v10157_v47 = vsel %vm220_vm0, %v230_v34, 0.0 }
   0xc   :  { %18905 = vst [vmem:[#allocation14_spill] sm:$0xff] %v10145_v43  ;;  %v560_v48 = vrot.slane %v10145_v43, 1  ;;  %v553_v50 = vsel %vm543_vm1, %v550_v38, %v552_v42  ;;  %v559_v51 = vrot.slane %v10154_v46, 1  ;;  %v562_v52 = vrot.slane %v10157_v47, 1 }
   0xd   :  { %18904 = vst [vmem:[#allocation13_spill] sm:$0xff] %v10141_v41  ;;  %7522 = vrot.lane.b32.xlu1 %v10141_v41, %s10009_s30  ;;  %v10171_v54 = vpack.i.bf16 %v553_v50, %v551_v45  ;;  %v17942_v55 = vunpack.c.h.bf16 %v10138_v39  ;;  %v17938_v56 = vunpack.c.l.bf16 %v10150_v44  ;;  %v17936_v57 = vunpack.c.h.bf16 %v10150_v44 }
   0xe   :  { %v561_v59 = vsel %vm543_vm1, %v559_v51, %v560_v48  ;;  %v563_v60 = vsel %vm543_vm1, %v560_v48, %v562_v52  ;;  %v232_v61 = vrot.slane %v17947_v53, 7  ;;  %v17939_v62 = vunpack.c.l.bf16 %v10163_v49  ;;  %v10237_v51 = vld [vmem:[%s17926_s0 + $0x38] sm:$0xff]  }
   0xf   :  { %18909 = vst [vmem:[#allocation18_spill] sm:$0xff] %v10171_v54  ;;  %7517 = vrot.lane.b32.xlu0 %v10171_v54, %s10009_s30  ;;  %v10188_v63 = vpack.i.bf16 %v563_v60, %v561_v59  ;;  %v233_v0 = vrot.slane %v17942_v55, 7  ;;  %v235_v11 = vrot.slane %v17938_v56, 7  ;;  %v236_v13 = vrot.slane %v17936_v57, 7  ;;  %18917 = vst [vmem:[#allocation26_spill] sm:$0xff] %v10237_v51 }
  0x10   :  { %v10197_v14 = vsel %vm220_vm0, 0.0, %v232_v61  ;;  %v17937_v15 = vunpack.c.h.bf16 %v10163_v49  ;;  %v238_v16 = vrot.slane %v17939_v62, 7  ;;  %v17935_v17 = vunpack.c.l.bf16 %v10179_v58 }
  0x11   :  { %18911 = vst [vmem:[#allocation20_spill] sm:$0xff] %v10188_v63  ;;  %18912 = vst [vmem:[#allocation21_spill] sm:$0xff] %v10197_v14  ;;  %7527 = vrot.lane.b32.xlu1 %v10188_v63, %s10009_s30  ;;  %v10206_v18 = vsel %vm220_vm0, %v232_v61, %v233_v0  ;;  %v10209_v20 = vsel %vm220_vm0, %v233_v0, 0.0  ;;  %v564_v21 = vrot.slane %v10197_v14, 1  ;;  %v10213_v23 = vsel %vm220_vm0, %v235_v11, %v236_v13  ;;  %v10249_v0 = vld [vmem:[%s17926_s0 + $0x40] sm:$0xff]  }
  0x12   :  { %18913 = vst [vmem:[#allocation22_spill] sm:$0xff] %v10206_v18  ;;  %18914 = vst [vmem:[#allocation23_spill] sm:$0xff] %v10213_v23  ;;  %v565_v28 = vrot.slane %v10206_v18, 1  ;;  %v567_v29 = vrot.slane %v10209_v20, 1  ;;  %v10218_v30 = vsel %vm220_vm0, 0.0, %v235_v11  ;;  %v10221_v34 = vsel %vm220_vm0, %v236_v13, 0.0 }
  0x13   :  { %18915 = vst [vmem:[#allocation24_spill] sm:$0xff] %v10218_v30  ;;  %v569_v35 = vrot.slane %v10218_v30, 1  ;;  %v570_v36 = vrot.slane %v10213_v23, 1  ;;  %v572_v37 = vrot.slane %v10221_v34, 1  ;;  %v239_v38 = vrot.slane %v17937_v15, 7  ;;  %18920 = vst [vmem:[#allocation29_spill] sm:$0xff] %v10249_v0 }
  0x14   :  { %v566_v42 = vsel %vm543_vm1, %v564_v21, %v565_v28  ;;  %v568_v45 = vsel %vm543_vm1, %v565_v28, %v567_v29  ;;  %v10231_v48 = vsel %vm220_vm0, 0.0, %v238_v16  ;;  %v17934_v50 = vunpack.c.h.bf16 %v10179_v58 }
  0x15   :  { %18916 = vst [vmem:[#allocation25_spill] sm:$0xff] %v10231_v48  ;;  %v10239_v52 = vpack.i.bf16 %v568_v45, %v566_v42  ;;  %v571_v59 = vsel %vm543_vm1, %v569_v35, %v570_v36  ;;  %v573_v60 = vsel %vm543_vm1, %v570_v36, %v572_v37  ;;  %v10244_v61 = vsel %vm220_vm0, %v238_v16, %v239_v38 }
  0x16   :  { %18919 = vst [vmem:[#allocation28_spill] sm:$0xff] %v10244_v61  ;;  %v10251_v11 = vpack.i.bf16 %v573_v60, %v571_v59  ;;  %v10254_v13 = vsel %vm220_vm0, %v239_v38, 0.0  ;;  %v574_v21 = vrot.slane %v10231_v48, 1  ;;  %v575_v28 = vrot.slane %v10244_v61, 1 }
  0x17   :  { %18918 = vst [vmem:[#allocation27_spill] sm:$0xff] %v10239_v52  ;;  %7532 = vrot.lane.b32.xlu0 %v10239_v52, %s10009_s30  ;;  %v577_v16 = vrot.slane %v10254_v13, 1  ;;  %v241_v29 = vrot.slane %v17935_v17, 7  ;;  %v242_v35 = vrot.slane %v17934_v50, 7  ;;  %v17941_v36 = vunpack.c.l.bf16 %v10237_v51 }
  0x18   :  { %18921 = vst [vmem:[#allocation30_spill] sm:$0xff] %v10251_v11  ;;  %7537 = vrot.lane.b32.xlu1 %v10251_v11, %s10009_s30  ;;  %v576_v37 = vsel %vm543_vm1, %v574_v21, %v575_v28  ;;  %v17943_v38 = vunpack.c.h.bf16 %v10237_v51  ;;  %v17944_v42 = vunpack.c.l.bf16 %v10249_v0  ;;  %v17945_v45 = vunpack.c.h.bf16 %v10249_v0  ;;  %v10285_v21 = vld [vmem:[%s17926_s0 + $0x48] sm:$0xff]  }
  0x19   :  { %v578_v59 = vsel %vm543_vm1, %v575_v28, %v577_v16  ;;  %v10274_v60 = vsel %vm220_vm0, %v241_v29, %v242_v35  ;;  %v10277_v50 = vsel %vm220_vm0, 0.0, %v241_v29  ;;  %v10280_v17 = vsel %vm220_vm0, %v242_v35, 0.0  ;;  %18924 = vst [vmem:[#allocation33_spill] sm:$0xff] %v10285_v21 }
  0x1a   :  { %18922 = vst [vmem:[#allocation31_spill] sm:$0xff] %v10274_v60  ;;  %18923 = vst [vmem:[#allocation32_spill] sm:$0xff] %v10277_v50  ;;  %v10287_v57 = vpack.i.bf16 %v578_v59, %v576_v37  ;;  %v579_v15 = vrot.slane %v10277_v50, 1  ;;  %v580_v28 = vrot.slane %v10274_v60, 1  ;;  %v582_v16 = vrot.slane %v10280_v17, 1 }
  0x1b   :  { %v244_v29 = vrot.slane %v17941_v36, 7  ;;  %v245_v35 = vrot.slane %v17943_v38, 7  ;;  %v247_v56 = vrot.slane %v17944_v42, 7  ;;  %v248_v62 = vrot.slane %v17945_v45, 7 }
  0x1c   :  { %18925 = vst [vmem:[#allocation34_spill] sm:$0xff] %v10287_v57  ;;  %7542 = vrot.lane.b32.xlu0 %v10287_v57, %s10009_s30  ;;  %v581_v37 = vsel %vm543_vm1, %v579_v15, %v580_v28  ;;  %v583_v59 = vsel %vm543_vm1, %v580_v28, %v582_v16  ;;  %v17953_v19 = vunpack.c.l.bf16 %v10285_v21  ;;  %v17952_v36 = vunpack.c.h.bf16 %v10285_v21 }
  0x1d   :  { %v10306_v55 = vpack.i.bf16 %v583_v59, %v581_v37  ;;  %v10309_v38 = vsel %vm220_vm0, %v244_v29, %v245_v35  ;;  %v10312_v42 = vsel %vm220_vm0, 0.0, %v244_v29  ;;  %v10315_v45 = vsel %vm220_vm0, %v245_v35, 0.0  ;;  %v10326_v37 = vld [vmem:[%s17926_s0 + $0x50] sm:$0xff]  }
  0x1e   :  { %18927 = vst [vmem:[#allocation36_spill] sm:$0xff] %v10309_v38  ;;  %18928 = vst [vmem:[#allocation37_spill] sm:$0xff] %v10312_v42  ;;  %v584_v12 = vrot.slane %v10312_v42, 1  ;;  %v585_v15 = vrot.slane %v10309_v38, 1  ;;  %v587_v28 = vrot.slane %v10315_v45, 1  ;;  %v10321_v16 = vsel %vm220_vm0, %v247_v56, %v248_v62 }
  0x1f   :  { %18926 = vst [vmem:[#allocation35_spill] sm:$0xff] %v10306_v55  ;;  %18929 = vst [vmem:[#allocation38_spill] sm:$0xff] %v10321_v16  ;;  %7547 = vrot.lane.b32.xlu1 %v10306_v55, %s10009_s30  ;;  %v10331_v29 = vsel %vm220_vm0, 0.0, %v247_v56  ;;  %v10334_v35 = vsel %vm220_vm0, %v248_v62, 0.0  ;;  %v590_v59 = vrot.slane %v10321_v16, 1  ;;  %v250_v53 = vrot.slane %v17953_v19, 7 }
  0x20   :  { %18930 = vst [vmem:[#allocation39_spill] sm:$0xff] %v10326_v37  ;;  %18931 = vst [vmem:[#allocation40_spill] sm:$0xff] %v10331_v29  ;;  %v586_v8 = vsel %vm543_vm1, %v584_v12, %v585_v15  ;;  %v588_v6 = vsel %vm543_vm1, %v585_v15, %v587_v28  ;;  %v589_v7 = vrot.slane %v10331_v29, 1  ;;  %v592_v5 = vrot.slane %v10334_v35, 1  ;;  %v10354_v12 = vld [vmem:[%s17926_s0 + $0x58] sm:$0xff]  }
  0x21   :  { %v10343_v40 = vpack.i.bf16 %v588_v6, %v586_v8  ;;  %v251_v56 = vrot.slane %v17952_v36, 7  ;;  %v10348_v62 = vsel %vm220_vm0, 0.0, %v250_v53  ;;  %18934 = vst [vmem:[#allocation43_spill] sm:$0xff] %v10354_v12  ;;  %v10363_v36 = vld [vmem:[%s17926_s0 + $0x60] sm:$0xff]   ;;  %v18939_v21 = vunpack.c.h.bf16 %v10326_v37 }
  0x22   :  { %18933 = vst [vmem:[#allocation42_spill] sm:$0xff] %v10348_v62  ;;  %v591_v15 = vsel %vm543_vm1, %v589_v7, %v590_v59  ;;  %v593_v28 = vsel %vm543_vm1, %v590_v59, %v592_v5  ;;  %v594_v6 = vrot.slane %v10348_v62, 1  ;;  %18935 = vst [vmem:[#allocation44_spill] sm:$0xff] %v10363_v36  ;;  %v18938_v5 = vunpack.c.l.bf16 %v10326_v37  ;;  %v10401_v37 = vld [vmem:[%s17926_s0 + $0x68] sm:$0xff]  }
  0x23   :  { %18932 = vst [vmem:[#allocation41_spill] sm:$0xff] %v10343_v40  ;;  %7552 = vrot.lane.b32.xlu0 %v10343_v40, %s10009_s30  ;;  %v10367_v19 = vpack.i.bf16 %v593_v28, %v591_v15  ;;  %v10370_v27 = vsel %vm220_vm0, %v250_v53, %v251_v56  ;;  %v10373_v7 = vsel %vm220_vm0, %v251_v56, 0.0  ;;  %v254_v58 = vrot.slane %v18939_v21, 7  ;;  %18942 = vst [vmem:[#allocation49_spill] sm:$0xff] %v10401_v37 }
  0x24   :  { %18937 = vst [vmem:[#allocation46_spill] sm:$0xff] %v10370_v27  ;;  %v253_v59 = vrot.slane %v18938_v5, 7  ;;  %v595_v8 = vrot.slane %v10370_v27, 1  ;;  %v597_v0 = vrot.slane %v10373_v7, 1  ;;  %v18946_v49 = vunpack.c.l.bf16 %v10363_v36 }
  0x25   :  { %18936 = vst [vmem:[#allocation45_spill] sm:$0xff] %v10367_v19  ;;  %7557 = vrot.lane.b32.xlu1 %v10367_v19, %s10009_s30  ;;  %v10396_v51 = vsel %vm220_vm0, %v254_v58, 0.0  ;;  %v18947_v39 = vunpack.c.h.bf16 %v10363_v36  ;;  %v17993_v2 = vunpack.c.l.bf16 %v10401_v37  ;;  %vm2385_vm3 = vcmask 64512  }
  0x26   :  { %v10385_v53 = vsel %vm220_vm0, 0.0, %v253_v59  ;;  %v596_v5 = vsel %vm543_vm1, %v594_v6, %v595_v8  ;;  %v598_v44 = vsel %vm543_vm1, %v595_v8, %v597_v0  ;;  %v10393_v21 = vsel %vm220_vm0, %v253_v59, %v254_v58 }
  0x27   :  { %18940 = vst [vmem:[#allocation47_spill] sm:$0xff] %v10385_v53  ;;  %18941 = vst [vmem:[#allocation48_spill] sm:$0xff] %v10393_v21  ;;  %v10403_v56 = vpack.i.bf16 %v598_v44, %v596_v5  ;;  %v599_v15 = vrot.slane %v10385_v53, 1  ;;  %v600_v28 = vrot.slane %v10393_v21, 1  ;;  %v602_v6 = vrot.slane %v10396_v51, 1 }
  0x28   :  { %v18944_v0 = vunpack.c.l.bf16 %v10354_v12  ;;  %v18945_v59 = vunpack.c.h.bf16 %v10354_v12  ;;  %v259_v4 = vrot.slane %v18946_v49, 7  ;;  %v260_v3 = vrot.slane %v18947_v39, 7 }
  0x29   :  { %18943 = vst [vmem:[#allocation50_spill] sm:$0xff] %v10403_v56  ;;  %7562 = vrot.lane.b32.xlu0 %v10403_v56, %s10009_s30  ;;  %v601_v44 = vsel %vm543_vm1, %v599_v15, %v600_v28  ;;  %v603_v5 = vsel %vm543_vm1, %v600_v28, %v602_v6  ;;  %vm2448_vm4 = vcmask 130048   ;;  %vm3066_vm5 = vcmask 1043456  }
  0x2a   :  { %v256_v8 = vrot.slane %v18944_v0, 7  ;;  %v257_v58 = vrot.slane %v18945_v59, 7  ;;  %v10422_v24 = vpack.i.bf16 %v603_v5, %v601_v44  ;;  %v10437_v6 = vsel %vm220_vm0, %v259_v4, %v260_v3  ;;  %v10442_v44 = vld [vmem:[%s17926_s0 + $0x70] sm:$0xff]  }
  0x2b   :  { %18951 = vst [vmem:[#allocation54_spill] sm:$0xff] %v10437_v6  ;;  %18952 = vst [vmem:[#allocation55_spill] sm:$0xff] %v10442_v44  ;;  %v610_v5 = vrot.slane %v10437_v6, 1  ;;  %v262_v0 = vrot.slane %v17993_v2, 7  ;;  %v18963_v11 = vunpack.c.h.bf16 %v10442_v44  ;;  %vm2511_vm6 = vcmask 195584  }
  0x2c   :  { %18948 = vst [vmem:[#allocation51_spill] sm:$0xff] %v10422_v24  ;;  %v10425_v59 = vsel %vm220_vm0, %v256_v8, %v257_v58  ;;  %v10428_v49 = vsel %vm220_vm0, 0.0, %v256_v8  ;;  %v10431_v39 = vsel %vm220_vm0, %v257_v58, 0.0  ;;  %7567 = vrot.lane.b32.xlu1 %v10422_v24, %s10009_s30  ;;  %v10447_v8 = vsel %vm220_vm0, 0.0, %v259_v4 }
  0x2d   :  { %18949 = vst [vmem:[#allocation52_spill] sm:$0xff] %v10425_v59  ;;  %18950 = vst [vmem:[#allocation53_spill] sm:$0xff] %v10428_v49  ;;  %v604_v36 = vrot.slane %v10428_v49, 1  ;;  %v605_v15 = vrot.slane %v10425_v59, 1  ;;  %v607_v28 = vrot.slane %v10431_v39, 1  ;;  %v10450_v58 = vsel %vm220_vm0, %v260_v3, 0.0 }
  0x2e   :  { %18953 = vst [vmem:[#allocation56_spill] sm:$0xff] %v10447_v8  ;;  %v609_v19 = vrot.slane %v10447_v8, 1  ;;  %v612_v40 = vrot.slane %v10450_v58, 1  ;;  %v18955_v4 = vunpack.c.h.bf16 %v10401_v37  ;;  %v10464_v3 = vsel %vm220_vm0, 0.0, %v262_v0 }
  0x2f   :  { %v606_v12 = vsel %vm543_vm1, %v604_v36, %v605_v15  ;;  %v608_v56 = vsel %vm543_vm1, %v605_v15, %v607_v28  ;;  %18956 = vst [vmem:[#allocation58_spill] sm:$0xff] %v10464_v3  ;;  %v10470_v36 = vld [vmem:[%s17926_s0 + $0x80] sm:$0xff]   ;;  %v266_v52 = vrot.slane %v18963_v11, 7  ;;  %vm2576_vm7 = vcmask 261120  }
  0x30   :  { %v10459_v24 = vpack.i.bf16 %v608_v56, %v606_v12  ;;  %v263_v55 = vrot.slane %v18955_v4, 7  ;;  %18957 = vst [vmem:[#allocation59_spill] sm:$0xff] %v10470_v36  ;;  %v611_v15 = vsel %vm543_vm1, %v609_v19, %v610_v5  ;;  %v613_v28 = vsel %vm543_vm1, %v610_v5, %v612_v40  ;;  %v10479_v4 = vld [vmem:[%s17926_s0 + $0x88] sm:$0xff]  }
  0x31   :  { %v614_v12 = vrot.slane %v10464_v3, 1  ;;  %18958 = vst [vmem:[#allocation60_spill] sm:$0xff] %v10479_v4  ;;  %v10483_v2 = vpack.i.bf16 %v613_v28, %v611_v15  ;;  %v18962_v40 = vunpack.c.l.bf16 %v10442_v44  ;;  %v10517_v44 = vld [vmem:[%s17926_s0 + $0x90] sm:$0xff]   ;;  %v18972_v54 = vunpack.c.h.bf16 %v10479_v4 }
  0x32   :  { %18954 = vst [vmem:[#allocation57_spill] sm:$0xff] %v10459_v24  ;;  %7572 = vrot.lane.b32.xlu0 %v10459_v24, %s10009_s30  ;;  %v10486_v57 = vsel %vm220_vm0, %v262_v0, %v263_v55  ;;  %v10489_v19 = vsel %vm220_vm0, %v263_v55, 0.0  ;;  %v10512_v24 = vsel %vm220_vm0, %v266_v52, 0.0  ;;  %18967 = vst [vmem:[#allocation67_spill] sm:$0xff] %v10517_v44  ;;  %vm2641_vm8 = vcmask 326656  }
  0x33   :  { %18959 = vst [vmem:[#allocation61_spill] sm:$0xff] %v10483_v2  ;;  %18960 = vst [vmem:[#allocation62_spill] sm:$0xff] %v10486_v57  ;;  %v265_v5 = vrot.slane %v18962_v40, 7  ;;  %v615_v56 = vrot.slane %v10486_v57, 1  ;;  %v617_v37 = vrot.slane %v10489_v19, 1  ;;  %7577 = vrot.lane.b32.xlu1 %v10483_v2, %s10009_s30  ;;  %v18971_v2 = vunpack.c.l.bf16 %v10479_v4 }
  0x34   :  { %18961 = vst [vmem:[#allocation63_spill] sm:$0xff] %v10489_v19  ;;  %18966 = vst [vmem:[#allocation66_spill] sm:$0xff] %v10512_v24  ;;  %v275_v19 = vrot.slane %v18972_v54, 7  ;;  %vm2706_vm9 = vcmask 392192   ;;  %vm2771_vm10 = vcmask 457728   ;;  %vm2836_vm11 = vcmask 523264  }
  0x35   :  { %v10501_v0 = vsel %vm220_vm0, 0.0, %v265_v5  ;;  %v616_v40 = vsel %vm543_vm1, %v614_v12, %v615_v56  ;;  %v618_v63 = vsel %vm543_vm1, %v615_v56, %v617_v37  ;;  %v10509_v11 = vsel %vm220_vm0, %v265_v5, %v266_v52 }
  0x36   :  { %18964 = vst [vmem:[#allocation64_spill] sm:$0xff] %v10501_v0  ;;  %18965 = vst [vmem:[#allocation65_spill] sm:$0xff] %v10509_v11  ;;  %v10519_v55 = vpack.i.bf16 %v618_v63, %v616_v40  ;;  %v619_v15 = vrot.slane %v10501_v0, 1  ;;  %v620_v28 = vrot.slane %v10509_v11, 1  ;;  %v622_v12 = vrot.slane %v10512_v24, 1 }
  0x37   :  { %v18969_v37 = vunpack.c.l.bf16 %v10470_v36  ;;  %v18970_v5 = vunpack.c.h.bf16 %v10470_v36  ;;  %v274_v41 = vrot.slane %v18971_v2, 7  ;;  %v18026_v24 = vunpack.c.l.bf16 %v10517_v44 }
  0x38   :  { %18968 = vst [vmem:[#allocation68_spill] sm:$0xff] %v10519_v55  ;;  %7582 = vrot.lane.b32.xlu0 %v10519_v55, %s10009_s30  ;;  %v621_v63 = vsel %vm543_vm1, %v619_v15, %v620_v28  ;;  %v623_v40 = vsel %vm543_vm1, %v620_v28, %v622_v12  ;;  %vm2969_vm12 = vcmask 588800  }
  0x39   :  { %v271_v56 = vrot.slane %v18969_v37, 7  ;;  %v272_v52 = vrot.slane %v18970_v5, 7  ;;  %v10538_v11 = vpack.i.bf16 %v623_v40, %v621_v63  ;;  %v10553_v12 = vsel %vm220_vm0, %v274_v41, %v275_v19  ;;  %v10569_v37 = vld [vmem:[%s17926_s0 + $0x98] sm:$0xff]  }
  0x3a   :  { %18977 = vst [vmem:[#allocation73_spill] sm:$0xff] %v10553_v12  ;;  %v10558_v63 = vsel %vm220_vm0, 0.0, %v274_v41  ;;  %v277_v40 = vrot.slane %v18026_v24, 7  ;;  %18980 = vst [vmem:[#allocation76_spill] sm:$0xff] %v10569_v37 }
  0x3b   :  { %18973 = vst [vmem:[#allocation69_spill] sm:$0xff] %v10538_v11  ;;  %v10541_v5 = vsel %vm220_vm0, %v271_v56, %v272_v52  ;;  %v10544_v2 = vsel %vm220_vm0, 0.0, %v271_v56  ;;  %v10547_v54 = vsel %vm220_vm0, %v272_v52, 0.0  ;;  %7587 = vrot.lane.b32.xlu1 %v10538_v11, %s10009_s30  ;;  %18978 = vst [vmem:[#allocation74_spill] sm:$0xff] %v10558_v63  ;;  %v10561_v56 = vsel %vm220_vm0, %v275_v19, 0.0 }
  0x3c   :  { %18974 = vst [vmem:[#allocation70_spill] sm:$0xff] %v10541_v5  ;;  %18975 = vst [vmem:[#allocation71_spill] sm:$0xff] %v10544_v2  ;;  %v624_v36 = vrot.slane %v10544_v2, 1  ;;  %v625_v15 = vrot.slane %v10541_v5, 1  ;;  %v627_v28 = vrot.slane %v10547_v54, 1  ;;  %v630_v52 = vrot.slane %v10553_v12, 1 }
  0x3d   :  { %18976 = vst [vmem:[#allocation72_spill] sm:$0xff] %v10547_v54  ;;  %18979 = vst [vmem:[#allocation75_spill] sm:$0xff] %v10561_v56  ;;  %v629_v41 = vrot.slane %v10558_v63, 1  ;;  %v632_v55 = vrot.slane %v10561_v56, 1  ;;  %v18982_v12 = vunpack.c.h.bf16 %v10517_v44  ;;  %v10580_v24 = vsel %vm220_vm0, 0.0, %v277_v40  ;;  %v10585_v5 = vld [vmem:[%s17926_s0 + $0xa0] sm:$0xff]  }
  0x3e   :  { %v626_v4 = vsel %vm543_vm1, %v624_v36, %v625_v15  ;;  %v628_v11 = vsel %vm543_vm1, %v625_v15, %v627_v28  ;;  %18983 = vst [vmem:[#allocation78_spill] sm:$0xff] %v10580_v24  ;;  %18984 = vst [vmem:[#allocation79_spill] sm:$0xff] %v10585_v5  ;;  %v634_v28 = vrot.slane %v10580_v24, 1  ;;  %v18989_v24 = vunpack.c.l.bf16 %v10569_v37 }
  0x3f   :  { %v10575_v19 = vpack.i.bf16 %v628_v11, %v626_v4  ;;  %v278_v54 = vrot.slane %v18982_v12, 7  ;;  %v631_v36 = vsel %vm543_vm1, %v629_v41, %v630_v52  ;;  %v633_v15 = vsel %vm543_vm1, %v630_v52, %v632_v55  ;;  %v10594_v11 = vld [vmem:[%s17926_s0 + $0xa8] sm:$0xff]  }
  0x40   :  { %18985 = vst [vmem:[#allocation80_spill] sm:$0xff] %v10594_v11  ;;  %v10598_v12 = vpack.i.bf16 %v633_v15, %v631_v36  ;;  %v18040_v55 = vunpack.c.h.bf16 %v10569_v37  ;;  %v280_v56 = vrot.slane %v18989_v24, 7  ;;  %v18041_v63 = vunpack.c.l.bf16 %v10585_v5 }
  0x41   :  { %18981 = vst [vmem:[#allocation77_spill] sm:$0xff] %v10575_v19  ;;  %7592 = vrot.lane.b32.xlu0 %v10575_v19, %s10009_s30  ;;  %v10601_v44 = vsel %vm220_vm0, %v277_v40, %v278_v54  ;;  %v10604_v41 = vsel %vm220_vm0, %v278_v54, 0.0 }
  0x42   :  { %18986 = vst [vmem:[#allocation81_spill] sm:$0xff] %v10598_v12  ;;  %18987 = vst [vmem:[#allocation82_spill] sm:$0xff] %v10601_v44  ;;  %v635_v52 = vrot.slane %v10601_v44, 1  ;;  %v637_v4 = vrot.slane %v10604_v41, 1  ;;  %7597 = vrot.lane.b32.xlu1 %v10598_v12, %s10009_s30  ;;  %v281_v40 = vrot.slane %v18040_v55, 7  ;;  %v10622_v24 = vsel %vm220_vm0, 0.0, %v280_v56 }
  0x43   :  { %18988 = vst [vmem:[#allocation83_spill] sm:$0xff] %v10604_v41  ;;  %18990 = vst [vmem:[#allocation84_spill] sm:$0xff] %v10622_v24  ;;  %v283_v44 = vrot.slane %v18041_v63, 7  ;;  %v10629_v55 = vld [vmem:[%s17926_s0 + $0xb0] sm:$0xff]   ;;  %v18995_v63 = vunpack.c.h.bf16 %v10585_v5 }
  0x44   :  { %v636_v19 = vsel %vm543_vm1, %v634_v28, %v635_v52  ;;  %v638_v41 = vsel %vm543_vm1, %v635_v52, %v637_v4  ;;  %18991 = vst [vmem:[#allocation85_spill] sm:$0xff] %v10629_v55  ;;  %v10634_v36 = vsel %vm220_vm0, %v280_v56, %v281_v40  ;;  %v10637_v28 = vsel %vm220_vm0, %v281_v40, 0.0 }
  0x45   :  { %v10631_v54 = vpack.i.bf16 %v638_v41, %v636_v19  ;;  %18993 = vst [vmem:[#allocation87_spill] sm:$0xff] %v10634_v36  ;;  %18994 = vst [vmem:[#allocation88_spill] sm:$0xff] %v10637_v28  ;;  %v639_v4 = vrot.slane %v10622_v24, 1  ;;  %v640_v52 = vrot.slane %v10634_v36, 1  ;;  %v642_v15 = vrot.slane %v10637_v28, 1 }
  0x46   :  { %v284_v37 = vrot.slane %v18995_v63, 7  ;;  %v10645_v12 = vsel %vm220_vm0, 0.0, %v283_v44  ;;  %v18997_v19 = vunpack.c.l.bf16 %v10594_v11  ;;  %v18998_v40 = vunpack.c.h.bf16 %v10594_v11 }
  0x47   :  { %18992 = vst [vmem:[#allocation86_spill] sm:$0xff] %v10631_v54  ;;  %18996 = vst [vmem:[#allocation89_spill] sm:$0xff] %v10645_v12  ;;  %7602 = vrot.lane.b32.xlu0 %v10631_v54, %s10009_s30  ;;  %v644_v56 = vrot.slane %v10645_v12, 1  ;;  %v641_v28 = vsel %vm543_vm1, %v639_v4, %v640_v52  ;;  %v643_v63 = vsel %vm543_vm1, %v640_v52, %v642_v15  ;;  %v10673_v4 = vld [vmem:[%s17926_s0 + $0xb8] sm:$0xff]   ;;  %v10686_v52 = vld [vmem:[%s17926_s0 + $0xc0] sm:$0xff]  }
  0x48   :  { %v286_v41 = vrot.slane %v18997_v19, 7  ;;  %v287_v24 = vrot.slane %v18998_v40, 7  ;;  %v10658_v5 = vsel %vm220_vm0, %v283_v44, %v284_v37  ;;  %v10661_v2 = vsel %vm220_vm0, %v284_v37, 0.0  ;;  %19003 = vst [vmem:[#allocation94_spill] sm:$0xff] %v10673_v4  ;;  %19006 = vst [vmem:[#allocation97_spill] sm:$0xff] %v10686_v52 }
  0x49   :  { %18999 = vst [vmem:[#allocation90_spill] sm:$0xff] %v10658_v5  ;;  %19000 = vst [vmem:[#allocation91_spill] sm:$0xff] %v10661_v2  ;;  %v10663_v54 = vpack.i.bf16 %v643_v63, %v641_v28  ;;  %v645_v12 = vrot.slane %v10658_v5, 1  ;;  %v647_v19 = vrot.slane %v10661_v2, 1  ;;  %v19008_v28 = vunpack.c.l.bf16 %v10629_v55 }
  0x4a   :  { %v10668_v40 = vsel %vm220_vm0, %v286_v41, %v287_v24  ;;  %v10676_v44 = vsel %vm220_vm0, 0.0, %v286_v41  ;;  %v10679_v37 = vsel %vm220_vm0, %v287_v24, 0.0  ;;  %v19009_v2 = vunpack.c.h.bf16 %v10629_v55 }
  0x4b   :  { %19001 = vst [vmem:[#allocation92_spill] sm:$0xff] %v10663_v54  ;;  %19002 = vst [vmem:[#allocation93_spill] sm:$0xff] %v10668_v40  ;;  %v650_v15 = vrot.slane %v10668_v40, 1  ;;  %7607 = vrot.lane.b32.xlu1 %v10663_v54, %s10009_s30  ;;  %v646_v63 = vsel %vm543_vm1, %v644_v56, %v645_v12  ;;  %v648_v41 = vsel %vm543_vm1, %v645_v12, %v647_v19  ;;  %v649_v36 = vrot.slane %v10676_v44, 1 }
  0x4c   :  { %19004 = vst [vmem:[#allocation95_spill] sm:$0xff] %v10676_v44  ;;  %19005 = vst [vmem:[#allocation96_spill] sm:$0xff] %v10679_v37  ;;  %v652_v24 = vrot.slane %v10679_v37, 1  ;;  %v10694_v11 = vpack.i.bf16 %v648_v41, %v646_v63  ;;  %v289_v40 = vrot.slane %v19008_v28, 7  ;;  %v290_v5 = vrot.slane %v19009_v2, 7  ;;  %v10708_v63 = vld [vmem:[%s17926_s0 + $0xc8] sm:$0xff]  }
  0x4d   :  { %v18079_v0 = vunpack.c.l.bf16 %v10673_v4  ;;  %v651_v54 = vsel %vm543_vm1, %v649_v36, %v650_v15  ;;  %19010 = vst [vmem:[#allocation99_spill] sm:$0xff] %v10708_v63 }
  0x4e   :  { %19007 = vst [vmem:[#allocation98_spill] sm:$0xff] %v10694_v11  ;;  %v653_v56 = vsel %vm543_vm1, %v650_v15, %v652_v24  ;;  %7612 = vrot.lane.b32.xlu0 %v10694_v11, %s10009_s30  ;;  %v10715_v2 = vsel %vm220_vm0, %v289_v40, %v290_v5  ;;  %v10718_v36 = vsel %vm220_vm0, 0.0, %v289_v40  ;;  %v10721_v15 = vsel %vm220_vm0, %v290_v5, 0.0 }
  0x4f   :  { %v10712_v28 = vpack.i.bf16 %v653_v56, %v651_v54  ;;  %19012 = vst [vmem:[#allocation101_spill] sm:$0xff] %v10715_v2  ;;  %19013 = vst [vmem:[#allocation102_spill] sm:$0xff] %v10718_v36  ;;  %v654_v41 = vrot.slane %v10718_v36, 1  ;;  %v655_v24 = vrot.slane %v10715_v2, 1  ;;  %v657_v19 = vrot.slane %v10721_v15, 1 }
  0x50   :  { %19014 = vst [vmem:[#allocation103_spill] sm:$0xff] %v10721_v15  ;;  %v292_v12 = vrot.slane %v18079_v0, 7  ;;  %v19015_v54 = vunpack.c.h.bf16 %v10673_v4  ;;  %v19016_v5 = vunpack.c.l.bf16 %v10686_v52  ;;  %v19022_v0 = vunpack.c.h.bf16 %v10686_v52 }
  0x51   :  { %19011 = vst [vmem:[#allocation100_spill] sm:$0xff] %v10712_v28  ;;  %7617 = vrot.lane.b32.xlu1 %v10712_v28, %s10009_s30  ;;  %v656_v2 = vsel %vm543_vm1, %v654_v41, %v655_v24  ;;  %v658_v15 = vsel %vm543_vm1, %v655_v24, %v657_v19 }
  0x52   :  { %v293_v56 = vrot.slane %v19015_v54, 7  ;;  %v295_v55 = vrot.slane %v19016_v5, 7  ;;  %v10739_v36 = vsel %vm220_vm0, 0.0, %v292_v12  ;;  %v10745_v54 = vld [vmem:[%s17926_s0 + $0xd0] sm:$0xff]   ;;  %v10747_v40 = vpack.i.bf16 %v658_v15, %v656_v2 }
  0x53   :  { %19017 = vst [vmem:[#allocation104_spill] sm:$0xff] %v10739_v36  ;;  %19018 = vst [vmem:[#allocation105_spill] sm:$0xff] %v10745_v54  ;;  %v659_v19 = vrot.slane %v10739_v36, 1  ;;  %v296_v4 = vrot.slane %v19022_v0, 7  ;;  %v19024_v2 = vunpack.c.l.bf16 %v10708_v63 }
  0x54   :  { %19019 = vst [vmem:[#allocation106_spill] sm:$0xff] %v10747_v40  ;;  %v10750_v5 = vsel %vm220_vm0, %v292_v12, %v293_v56  ;;  %v10753_v11 = vsel %vm220_vm0, %v293_v56, 0.0  ;;  %v10761_v28 = vsel %vm220_vm0, 0.0, %v295_v55  ;;  %7622 = vrot.lane.b32.xlu0 %v10747_v40, %s10009_s30  ;;  %v19025_v56 = vunpack.c.h.bf16 %v10708_v63 }
  0x55   :  { %19020 = vst [vmem:[#allocation107_spill] sm:$0xff] %v10750_v5  ;;  %19021 = vst [vmem:[#allocation108_spill] sm:$0xff] %v10753_v11  ;;  %v660_v41 = vrot.slane %v10750_v5, 1  ;;  %v662_v24 = vrot.slane %v10753_v11, 1  ;;  %v664_v12 = vrot.slane %v10761_v28, 1  ;;  %v298_v15 = vrot.slane %v19024_v2, 7 }
  0x56   :  { %19023 = vst [vmem:[#allocation109_spill] sm:$0xff] %v10761_v28  ;;  %v299_v36 = vrot.slane %v19025_v56, 7  ;;  %v10774_v52 = vsel %vm220_vm0, %v295_v55, %v296_v4  ;;  %v10777_v37 = vsel %vm220_vm0, %v296_v4, 0.0 }
  0x57   :  { %v661_v11 = vsel %vm543_vm1, %v659_v19, %v660_v41  ;;  %v663_v0 = vsel %vm543_vm1, %v660_v41, %v662_v24  ;;  %19026 = vst [vmem:[#allocation110_spill] sm:$0xff] %v10774_v52  ;;  %19027 = vst [vmem:[#allocation111_spill] sm:$0xff] %v10777_v37  ;;  %v665_v28 = vrot.slane %v10774_v52, 1  ;;  %v667_v2 = vrot.slane %v10777_v37, 1  ;;  %v10789_v19 = vld [vmem:[%s17926_s0 + $0xd8] sm:$0xff]   ;;  %v10802_v24 = vld [vmem:[%s17926_s0 + $0xe0] sm:$0xff]  }
  0x58   :  { %v10779_v40 = vpack.i.bf16 %v663_v0, %v661_v11  ;;  %v10784_v56 = vsel %vm220_vm0, %v298_v15, %v299_v36  ;;  %19030 = vst [vmem:[#allocation114_spill] sm:$0xff] %v10789_v19  ;;  %v10792_v55 = vsel %vm220_vm0, 0.0, %v298_v15  ;;  %v10795_v4 = vsel %vm220_vm0, %v299_v36, 0.0  ;;  %19033 = vst [vmem:[#allocation117_spill] sm:$0xff] %v10802_v24 }
  0x59   :  { %19029 = vst [vmem:[#allocation113_spill] sm:$0xff] %v10784_v56  ;;  %19031 = vst [vmem:[#allocation115_spill] sm:$0xff] %v10792_v55  ;;  %v670_v11 = vrot.slane %v10784_v56, 1  ;;  %v666_v0 = vsel %vm543_vm1, %v664_v12, %v665_v28  ;;  %v668_v15 = vsel %vm543_vm1, %v665_v28, %v667_v2  ;;  %v669_v5 = vrot.slane %v10792_v55, 1 }
  0x5a   :  { %19028 = vst [vmem:[#allocation112_spill] sm:$0xff] %v10779_v40  ;;  %19032 = vst [vmem:[#allocation116_spill] sm:$0xff] %v10795_v4  ;;  %7627 = vrot.lane.b32.xlu1 %v10779_v40, %s10009_s30  ;;  %v672_v36 = vrot.slane %v10795_v4, 1  ;;  %v10810_v63 = vpack.i.bf16 %v668_v15, %v666_v0  ;;  %v19035_v41 = vunpack.c.l.bf16 %v10745_v54  ;;  %v19036_v37 = vunpack.c.h.bf16 %v10745_v54  ;;  %v10824_v0 = vld [vmem:[%s17926_s0 + $0xe8] sm:$0xff]  }
  0x5b   :  { %v18116_v44 = vunpack.c.l.bf16 %v10789_v19  ;;  %v671_v40 = vsel %vm543_vm1, %v669_v5, %v670_v11  ;;  %19037 = vst [vmem:[#allocation119_spill] sm:$0xff] %v10824_v0 }
  0x5c   :  { %19034 = vst [vmem:[#allocation118_spill] sm:$0xff] %v10810_v63  ;;  %v301_v56 = vrot.slane %v19035_v41, 7  ;;  %v302_v52 = vrot.slane %v19036_v37, 7  ;;  %v673_v12 = vsel %vm543_vm1, %v670_v11, %v672_v36  ;;  %7632 = vrot.lane.b32.xlu0 %v10810_v63, %s10009_s30  ;;  %v19049_v63 = vunpack.c.h.bf16 %v10802_v24 }
  0x5d   :  { %v10828_v41 = vpack.i.bf16 %v673_v12, %v671_v40  ;;  %v304_v28 = vrot.slane %v18116_v44, 7  ;;  %v19042_v40 = vunpack.c.h.bf16 %v10789_v19 }
  0x5e   :  { %v10831_v37 = vsel %vm220_vm0, %v301_v56, %v302_v52  ;;  %v10834_v5 = vsel %vm220_vm0, 0.0, %v301_v56  ;;  %v10837_v11 = vsel %vm220_vm0, %v302_v52, 0.0  ;;  %v19043_v52 = vunpack.c.l.bf16 %v10802_v24 }
  0x5f   :  { %19038 = vst [vmem:[#allocation120_spill] sm:$0xff] %v10828_v41  ;;  %19039 = vst [vmem:[#allocation121_spill] sm:$0xff] %v10831_v37  ;;  %v674_v15 = vrot.slane %v10834_v5, 1  ;;  %v675_v36 = vrot.slane %v10831_v37, 1  ;;  %v677_v2 = vrot.slane %v10837_v11, 1  ;;  %7637 = vrot.lane.b32.xlu1 %v10828_v41, %s10009_s30  ;;  %v305_v12 = vrot.slane %v19042_v40, 7 }
  0x60   :  { %19040 = vst [vmem:[#allocation122_spill] sm:$0xff] %v10834_v5  ;;  %19041 = vst [vmem:[#allocation123_spill] sm:$0xff] %v10837_v11  ;;  %v307_v54 = vrot.slane %v19043_v52, 7  ;;  %v10855_v5 = vsel %vm220_vm0, 0.0, %v304_v28  ;;  %v10861_v40 = vld [vmem:[%s17926_s0 + $0xf0] sm:$0xff]   ;;  %v308_v19 = vrot.slane %v19049_v63, 7 }
  0x61   :  { %v676_v37 = vsel %vm543_vm1, %v674_v15, %v675_v36  ;;  %v678_v11 = vsel %vm543_vm1, %v675_v36, %v677_v2  ;;  %19044 = vst [vmem:[#allocation124_spill] sm:$0xff] %v10855_v5  ;;  %19045 = vst [vmem:[#allocation125_spill] sm:$0xff] %v10861_v40  ;;  %v10866_v52 = vsel %vm220_vm0, %v304_v28, %v305_v12  ;;  %v10869_v15 = vsel %vm220_vm0, %v305_v12, 0.0 }
  0x62   :  { %v10863_v56 = vpack.i.bf16 %v678_v11, %v676_v37  ;;  %19047 = vst [vmem:[#allocation127_spill] sm:$0xff] %v10866_v52  ;;  %19048 = vst [vmem:[#allocation128_spill] sm:$0xff] %v10869_v15  ;;  %v679_v2 = vrot.slane %v10855_v5, 1  ;;  %v680_v36 = vrot.slane %v10866_v52, 1  ;;  %v682_v44 = vrot.slane %v10869_v15, 1 }
  0x63   :  { %v10877_v41 = vsel %vm220_vm0, 0.0, %v307_v54  ;;  %v19051_v37 = vunpack.c.l.bf16 %v10824_v0  ;;  %v19052_v12 = vunpack.c.h.bf16 %v10824_v0  ;;  %v10890_v24 = vsel %vm220_vm0, %v307_v54, %v308_v19 }
  0x64   :  { %19046 = vst [vmem:[#allocation126_spill] sm:$0xff] %v10863_v56  ;;  %19050 = vst [vmem:[#allocation129_spill] sm:$0xff] %v10877_v41  ;;  %7642 = vrot.lane.b32.xlu0 %v10863_v56, %s10009_s30  ;;  %v684_v28 = vrot.slane %v10877_v41, 1  ;;  %v681_v15 = vsel %vm543_vm1, %v679_v2, %v680_v36  ;;  %v683_v63 = vsel %vm543_vm1, %v680_v36, %v682_v44  ;;  %v10893_v4 = vsel %vm220_vm0, %v308_v19, 0.0 }
  0x65   :  { %v310_v11 = vrot.slane %v19051_v37, 7  ;;  %v311_v5 = vrot.slane %v19052_v12, 7  ;;  %19053 = vst [vmem:[#allocation130_spill] sm:$0xff] %v10890_v24  ;;  %19054 = vst [vmem:[#allocation131_spill] sm:$0xff] %v10893_v4  ;;  %v10895_v56 = vpack.i.bf16 %v683_v63, %v681_v15  ;;  %v685_v41 = vrot.slane %v10890_v24, 1 }
  0x66   :  { %v687_v37 = vrot.slane %v10893_v4, 1  ;;  %v18140_v19 = vunpack.c.h.bf16 %v10861_v40  ;;  %v886_v4 = vrot.slane %v10080_v9, 2 }
  0x67   :  { %19055 = vst [vmem:[#allocation132_spill] sm:$0xff] %v10895_v56  ;;  %v10900_v12 = vsel %vm220_vm0, %v310_v11, %v311_v5  ;;  %v10903_v52 = vsel %vm220_vm0, 0.0, %v310_v11  ;;  %v10906_v44 = vsel %vm220_vm0, %v311_v5, 0.0  ;;  %7647 = vrot.lane.b32.xlu1 %v10895_v56, %s10009_s30  ;;  %v686_v15 = vsel %vm543_vm1, %v684_v28, %v685_v41 }
  0x68   :  { %19056 = vst [vmem:[#allocation133_spill] sm:$0xff] %v10900_v12  ;;  %19057 = vst [vmem:[#allocation134_spill] sm:$0xff] %v10903_v52  ;;  %v690_v54 = vrot.slane %v10900_v12, 1  ;;  %v688_v2 = vsel %vm543_vm1, %v685_v41, %v687_v37  ;;  %v689_v36 = vrot.slane %v10903_v52, 1  ;;  %v692_v63 = vrot.slane %v10906_v44, 1 }
  0x69   :  { %v10916_v11 = vpack.i.bf16 %v688_v2, %v686_v15  ;;  %v19059_v5 = vunpack.c.l.bf16 %v10861_v40  ;;  %v314_v12 = vrot.slane %v18140_v19, 7  ;;  %v887_v41 = vrot.slane %v10057_v1, 2 }
  0x6a   :  { %v691_v56 = vsel %vm543_vm1, %v689_v36, %v690_v54  ;;  %v693_v28 = vsel %vm543_vm1, %v690_v54, %v692_v63  ;;  %v891_v37 = vrot.slane %v10124_v32, 2  ;;  %v896_v1 = vrot.slane %v10102_v22, 2 }
  0x6b   :  { %19058 = vst [vmem:[#allocation135_spill] sm:$0xff] %v10916_v11  ;;  %v313_v0 = vrot.slane %v19059_v5, 7  ;;  %7652 = vrot.lane.b32.xlu0 %v10916_v11, %s10009_s30  ;;  %v10929_v15 = vpack.i.bf16 %v693_v28, %v691_v56  ;;  %v10938_v19 = vsel %vm220_vm0, %v314_v12, 0.0  ;;  %v888_v40 = vsel %vm885_vm2, %v886_v4, %v887_v41 }
  0x6c   :  { %v697_v63 = vrot.slane %v10938_v19, 1  ;;  %v19063_v56 = vrot.slane %v10084_v10, 2  ;;  %v902_v22 = vrot.slane %v10145_v43, 2 }
  0x6d   :  { %19060 = vst [vmem:[#allocation136_spill] sm:$0xff] %v10929_v15  ;;  %v10932_v2 = vsel %vm220_vm0, %v313_v0, %v314_v12  ;;  %v10935_v5 = vsel %vm220_vm0, 0.0, %v313_v0  ;;  %7657 = vrot.lane.b32.xlu1 %v10929_v15, %s10009_s30  ;;  %v892_v0 = vrot.slane %v10121_v31, 2  ;;  %v894_v12 = vrot.slane %v10127_v33, 2 }
  0x6e   :  { %19061 = vst [vmem:[#allocation137_spill] sm:$0xff] %v10932_v2  ;;  %19062 = vst [vmem:[#allocation138_spill] sm:$0xff] %v10935_v5  ;;  %v694_v54 = vrot.slane %v10935_v5, 1  ;;  %v695_v36 = vrot.slane %v10932_v2, 1  ;;  %v890_v28 = vsel %vm885_vm2, %v887_v41, %v19063_v56  ;;  %v897_v41 = vrot.slane %v10109_v25, 2 }
  0x6f   :  { %v10954_v32 = vpack.i.bf16 %v890_v28, %v888_v40  ;;  %v893_v15 = vsel %vm885_vm2, %v891_v37, %v892_v0  ;;  %v895_v10 = vsel %vm885_vm2, %v892_v0, %v894_v12  ;;  %v901_v33 = vrot.slane %v10154_v46, 2 }
  0x70   :  { %v696_v9 = vsel %vm543_vm1, %v694_v54, %v695_v36  ;;  %v698_v11 = vsel %vm543_vm1, %v695_v36, %v697_v63  ;;  %v10961_v56 = vpack.i.bf16 %v895_v10, %v893_v15  ;;  %v19067_v40 = vrot.slane %v10112_v26, 2 }
  0x71   :  { %19064 = vst [vmem:[#allocation139_spill] sm:$0xff] %v10954_v32  ;;  %v10956_v4 = vpack.i.bf16 %v698_v11, %v696_v9  ;;  %7667 = vrot.lane.b32.xlu1 %v10954_v32, %s10010_s18  ;;  %v898_v9 = vsel %vm885_vm2, %v896_v1, %v897_v41  ;;  %v904_v37 = vrot.slane %v10157_v47, 2  ;;  %v906_v15 = vrot.slane %v10197_v14, 2  ;;  %v19081_v32 = vld [vmem:[#allocation65_spill] sm:$0xff] }
  0x72   :  { %19066 = vst [vmem:[#allocation141_spill] sm:$0xff] %v10961_v56  ;;  %v900_v11 = vsel %vm885_vm2, %v897_v41, %v19067_v40  ;;  %v903_v36 = vsel %vm885_vm2, %v901_v33, %v902_v22  ;;  %v907_v63 = vrot.slane %v10206_v18, 2  ;;  %v909_v28 = vrot.slane %v10209_v20, 2 }
  0x73   :  { %19065 = vst [vmem:[#allocation140_spill] sm:$0xff] %v10956_v4  ;;  %7662 = vrot.lane.b32.xlu0 %v10956_v4, %s10009_s30  ;;  %v10975_v54 = vpack.i.bf16 %v900_v11, %v898_v9  ;;  %v905_v0 = vsel %vm885_vm2, %v902_v22, %v904_v37  ;;  %v911_v1 = vrot.slane %v10218_v30, 2  ;;  %v912_v26 = vrot.slane %v10213_v23, 2  ;;  %v19088_v4 = vld [vmem:[#allocation73_spill] sm:$0xff] }
  0x74   :  { %v914_v12 = vrot.slane %v10221_v34, 2  ;;  %v10984_v10 = vpack.i.bf16 %v905_v0, %v903_v36  ;;  %v908_v47 = vsel %vm885_vm2, %v906_v15, %v907_v63  ;;  %v910_v41 = vsel %vm885_vm2, %v907_v63, %v909_v28 }
  0x75   :  { %19068 = vst [vmem:[#allocation142_spill] sm:$0xff] %v10975_v54  ;;  %v916_v33 = vrot.slane %v10231_v48, 2  ;;  %7677 = vrot.lane.b32.xlu1 %v10975_v54, %s10010_s18  ;;  %v10993_v22 = vpack.i.bf16 %v910_v41, %v908_v47  ;;  %v913_v20 = vsel %vm885_vm2, %v911_v1, %v912_v26  ;;  %v917_v9 = vrot.slane %v10244_v61, 2 }
  0x76   :  { %19069 = vst [vmem:[#allocation143_spill] sm:$0xff] %v10984_v10  ;;  %v915_v34 = vsel %vm885_vm2, %v912_v26, %v914_v12  ;;  %v919_v11 = vrot.slane %v10254_v13, 2  ;;  %v921_v37 = vrot.slane %v10277_v50, 2  ;;  %v922_v15 = vrot.slane %v10274_v60, 2 }
  0x77   :  { %7672 = vrot.lane.b32.xlu0 %v10961_v56, %s10010_s18  ;;  %19070 = vst [vmem:[#allocation144_spill] sm:$0xff] %v10993_v22  ;;  %v10998_v40 = vpack.i.bf16 %v915_v34, %v913_v20  ;;  %v918_v36 = vsel %vm885_vm2, %v916_v33, %v917_v9  ;;  %v924_v63 = vrot.slane %v10280_v17, 2  ;;  %v926_v28 = vrot.slane %v10312_v42, 2 }
  0x78   :  { %v927_v0 = vrot.slane %v10309_v38, 2  ;;  %v920_v1 = vsel %vm885_vm2, %v917_v9, %v919_v11  ;;  %v923_v26 = vsel %vm885_vm2, %v921_v37, %v922_v15  ;;  %v929_v12 = vrot.slane %v10315_v45, 2 }
  0x79   :  { %19071 = vst [vmem:[#allocation145_spill] sm:$0xff] %v10998_v40  ;;  %v931_v13 = vrot.slane %v10331_v29, 2  ;;  %7687 = vrot.lane.b32.xlu1 %v10993_v22, %s10010_s18  ;;  %v11015_v47 = vpack.i.bf16 %v920_v1, %v918_v36  ;;  %v925_v17 = vsel %vm885_vm2, %v922_v15, %v924_v63  ;;  %v932_v33 = vrot.slane %v10321_v16, 2  ;;  %v19084_v22 = vld [vmem:[#allocation72_spill] sm:$0xff] }
  0x7a   :  { %v928_v41 = vsel %vm885_vm2, %v926_v28, %v927_v0  ;;  %v930_v20 = vsel %vm885_vm2, %v927_v0, %v929_v12  ;;  %v934_v45 = vrot.slane %v10334_v35, 2  ;;  %v936_v34 = vrot.slane %v10348_v62, 2 }
  0x7b   :  { %7682 = vrot.lane.b32.xlu0 %v10984_v10, %s10010_s18  ;;  %19072 = vst [vmem:[#allocation146_spill] sm:$0xff] %v11015_v47  ;;  %v11023_v9 = vpack.i.bf16 %v925_v17, %v923_v26  ;;  %v11025_v11 = vpack.i.bf16 %v930_v20, %v928_v41  ;;  %v937_v37 = vrot.slane %v10370_v27, 2  ;;  %v939_v36 = vrot.slane %v10373_v7, 2 }
  0x7c   :  { %v933_v15 = vsel %vm885_vm2, %v931_v13, %v932_v33  ;;  %v941_v63 = vrot.slane %v10385_v53, 2  ;;  %v942_v28 = vrot.slane %v10393_v21, 2  ;;  %v944_v0 = vrot.slane %v10396_v51, 2 }
  0x7d   :  { %19073 = vst [vmem:[#allocation147_spill] sm:$0xff] %v11023_v9  ;;  %19074 = vst [vmem:[#allocation148_spill] sm:$0xff] %v11025_v11  ;;  %7697 = vrot.lane.b32.xlu1 %v11015_v47, %s10010_s18  ;;  %v935_v35 = vsel %vm885_vm2, %v932_v33, %v934_v45  ;;  %v938_v1 = vsel %vm885_vm2, %v936_v34, %v937_v37  ;;  %v940_v7 = vsel %vm885_vm2, %v937_v37, %v939_v36 }
  0x7e   :  { %v946_v26 = vrot.slane %v10428_v49, 2  ;;  %v947_v12 = vrot.slane %v10425_v59, 2  ;;  %v949_v13 = vrot.slane %v10431_v39, 2  ;;  %v11043_v17 = vpack.i.bf16 %v935_v35, %v933_v15  ;;  %v19079_v35 = vld [vmem:[#allocation64_spill] sm:$0xff] }
  0x7f   :  { %7692 = vrot.lane.b32.xlu0 %v10998_v40, %s10010_s18  ;;  %v11045_v51 = vpack.i.bf16 %v940_v7, %v938_v1  ;;  %v943_v41 = vsel %vm885_vm2, %v941_v63, %v942_v28  ;;  %v945_v20 = vsel %vm885_vm2, %v942_v28, %v944_v0  ;;  %v951_v45 = vrot.slane %v10447_v8, 2  ;;  %v19077_v63 = vld [vmem:[#allocation63_spill] sm:$0xff]  ;;  %v19083_v40 = vld [vmem:[#allocation70_spill] sm:$0xff] }
  0x80   :  { %19075 = vst [vmem:[#allocation149_spill] sm:$0xff] %v11043_v17  ;;  %v948_v33 = vsel %vm885_vm2, %v946_v26, %v947_v12  ;;  %v952_v39 = vrot.slane %v10437_v6, 2  ;;  %v954_v34 = vrot.slane %v10450_v58, 2  ;;  %v950_v37 = vsel %vm885_vm2, %v947_v12, %v949_v13  ;;  %v19080_v7 = vld [vmem:[#allocation71_spill] sm:$0xff] }
  0x81   :  { %19076 = vst [vmem:[#allocation150_spill] sm:$0xff] %v11045_v51  ;;  %7707 = vrot.lane.b32.xlu1 %v11025_v11, %s10010_s18  ;;  %v956_v36 = vrot.slane %v10464_v3, 2  ;;  %v957_v15 = vrot.slane %v10486_v57, 2  ;;  %v959_v28 = vrot.slane %v19077_v63, 2  ;;  %v11061_v0 = vpack.i.bf16 %v945_v20, %v943_v41 }
  0x82   :  { %v961_v1 = vrot.slane %v19079_v35, 2  ;;  %v966_v26 = vrot.slane %v19080_v7, 2  ;;  %v962_v11 = vrot.slane %v19081_v32, 2  ;;  %v967_v58 = vrot.slane %v19083_v40, 2  ;;  %v19119_v40 = vld [vmem:[#allocation111_spill] sm:$0xff] }
  0x83   :  { %7702 = vrot.lane.b32.xlu0 %v11023_v9, %s10010_s18  ;;  %19078 = vst [vmem:[#allocation63_spill] sm:$0xff] %v11061_v0  ;;  %v19082_v9 = vld [vmem:[#allocation66_spill] sm:$0xff]  ;;  %v969_v12 = vrot.slane %v19084_v22, 2  ;;  %v11073_v13 = vpack.i.bf16 %v950_v37, %v948_v33  ;;  %v953_v41 = vsel %vm885_vm2, %v951_v45, %v952_v39  ;;  %v955_v20 = vsel %vm885_vm2, %v952_v39, %v954_v34  ;;  %v19090_v34 = vld [vmem:[#allocation75_spill] sm:$0xff] }
  0x84   :  { %v964_v47 = vrot.slane %v19082_v9, 2  ;;  %v958_v63 = vsel %vm885_vm2, %v956_v36, %v957_v15  ;;  %v960_v9 = vsel %vm885_vm2, %v957_v15, %v959_v28  ;;  %v968_v10 = vsel %vm885_vm2, %v966_v26, %v967_v58  ;;  %v19092_v36 = vld [vmem:[#allocation78_spill] sm:$0xff] }
  0x85   :  { %7717 = vrot.lane.b32.xlu1 %v11045_v51, %s10010_s18  ;;  %19085 = vst [vmem:[#allocation66_spill] sm:$0xff] %v11073_v13  ;;  %v970_v22 = vsel %vm885_vm2, %v967_v58, %v969_v12  ;;  %v972_v51 = vrot.slane %v19088_v4, 2  ;;  %v11085_v33 = vpack.i.bf16 %v955_v20, %v953_v41  ;;  %v963_v45 = vsel %vm885_vm2, %v961_v1, %v962_v11  ;;  %v19093_v28 = vld [vmem:[#allocation82_spill] sm:$0xff]  ;;  %v19094_v58 = vld [vmem:[#allocation83_spill] sm:$0xff]  ;;  %v11099_v41 = vpop.permute.xlu0 %7512  ;;  %v19097_v20 = vld [vmem:[#allocation84_spill] sm:$0xff] }
  0x86   :  { %v11081_v54 = vpack.i.bf16 %v970_v22, %v968_v10  ;;  %v965_v39 = vsel %vm885_vm2, %v962_v11, %v964_v47  ;;  %v974_v37 = vrot.slane %v19090_v34, 2  ;;  %v11094_v10 = vpack.i.bf16 %v960_v9, %v958_v63  ;;  %19095 = vst [vmem:[#allocation83_spill] sm:$0xff] %v11099_v41  ;;  %v19098_v34 = vld [vmem:[#allocation87_spill] sm:$0xff]  ;;  %v19099_v63 = vld [vmem:[#allocation88_spill] sm:$0xff] }
  0x87   :  { %7712 = vrot.lane.b32.xlu0 %v11043_v17, %s10010_s18  ;;  %v19087_v17 = vld [vmem:[#allocation74_spill] sm:$0xff]  ;;  %19089 = vst [vmem:[#allocation151_spill] sm:$0xff] %v11085_v33  ;;  %v976_v15 = vrot.slane %v19092_v36, 2  ;;  %v977_v26 = vrot.slane %v19093_v28, 2  ;;  %v979_v12 = vrot.slane %v19094_v58, 2  ;;  %v11101_v1 = vpack.i.bf16 %v965_v39, %v963_v45  ;;  %v19101_v39 = vld [vmem:[#allocation89_spill] sm:$0xff] }
  0x88   :  { %19086 = vst [vmem:[#allocation72_spill] sm:$0xff] %v11081_v54  ;;  %v971_v56 = vrot.slane %v19087_v17, 2  ;;  %19091 = vst [vmem:[#allocation75_spill] sm:$0xff] %v11094_v10  ;;  %v975_v11 = vsel %vm885_vm2, %v972_v51, %v974_v37  ;;  %v981_v22 = vrot.slane %v19097_v20, 2  ;;  %v984_v9 = vrot.slane %v19099_v63, 2  ;;  %v19102_v37 = vld [vmem:[#allocation90_spill] sm:$0xff] }
  0x89   :  { %7727 = vrot.lane.b32.xlu1 %v11073_v13, %s10010_s18  ;;  %19096 = vst [vmem:[#allocation152_spill] sm:$0xff] %v11101_v1  ;;  %v982_v13 = vrot.slane %v19098_v34, 2  ;;  %v978_v45 = vsel %vm885_vm2, %v976_v15, %v977_v26  ;;  %v987_v58 = vrot.slane %v19102_v37, 2  ;;  %v19103_v41 = vld [vmem:[#allocation91_spill] sm:$0xff]  ;;  %v19105_v28 = vld [vmem:[#allocation93_spill] sm:$0xff]  ;;  %v19106_v36 = vld [vmem:[#allocation96_spill] sm:$0xff] }
  0x8a   :  { %v973_v47 = vsel %vm885_vm2, %v971_v56, %v972_v51  ;;  %v980_v56 = vsel %vm885_vm2, %v977_v26, %v979_v12  ;;  %v986_v51 = vrot.slane %v19101_v39, 2  ;;  %v989_v34 = vrot.slane %v19103_v41, 2  ;;  %v19104_v20 = vld [vmem:[#allocation95_spill] sm:$0xff]  ;;  %v19110_v41 = vld [vmem:[#allocation102_spill] sm:$0xff]  ;;  %v19117_v39 = vld [vmem:[#allocation109_spill] sm:$0xff] }
  0x8b   :  { %7722 = vrot.lane.b32.xlu0 %v11061_v0, %s10010_s18  ;;  %v11108_v0 = vpop.permute.xlu1 %7522  ;;  %v991_v63 = vrot.slane %v19104_v20, 2  ;;  %v994_v4 = vrot.slane %v19106_v36, 2  ;;  %v11124_v17 = vpack.i.bf16 %v975_v11, %v973_v47  ;;  %v983_v15 = vsel %vm885_vm2, %v981_v22, %v982_v13  ;;  %v19111_v47 = vld [vmem:[#allocation101_spill] sm:$0xff]  ;;  %v19114_v20 = vld [vmem:[#allocation104_spill] sm:$0xff]  ;;  %v19115_v37 = vld [vmem:[#allocation107_spill] sm:$0xff] }
  0x8c   :  { %19100 = vst [vmem:[#allocation88_spill] sm:$0xff] %v11108_v0  ;;  %v992_v0 = vrot.slane %v19105_v28, 2  ;;  %v985_v26 = vsel %vm885_vm2, %v982_v13, %v984_v9  ;;  %v988_v12 = vsel %vm885_vm2, %v986_v51, %v987_v58  ;;  %v990_v36 = vsel %vm885_vm2, %v987_v58, %v989_v34  ;;  %v19116_v9 = vld [vmem:[#allocation108_spill] sm:$0xff]  ;;  %v19118_v58 = vld [vmem:[#allocation110_spill] sm:$0xff] }
  0x8d   :  { %7737 = vrot.lane.b32.xlu1 %v11094_v10, %s10010_s18  ;;  %19108 = vst [vmem:[#allocation96_spill] sm:$0xff] %v11124_v17  ;;  %v11126_v10 = vpack.i.bf16 %v980_v56, %v978_v45  ;;  %v997_v11 = vrot.slane %v19111_v47, 2  ;;  %v19112_v45 = vld [vmem:[#allocation103_spill] sm:$0xff]  ;;  %v1001_v22 = vrot.slane %v19114_v20, 2  ;;  %v1002_v13 = vrot.slane %v19115_v37, 2 }
  0x8e   :  { %v999_v56 = vrot.slane %v19112_v45, 2  ;;  %v1004_v51 = vrot.slane %v19116_v9, 2  ;;  %v1006_v34 = vrot.slane %v19117_v39, 2  ;;  %v1009_v47 = vrot.slane %v19119_v40, 2 }
  0x8f   :  { %7732 = vrot.lane.b32.xlu0 %v11085_v33, %s10010_s18  ;;  %v11122_v33 = vpop.permute.xlu0 %7517  ;;  %19109 = vst [vmem:[#allocation153_spill] sm:$0xff] %v11126_v10  ;;  %v11139_v28 = vpop.permute.xlu1 %7527  ;;  %v1003_v40 = vsel %vm885_vm2, %v1001_v22, %v1002_v13  ;;  %v19130_v22 = vld [vmem:[#allocation123_spill] sm:$0xff] }
  0x90   :  { %19107 = vst [vmem:[#allocation91_spill] sm:$0xff] %v11122_v33  ;;  %v996_v33 = vrot.slane %v19110_v41, 2  ;;  %19113 = vst [vmem:[#allocation103_spill] sm:$0xff] %v11139_v28  ;;  %v1007_v41 = vrot.slane %v19118_v58, 2  ;;  %v1000_v9 = vsel %vm885_vm2, %v997_v11, %v999_v56  ;;  %v1011_v58 = vrot.slane %v10792_v55, 2 }
  0x91   :  { %7747 = vrot.lane.b32.xlu1 %v11081_v54, %s10010_s18  ;;  %v995_v54 = vsel %vm885_vm2, %v992_v0, %v994_v4  ;;  %v11155_v4 = vpack.i.bf16 %v990_v36, %v988_v12  ;;  %v19125_v12 = vld [vmem:[#allocation116_spill] sm:$0xff] }
  0x92   :  { %v998_v45 = vsel %vm885_vm2, %v996_v33, %v997_v11  ;;  %v1014_v36 = vrot.slane %v19125_v12, 2  ;;  %v19128_v33 = vld [vmem:[#allocation122_spill] sm:$0xff]  ;;  %v19129_v11 = vld [vmem:[#allocation121_spill] sm:$0xff] }
  0x93   :  { %7742 = vrot.lane.b32.xlu0 %v11101_v1, %s10010_s18  ;;  %v993_v1 = vsel %vm885_vm2, %v991_v63, %v992_v0  ;;  %v11153_v63 = vpack.i.bf16 %v985_v26, %v983_v15  ;;  %19121 = vst [vmem:[#allocation111_spill] sm:$0xff] %v11155_v4  ;;  %v11157_v0 = vpop.permute.xlu0 %7532  ;;  %v1008_v15 = vsel %vm885_vm2, %v1006_v34, %v1007_v41  ;;  %v1017_v56 = vrot.slane %v19129_v11, 2 }
  0x94   :  { %19122 = vst [vmem:[#allocation154_spill] sm:$0xff] %v11157_v0  ;;  %v11161_v28 = vpack.i.bf16 %v995_v54, %v993_v1  ;;  %v1010_v26 = vsel %vm885_vm2, %v1007_v41, %v1009_v47  ;;  %v11170_v0 = vpop.permute.xlu1 %7537  ;;  %v11176_v54 = vpack.i.bf16 %v1000_v9, %v998_v45  ;;  %v1016_v1 = vrot.slane %v19128_v33, 2  ;;  %v19135_v45 = vld [vmem:[#allocation127_spill] sm:$0xff] }
  0x95   :  { %7757 = vrot.lane.b32.xlu1 %v11126_v10, %s10010_s18  ;;  %19120 = vst [vmem:[#allocation108_spill] sm:$0xff] %v11153_v63  ;;  %v1005_v10 = vsel %vm885_vm2, %v1002_v13, %v1004_v51  ;;  %19126 = vst [vmem:[#allocation116_spill] sm:$0xff] %v11170_v0  ;;  %v1019_v13 = vrot.slane %v19130_v22, 2  ;;  %v11183_v41 = vpack.i.bf16 %v1010_v26, %v1008_v15  ;;  %v19134_v0 = vld [vmem:[#allocation124_spill] sm:$0xff]  ;;  %v1022_v9 = vrot.slane %v19135_v45, 2  ;;  %v19138_v26 = vld [vmem:[#allocation131_spill] sm:$0xff] }
  0x96   :  { %19123 = vst [vmem:[#allocation155_spill] sm:$0xff] %v11161_v28  ;;  %19127 = vst [vmem:[#allocation156_spill] sm:$0xff] %v11176_v54  ;;  %v11181_v51 = vpack.i.bf16 %v1005_v10, %v1003_v40  ;;  %v1018_v10 = vsel %vm885_vm2, %v1016_v1, %v1017_v56  ;;  %v19137_v40 = vld [vmem:[#allocation129_spill] sm:$0xff] }
  0x97   :  { %7752 = vrot.lane.b32.xlu0 %v11124_v17, %s10010_s18  ;;  %v19124_v17 = vld [vmem:[#allocation113_spill] sm:$0xff]  ;;  %19132 = vst [vmem:[#allocation157_spill] sm:$0xff] %v11183_v41  ;;  %v11186_v34 = vpop.permute.xlu0 %7542  ;;  %v1026_v15 = vrot.slane %v19137_v40, 2 }
  0x98   :  { %v1012_v39 = vrot.slane %v19124_v17, 2  ;;  %19131 = vst [vmem:[#allocation123_spill] sm:$0xff] %v11181_v51  ;;  %19133 = vst [vmem:[#allocation158_spill] sm:$0xff] %v11186_v34  ;;  %v11201_v22 = vpop.permute.xlu1 %7547 }
  0x99   :  { %7767 = vrot.lane.b32.xlu1 %v11155_v4, %s10010_s18  ;;  %v1021_v4 = vrot.slane %v19134_v0, 2 }
  0x9a   :  { %v1013_v47 = vsel %vm885_vm2, %v1011_v58, %v1012_v39  ;;  %v1015_v12 = vsel %vm885_vm2, %v1012_v39, %v1014_v36  ;;  %v1020_v58 = vsel %vm885_vm2, %v1017_v56, %v1019_v13  ;;  %v1027_v39 = vrot.slane %v10890_v24, 2  ;;  %v19142_v13 = vld [vmem:[#allocation133_spill] sm:$0xff] }
  0x9b   :  { %7762 = vrot.lane.b32.xlu0 %v11153_v63, %s10010_s18  ;;  %v19136_v63 = vld [vmem:[#allocation128_spill] sm:$0xff]  ;;  %v1029_v36 = vrot.slane %v19138_v26, 2  ;;  %v11203_v34 = vpack.i.bf16 %v1015_v12, %v1013_v47  ;;  %v1031_v56 = vrot.slane %v10903_v52, 2  ;;  %v1032_v26 = vrot.slane %v19142_v13, 2  ;;  %v11217_v12 = vpop.permute.xlu0 %7552 }
  0x9c   :  { %v1024_v33 = vrot.slane %v19136_v63, 2  ;;  %19139 = vst [vmem:[#allocation128_spill] sm:$0xff] %v11201_v22  ;;  %v11205_v63 = vpack.i.bf16 %v1020_v58, %v1018_v10  ;;  %v1028_v1 = vsel %vm885_vm2, %v1026_v15, %v1027_v39  ;;  %v1034_v47 = vrot.slane %v10906_v44, 2  ;;  %19143 = vst [vmem:[#allocation160_spill] sm:$0xff] %v11217_v12  ;;  %v11223_v58 = vpop.permute.xlu1 %7557 }
  0x9d   :  { %7777 = vrot.lane.b32.xlu1 %v11176_v54, %s10010_s18  ;;  %19140 = vst [vmem:[#allocation131_spill] sm:$0xff] %v11203_v34  ;;  %v1039_v10 = vrot.slane %v10938_v19, 2  ;;  %19144 = vst [vmem:[#allocation161_spill] sm:$0xff] %v11223_v58  ;;  %v19174_v58 = vld [vmem:[#allocation87_spill] sm:$0xff] }
  0x9e   :  { %19141 = vst [vmem:[#allocation159_spill] sm:$0xff] %v11205_v63  ;;  %v1025_v54 = vsel %vm885_vm2, %v1022_v9, %v1024_v33  ;;  %v1036_v33 = vrot.slane %v10935_v5, 2 }
  0x9f   :  { %7772 = vrot.lane.b32.xlu0 %v11161_v28, %s10010_s18  ;;  %v1023_v28 = vsel %vm885_vm2, %v1021_v4, %v1022_v9  ;;  %v1030_v4 = vsel %vm885_vm2, %v1027_v39, %v1029_v36  ;;  %v1037_v9 = vrot.slane %v10932_v2, 2  ;;  %v1033_v39 = vsel %vm885_vm2, %v1031_v56, %v1032_v26  ;;  %v11237_v22 = vpop.permute.xlu0 %7562  ;;  %v19151_v56 = vld [vmem:[#allocation11_spill] sm:$0xff] }
  0xa0   :  { %v11229_v15 = vpack.i.bf16 %v1025_v54, %v1023_v28  ;;  %v11231_v44 = vpack.i.bf16 %v1030_v4, %v1028_v1  ;;  %v1035_v36 = vsel %vm885_vm2, %v1032_v26, %v1034_v47  ;;  %19147 = vst [vmem:[#allocation164_spill] sm:$0xff] %v11237_v22  ;;  %v11247_v1 = vpop.permute.xlu1 %7567  ;;  %v7821_v26 = vpack.i.bf16 %v10121_v31, %v19151_v56  ;;  %v19152_v47 = vld [vmem:[#allocation7_spill] sm:$0xff] }
  0xa1   :  { %7787 = vrot.lane.b32.xlu1 %v11183_v41, %s10010_s18  ;;  %v1038_v12 = vsel %vm885_vm2, %v1036_v33, %v1037_v9  ;;  %v1040_v19 = vsel %vm885_vm2, %v1037_v9, %v1039_v10  ;;  %v11243_v28 = vpack.i.bf16 %v1035_v36, %v1033_v39  ;;  %19150 = vst [vmem:[#allocation167_spill] sm:$0xff] %v11247_v1 }
  0xa2   :  { %19145 = vst [vmem:[#allocation162_spill] sm:$0xff] %v11229_v15  ;;  %19146 = vst [vmem:[#allocation163_spill] sm:$0xff] %v11231_v44  ;;  %v11245_v54 = vpack.i.bf16 %v1040_v19, %v1038_v12  ;;  %v11257_v4 = vpack.i.bf16 %v10109_v25, %v19152_v47  ;;  %v11268_v12 = vpack.i.bf16 %v10145_v43, %v10154_v46 }
  0xa3   :  { %7782 = vrot.lane.b32.xlu0 %v11181_v51, %s10010_s18  ;;  %19148 = vst [vmem:[#allocation165_spill] sm:$0xff] %v11243_v28  ;;  %v11272_v10 = vpack.i.bf16 %v10206_v18, %v10197_v14  ;;  %v11282_v36 = vpack.i.bf16 %v10213_v23, %v10218_v30  ;;  %v11286_v19 = vpack.i.bf16 %v10244_v61, %v10231_v48  ;;  %v19211_v30 = vld [vmem:[#allocation41_spill] sm:$0xff] }
  0xa4   :  { %19149 = vst [vmem:[#allocation166_spill] sm:$0xff] %v11245_v54  ;;  %v11259_v33 = vpop.permute.xlu0 %7572  ;;  %v19214_v14 = vld [vmem:[#allocation45_spill] sm:$0xff] }
  0xa5   :  { %7797 = vrot.lane.b32.xlu1 %v11205_v63, %s10010_s18  ;;  %19153 = vst [vmem:[#allocation168_spill] sm:$0xff] %v11259_v33  ;;  %v11261_v9 = vpop.permute.xlu1 %7577 }
  0xa6   :  { %19154 = vst [vmem:[#allocation169_spill] sm:$0xff] %v11261_v9  ;;  %v11300_v9 = vpack.i.bf16 %v10309_v38, %v10312_v42 }
  0xa7   :  { %7792 = vrot.lane.b32.xlu0 %v11203_v34, %s10010_s18 }
  0xa9   :  { %7807 = vrot.lane.b32.xlu1 %v11231_v44, %s10010_s18 }
  0xaa   :  { %v11274_v39 = vpop.permute.xlu0 %7582 }
  0xab   :  { %7802 = vrot.lane.b32.xlu0 %v11229_v15, %s10010_s18  ;;  %19155 = vst [vmem:[#allocation170_spill] sm:$0xff] %v11274_v39  ;;  %v11296_v39 = vpack.i.bf16 %v10274_v60, %v10277_v50  ;;  %v11317_v50 = vpack.i.bf16 %v10321_v16, %v10331_v29  ;;  %v19173_v60 = vld [vmem:[#allocation84_spill] sm:$0xff] }
  0xad   :  { %7817 = vrot.lane.b32.xlu1 %v11245_v54, %s10010_s18 }
  0xaf   :  { %7812 = vrot.lane.b32.xlu0 %v11243_v28, %s10010_s18 }
  0xb1   :  { %7827 = vrot.lane.b32.xlu1 %v11257_v4, %s10011_s19 }
  0xb3   :  { %7822 = vrot.lane.b32.xlu0 %v7821_v26, %s10011_s19  ;;  %v11288_v26 = vpop.permute.xlu1 %7587  ;;  %v11302_v33 = vpop.permute.xlu0 %7592 }
  0xb4   :  { %19156 = vst [vmem:[#allocation171_spill] sm:$0xff] %v11288_v26  ;;  %19157 = vst [vmem:[#allocation172_spill] sm:$0xff] %v11302_v33  ;;  %v11307_v26 = vld [vmem:[%s17926_s0 + $0x78] sm:$0xff]   ;;  %v11321_v33 = vpack.i.bf16 %v10370_v27, %v10348_v62  ;;  %v11337_v62 = vpack.i.bf16 %v10425_v59, %v10428_v49 }
  0xb5   :  { %7837 = vrot.lane.b32.xlu1 %v11272_v10, %s10011_s19  ;;  %19158 = vst [vmem:[#allocation173_spill] sm:$0xff] %v11307_v26  ;;  %v18227_v42 = vunpack.c.l.bf16 %v11307_v26 }
  0xb7   :  { %7832 = vrot.lane.b32.xlu0 %v11268_v12, %s10011_s19  ;;  %v11309_v1 = vpop.permute.xlu1 %7597  ;;  %v268_v38 = vrot.slane %v18227_v42, 7 }
  0xb8   :  { %19159 = vst [vmem:[#allocation174_spill] sm:$0xff] %v11309_v1  ;;  %v11333_v1 = vpack.i.bf16 %v10393_v21, %v10385_v53  ;;  %v11353_v53 = vpack.i.bf16 %v10437_v6, %v10447_v8  ;;  %v19167_v8 = vld [vmem:[#allocation74_spill] sm:$0xff]  ;;  %v19168_v6 = vld [vmem:[#allocation73_spill] sm:$0xff] }
  0xb9   :  { %7847 = vrot.lane.b32.xlu1 %v11286_v19, %s10011_s19  ;;  %v11325_v22 = vpop.permute.xlu0 %7602  ;;  %v11366_v42 = vsel %vm220_vm0, 0.0, %v268_v38  ;;  %v11392_v59 = vpack.i.bf16 %v19168_v6, %v19167_v8 }
  0xba   :  { %19160 = vst [vmem:[#allocation175_spill] sm:$0xff] %v11325_v22  ;;  %v19162_v22 = vunpack.c.h.bf16 %v11307_v26 }
  0xbb   :  { %7842 = vrot.lane.b32.xlu0 %v11282_v36, %s10011_s19 }
  0xbc   :  { %v11345_v29 = vrot.slane %v19162_v22, 7 }
  0xbd   :  { %7857 = vrot.lane.b32.xlu1 %v11300_v9, %s10011_s19  ;;  %v11339_v27 = vpop.permute.xlu1 %7607 }
  0xbe   :  { %19161 = vst [vmem:[#allocation176_spill] sm:$0xff] %v11339_v27  ;;  %v11357_v27 = vpack.i.bf16 %v10486_v57, %v10464_v3  ;;  %v11363_v22 = vsel %vm220_vm0, %v268_v38, %v11345_v29  ;;  %v11376_v3 = vpack.i.bf16 %v19081_v32, %v19079_v35  ;;  %v19166_v38 = vld [vmem:[#allocation70_spill] sm:$0xff] }
  0xbf   :  { %7852 = vrot.lane.b32.xlu0 %v11296_v39, %s10011_s19  ;;  %v19171_v32 = vld [vmem:[#allocation82_spill] sm:$0xff]  ;;  %v1424_v18 = vrot.slane %v11363_v22, 1 }
  0xc0   :  { %v11359_v49 = vpop.permute.xlu0 %7612 }
  0xc1   :  { %7867 = vrot.lane.b32.xlu1 %v11321_v33, %s10011_s19  ;;  %19163 = vst [vmem:[#allocation177_spill] sm:$0xff] %v11359_v49  ;;  %v11380_v49 = vpack.i.bf16 %v11363_v22, %v11366_v42 }
  0xc3   :  { %7862 = vrot.lane.b32.xlu0 %v11317_v50, %s10011_s19  ;;  %v11368_v26 = vpop.permute.xlu1 %7617 }
  0xc4   :  { %19164 = vst [vmem:[#allocation178_spill] sm:$0xff] %v11368_v26  ;;  %v7901_v26 = vpack.i.bf16 %v19166_v38, %v19080_v7  ;;  %v11407_v7 = vpack.i.bf16 %v19174_v58, %v19173_v60  ;;  %v19182_v60 = vld [vmem:[#allocation101_spill] sm:$0xff] }
  0xc5   :  { %7877 = vrot.lane.b32.xlu1 %v11337_v62, %s10011_s19 }
  0xc6   :  { %v11382_v57 = vpop.permute.xlu0 %7622 }
  0xc7   :  { %7872 = vrot.lane.b32.xlu0 %v11333_v1, %s10011_s19  ;;  %19165 = vst [vmem:[#allocation179_spill] sm:$0xff] %v11382_v57  ;;  %v19170_v57 = vld [vmem:[#allocation78_spill] sm:$0xff] }
  0xc8   :  { %v11401_v21 = vpack.i.bf16 %v19171_v32, %v19170_v57  ;;  %v19178_v57 = vld [vmem:[#allocation95_spill] sm:$0xff]  ;;  %v19179_v32 = vld [vmem:[#allocation93_spill] sm:$0xff] }
  0xc9   :  { %7887 = vrot.lane.b32.xlu1 %v11357_v27, %s10011_s19  ;;  %v11421_v6 = vpack.i.bf16 %v19179_v32, %v19178_v57 }
  0xcb   :  { %7882 = vrot.lane.b32.xlu0 %v11353_v53, %s10011_s19 }
  0xcc   :  { %v11394_v35 = vpop.permute.xlu1 %7627 }
  0xcd   :  { %7897 = vrot.lane.b32.xlu1 %v11380_v49, %s10011_s19  ;;  %19169 = vst [vmem:[#allocation180_spill] sm:$0xff] %v11394_v35  ;;  %v19177_v35 = vld [vmem:[#allocation90_spill] sm:$0xff] }
  0xce   :  { %v11403_v16 = vpop.permute.xlu0 %7632 }
  0xcf   :  { %7892 = vrot.lane.b32.xlu0 %v11376_v3, %s10011_s19  ;;  %19172 = vst [vmem:[#allocation181_spill] sm:$0xff] %v11403_v16 }
  0xd1   :  { %7907 = vrot.lane.b32.xlu1 %v11392_v59, %s10011_s19  ;;  %v11409_v38 = vpop.permute.xlu1 %7637 }
  0xd2   :  { %19175 = vst [vmem:[#allocation182_spill] sm:$0xff] %v11409_v38  ;;  %v19181_v38 = vld [vmem:[#allocation102_spill] sm:$0xff] }
  0xd3   :  { %7902 = vrot.lane.b32.xlu0 %v7901_v26, %s10011_s19  ;;  %v19176_v26 = vld [vmem:[#allocation89_spill] sm:$0xff]  ;;  %v11431_v58 = vpack.i.bf16 %v19182_v60, %v19181_v38  ;;  %v19187_v60 = vld [vmem:[#allocation110_spill] sm:$0xff] }
  0xd4   :  { %v11417_v8 = vpack.i.bf16 %v19177_v35, %v19176_v26  ;;  %v11435_v26 = vpack.i.bf16 %v19115_v37, %v19114_v20  ;;  %v19186_v38 = vld [vmem:[#allocation109_spill] sm:$0xff]  ;;  %v11456_v20 = vpack.i.bf16 %v19124_v17, %v10792_v55  ;;  %v11472_v55 = vpack.i.bf16 %v19135_v45, %v19134_v0  ;;  %v19203_v45 = vld [vmem:[#allocation27_spill] sm:$0xff] }
  0xd5   :  { %7917 = vrot.lane.b32.xlu1 %v11407_v7, %s10011_s19  ;;  %v11452_v32 = vpack.i.bf16 %v19187_v60, %v19186_v38  ;;  %v11490_v0 = vpack.i.bf16 %v10890_v24, %v19137_v40  ;;  %v19202_v24 = vld [vmem:[#allocation20_spill] sm:$0xff] }
  0xd6   :  { %v11423_v16 = vpop.permute.xlu0 %7642 }
  0xd7   :  { %7912 = vrot.lane.b32.xlu0 %v11401_v21, %s10011_s19  ;;  %19180 = vst [vmem:[#allocation183_spill] sm:$0xff] %v11423_v16  ;;  %v11442_v16 = vld [vmem:[%s17926_s0 + $0xf8] sm:$0xff]   ;;  %s10012_s0 = smov 32  }
  0xd8   :  { %19184 = vst [vmem:[#allocation185_spill] sm:$0xff] %v11442_v16  ;;  %v18260_v37 = vunpack.c.h.bf16 %v11442_v16 }
  0xd9   :  { %7927 = vrot.lane.b32.xlu1 %v11421_v6, %s10011_s19  ;;  %v11437_v35 = vpop.permute.xlu1 %7647 }
  0xda   :  { %19183 = vst [vmem:[#allocation184_spill] sm:$0xff] %v11437_v35  ;;  %v18259_v35 = vunpack.c.l.bf16 %v11442_v16 }
  0xdb   :  { %7922 = vrot.lane.b32.xlu0 %v11417_v8, %s10011_s19 }
  0xdc   :  { %v316_v17 = vrot.slane %v18259_v35, 7  ;;  %v11494_v35 = vpack.i.bf16 %v19142_v13, %v10903_v52  ;;  %v11513_v52 = vpack.i.bf16 %v10932_v2, %v10935_v5  ;;  %v19198_v5 = vld [vmem:[#allocation18_spill] sm:$0xff]  ;;  %v19199_v2 = vld [vmem:[#allocation13_spill] sm:$0xff] }
  0xdd   :  { %v11446_v57 = vpop.permute.xlu0 %7652  ;;  %7937 = vrot.lane.b32.xlu1 %v11435_v26, %s10011_s19 }
  0xde   :  { %19185 = vst [vmem:[#allocation186_spill] sm:$0xff] %v11446_v57  ;;  %v19189_v57 = vld [vmem:[#allocation122_spill] sm:$0xff]  ;;  %v11501_v16 = vsel %vm220_vm0, 0.0, %v316_v17 }
  0xdf   :  { %7932 = vrot.lane.b32.xlu0 %v11431_v58, %s10011_s19  ;;  %v11460_v48 = vpop.permute.xlu1 %7657  ;;  %v11468_v38 = vpack.i.bf16 %v19129_v11, %v19189_v57  ;;  %v19206_v57 = vld [vmem:[#allocation30_spill] sm:$0xff] }
  0xe0   :  { %19188 = vst [vmem:[#allocation187_spill] sm:$0xff] %v11460_v48  ;;  %v11478_v48 = vrot.slane %v18260_v37, 7 }
  0xe1   :  { %7947 = vrot.lane.b32.xlu1 %v11456_v20, %s10011_s19 }
  0xe2   :  { %v11498_v37 = vsel %vm220_vm0, %v316_v17, %v11478_v48 }
  0xe3   :  { %7942 = vrot.lane.b32.xlu0 %v11452_v32, %s10011_s19  ;;  %v11482_v61 = vpop.permute.xlu1 %7667  ;;  %v11517_v13 = vpack.i.bf16 %v11498_v37, %v11501_v16 }
  0xe4   :  { %19191 = vst [vmem:[#allocation189_spill] sm:$0xff] %v11482_v61 }
  0xe5   :  { %v11480_v60 = vpop.permute.xlu0 %7662  ;;  %7957 = vrot.lane.b32.xlu1 %v11472_v55, %s10011_s19 }
  0xe6   :  { %19190 = vst [vmem:[#allocation188_spill] sm:$0xff] %v11480_v60 }
  0xe7   :  { %7952 = vrot.lane.b32.xlu0 %v11468_v38, %s10011_s19  ;;  %v11505_v60 = vpop.permute.xlu1 %7677 }
  0xe8   :  { %19193 = vst [vmem:[#allocation191_spill] sm:$0xff] %v11505_v60 }
  0xe9   :  { %v11503_v61 = vpop.permute.xlu0 %7672  ;;  %7967 = vrot.lane.b32.xlu1 %v11494_v35, %s10011_s19 }
  0xea   :  { %19192 = vst [vmem:[#allocation190_spill] sm:$0xff] %v11503_v61 }
  0xeb   :  { %7962 = vrot.lane.b32.xlu0 %v11490_v0, %s10011_s19  ;;  %v11521_v40 = vpop.permute.xlu1 %7687 }
  0xec   :  { %19195 = vst [vmem:[#allocation193_spill] sm:$0xff] %v11521_v40 }
  0xed   :  { %v11519_v17 = vpop.permute.xlu0 %7682  ;;  %7977 = vrot.lane.b32.xlu1 %v11517_v13, %s10011_s19 }
  0xee   :  { %19194 = vst [vmem:[#allocation192_spill] sm:$0xff] %v11519_v17 }
  0xef   :  { %7972 = vrot.lane.b32.xlu0 %v11513_v52, %s10011_s19  ;;  %v11529_v61 = vpop.permute.xlu1 %7697 }
  0xf0   :  { %19197 = vst [vmem:[#allocation195_spill] sm:$0xff] %v11529_v61 }
  0xf1   :  { %v11527_v60 = vpop.permute.xlu0 %7692  ;;  %7987 = vrot.lane.b32.xlu1 %v19199_v2, %s10012_s0 }
  0xf2   :  { %19196 = vst [vmem:[#allocation194_spill] sm:$0xff] %v11527_v60 }
  0xf3   :  { %7982 = vrot.lane.b32.xlu0 %v19198_v5, %s10012_s0  ;;  %v11537_v40 = vpop.permute.xlu1 %7707  ;;  %v19207_v5 = vld [vmem:[#allocation34_spill] sm:$0xff] }
  0xf4   :  { %19201 = vst [vmem:[#allocation13_spill] sm:$0xff] %v11537_v40  ;;  %v19210_v40 = vld [vmem:[#allocation35_spill] sm:$0xff] }
  0xf5   :  { %v11535_v17 = vpop.permute.xlu0 %7702  ;;  %7997 = vrot.lane.b32.xlu1 %v19203_v45, %s10012_s0 }
  0xf6   :  { %19200 = vst [vmem:[#allocation18_spill] sm:$0xff] %v11535_v17 }
  0xf7   :  { %7992 = vrot.lane.b32.xlu0 %v19202_v24, %s10012_s0  ;;  %v11545_v61 = vpop.permute.xlu1 %7717 }
  0xf8   :  { %19205 = vst [vmem:[#allocation27_spill] sm:$0xff] %v11545_v61  ;;  %v11565_v61 = vsel %vm220_vm0, %v11345_v29, 0.0  ;;  %v19219_v29 = vld [vmem:[#allocation57_spill] sm:$0xff] }
  0xf9   :  { %v11543_v60 = vpop.permute.xlu0 %7712  ;;  %8007 = vrot.lane.b32.xlu1 %v19207_v5, %s10012_s0  ;;  %v1426_v46 = vrot.slane %v11565_v61, 1 }
  0xfa   :  { %19204 = vst [vmem:[#allocation20_spill] sm:$0xff] %v11543_v60 }
  0xfb   :  { %8002 = vrot.lane.b32.xlu0 %v19206_v57, %s10012_s0  ;;  %v11553_v17 = vpop.permute.xlu1 %7727  ;;  %v1427_v31 = vsel %vm543_vm1, %v1424_v18, %v1426_v46 }
  0xfc   :  { %19209 = vst [vmem:[#allocation34_spill] sm:$0xff] %v11553_v17  ;;  %v1423_v17 = vrot.slane %v11366_v42, 1 }
  0xfd   :  { %v11551_v11 = vpop.permute.xlu0 %7722  ;;  %8017 = vrot.lane.b32.xlu1 %v19211_v30, %s10012_s0 }
  0xfe   :  { %19208 = vst [vmem:[#allocation30_spill] sm:$0xff] %v11551_v11  ;;  %v19215_v11 = vld [vmem:[#allocation50_spill] sm:$0xff]  ;;  %v1425_v56 = vsel %vm543_vm1, %v1423_v17, %v1424_v18  ;;  %v19227_v17 = vld [vmem:[#allocation69_spill] sm:$0xff] }
  0xff   :  { %8012 = vrot.lane.b32.xlu0 %v19210_v40, %s10012_s0  ;;  %v11561_v60 = vpop.permute.xlu1 %7737 }
 0x100   :  { %19213 = vst [vmem:[#allocation41_spill] sm:$0xff] %v11561_v60  ;;  %v19218_v60 = vld [vmem:[#allocation51_spill] sm:$0xff] }
 0x101   :  { %v11559_v23 = vpop.permute.xlu0 %7732  ;;  %8027 = vrot.lane.b32.xlu1 %v19215_v11, %s10012_s0  ;;  %v19222_v11 = vld [vmem:[#allocation61_spill] sm:$0xff] }
 0x102   :  { %19212 = vst [vmem:[#allocation35_spill] sm:$0xff] %v11559_v23 }
 0x103   :  { %8022 = vrot.lane.b32.xlu0 %v19214_v14, %s10012_s0  ;;  %v11576_v23 = vpop.permute.xlu1 %7747 }
 0x104   :  { %19217 = vst [vmem:[#allocation197_spill] sm:$0xff] %v11576_v23  ;;  %v11592_v23 = vpack.i.bf16 %v1427_v31, %v1425_v56  ;;  %v19231_v31 = vld [vmem:[#allocation81_spill] sm:$0xff] }
 0x105   :  { %v11574_v43 = vpop.permute.xlu0 %7742  ;;  %8037 = vrot.lane.b32.xlu1 %v19219_v29, %s10012_s0 }
 0x106   :  { %19216 = vst [vmem:[#allocation196_spill] sm:$0xff] %v11574_v43  ;;  %v19223_v43 = vld [vmem:[#allocation68_spill] sm:$0xff]  ;;  %19224 = vst [vmem:[#allocation200_spill] sm:$0xff] %v11592_v23 }
 0x107   :  { %8032 = vrot.lane.b32.xlu0 %v19218_v60, %s10012_s0  ;;  %v11586_v25 = vpop.permute.xlu1 %7757 }
 0x108   :  { %19221 = vst [vmem:[#allocation199_spill] sm:$0xff] %v11586_v25  ;;  %v19230_v25 = vld [vmem:[#allocation77_spill] sm:$0xff] }
 0x109   :  { %v11584_v47 = vpop.permute.xlu0 %7752  ;;  %8047 = vrot.lane.b32.xlu1 %v19223_v43, %s10012_s0 }
 0x10a   :  { %19220 = vst [vmem:[#allocation198_spill] sm:$0xff] %v11584_v47  ;;  %v19235_v47 = vld [vmem:[#allocation92_spill] sm:$0xff] }
 0x10b   :  { %8042 = vrot.lane.b32.xlu0 %v19222_v11, %s10012_s0  ;;  %v11596_v14 = vpop.permute.xlu1 %7767  ;;  %v19254_v11 = vld [vmem:[#allocation135_spill] sm:$0xff] }
 0x10c   :  { %19226 = vst [vmem:[#allocation202_spill] sm:$0xff] %v11596_v14  ;;  %v19234_v14 = vld [vmem:[#allocation86_spill] sm:$0xff] }
 0x10d   :  { %v11594_v60 = vpop.permute.xlu0 %7762  ;;  %8057 = vrot.lane.b32.xlu1 %v11592_v23, %s10012_s0 }
 0x10e   :  { %19225 = vst [vmem:[#allocation201_spill] sm:$0xff] %v11594_v60 }
 0x10f   :  { %8052 = vrot.lane.b32.xlu0 %v19227_v17, %s10012_s0  ;;  %v11604_v18 = vpop.permute.xlu1 %7777 }
 0x110   :  { %19229 = vst [vmem:[#allocation204_spill] sm:$0xff] %v11604_v18  ;;  %v19238_v18 = vld [vmem:[#allocation98_spill] sm:$0xff] }
 0x111   :  { %v11602_v46 = vpop.permute.xlu0 %7772  ;;  %8067 = vrot.lane.b32.xlu1 %v19231_v31, %s10012_s0 }
 0x112   :  { %19228 = vst [vmem:[#allocation203_spill] sm:$0xff] %v11602_v46 }
 0x113   :  { %8062 = vrot.lane.b32.xlu0 %v19230_v25, %s10012_s0  ;;  %v11612_v60 = vpop.permute.xlu1 %7787  ;;  %v19239_v25 = vld [vmem:[#allocation100_spill] sm:$0xff] }
 0x114   :  { %19233 = vst [vmem:[#allocation205_spill] sm:$0xff] %v11612_v60  ;;  %v19242_v60 = vld [vmem:[#allocation106_spill] sm:$0xff] }
 0x115   :  { %v11610_v56 = vpop.permute.xlu0 %7782  ;;  %8077 = vrot.lane.b32.xlu1 %v19235_v47, %s10012_s0 }
 0x116   :  { %19232 = vst [vmem:[#allocation77_spill] sm:$0xff] %v11610_v56 }
 0x117   :  { %8072 = vrot.lane.b32.xlu0 %v19234_v14, %s10012_s0  ;;  %v11620_v46 = vpop.permute.xlu1 %7797  ;;  %v19243_v14 = vld [vmem:[#allocation112_spill] sm:$0xff] }
 0x118   :  { %19237 = vst [vmem:[#allocation207_spill] sm:$0xff] %v11620_v46  ;;  %v11640_v46 = vsel %vm220_vm0, %v11478_v48, 0.0  ;;  %v19251_v48 = vld [vmem:[#allocation132_spill] sm:$0xff] }
 0x119   :  { %v11618_v23 = vpop.permute.xlu0 %7792  ;;  %8087 = vrot.lane.b32.xlu1 %v19239_v25, %s10012_s0  ;;  %v19246_v25 = vld [vmem:[#allocation118_spill] sm:$0xff] }
 0x11a   :  { %19236 = vst [vmem:[#allocation206_spill] sm:$0xff] %v11618_v23 }
 0x11b   :  { %8082 = vrot.lane.b32.xlu0 %v19238_v18, %s10012_s0  ;;  %v11628_v56 = vpop.permute.xlu1 %7807 }
 0x11c   :  { %19241 = vst [vmem:[#allocation209_spill] sm:$0xff] %v11628_v56  ;;  %v1428_v56 = vrot.slane %v11501_v16, 1 }
 0x11d   :  { %v11626_v31 = vpop.permute.xlu0 %7802  ;;  %8097 = vrot.lane.b32.xlu1 %v19243_v14, %s10012_s0  ;;  %v1431_v14 = vrot.slane %v11640_v46, 1 }
 0x11e   :  { %19240 = vst [vmem:[#allocation208_spill] sm:$0xff] %v11626_v31  ;;  %v19247_v31 = vld [vmem:[#allocation120_spill] sm:$0xff] }
 0x11f   :  { %8092 = vrot.lane.b32.xlu0 %v19242_v60, %s10012_s0  ;;  %v11636_v23 = vpop.permute.xlu1 %7817  ;;  %v1429_v60 = vrot.slane %v11498_v37, 1 }
 0x120   :  { %19245 = vst [vmem:[#allocation211_spill] sm:$0xff] %v11636_v23  ;;  %v19250_v23 = vld [vmem:[#allocation126_spill] sm:$0xff] }
 0x121   :  { %v11634_v47 = vpop.permute.xlu0 %7812  ;;  %8107 = vrot.lane.b32.xlu1 %v19247_v31, %s10012_s0  ;;  %v1432_v31 = vsel %vm543_vm1, %v1429_v60, %v1431_v14 }
 0x122   :  { %19244 = vst [vmem:[#allocation210_spill] sm:$0xff] %v11634_v47 }
 0x123   :  { %8102 = vrot.lane.b32.xlu0 %v19246_v25, %s10012_s0  ;;  %v11651_v47 = vpop.permute.xlu1 %7827  ;;  %v1430_v25 = vsel %vm543_vm1, %v1428_v56, %v1429_v60  ;;  %v19259_v56 = vld [vmem:[#allocation140_spill] sm:$0xff] }
 0x124   :  { %19249 = vst [vmem:[#allocation213_spill] sm:$0xff] %v11651_v47  ;;  %v11667_v47 = vpack.i.bf16 %v1432_v31, %v1430_v25  ;;  %v19263_v31 = vld [vmem:[#allocation142_spill] sm:$0xff] }
 0x125   :  { %v11649_v18 = vpop.permute.xlu0 %7822  ;;  %8117 = vrot.lane.b32.xlu1 %v19251_v48, %s10012_s0 }
 0x126   :  { %19248 = vst [vmem:[#allocation212_spill] sm:$0xff] %v11649_v18  ;;  %v19255_v18 = vld [vmem:[#allocation136_spill] sm:$0xff]  ;;  %19256 = vst [vmem:[#allocation135_spill] sm:$0xff] %v11667_v47 }
 0x127   :  { %8112 = vrot.lane.b32.xlu0 %v19250_v23, %s10012_s0  ;;  %v11661_v43 = vpop.permute.xlu1 %7837 }
 0x128   :  { %19253 = vst [vmem:[#allocation214_spill] sm:$0xff] %v11661_v43  ;;  %v19262_v43 = vld [vmem:[#allocation141_spill] sm:$0xff] }
 0x129   :  { %v11659_v17 = vpop.permute.xlu0 %7832  ;;  %8127 = vrot.lane.b32.xlu1 %v19255_v18, %s10012_s0 }
 0x12a   :  { %19252 = vst [vmem:[#allocation132_spill] sm:$0xff] %v11659_v17  ;;  %v19267_v17 = vld [vmem:[#allocation144_spill] sm:$0xff] }
 0x12b   :  { %8122 = vrot.lane.b32.xlu0 %v19254_v11, %s10012_s0  ;;  %v11671_v29 = vpop.permute.xlu1 %7847 }
 0x12c   :  { %19258 = vst [vmem:[#allocation215_spill] sm:$0xff] %v11671_v29 }
 0x12d   :  { %v11669_v23 = vpop.permute.xlu0 %7842  ;;  %8137 = vrot.lane.b32.xlu1 %v11667_v47, %s10012_s0  ;;  %v19270_v47 = vld [vmem:[#allocation145_spill] sm:$0xff] }
 0x12e   :  { %19257 = vst [vmem:[#allocation136_spill] sm:$0xff] %v11669_v23  ;;  %v19266_v23 = vld [vmem:[#allocation143_spill] sm:$0xff] }
 0x12f   :  { %8132 = vrot.lane.b32.xlu0 %v19259_v56, %s10012_s0  ;;  %v11679_v60 = vpop.permute.xlu1 %7857 }
 0x130   :  { %19261 = vst [vmem:[#allocation217_spill] sm:$0xff] %v11679_v60 }
 0x131   :  { %v11677_v14 = vpop.permute.xlu0 %7852  ;;  %8147 = vrot.lane.b32.xlu1 %v19263_v31, %s10013_s24 }
 0x132   :  { %19260 = vst [vmem:[#allocation216_spill] sm:$0xff] %v11677_v14 }
 0x133   :  { %8142 = vrot.lane.b32.xlu0 %v19262_v43, %s10013_s24  ;;  %v11687_v29 = vpop.permute.xlu1 %7867  ;;  %v19271_v43 = vld [vmem:[#allocation146_spill] sm:$0xff] }
 0x134   :  { %19265 = vst [vmem:[#allocation218_spill] sm:$0xff] %v11687_v29  ;;  %v19274_v29 = vld [vmem:[#allocation147_spill] sm:$0xff] }
 0x135   :  { %v11685_v25 = vpop.permute.xlu0 %7862  ;;  %8157 = vrot.lane.b32.xlu1 %v19267_v17, %s10013_s24 }
 0x136   :  { %19264 = vst [vmem:[#allocation141_spill] sm:$0xff] %v11685_v25 }
 0x137   :  { %8152 = vrot.lane.b32.xlu0 %v19266_v23, %s10013_s24  ;;  %v11695_v60 = vpop.permute.xlu1 %7877  ;;  %v19275_v23 = vld [vmem:[#allocation148_spill] sm:$0xff] }
 0x138   :  { %19269 = vst [vmem:[#allocation220_spill] sm:$0xff] %v11695_v60  ;;  %v19278_v60 = vld [vmem:[#allocation149_spill] sm:$0xff] }
 0x139   :  { %v11693_v14 = vpop.permute.xlu0 %7872  ;;  %8167 = vrot.lane.b32.xlu1 %v19271_v43, %s10013_s24  ;;  %v1628_v43 = vrot.slane %v11565_v61, 2  ;;  %v19286_v61 = vld [vmem:[#allocation151_spill] sm:$0xff] }
 0x13a   :  { %19268 = vst [vmem:[#allocation219_spill] sm:$0xff] %v11693_v14 }
 0x13b   :  { %8162 = vrot.lane.b32.xlu0 %v19270_v47, %s10013_s24  ;;  %v11703_v25 = vpop.permute.xlu1 %7887  ;;  %v19279_v47 = vld [vmem:[#allocation150_spill] sm:$0xff] }
 0x13c   :  { %19273 = vst [vmem:[#allocation222_spill] sm:$0xff] %v11703_v25  ;;  %v1626_v25 = vrot.slane %v11363_v22, 2  ;;  %v19287_v22 = vld [vmem:[#allocation75_spill] sm:$0xff] }
 0x13d   :  { %v11701_v31 = vpop.permute.xlu0 %7882  ;;  %8177 = vrot.lane.b32.xlu1 %v19275_v23, %s10013_s24 }
 0x13e   :  { %19272 = vst [vmem:[#allocation221_spill] sm:$0xff] %v11701_v31  ;;  %v1625_v31 = vrot.slane %v11366_v42, 2 }
 0x13f   :  { %8172 = vrot.lane.b32.xlu0 %v19274_v29, %s10013_s24  ;;  %v11711_v14 = vpop.permute.xlu1 %7897 }
 0x140   :  { %19277 = vst [vmem:[#allocation224_spill] sm:$0xff] %v11711_v14  ;;  %v19283_v14 = vld [vmem:[#allocation66_spill] sm:$0xff] }
 0x141   :  { %v11709_v17 = vpop.permute.xlu0 %7892  ;;  %8187 = vrot.lane.b32.xlu1 %v19279_v47, %s10013_s24  ;;  %v1629_v47 = vsel %vm885_vm2, %v1626_v25, %v1628_v43 }
 0x142   :  { %19276 = vst [vmem:[#allocation223_spill] sm:$0xff] %v11709_v17  ;;  %v19282_v17 = vld [vmem:[#allocation63_spill] sm:$0xff] }
 0x143   :  { %8182 = vrot.lane.b32.xlu0 %v19278_v60, %s10013_s24  ;;  %v11722_v56 = vpop.permute.xlu1 %7907  ;;  %v1627_v60 = vsel %vm885_vm2, %v1625_v31, %v1626_v25  ;;  %v19291_v31 = vld [vmem:[#allocation152_spill] sm:$0xff] }
 0x144   :  { %19281 = vst [vmem:[#allocation226_spill] sm:$0xff] %v11722_v56  ;;  %v11738_v56 = vpack.i.bf16 %v1629_v47, %v1627_v60  ;;  %v19295_v47 = vld [vmem:[#allocation96_spill] sm:$0xff] }
 0x145   :  { %v11720_v29 = vpop.permute.xlu0 %7902  ;;  %8197 = vrot.lane.b32.xlu1 %v19283_v14, %s10013_s24 }
 0x146   :  { %19280 = vst [vmem:[#allocation225_spill] sm:$0xff] %v11720_v29  ;;  %19288 = vst [vmem:[#allocation151_spill] sm:$0xff] %v11738_v56 }
 0x147   :  { %8192 = vrot.lane.b32.xlu0 %v19282_v17, %s10013_s24  ;;  %v11732_v42 = vpop.permute.xlu1 %7917 }
 0x148   :  { %19285 = vst [vmem:[#allocation227_spill] sm:$0xff] %v11732_v42  ;;  %v19294_v42 = vld [vmem:[#allocation72_spill] sm:$0xff] }
 0x149   :  { %v11730_v23 = vpop.permute.xlu0 %7912  ;;  %8207 = vrot.lane.b32.xlu1 %v19287_v22, %s10013_s24 }
 0x14a   :  { %19284 = vst [vmem:[#allocation66_spill] sm:$0xff] %v11730_v23  ;;  %v19299_v23 = vld [vmem:[#allocation108_spill] sm:$0xff] }
 0x14b   :  { %8202 = vrot.lane.b32.xlu0 %v19286_v61, %s10013_s24  ;;  %v11742_v17 = vpop.permute.xlu1 %7927 }
 0x14c   :  { %19290 = vst [vmem:[#allocation229_spill] sm:$0xff] %v11742_v17  ;;  %v19298_v17 = vld [vmem:[#allocation153_spill] sm:$0xff] }
 0x14d   :  { %v11740_v29 = vpop.permute.xlu0 %7922  ;;  %8217 = vrot.lane.b32.xlu1 %v11738_v56, %s10013_s24 }
 0x14e   :  { %19289 = vst [vmem:[#allocation228_spill] sm:$0xff] %v11740_v29 }
 0x14f   :  { %8212 = vrot.lane.b32.xlu0 %v19291_v31, %s10013_s24  ;;  %v11750_v43 = vpop.permute.xlu1 %7937 }
 0x150   :  { %19293 = vst [vmem:[#allocation231_spill] sm:$0xff] %v11750_v43  ;;  %v19302_v43 = vld [vmem:[#allocation111_spill] sm:$0xff] }
 0x151   :  { %v11748_v25 = vpop.permute.xlu0 %7932  ;;  %8227 = vrot.lane.b32.xlu1 %v19295_v47, %s10013_s24 }
 0x152   :  { %19292 = vst [vmem:[#allocation230_spill] sm:$0xff] %v11748_v25 }
 0x153   :  { %8222 = vrot.lane.b32.xlu0 %v19294_v42, %s10013_s24  ;;  %v11758_v29 = vpop.permute.xlu1 %7947  ;;  %v19303_v42 = vld [vmem:[#allocation155_spill] sm:$0xff] }
 0x154   :  { %19297 = vst [vmem:[#allocation232_spill] sm:$0xff] %v11758_v29  ;;  %v19306_v29 = vld [vmem:[#allocation156_spill] sm:$0xff] }
 0x155   :  { %v11756_v60 = vpop.permute.xlu0 %7942  ;;  %8237 = vrot.lane.b32.xlu1 %v19299_v23, %s10013_s24 }
 0x156   :  { %19296 = vst [vmem:[#allocation72_spill] sm:$0xff] %v11756_v60 }
 0x157   :  { %8232 = vrot.lane.b32.xlu0 %v19298_v17, %s10013_s24  ;;  %v11766_v25 = vpop.permute.xlu1 %7957  ;;  %v19456_v17 = vld [vmem:[#allocation89_spill] sm:$0xff] }
 0x158   :  { %19301 = vst [vmem:[#allocation234_spill] sm:$0xff] %v11766_v25  ;;  %v1633_v25 = vrot.slane %v11640_v46, 2 }
 0x159   :  { %v11764_v56 = vpop.permute.xlu0 %7952  ;;  %8247 = vrot.lane.b32.xlu1 %v19303_v42, %s10013_s24 }
 0x15a   :  { %19300 = vst [vmem:[#allocation233_spill] sm:$0xff] %v11764_v56 }
 0x15b   :  { %8242 = vrot.lane.b32.xlu0 %v19302_v43, %s10013_s24  ;;  %v11774_v60 = vpop.permute.xlu1 %7967 }
 0x15c   :  { %19305 = vst [vmem:[#allocation236_spill] sm:$0xff] %v11774_v60  ;;  %v1631_v60 = vrot.slane %v11498_v37, 2 }
 0x15d   :  { %v11772_v47 = vpop.permute.xlu0 %7962  ;;  %8257 = vrot.lane.b32.xlu1 %v11181_v51, %s10013_s24 }
 0x15e   :  { %19304 = vst [vmem:[#allocation235_spill] sm:$0xff] %v11772_v47  ;;  %v1630_v47 = vrot.slane %v11501_v16, 2 }
 0x15f   :  { %8252 = vrot.lane.b32.xlu0 %v19306_v29, %s10013_s24  ;;  %v11782_v56 = vpop.permute.xlu1 %7977 }
 0x160   :  { %19308 = vst [vmem:[#allocation238_spill] sm:$0xff] %v11782_v56  ;;  %v1632_v56 = vsel %vm885_vm2, %v1630_v47, %v1631_v60 }
 0x161   :  { %v11780_v23 = vpop.permute.xlu0 %7972  ;;  %8267 = vrot.lane.b32.xlu1 %v11203_v34, %s10013_s24 }
 0x162   :  { %19307 = vst [vmem:[#allocation237_spill] sm:$0xff] %v11780_v23  ;;  %v1634_v23 = vsel %vm885_vm2, %v1631_v60, %v1633_v25 }
 0x163   :  { %8262 = vrot.lane.b32.xlu0 %v11183_v41, %s10013_s24  ;;  %v11793_v42 = vpop.permute.xlu1 %7987  ;;  %v11809_v37 = vpack.i.bf16 %v1634_v23, %v1632_v56  ;;  %v19446_v41 = vld [vmem:[#allocation82_spill] sm:$0xff] }
 0x164   :  { %19310 = vst [vmem:[#allocation240_spill] sm:$0xff] %v11793_v42 }
 0x165   :  { %v11791_v29 = vpop.permute.xlu0 %7982  ;;  %8277 = vrot.lane.b32.xlu1 %v11229_v15, %s10013_s24  ;;  %19313 = vst [vmem:[#allocation243_spill] sm:$0xff] %v11809_v37 }
 0x166   :  { %19309 = vst [vmem:[#allocation239_spill] sm:$0xff] %v11791_v29 }
 0x167   :  { %8272 = vrot.lane.b32.xlu0 %v11205_v63, %s10013_s24  ;;  %v11803_v16 = vpop.permute.xlu1 %7997 }
 0x168   :  { %19312 = vst [vmem:[#allocation242_spill] sm:$0xff] %v11803_v16 }
 0x169   :  { %v11801_v34 = vpop.permute.xlu0 %7992  ;;  %8287 = vrot.lane.b32.xlu1 %v11243_v28, %s10013_s24 }
 0x16a   :  { %19311 = vst [vmem:[#allocation241_spill] sm:$0xff] %v11801_v34  ;;  %v19432_v34 = vld [vmem:[#allocation65_spill] sm:$0xff] }
 0x16b   :  { %8282 = vrot.lane.b32.xlu0 %v11231_v44, %s10013_s24  ;;  %v11813_v42 = vpop.permute.xlu1 %8007 }
 0x16c   :  { %19315 = vst [vmem:[#allocation245_spill] sm:$0xff] %v11813_v42  ;;  %v19425_v42 = vld [vmem:[#allocation56_spill] sm:$0xff] }
 0x16d   :  { %v11811_v46 = vpop.permute.xlu0 %8002  ;;  %8297 = vrot.lane.b32.xlu1 %v11809_v37, %s10013_s24  ;;  %v19434_v37 = vld [vmem:[#allocation64_spill] sm:$0xff] }
 0x16e   :  { %19314 = vst [vmem:[#allocation244_spill] sm:$0xff] %v11811_v46 }
 0x16f   :  { %8292 = vrot.lane.b32.xlu0 %v11245_v54, %s10013_s24  ;;  %v11821_v47 = vpop.permute.xlu1 %8017 }
 0x170   :  { %19317 = vst [vmem:[#allocation247_spill] sm:$0xff] %v11821_v47 }
 0x171   :  { %v11819_v25 = vpop.permute.xlu0 %8012  ;;  %8307 = vrot.lane.b32.xlu1 %v11268_v12, %s10014_s25 }
 0x172   :  { %19316 = vst [vmem:[#allocation246_spill] sm:$0xff] %v11819_v25 }
 0x173   :  { %8302 = vrot.lane.b32.xlu0 %v11257_v4, %s10014_s25  ;;  %v11829_v56 = vpop.permute.xlu1 %8027 }
 0x174   :  { %19319 = vst [vmem:[#allocation249_spill] sm:$0xff] %v11829_v56  ;;  %v19417_v56 = vld [vmem:[#allocation48_spill] sm:$0xff] }
 0x175   :  { %v11827_v23 = vpop.permute.xlu0 %8022  ;;  %8317 = vrot.lane.b32.xlu1 %v11282_v36, %s10014_s25 }
 0x176   :  { %19318 = vst [vmem:[#allocation248_spill] sm:$0xff] %v11827_v23 }
 0x177   :  { %8312 = vrot.lane.b32.xlu0 %v11272_v10, %s10014_s25  ;;  %v11837_v47 = vpop.permute.xlu1 %8037 }
 0x178   :  { %19321 = vst [vmem:[#allocation251_spill] sm:$0xff] %v11837_v47 }
 0x179   :  { %v11835_v60 = vpop.permute.xlu0 %8032  ;;  %8327 = vrot.lane.b32.xlu1 %v11296_v39, %s10014_s25 }
 0x17a   :  { %19320 = vst [vmem:[#allocation250_spill] sm:$0xff] %v11835_v60 }
 0x17b   :  { %8322 = vrot.lane.b32.xlu0 %v11286_v19, %s10014_s25  ;;  %v11845_v12 = vpop.permute.xlu1 %8047 }
 0x17c   :  { %19323 = vst [vmem:[#allocation253_spill] sm:$0xff] %v11845_v12 }
 0x17d   :  { %v11843_v4 = vpop.permute.xlu0 %8042  ;;  %8337 = vrot.lane.b32.xlu1 %v11317_v50, %s10014_s25 }
 0x17e   :  { %19322 = vst [vmem:[#allocation252_spill] sm:$0xff] %v11843_v4  ;;  %v19412_v4 = vld [vmem:[#allocation46_spill] sm:$0xff] }
 0x17f   :  { %8332 = vrot.lane.b32.xlu0 %v11300_v9, %s10014_s25  ;;  %v11853_v36 = vpop.permute.xlu1 %8057 }
 0x180   :  { %19325 = vst [vmem:[#allocation255_spill] sm:$0xff] %v11853_v36 }
 0x181   :  { %v11851_v10 = vpop.permute.xlu0 %8052  ;;  %8347 = vrot.lane.b32.xlu1 %v11333_v1, %s10014_s25  ;;  %v19330_v1 = vld [vmem:[#allocation6_spill] sm:$0xff] }
 0x182   :  { %19324 = vst [vmem:[#allocation254_spill] sm:$0xff] %v11851_v10  ;;  %v19410_v10 = vld [vmem:[#allocation169_spill] sm:$0xff] }
 0x183   :  { %8342 = vrot.lane.b32.xlu0 %v11321_v33, %s10014_s25  ;;  %v11861_v19 = vpop.permute.xlu1 %8067  ;;  %v19331_v33 = vld [vmem:[#allocation2_spill] sm:$0xff]  ;;  %v7579_v12 = vunpack.i.l.bf16 %v19410_v10 }
 0x184   :  { %19327 = vst [vmem:[#allocation257_spill] sm:$0xff] %v11861_v19 }
 0x185   :  { %v11859_v39 = vpop.permute.xlu0 %8062  ;;  %8357 = vrot.lane.b32.xlu1 %v11353_v53, %s10014_s25 }
 0x186   :  { %19326 = vst [vmem:[#allocation256_spill] sm:$0xff] %v11859_v39  ;;  %v8376_v39 = vpack.i.bf16 %v19331_v33, %v19330_v1 }
 0x187   :  { %8352 = vrot.lane.b32.xlu0 %v11337_v62, %s10014_s25  ;;  %v11869_v9 = vpop.permute.xlu1 %8077 }
 0x188   :  { %19329 = vst [vmem:[#allocation259_spill] sm:$0xff] %v11869_v9  ;;  %v19405_v9 = vld [vmem:[#allocation37_spill] sm:$0xff] }
 0x189   :  { %v11867_v50 = vpop.permute.xlu0 %8072  ;;  %8367 = vrot.lane.b32.xlu1 %v11376_v3, %s10014_s25 }
 0x18a   :  { %19328 = vst [vmem:[#allocation258_spill] sm:$0xff] %v11867_v50 }
 0x18b   :  { %8362 = vrot.lane.b32.xlu0 %v11357_v27, %s10014_s25  ;;  %v11879_v36 = vpop.permute.xlu1 %8087 }
 0x18c   :  { %19333 = vst [vmem:[#allocation2_spill] sm:$0xff] %v11879_v36 }
 0x18d   :  { %v11877_v19 = vpop.permute.xlu0 %8082  ;;  %8377 = vrot.lane.b32.xlu1 %v8376_v39, %s10014_s25 }
 0x18e   :  { %19332 = vst [vmem:[#allocation6_spill] sm:$0xff] %v11877_v19 }
 0x18f   :  { %8372 = vrot.lane.b32.xlu0 %v11380_v49, %s10014_s25  ;;  %v11886_v53 = vpop.permute.xlu1 %8097 }
 0x190   :  { %19335 = vst [vmem:[#allocation261_spill] sm:$0xff] %v11886_v53  ;;  %v19398_v53 = vld [vmem:[#allocation31_spill] sm:$0xff] }
 0x191   :  { %v11884_v62 = vpop.permute.xlu0 %8092  ;;  %8387 = vrot.lane.b32.xlu1 %v11401_v21, %s10014_s25 }
 0x192   :  { %19334 = vst [vmem:[#allocation260_spill] sm:$0xff] %v11884_v62  ;;  %v19399_v62 = vld [vmem:[#allocation164_spill] sm:$0xff] }
 0x193   :  { %8382 = vrot.lane.b32.xlu0 %v11392_v59, %s10014_s25  ;;  %v11894_v3 = vpop.permute.xlu1 %8107  ;;  %v7565_v36 = vunpack.i.h.bf16 %v19399_v62 }
 0x194   :  { %19337 = vst [vmem:[#allocation263_spill] sm:$0xff] %v11894_v3 }
 0x195   :  { %v11892_v27 = vpop.permute.xlu0 %8102  ;;  %8397 = vrot.lane.b32.xlu1 %v11417_v8, %s10014_s25 }
 0x196   :  { %19336 = vst [vmem:[#allocation262_spill] sm:$0xff] %v11892_v27  ;;  %v19396_v27 = vld [vmem:[#allocation25_spill] sm:$0xff] }
 0x197   :  { %8392 = vrot.lane.b32.xlu0 %v11407_v7, %s10014_s25  ;;  %v11902_v39 = vpop.permute.xlu1 %8117 }
 0x198   :  { %19339 = vst [vmem:[#allocation265_spill] sm:$0xff] %v11902_v39 }
 0x199   :  { %v11900_v49 = vpop.permute.xlu0 %8112  ;;  %8407 = vrot.lane.b32.xlu1 %v11431_v58, %s10014_s25 }
 0x19a   :  { %19338 = vst [vmem:[#allocation264_spill] sm:$0xff] %v11900_v49  ;;  %v19388_v49 = vld [vmem:[#allocation22_spill] sm:$0xff] }
 0x19b   :  { %8402 = vrot.lane.b32.xlu0 %v11421_v6, %s10014_s25  ;;  %v11910_v59 = vpop.permute.xlu1 %8127 }
 0x19c   :  { %19341 = vst [vmem:[#allocation267_spill] sm:$0xff] %v11910_v59  ;;  %v19383_v59 = vld [vmem:[#allocation14_spill] sm:$0xff] }
 0x19d   :  { %v11908_v21 = vpop.permute.xlu0 %8122  ;;  %8417 = vrot.lane.b32.xlu1 %v11452_v32, %s10014_s25 }
 0x19e   :  { %19340 = vst [vmem:[#allocation266_spill] sm:$0xff] %v11908_v21  ;;  %v19384_v21 = vld [vmem:[#allocation16_spill] sm:$0xff] }
 0x19f   :  { %8412 = vrot.lane.b32.xlu0 %v11435_v26, %s10014_s25  ;;  %v11918_v7 = vpop.permute.xlu1 %8137 }
 0x1a0   :  { %19343 = vst [vmem:[#allocation269_spill] sm:$0xff] %v11918_v7  ;;  %v19375_v7 = vld [vmem:[#allocation9_spill] sm:$0xff] }
 0x1a1   :  { %v11916_v8 = vpop.permute.xlu0 %8132  ;;  %8427 = vrot.lane.b32.xlu1 %v11468_v38, %s10014_s25 }
 0x1a2   :  { %19342 = vst [vmem:[#allocation268_spill] sm:$0xff] %v11916_v8 }
 0x1a3   :  { %8422 = vrot.lane.b32.xlu0 %v11456_v20, %s10014_s25  ;;  %v11926_v58 = vpop.permute.xlu1 %8147 }
 0x1a4   :  { %19345 = vst [vmem:[#allocation271_spill] sm:$0xff] %v11926_v58 }
 0x1a5   :  { %v11924_v6 = vpop.permute.xlu0 %8142  ;;  %8437 = vrot.lane.b32.xlu1 %v11490_v0, %s10014_s25 }
 0x1a6   :  { %19344 = vst [vmem:[#allocation270_spill] sm:$0xff] %v11924_v6 }
 0x1a7   :  { %8432 = vrot.lane.b32.xlu0 %v11472_v55, %s10014_s25  ;;  %v11934_v26 = vpop.permute.xlu1 %8157 }
 0x1a8   :  { %19347 = vst [vmem:[#allocation273_spill] sm:$0xff] %v11934_v26 }
 0x1a9   :  { %v11932_v32 = vpop.permute.xlu0 %8152  ;;  %8447 = vrot.lane.b32.xlu1 %v11513_v52, %s10014_s25 }
 0x1aa   :  { %19346 = vst [vmem:[#allocation272_spill] sm:$0xff] %v11932_v32 }
 0x1ab   :  { %8442 = vrot.lane.b32.xlu0 %v11494_v35, %s10014_s25  ;;  %v11942_v38 = vpop.permute.xlu1 %8167 }
 0x1ac   :  { %19349 = vst [vmem:[#allocation275_spill] sm:$0xff] %v11942_v38 }
 0x1ad   :  { %v11940_v20 = vpop.permute.xlu0 %8162  ;;  %8457 = vrot.lane.b32.xlu1 %v19199_v2, %s10015_s26 }
 0x1ae   :  { %19348 = vst [vmem:[#allocation274_spill] sm:$0xff] %v11940_v20 }
 0x1af   :  { %8452 = vrot.lane.b32.xlu0 %v11517_v13, %s10014_s25  ;;  %v11950_v0 = vpop.permute.xlu1 %8177 }
 0x1b0   :  { %19351 = vst [vmem:[#allocation277_spill] sm:$0xff] %v11950_v0 }
 0x1b1   :  { %v11948_v55 = vpop.permute.xlu0 %8172  ;;  %8467 = vrot.lane.b32.xlu1 %v19203_v45, %s10015_s26 }
 0x1b2   :  { %19350 = vst [vmem:[#allocation276_spill] sm:$0xff] %v11948_v55 }
 0x1b3   :  { %8462 = vrot.lane.b32.xlu0 %v19202_v24, %s10015_s26  ;;  %v11958_v35 = vpop.permute.xlu1 %8187 }
 0x1b4   :  { %19353 = vst [vmem:[#allocation279_spill] sm:$0xff] %v11958_v35  ;;  %v19358_v35 = vld [vmem:[#allocation45_spill] sm:$0xff] }
 0x1b5   :  { %v11956_v52 = vpop.permute.xlu0 %8182  ;;  %8477 = vrot.lane.b32.xlu1 %v19207_v5, %s10015_s26 }
 0x1b6   :  { %19352 = vst [vmem:[#allocation278_spill] sm:$0xff] %v11956_v52 }
 0x1b7   :  { %8472 = vrot.lane.b32.xlu0 %v19206_v57, %s10015_s26  ;;  %v11966_v13 = vpop.permute.xlu1 %8197  ;;  %v19359_v57 = vld [vmem:[#allocation50_spill] sm:$0xff] }
 0x1b8   :  { %19355 = vst [vmem:[#allocation281_spill] sm:$0xff] %v11966_v13  ;;  %v19362_v13 = vld [vmem:[#allocation51_spill] sm:$0xff] }
 0x1b9   :  { %v11964_v2 = vpop.permute.xlu0 %8192  ;;  %8487 = vrot.lane.b32.xlu1 %v19211_v30, %s10015_s26 }
 0x1ba   :  { %19354 = vst [vmem:[#allocation280_spill] sm:$0xff] %v11964_v2 }
 0x1bb   :  { %8482 = vrot.lane.b32.xlu0 %v19210_v40, %s10015_s26  ;;  %v11974_v45 = vpop.permute.xlu1 %8207  ;;  %v19363_v40 = vld [vmem:[#allocation57_spill] sm:$0xff] }
 0x1bc   :  { %19357 = vst [vmem:[#allocation283_spill] sm:$0xff] %v11974_v45  ;;  %v19366_v45 = vld [vmem:[#allocation83_spill] sm:$0xff] }
 0x1bd   :  { %v11972_v24 = vpop.permute.xlu0 %8202  ;;  %8497 = vrot.lane.b32.xlu1 %v19359_v57, %s10015_s26  ;;  %v7514_v52 = vunpack.i.l.bf16 %v19366_v45  ;;  %v19367_v57 = vld [vmem:[#allocation88_spill] sm:$0xff] }
 0x1be   :  { %19356 = vst [vmem:[#allocation282_spill] sm:$0xff] %v11972_v24  ;;  %v7525_v0 = vunpack.i.h.bf16 %v19367_v57 }
 0x1bf   :  { %8492 = vrot.lane.b32.xlu0 %v19358_v35, %s10015_s26  ;;  %v11982_v2 = vpop.permute.xlu1 %8217  ;;  %v7515_v35 = vunpack.i.h.bf16 %v19366_v45 }
 0x1c0   :  { %19361 = vst [vmem:[#allocation50_spill] sm:$0xff] %v11982_v2  ;;  %v19368_v2 = vld [vmem:[#allocation61_spill] sm:$0xff]  ;;  %v12020_v58 = vsel %vm2385_vm3, %v19375_v7, %v7525_v0  ;;  %v19381_v7 = vld [vmem:[#allocation158_spill] sm:$0xff] }
 0x1c1   :  { %v11980_v5 = vpop.permute.xlu0 %8212  ;;  %8507 = vrot.lane.b32.xlu1 %v19363_v40, %s10015_s26  ;;  %v19370_v40 = vld [vmem:[#allocation91_spill] sm:$0xff]  ;;  %v7545_v0 = vunpack.i.h.bf16 %v19381_v7  ;;  %v7544_v8 = vunpack.i.l.bf16 %v19381_v7 }
 0x1c2   :  { %19360 = vst [vmem:[#allocation45_spill] sm:$0xff] %v11980_v5  ;;  %v7524_v5 = vunpack.i.l.bf16 %v19367_v57  ;;  %v7520_v55 = vunpack.i.h.bf16 %v19370_v40  ;;  %v12010_v57 = vsel %vm2385_vm3, %v19331_v33, %v7515_v35  ;;  %v19378_v33 = vld [vmem:[#allocation69_spill] sm:$0xff] }
 0x1c3   :  { %8502 = vrot.lane.b32.xlu0 %v19362_v13, %s10015_s26  ;;  %v11990_v24 = vpop.permute.xlu1 %8227  ;;  %v19369_v13 = vld [vmem:[#allocation68_spill] sm:$0xff] }
 0x1c4   :  { %19365 = vst [vmem:[#allocation57_spill] sm:$0xff] %v11990_v24  ;;  %v19371_v24 = vld [vmem:[#allocation103_spill] sm:$0xff] }
 0x1c5   :  { %v11988_v30 = vpop.permute.xlu0 %8222  ;;  %8517 = vrot.lane.b32.xlu1 %v19369_v13, %s10015_s26  ;;  %v7530_v38 = vunpack.i.h.bf16 %v19371_v24  ;;  %v7529_v20 = vunpack.i.l.bf16 %v19371_v24  ;;  %v19374_v13 = vld [vmem:[#allocation154_spill] sm:$0xff]  ;;  %v19376_v24 = vld [vmem:[#allocation7_spill] sm:$0xff] }
 0x1c6   :  { %19364 = vst [vmem:[#allocation51_spill] sm:$0xff] %v11988_v30  ;;  %v7519_v30 = vunpack.i.l.bf16 %v19370_v40  ;;  %v7535_v32 = vunpack.i.h.bf16 %v19374_v13  ;;  %v7534_v40 = vunpack.i.l.bf16 %v19374_v13 }
 0x1c7   :  { %8512 = vrot.lane.b32.xlu0 %v19368_v2, %s10015_s26  ;;  %v12006_v45 = vpop.permute.xlu1 %8237  ;;  %v12014_v2 = vsel %vm2385_vm3, %v19330_v1, %v7514_v52  ;;  %v19379_v1 = vld [vmem:[#allocation200_spill] sm:$0xff]  ;;  %v19380_v52 = vld [vmem:[#allocation10_spill] sm:$0xff] }
 0x1c8   :  { %19373 = vst [vmem:[#allocation88_spill] sm:$0xff] %v12006_v45  ;;  %v19377_v45 = vld [vmem:[#allocation116_spill] sm:$0xff]  ;;  %v12033_v35 = vsel %vm2385_vm3, %v19380_v52, %v7520_v55  ;;  %v12057_v7 = vsel %vm2385_vm3, %v19388_v49, %v7535_v32  ;;  %v19393_v49 = vld [vmem:[#allocation81_spill] sm:$0xff] }
 0x1c9   :  { %v12004_v26 = vpop.permute.xlu0 %8232  ;;  %v7540_v6 = vunpack.i.h.bf16 %v19377_v45  ;;  %8527 = vrot.lane.b32.xlu1 %v19379_v1, %s10015_s26  ;;  %v7539_v13 = vunpack.i.l.bf16 %v19377_v45  ;;  %v12048_v1 = vsel %vm2385_vm3, %v19384_v21, %v7529_v20  ;;  %v19385_v55 = vld [vmem:[#allocation128_spill] sm:$0xff]  ;;  %v19391_v21 = vld [vmem:[#allocation23_spill] sm:$0xff] }
 0x1ca   :  { %19372 = vst [vmem:[#allocation83_spill] sm:$0xff] %v12004_v26  ;;  %v12024_v26 = vsel %vm2385_vm3, %v19376_v24, %v7524_v5  ;;  %v19382_v5 = vld [vmem:[#allocation11_spill] sm:$0xff]  ;;  %v7550_v52 = vunpack.i.h.bf16 %v19385_v55  ;;  %v19394_v32 = vld [vmem:[#allocation24_spill] sm:$0xff] }
 0x1cb   :  { %8522 = vrot.lane.b32.xlu0 %v19378_v33, %s10015_s26  ;;  %v12040_v24 = vsel %vm2385_vm3, %v19382_v5, %v7519_v30  ;;  %v12044_v33 = vsel %vm2385_vm3, %v19383_v59, %v7530_v38  ;;  %v12053_v45 = vpop.permute.xlu1 %8247  ;;  %v19389_v30 = vld [vmem:[#allocation21_spill] sm:$0xff]  ;;  %v7549_v59 = vunpack.i.l.bf16 %v19385_v55  ;;  %v19390_v38 = vld [vmem:[#allocation160_spill] sm:$0xff]  ;;  %v12067_v20 = vsel %vm2385_vm3, %v19391_v21, %v7540_v6 }
 0x1cc   :  { %19387 = vst [vmem:[#allocation68_spill] sm:$0xff] %v12053_v45  ;;  %v12061_v5 = vsel %vm2385_vm3, %v19389_v30, %v7534_v40  ;;  %v7555_v3 = vunpack.i.h.bf16 %v19390_v38  ;;  %v19392_v45 = vld [vmem:[#allocation8_spill] sm:$0xff]  ;;  %v12076_v40 = vsel %vm2385_vm3, %v19394_v32, %v7539_v13  ;;  %v12084_v6 = vsel %vm2385_vm3, %v19396_v27, %v7544_v8  ;;  %v19397_v21 = vld [vmem:[#allocation161_spill] sm:$0xff] }
 0x1cd   :  { %v12051_v39 = vpop.permute.xlu0 %8242  ;;  %8537 = vrot.lane.b32.xlu1 %v19393_v49, %s10015_s26  ;;  %v19395_v30 = vld [vmem:[#allocation28_spill] sm:$0xff]  ;;  %v7559_v49 = vunpack.i.l.bf16 %v19397_v21  ;;  %v7564_v13 = vunpack.i.l.bf16 %v19399_v62 }
 0x1ce   :  { %19386 = vst [vmem:[#allocation61_spill] sm:$0xff] %v12051_v39  ;;  %v7554_v39 = vunpack.i.l.bf16 %v19390_v38  ;;  %v12080_v55 = vsel %vm2385_vm3, %v19395_v30, %v7545_v0  ;;  %v7560_v38 = vunpack.i.h.bf16 %v19397_v21  ;;  %v19402_v30 = vld [vmem:[#allocation32_spill] sm:$0xff] }
 0x1cf   :  { %8532 = vrot.lane.b32.xlu0 %v19392_v45, %s10015_s26  ;;  %v12089_v45 = vsel %vm2385_vm3, %v19398_v53, %v7550_v52  ;;  %v12096_v0 = vpop.permute.xlu1 %8257  ;;  %v12100_v27 = vsel %vm2385_vm3, %v19402_v30, %v7549_v59  ;;  %v19403_v8 = vld [vmem:[#allocation36_spill] sm:$0xff]  ;;  %v19404_v53 = vld [vmem:[#allocation167_spill] sm:$0xff]  ;;  %v19409_v30 = vld [vmem:[#allocation38_spill] sm:$0xff] }
 0x1d0   :  { %19401 = vst [vmem:[#allocation103_spill] sm:$0xff] %v12096_v0  ;;  %v12104_v19 = vsel %vm2385_vm3, %v19403_v8, %v7555_v3  ;;  %v7570_v52 = vunpack.i.h.bf16 %v19404_v53  ;;  %v7569_v21 = vunpack.i.l.bf16 %v19404_v53  ;;  %v12110_v50 = vsel %vm2385_vm3, %v19405_v9, %v7554_v39  ;;  %v19406_v62 = vld [vmem:[#allocation168_spill] sm:$0xff]  ;;  %v19407_v0 = vld [vmem:[#allocation86_spill] sm:$0xff] }
 0x1d1   :  { %v12094_v32 = vpop.permute.xlu0 %8252  ;;  %v19408_v59 = vld [vmem:[#allocation92_spill] sm:$0xff]  ;;  %v12119_v3 = vsel %vm2385_vm3, %v19409_v30, %v7560_v38  ;;  %v7574_v8 = vunpack.i.l.bf16 %v19406_v62  ;;  %v7580_v53 = vunpack.i.h.bf16 %v19410_v10  ;;  %v9996_v9 = vld [vmem:[%s17927_s1] sm:$0xff]  }
 0x1d2   :  { %19400 = vst [vmem:[#allocation91_spill] sm:$0xff] %v12094_v32  ;;  %v7575_v32 = vunpack.i.h.bf16 %v19406_v62  ;;  %8547 = vrot.lane.b32.xlu1 %v19408_v59, %s10015_s26  ;;  %v19411_v39 = vld [vmem:[#allocation40_spill] sm:$0xff]  ;;  %v12133_v59 = vsel %vm2385_vm3, %v19412_v4, %v7565_v36  ;;  %v19413_v38 = vld [vmem:[#allocation42_spill] sm:$0xff]  ;;  %v12146_v23 = vsel %vm2385_vm3, %v19417_v56, %v7570_v52  ;;  %v19419_v36 = vld [vmem:[#allocation171_spill] sm:$0xff]  ;;  %7352 = vmatprep.subr.bf16.mxu0 %v9996_v9 }
 0x1d3   :  { %8542 = vrot.lane.b32.xlu0 %v19407_v0, %s10015_s26  ;;  %v12129_v0 = vsel %vm2385_vm3, %v19411_v39, %v7559_v49  ;;  %v12137_v30 = vsel %vm2385_vm3, %v19413_v38, %v7564_v13  ;;  %v19414_v62 = vld [vmem:[#allocation170_spill] sm:$0xff]  ;;  %v12142_v10 = vpop.permute.xlu1 %8267  ;;  %v19418_v49 = vld [vmem:[#allocation47_spill] sm:$0xff]  ;;  %v7590_v25 = vunpack.i.h.bf16 %v19419_v36  ;;  %v19420_v13 = vld [vmem:[#allocation52_spill] sm:$0xff]  ;;  %7353 = vmatpush3.bf16.msra.mxu0 %v9996_v9 }
 0x1d4   :  { %v7585_v47 = vunpack.i.h.bf16 %v19414_v62  ;;  %19416 = vst [vmem:[#allocation9_spill] sm:$0xff] %v12142_v10  ;;  %v12150_v39 = vsel %vm2385_vm3, %v19418_v49, %v7569_v21  ;;  %v7584_v4 = vunpack.i.l.bf16 %v19414_v62  ;;  %v12156_v38 = vsel %vm2385_vm3, %v19420_v13, %v7575_v32  ;;  %v19421_v10 = vld [vmem:[#allocation98_spill] sm:$0xff]  ;;  %v19422_v56 = vld [vmem:[#allocation100_spill] sm:$0xff]  ;;  %v19423_v52 = vld [vmem:[#allocation53_spill] sm:$0xff] }
 0x1d5   :  { %v12140_v60 = vpop.permute.xlu0 %8262  ;;  %v12165_v21 = vsel %vm2385_vm3, %v19423_v52, %v7574_v8  ;;  %v19424_v62 = vld [vmem:[#allocation54_spill] sm:$0xff]  ;;  %v12173_v32 = vsel %vm2385_vm3, %v19425_v42, %v7579_v12  ;;  %v19426_v13 = vld [vmem:[#allocation172_spill] sm:$0xff]  ;;  %v12196_v29 = vsel %vm2385_vm3, %v19432_v34, %v7590_v25 }
 0x1d6   :  { %19415 = vst [vmem:[#allocation154_spill] sm:$0xff] %v12140_v60  ;;  %v7589_v60 = vunpack.i.l.bf16 %v19419_v36  ;;  %8557 = vrot.lane.b32.xlu1 %v19422_v56, %s10015_s26  ;;  %v12169_v49 = vsel %vm2385_vm3, %v19424_v62, %v7580_v53  ;;  %v7595_v36 = vunpack.i.h.bf16 %v19426_v13  ;;  %v19427_v56 = vld [vmem:[#allocation62_spill] sm:$0xff]  ;;  %v7594_v8 = vunpack.i.l.bf16 %v19426_v13 }
 0x1d7   :  { %8552 = vrot.lane.b32.xlu0 %v19421_v10, %s10015_s26  ;;  %v9997_v10 = vld [vmem:[%s17927_s1 + $0x8] sm:$0xff]   ;;  %v12181_v46 = vsel %vm2385_vm3, %v19427_v56, %v7585_v47  ;;  %v19428_v52 = vld [vmem:[#allocation174_spill] sm:$0xff]  ;;  %v12188_v42 = vpop.permute.xlu1 %8277 }
 0x1d8   :  { %v7600_v53 = vunpack.i.h.bf16 %v19428_v52  ;;  %v7599_v62 = vunpack.i.l.bf16 %v19428_v52  ;;  %19430 = vst [vmem:[#allocation116_spill] sm:$0xff] %v12188_v42  ;;  %v19431_v12 = vld [vmem:[#allocation58_spill] sm:$0xff]  ;;  %v19433_v47 = vld [vmem:[#allocation175_spill] sm:$0xff]  ;;  %7354 = vmatprep.subr.bf16.mxu0 %v9997_v10  ;;  %v12202_v52 = vsel %vm2385_vm3, %v19434_v37, %v7589_v60  ;;  %v9998_v37 = vld [vmem:[%s17927_s1 + $0x10] sm:$0xff]  }
 0x1d9   :  { %v12186_v16 = vpop.permute.xlu0 %8272  ;;  %v12192_v9 = vsel %vm2385_vm3, %v19431_v12, %v7584_v4  ;;  %v7605_v56 = vunpack.i.h.bf16 %v19433_v47  ;;  %v7604_v13 = vunpack.i.l.bf16 %v19433_v47  ;;  %v19436_v42 = vld [vmem:[#allocation106_spill] sm:$0xff]  ;;  %v19437_v4 = vld [vmem:[#allocation112_spill] sm:$0xff]  ;;  %v19439_v47 = vld [vmem:[#allocation177_spill] sm:$0xff]  ;;  %7355 = vmatpush3.bf16.msra.mxu0 %v9997_v10 }
 0x1da   :  { %19429 = vst [vmem:[#allocation7_spill] sm:$0xff] %v12186_v16  ;;  %v19435_v16 = vld [vmem:[#allocation176_spill] sm:$0xff]  ;;  %8567 = vrot.lane.b32.xlu1 %v19437_v4, %s10015_s26  ;;  %v19438_v12 = vld [vmem:[#allocation70_spill] sm:$0xff]  ;;  %v7615_v28 = vunpack.i.h.bf16 %v19439_v47  ;;  %v7614_v44 = vunpack.i.l.bf16 %v19439_v47  ;;  %v19440_v60 = vld [vmem:[#allocation71_spill] sm:$0xff]  ;;  %7356 = vmatprep.subr.bf16.mxu0 %v9998_v37 }
 0x1db   :  { %v7610_v54 = vunpack.i.h.bf16 %v19435_v16  ;;  %8562 = vrot.lane.b32.xlu0 %v19436_v42, %s10015_s26  ;;  %v12211_v34 = vsel %vm2385_vm3, %v19438_v12, %v7595_v36  ;;  %v7609_v25 = vunpack.i.l.bf16 %v19435_v16  ;;  %v12221_v42 = vsel %vm2385_vm3, %v19440_v60, %v7594_v8  ;;  %v19441_v4 = vld [vmem:[#allocation73_spill] sm:$0xff]  ;;  %v19442_v36 = vld [vmem:[#allocation74_spill] sm:$0xff]  ;;  %v12234_v10 = vpop.permute.xlu1 %8287 }
 0x1dc   :  { %v12225_v15 = vsel %vm2385_vm3, %v19441_v4, %v7600_v53  ;;  %v12229_v16 = vsel %vm2385_vm3, %v19442_v36, %v7599_v62  ;;  %v19443_v12 = vld [vmem:[#allocation178_spill] sm:$0xff]  ;;  %19445 = vst [vmem:[#allocation200_spill] sm:$0xff] %v12234_v10  ;;  %v12238_v51 = vsel %vm2385_vm3, %v19446_v41, %v7605_v56  ;;  %v19448_v4 = vld [vmem:[#allocation179_spill] sm:$0xff]  ;;  %v19451_v41 = vld [vmem:[#allocation120_spill] sm:$0xff] }
 0x1dd   :  { %v7620_v63 = vunpack.i.h.bf16 %v19443_v12  ;;  %v12232_v47 = vpop.permute.xlu0 %8282  ;;  %v19447_v8 = vld [vmem:[#allocation78_spill] sm:$0xff]  ;;  %v7619_v53 = vunpack.i.l.bf16 %v19443_v12  ;;  %v7625_v43 = vunpack.i.h.bf16 %v19448_v4  ;;  %v19449_v62 = vld [vmem:[#allocation87_spill] sm:$0xff]  ;;  %v19452_v56 = vld [vmem:[#allocation84_spill] sm:$0xff]  ;;  %7357 = vmatpush3.bf16.msra.mxu0 %v9998_v37 }
 0x1de   :  { %19444 = vst [vmem:[#allocation69_spill] sm:$0xff] %v12232_v47  ;;  %v12242_v60 = vsel %vm2385_vm3, %v19447_v8, %v7604_v13  ;;  %v12248_v36 = vsel %vm2385_vm3, %v19449_v62, %v7610_v54  ;;  %v7624_v47 = vunpack.i.l.bf16 %v19448_v4  ;;  %v19450_v10 = vld [vmem:[#allocation118_spill] sm:$0xff]  ;;  %8577 = vrot.lane.b32.xlu1 %v19451_v41, %s10015_s26  ;;  %v12257_v13 = vsel %vm2385_vm3, %v19452_v56, %v7609_v25  ;;  %v19458_v62 = vld [vmem:[#allocation180_spill] sm:$0xff]  ;;  %v19459_v41 = vld [vmem:[#allocation93_spill] sm:$0xff] }
 0x1df   :  { %8572 = vrot.lane.b32.xlu0 %v19450_v10, %s10015_s26  ;;  %19453 = vst [vmem:[#allocation10_spill] sm:$0xff] %v12257_v13  ;;  %v19454_v12 = vld [vmem:[#allocation90_spill] sm:$0xff]  ;;  %v12265_v54 = vsel %vm2385_vm3, %v19456_v17, %v7614_v44  ;;  %v7630_v4 = vunpack.i.h.bf16 %v19458_v62  ;;  %v9999_v10 = vld [vmem:[%s17927_s1 + $0x18] sm:$0xff]   ;;  %v12273_v31 = vsel %vm2385_vm3, %v19459_v41, %v7620_v63  ;;  %v7629_v25 = vunpack.i.l.bf16 %v19458_v62  ;;  %v12280_v44 = vpop.permute.xlu1 %8297  ;;  %v19464_v17 = vld [vmem:[#allocation95_spill] sm:$0xff] }
 0x1e0   :  { %v12261_v8 = vsel %vm2385_vm3, %v19454_v12, %v7615_v28  ;;  %19457 = vst [vmem:[#allocation11_spill] sm:$0xff] %v12265_v54  ;;  %19460 = vst [vmem:[#allocation14_spill] sm:$0xff] %v12273_v31  ;;  %v19461_v56 = vld [vmem:[#allocation181_spill] sm:$0xff]  ;;  %v12284_v37 = vsel %vm2385_vm3, %v19464_v17, %v7619_v53  ;;  %v19468_v63 = vld [vmem:[#allocation182_spill] sm:$0xff]  ;;  %7358 = vmatprep.subr.bf16.mxu0 %v9999_v10 }
 0x1e1   :  { %19455 = vst [vmem:[#allocation158_spill] sm:$0xff] %v12261_v8  ;;  %v7635_v28 = vunpack.i.h.bf16 %v19461_v56  ;;  %v7634_v12 = vunpack.i.l.bf16 %v19461_v56  ;;  %v12278_v22 = vpop.permute.xlu0 %8292  ;;  %19463 = vst [vmem:[#allocation128_spill] sm:$0xff] %v12280_v44  ;;  %v19466_v8 = vld [vmem:[#allocation101_spill] sm:$0xff]  ;;  %v7640_v41 = vunpack.i.h.bf16 %v19468_v63  ;;  %v7639_v62 = vunpack.i.l.bf16 %v19468_v63  ;;  %v19469_v31 = vld [vmem:[#allocation102_spill] sm:$0xff]  ;;  %7359 = vmatpush3.bf16.msra.mxu0 %v9999_v10 }
 0x1e2   :  { %19462 = vst [vmem:[#allocation16_spill] sm:$0xff] %v12278_v22  ;;  %19465 = vst [vmem:[#allocation22_spill] sm:$0xff] %v12284_v37  ;;  %v12288_v54 = vsel %vm2385_vm3, %v19466_v8, %v7625_v43  ;;  %v12294_v56 = vsel %vm2385_vm3, %v19469_v31, %v7624_v47  ;;  %v19471_v44 = vld [vmem:[#allocation126_spill] sm:$0xff]  ;;  %8587 = vrot.lane.b32.xlu1 %v19251_v48, %s10015_s26  ;;  %v19472_v53 = vld [vmem:[#allocation107_spill] sm:$0xff] }
 0x1e3   :  { %19467 = vst [vmem:[#allocation21_spill] sm:$0xff] %v12288_v54  ;;  %19470 = vst [vmem:[#allocation160_spill] sm:$0xff] %v12294_v56  ;;  %8582 = vrot.lane.b32.xlu0 %v19471_v44, %s10015_s26  ;;  %v12302_v43 = vsel %vm2385_vm3, %v19472_v53, %v7630_v4  ;;  %v19474_v8 = vld [vmem:[#allocation183_spill] sm:$0xff]  ;;  %v19475_v22 = vld [vmem:[#allocation184_spill] sm:$0xff] }
 0x1e4   :  { %19473 = vst [vmem:[#allocation23_spill] sm:$0xff] %v12302_v43  ;;  %v7645_v17 = vunpack.i.h.bf16 %v19474_v8  ;;  %v7644_v63 = vunpack.i.l.bf16 %v19474_v8  ;;  %v7650_v54 = vunpack.i.h.bf16 %v19475_v22  ;;  %v10000_v31 = vld [vmem:[%s17927_s1 + $0x20] ss:$0 sps:$4 sm:$0xff]   ;;  %v19476_v47 = vld [vmem:[#allocation104_spill] sm:$0xff]  ;;  %v19479_v4 = vld [vmem:[#allocation109_spill] sm:$0xff]  ;;  %v12324_v43 = vpop.permute.xlu1 %8307  ;;  %s10016_s1 = smov 64  }
 0x1e5   :  { %v12312_v44 = vsel %vm2385_vm3, %v19476_v47, %v7629_v25  ;;  %v19477_v48 = vld [vmem:[#allocation110_spill] sm:$0xff]  ;;  %v12320_v53 = vsel %vm2385_vm3, %v19479_v4, %v7634_v12  ;;  %v12322_v8 = vpop.permute.xlu0 %8302  ;;  %19481 = vst [vmem:[#allocation24_spill] sm:$0xff] %v12324_v43  ;;  %v19482_v10 = vld [vmem:[#allocation113_spill] sm:$0xff]  ;;  %v19484_v13 = vld [vmem:[#allocation115_spill] sm:$0xff]  ;;  %7500 = vmatprep.subr.msk.bf16.mxu0 %vm3066_vm5, %v10000_v31 }
 0x1e6   :  { %v12316_v56 = vsel %vm2385_vm3, %v19477_v48, %v7635_v28  ;;  %19480 = vst [vmem:[#allocation81_spill] sm:$0xff] %v12322_v8  ;;  %v12328_v37 = vsel %vm2385_vm3, %v19482_v10, %v7640_v41  ;;  %v12332_v25 = vsel %vm2385_vm3, %v19484_v13, %v7639_v62  ;;  %v7649_v28 = vunpack.i.l.bf16 %v19475_v22  ;;  %v19486_v47 = vld [vmem:[#allocation186_spill] sm:$0xff]  ;;  %8597 = vrot.lane.b32.xlu1 %v19255_v18, %s10015_s26  ;;  %v19487_v4 = vld [vmem:[#allocation121_spill] sm:$0xff]  ;;  %v19491_v10 = vld [vmem:[#allocation127_spill] sm:$0xff] }
 0x1e7   :  { %19478 = vst [vmem:[#allocation8_spill] sm:$0xff] %v12316_v56  ;;  %19483 = vst [vmem:[#allocation28_spill] sm:$0xff] %v12328_v37  ;;  %v7655_v48 = vunpack.i.h.bf16 %v19486_v47  ;;  %v7654_v12 = vunpack.i.l.bf16 %v19486_v47  ;;  %8592 = vrot.lane.b32.xlu0 %v19254_v11, %s10015_s26  ;;  %v3068_v41 = vsel %vm3066_vm5, %v10000_v31, 0  ;;  %v12345_v13 = vsel %vm2385_vm3, %v19487_v4, %v7645_v17  ;;  %v19489_v62 = vld [vmem:[#allocation122_spill] sm:$0xff]  ;;  %v19493_v47 = vld [vmem:[#allocation187_spill] sm:$0xff] }
 0x1e8   :  { %19485 = vst [vmem:[#allocation25_spill] sm:$0xff] %v12332_v25  ;;  %19488 = vst [vmem:[#allocation161_spill] sm:$0xff] %v12345_v13  ;;  %v12349_v22 = vsel %vm2385_vm3, %v19489_v62, %v7644_v63  ;;  %v12353_v43 = vsel %vm2385_vm3, %v19491_v10, %v7650_v54  ;;  %v7660_v8 = vunpack.i.h.bf16 %v19493_v47  ;;  %7361 = vmatpush3.bf16.msra.mxu0 %v3068_v41  ;;  %v7659_v11 = vunpack.i.l.bf16 %v19493_v47  ;;  %v19494_v18 = vld [vmem:[#allocation188_spill] sm:$0xff]  ;;  %v19495_v37 = vld [vmem:[#allocation189_spill] sm:$0xff]  ;;  %v12362_v13 = vpop.permute.xlu1 %8317 }
 0x1e9   :  { %19490 = vst [vmem:[#allocation31_spill] sm:$0xff] %v12349_v22  ;;  %19492 = vst [vmem:[#allocation164_spill] sm:$0xff] %v12353_v43  ;;  %v7665_v25 = vunpack.i.h.bf16 %v19494_v18  ;;  %v7664_v31 = vunpack.i.l.bf16 %v19494_v18  ;;  %v7670_v17 = vunpack.i.h.bf16 %v19495_v37  ;;  %v12360_v4 = vpop.permute.xlu0 %8312  ;;  %v19498_v63 = vld [vmem:[#allocation124_spill] sm:$0xff]  ;;  %v19500_v54 = vld [vmem:[#allocation130_spill] sm:$0xff]  ;;  %v7669_v41 = vunpack.i.l.bf16 %v19495_v37 }
 0x1ea   :  { %19496 = vst [vmem:[#allocation32_spill] sm:$0xff] %v12360_v4  ;;  %19497 = vst [vmem:[#allocation36_spill] sm:$0xff] %v12362_v13  ;;  %v12366_v62 = vsel %vm2385_vm3, %v19498_v63, %v7649_v28  ;;  %v12370_v10 = vsel %vm2385_vm3, %v19500_v54, %v7655_v48  ;;  %v19502_v47 = vld [vmem:[#allocation190_spill] sm:$0xff]  ;;  %v19503_v22 = vld [vmem:[#allocation129_spill] sm:$0xff] }
 0x1eb   :  { %19499 = vst [vmem:[#allocation167_spill] sm:$0xff] %v12366_v62  ;;  %19501 = vst [vmem:[#allocation37_spill] sm:$0xff] %v12370_v10  ;;  %v7674_v43 = vunpack.i.l.bf16 %v19502_v47  ;;  %v12376_v18 = vsel %vm2385_vm3, %v19503_v22, %v7654_v12  ;;  %v7675_v4 = vunpack.i.h.bf16 %v19502_v47  ;;  %v19505_v13 = vld [vmem:[#allocation140_spill] sm:$0xff]  ;;  %v19506_v28 = vld [vmem:[#allocation135_spill] sm:$0xff] }
 0x1ec   :  { %19504 = vst [vmem:[#allocation168_spill] sm:$0xff] %v12376_v18  ;;  %8602 = vrot.lane.b32.xlu0 %v19505_v13, %s10015_s26  ;;  %8607 = vrot.lane.b32.xlu1 %v19506_v28, %s10015_s26  ;;  %v19507_v63 = vld [vmem:[#allocation133_spill] sm:$0xff]  ;;  %v19508_v54 = vld [vmem:[#allocation191_spill] sm:$0xff]  ;;  %v19509_v62 = vld [vmem:[#allocation192_spill] sm:$0xff] }
 0x1ed   :  { %v12385_v48 = vsel %vm2385_vm3, %v19507_v63, %v7660_v8  ;;  %v7680_v37 = vunpack.i.h.bf16 %v19508_v54  ;;  %v7679_v10 = vunpack.i.l.bf16 %v19508_v54  ;;  %v7685_v56 = vunpack.i.h.bf16 %v19509_v62  ;;  %v19510_v12 = vld [vmem:[#allocation134_spill] sm:$0xff]  ;;  %v19511_v47 = vld [vmem:[#allocation137_spill] sm:$0xff]  ;;  %v12406_v63 = vpop.permute.xlu0 %8322  ;;  %v12408_v54 = vpop.permute.xlu1 %8327 }
 0x1ee   :  { %v12392_v22 = vsel %vm2385_vm3, %v19510_v12, %v7659_v11  ;;  %v12396_v13 = vsel %vm2385_vm3, %v19511_v47, %v7665_v25  ;;  %v19513_v18 = vld [vmem:[#allocation138_spill] sm:$0xff]  ;;  %v12404_v8 = vsel %vm2448_vm4, %v12010_v57, %v7670_v17  ;;  %19516 = vst [vmem:[#allocation169_spill] sm:$0xff] %v12406_v63  ;;  %19517 = vst [vmem:[#allocation40_spill] sm:$0xff] %v12408_v54  ;;  %v7684_v12 = vunpack.i.l.bf16 %v19509_v62  ;;  %v19531_v54 = vld [vmem:[#allocation27_spill] sm:$0xff] }
 0x1ef   :  { %19512 = vst [vmem:[#allocation86_spill] sm:$0xff] %v12396_v13  ;;  %v12400_v28 = vsel %vm2385_vm3, %v19513_v18, %v7664_v31  ;;  %19515 = vst [vmem:[#allocation38_spill] sm:$0xff] %v12404_v8  ;;  %v12412_v11 = vsel %vm2448_vm4, %v12014_v2, %v7669_v41  ;;  %v12416_v25 = vsel %vm2448_vm4, %v12040_v24, %v7674_v43  ;;  %v19519_v31 = vld [vmem:[#allocation193_spill] sm:$0xff]  ;;  %v19520_v47 = vld [vmem:[#allocation142_spill] sm:$0xff]  ;;  %v7719_v63 = vunpack.i.l.bf16 %v19531_v54 }
 0x1f0   :  { %19514 = vst [vmem:[#allocation92_spill] sm:$0xff] %v12400_v28  ;;  %19518 = vst [vmem:[#allocation46_spill] sm:$0xff] %v12412_v11  ;;  %v7689_v18 = vunpack.i.l.bf16 %v19519_v31  ;;  %v12422_v57 = vsel %vm2448_vm4, %v12033_v35, %v7675_v4  ;;  %v7690_v17 = vunpack.i.h.bf16 %v19519_v31  ;;  %8612 = vrot.lane.b32.xlu0 %v19520_v47, %s10016_s1  ;;  %v19521_v2 = vld [vmem:[#allocation143_spill] sm:$0xff]  ;;  %v12431_v24 = vsel %vm2448_vm4, %v12024_v26, %v7679_v10  ;;  %v19522_v4 = vld [vmem:[#allocation194_spill] sm:$0xff] }
 0x1f1   :  { %8617 = vrot.lane.b32.xlu1 %v19521_v2, %s10016_s1  ;;  %v12435_v43 = vsel %vm2448_vm4, %v12020_v58, %v7680_v37  ;;  %v12439_v35 = vsel %vm2448_vm4, %v12044_v33, %v7685_v56  ;;  %v7695_v62 = vunpack.i.h.bf16 %v19522_v4  ;;  %v7694_v41 = vunpack.i.l.bf16 %v19522_v4  ;;  %v19523_v31 = vld [vmem:[#allocation195_spill] sm:$0xff]  ;;  %v19524_v13 = vld [vmem:[#allocation18_spill] sm:$0xff]  ;;  %v12446_v26 = vpop.permute.xlu0 %8332  ;;  %v12448_v10 = vpop.permute.xlu1 %8337  ;;  %v19527_v37 = vld [vmem:[#allocation13_spill] sm:$0xff] }
 0x1f2   :  { %v7700_v47 = vunpack.i.h.bf16 %v19523_v31  ;;  %v7699_v2 = vunpack.i.l.bf16 %v19523_v31  ;;  %v7705_v28 = vunpack.i.h.bf16 %v19524_v13  ;;  %19525 = vst [vmem:[#allocation42_spill] sm:$0xff] %v12446_v26  ;;  %19526 = vst [vmem:[#allocation170_spill] sm:$0xff] %v12448_v10  ;;  %v12452_v58 = vsel %vm2448_vm4, %v12048_v1, %v7684_v12  ;;  %v19528_v10 = vld [vmem:[#allocation144_spill] sm:$0xff]  ;;  %v19529_v1 = vld [vmem:[#allocation145_spill] sm:$0xff] }
 0x1f3   :  { %v12456_v33 = vsel %vm2448_vm4, %v12061_v5, %v7689_v18  ;;  %v7704_v56 = vunpack.i.l.bf16 %v19524_v13  ;;  %v7709_v4 = vunpack.i.l.bf16 %v19527_v37  ;;  %v12462_v31 = vsel %vm2448_vm4, %v12057_v7, %v7690_v17  ;;  %v19530_v12 = vld [vmem:[#allocation20_spill] sm:$0xff] }
 0x1f4   :  { %v7710_v26 = vunpack.i.h.bf16 %v19527_v37  ;;  %8622 = vrot.lane.b32.xlu0 %v19528_v10, %s10016_s1  ;;  %v12471_v5 = vsel %vm2448_vm4, %v12067_v20, %v7695_v62  ;;  %v7715_v13 = vunpack.i.h.bf16 %v19530_v12  ;;  %v7714_v18 = vunpack.i.l.bf16 %v19530_v12 }
 0x1f5   :  { %8627 = vrot.lane.b32.xlu1 %v19529_v1, %s10016_s1  ;;  %v12478_v7 = vsel %vm2448_vm4, %v12076_v40, %v7694_v41  ;;  %v12482_v17 = vsel %vm2448_vm4, %v12084_v6, %v7699_v2  ;;  %v12486_v10 = vsel %vm2448_vm4, %v12080_v55, %v7700_v47  ;;  %v12490_v20 = vsel %vm2448_vm4, %v12089_v45, %v7705_v28  ;;  %v12492_v62 = vpop.permute.xlu0 %8342  ;;  %v12494_v37 = vpop.permute.xlu1 %8347  ;;  %v19534_v55 = vld [vmem:[#allocation30_spill] sm:$0xff]  ;;  %v19538_v1 = vld [vmem:[#allocation35_spill] sm:$0xff] }
 0x1f6   :  { %19532 = vst [vmem:[#allocation48_spill] sm:$0xff] %v12492_v62  ;;  %19533 = vst [vmem:[#allocation47_spill] sm:$0xff] %v12494_v37  ;;  %v12498_v40 = vsel %vm2448_vm4, %v12100_v27, %v7704_v56  ;;  %v12502_v6 = vsel %vm2448_vm4, %v12110_v50, %v7709_v4  ;;  %v7720_v41 = vunpack.i.h.bf16 %v19531_v54  ;;  %v7725_v47 = vunpack.i.h.bf16 %v19534_v55  ;;  %v19535_v2 = vld [vmem:[#allocation146_spill] sm:$0xff]  ;;  %v19536_v27 = vld [vmem:[#allocation147_spill] sm:$0xff] }
 0x1f7   :  { %v12508_v45 = vsel %vm2448_vm4, %v12104_v19, %v7710_v26  ;;  %v7724_v28 = vunpack.i.l.bf16 %v19534_v55  ;;  %v12517_v50 = vsel %vm2448_vm4, %v12119_v3, %v7715_v13  ;;  %v12521_v54 = vsel %vm2448_vm4, %v12129_v0, %v7714_v18  ;;  %v19537_v26 = vld [vmem:[#allocation34_spill] sm:$0xff]  ;;  %v19542_v18 = vld [vmem:[#allocation196_spill] sm:$0xff] }
 0x1f8   :  { %8632 = vrot.lane.b32.xlu0 %v19535_v2, %s10016_s1  ;;  %v12525_v19 = vsel %vm2448_vm4, %v12137_v30, %v7719_v63  ;;  %v7729_v56 = vunpack.i.l.bf16 %v19537_v26  ;;  %v7730_v4 = vunpack.i.h.bf16 %v19537_v26  ;;  %v7735_v12 = vunpack.i.h.bf16 %v19538_v1  ;;  %v19539_v2 = vld [vmem:[#allocation41_spill] sm:$0xff]  ;;  %v19546_v37 = vld [vmem:[#allocation198_spill] sm:$0xff] }
 0x1f9   :  { %8637 = vrot.lane.b32.xlu1 %v19536_v27, %s10016_s1  ;;  %v7734_v55 = vunpack.i.l.bf16 %v19538_v1  ;;  %v7739_v27 = vunpack.i.l.bf16 %v19539_v2  ;;  %v12532_v3 = vpop.permute.xlu0 %8352  ;;  %v12534_v13 = vpop.permute.xlu1 %8357  ;;  %v12538_v0 = vsel %vm2448_vm4, %v12133_v59, %v7720_v41  ;;  %v12542_v30 = vsel %vm2448_vm4, %v12146_v23, %v7725_v47  ;;  %v19544_v59 = vld [vmem:[#allocation149_spill] sm:$0xff] }
 0x1fa   :  { %19540 = vst [vmem:[#allocation171_spill] sm:$0xff] %v12532_v3  ;;  %19541 = vst [vmem:[#allocation52_spill] sm:$0xff] %v12534_v13  ;;  %v7740_v63 = vunpack.i.h.bf16 %v19539_v2  ;;  %v7745_v26 = vunpack.i.h.bf16 %v19542_v18  ;;  %v12548_v1 = vsel %vm2448_vm4, %v12150_v39, %v7724_v28  ;;  %v7744_v3 = vunpack.i.l.bf16 %v19542_v18  ;;  %v19543_v13 = vld [vmem:[#allocation148_spill] sm:$0xff]  ;;  %v19545_v41 = vld [vmem:[#allocation197_spill] sm:$0xff] }
 0x1fb   :  { %v12557_v23 = vsel %vm2448_vm4, %v12165_v21, %v7729_v56  ;;  %v7750_v47 = vunpack.i.h.bf16 %v19545_v41  ;;  %v7749_v2 = vunpack.i.l.bf16 %v19545_v41  ;;  %v7755_v62 = vunpack.i.h.bf16 %v19546_v37 }
 0x1fc   :  { %8642 = vrot.lane.b32.xlu0 %v19543_v13, %s10016_s1  ;;  %v12564_v39 = vsel %vm2448_vm4, %v12156_v38, %v7730_v4  ;;  %v12568_v28 = vsel %vm2448_vm4, %v12169_v49, %v7735_v12  ;;  %v12572_v13 = vsel %vm2448_vm4, %v12173_v32, %v7734_v55  ;;  %v12576_v21 = vsel %vm2448_vm4, %v12192_v9, %v7739_v27  ;;  %v19549_v32 = vld [vmem:[#allocation199_spill] sm:$0xff]  ;;  %v19550_v55 = vld [vmem:[#allocation150_spill] sm:$0xff] }
 0x1fd   :  { %8647 = vrot.lane.b32.xlu1 %v19544_v59, %s10016_s1  ;;  %v12578_v56 = vpop.permute.xlu0 %8362  ;;  %v12580_v18 = vpop.permute.xlu1 %8367  ;;  %v12584_v38 = vsel %vm2448_vm4, %v12181_v46, %v7740_v63  ;;  %v12588_v49 = vsel %vm2448_vm4, %v12196_v29, %v7745_v26  ;;  %v7754_v4 = vunpack.i.l.bf16 %v19546_v37  ;;  %v7759_v12 = vunpack.i.l.bf16 %v19549_v32  ;;  %v19551_v27 = vld [vmem:[#allocation63_spill] sm:$0xff]  ;;  %v19553_v59 = vld [vmem:[#allocation202_spill] sm:$0xff] }
 0x1fe   :  { %19547 = vst [vmem:[#allocation98_spill] sm:$0xff] %v12578_v56  ;;  %19548 = vst [vmem:[#allocation100_spill] sm:$0xff] %v12580_v18  ;;  %v12594_v9 = vsel %vm2448_vm4, %v12202_v52, %v7744_v3  ;;  %v12602_v46 = vsel %vm2448_vm4, %v12221_v42, %v7749_v2  ;;  %v12606_v29 = vsel %vm2448_vm4, %v12211_v34, %v7750_v47  ;;  %v7760_v52 = vunpack.i.h.bf16 %v19549_v32  ;;  %v19552_v3 = vld [vmem:[#allocation201_spill] sm:$0xff]  ;;  %v19562_v18 = vld [vmem:[#allocation11_spill] sm:$0xff] }
 0x1ff   :  { %v12610_v37 = vsel %vm2448_vm4, %v12225_v15, %v7755_v62  ;;  %v7765_v63 = vunpack.i.h.bf16 %v19552_v3  ;;  %v7764_v26 = vunpack.i.l.bf16 %v19552_v3  ;;  %v7770_v41 = vunpack.i.h.bf16 %v19553_v59  ;;  %v19556_v62 = vld [vmem:[#allocation203_spill] sm:$0xff] }
 0x200   :  { %8652 = vrot.lane.b32.xlu0 %v19550_v55, %s10016_s1  ;;  %v7769_v55 = vunpack.i.l.bf16 %v19553_v59  ;;  %v12623_v34 = vsel %vm2448_vm4, %v12229_v16, %v7754_v4  ;;  %v12627_v15 = vsel %vm2448_vm4, %v12242_v60, %v7759_v12  ;;  %v7775_v47 = vunpack.i.h.bf16 %v19556_v62  ;;  %v19559_v60 = vld [vmem:[#allocation77_spill] sm:$0xff] }
 0x201   :  { %8657 = vrot.lane.b32.xlu1 %v19551_v27, %s10016_s1  ;;  %v12617_v42 = vpop.permute.xlu0 %8372  ;;  %v12619_v2 = vpop.permute.xlu1 %8377  ;;  %v7774_v32 = vunpack.i.l.bf16 %v19556_v62  ;;  %v19557_v27 = vld [vmem:[#allocation204_spill] sm:$0xff]  ;;  %v12639_v16 = vsel %vm2448_vm4, %v12238_v51, %v7760_v52  ;;  %v7785_v4 = vunpack.i.h.bf16 %v19559_v60  ;;  %v7784_v12 = vunpack.i.l.bf16 %v19559_v60  ;;  %v19564_v51 = vld [vmem:[#allocation158_spill] sm:$0xff] }
 0x202   :  { %19554 = vst [vmem:[#allocation53_spill] sm:$0xff] %v12617_v42  ;;  %19555 = vst [vmem:[#allocation54_spill] sm:$0xff] %v12619_v2  ;;  %v7780_v3 = vunpack.i.h.bf16 %v19557_v27  ;;  %v7779_v59 = vunpack.i.l.bf16 %v19557_v27  ;;  %v19560_v2 = vld [vmem:[#allocation205_spill] sm:$0xff]  ;;  %v12646_v42 = vsel %vm2448_vm4, %v12248_v36, %v7765_v63  ;;  %v19561_v27 = vld [vmem:[#allocation10_spill] sm:$0xff]  ;;  %v12658_v52 = vsel %vm2448_vm4, %v19564_v51, %v7770_v41 }
 0x203   :  { %19558 = vst [vmem:[#allocation56_spill] sm:$0xff] %v12639_v16  ;;  %v7789_v62 = vunpack.i.l.bf16 %v19560_v2  ;;  %v19567_v16 = vld [vmem:[#allocation14_spill] sm:$0xff]  ;;  %v19574_v51 = vld [vmem:[#allocation21_spill] sm:$0xff] }
 0x204   :  { %8662 = vrot.lane.b32.xlu0 %v19283_v14, %s10016_s1  ;;  %v12650_v14 = vsel %vm2448_vm4, %v19561_v27, %v7764_v26  ;;  %v12666_v36 = vsel %vm2448_vm4, %v19567_v16, %v7775_v47  ;;  %v19569_v63 = vld [vmem:[#allocation22_spill] sm:$0xff]  ;;  %v19576_v47 = vld [vmem:[#allocation75_spill] sm:$0xff] }
 0x205   :  { %8667 = vrot.lane.b32.xlu1 %v19286_v61, %s10016_s1  ;;  %v12654_v61 = vsel %vm2448_vm4, %v19562_v18, %v7769_v55  ;;  %v12660_v60 = vpop.permute.xlu0 %8382  ;;  %v12662_v56 = vpop.permute.xlu1 %8387  ;;  %19568 = vst [vmem:[#allocation58_spill] sm:$0xff] %v12666_v36  ;;  %v12670_v26 = vsel %vm2448_vm4, %v19569_v63, %v7774_v32  ;;  %v7790_v18 = vunpack.i.h.bf16 %v19560_v2  ;;  %v19571_v55 = vld [vmem:[#allocation206_spill] sm:$0xff]  ;;  %v19577_v32 = vld [vmem:[#allocation152_spill] sm:$0xff]  ;;  %v19578_v16 = vld [vmem:[#allocation23_spill] sm:$0xff] }
 0x206   :  { %19563 = vst [vmem:[#allocation172_spill] sm:$0xff] %v12654_v61  ;;  %19565 = vst [vmem:[#allocation62_spill] sm:$0xff] %v12660_v60  ;;  %v7795_v27 = vunpack.i.h.bf16 %v19571_v55  ;;  %v19572_v61 = vld [vmem:[#allocation160_spill] sm:$0xff]  ;;  %v12680_v60 = vsel %vm2448_vm4, %v19574_v51, %v7780_v3  ;;  %v12689_v2 = vsel %vm2448_vm4, %v19578_v16, %v7785_v4  ;;  %v12697_v3 = vsel %vm2448_vm4, %v12320_v53, %v7789_v62 }
 0x207   :  { %19566 = vst [vmem:[#allocation174_spill] sm:$0xff] %v12662_v56  ;;  %19570 = vst [vmem:[#allocation65_spill] sm:$0xff] %v12670_v26  ;;  %v12676_v41 = vsel %vm2448_vm4, %v19572_v61, %v7779_v59  ;;  %v7794_v56 = vunpack.i.l.bf16 %v19571_v55  ;;  %v12693_v59 = vsel %vm2448_vm4, %v12312_v44, %v7784_v12  ;;  %v19582_v61 = vld [vmem:[#allocation207_spill] sm:$0xff]  ;;  %v19583_v51 = vld [vmem:[#allocation208_spill] sm:$0xff] }
 0x208   :  { %19573 = vst [vmem:[#allocation175_spill] sm:$0xff] %v12676_v41  ;;  %19575 = vst [vmem:[#allocation64_spill] sm:$0xff] %v12680_v60  ;;  %8672 = vrot.lane.b32.xlu0 %v19576_v47, %s10016_s1  ;;  %v7799_v63 = vunpack.i.l.bf16 %v19582_v61  ;;  %v7800_v55 = vunpack.i.h.bf16 %v19582_v61  ;;  %v7805_v47 = vunpack.i.h.bf16 %v19583_v51  ;;  %v19584_v60 = vld [vmem:[#allocation209_spill] sm:$0xff]  ;;  %v19587_v44 = vld [vmem:[#allocation8_spill] sm:$0xff] }
 0x209   :  { %8677 = vrot.lane.b32.xlu1 %v19577_v32, %s10016_s1  ;;  %19579 = vst [vmem:[#allocation176_spill] sm:$0xff] %v12689_v2  ;;  %19580 = vst [vmem:[#allocation106_spill] sm:$0xff] %v12693_v59  ;;  %v7804_v32 = vunpack.i.l.bf16 %v19583_v51  ;;  %v7809_v41 = vunpack.i.l.bf16 %v19584_v60  ;;  %v12704_v4 = vpop.permute.xlu0 %8392  ;;  %v12706_v16 = vpop.permute.xlu1 %8397  ;;  %v12710_v12 = vsel %vm2448_vm4, %v19587_v44, %v7790_v18  ;;  %v19589_v53 = vld [vmem:[#allocation28_spill] sm:$0xff]  ;;  %v7810_v61 = vunpack.i.h.bf16 %v19584_v60  ;;  %v19592_v59 = vld [vmem:[#allocation25_spill] sm:$0xff] }
 0x20a   :  { %19581 = vst [vmem:[#allocation112_spill] sm:$0xff] %v12697_v3  ;;  %19585 = vst [vmem:[#allocation70_spill] sm:$0xff] %v12704_v4  ;;  %v12714_v62 = vsel %vm2448_vm4, %v19589_v53, %v7795_v27  ;;  %v19591_v3 = vld [vmem:[#allocation210_spill] sm:$0xff]  ;;  %v12720_v51 = vsel %vm2448_vm4, %v19592_v59, %v7794_v56  ;;  %v19595_v18 = vld [vmem:[#allocation139_spill] sm:$0xff] }
 0x20b   :  { %19586 = vst [vmem:[#allocation177_spill] sm:$0xff] %v12706_v16  ;;  %19588 = vst [vmem:[#allocation71_spill] sm:$0xff] %v12710_v12  ;;  %v7815_v2 = vunpack.i.h.bf16 %v19591_v3  ;;  %v7814_v4 = vunpack.i.l.bf16 %v19591_v3  ;;  %v19594_v16 = vld [vmem:[#allocation151_spill] sm:$0xff]  ;;  %v19598_v53 = vld [vmem:[#allocation212_spill] sm:$0xff] }
 0x20c   :  { %19590 = vst [vmem:[#allocation73_spill] sm:$0xff] %v12714_v62  ;;  %19593 = vst [vmem:[#allocation74_spill] sm:$0xff] %v12720_v51  ;;  %8682 = vrot.lane.b32.xlu0 %v19594_v16, %s10016_s1  ;;  %v19596_v44 = vld [vmem:[#allocation31_spill] sm:$0xff]  ;;  %v7825_v60 = vunpack.i.h.bf16 %v19598_v53  ;;  %v7824_v62 = vunpack.i.l.bf16 %v19598_v53  ;;  %v19599_v12 = vld [vmem:[#allocation213_spill] sm:$0xff] }
 0x20d   :  { %8687 = vrot.lane.b32.xlu1 %v19595_v18, %s10016_s1  ;;  %v12729_v27 = vsel %vm2448_vm4, %v19596_v44, %v7799_v63  ;;  %v7829_v36 = vunpack.i.l.bf16 %v19599_v12  ;;  %v19600_v56 = vld [vmem:[#allocation161_spill] sm:$0xff]  ;;  %v19601_v3 = vld [vmem:[#allocation164_spill] sm:$0xff]  ;;  %v19602_v51 = vld [vmem:[#allocation167_spill] sm:$0xff]  ;;  %v12752_v53 = vpop.permute.xlu1 %8407 }
 0x20e   :  { %19597 = vst [vmem:[#allocation178_spill] sm:$0xff] %v12729_v27  ;;  %v12736_v59 = vsel %vm2448_vm4, %v19600_v56, %v7800_v55  ;;  %v12740_v16 = vsel %vm2448_vm4, %v19601_v3, %v7805_v47  ;;  %v12744_v18 = vsel %vm2448_vm4, %v19602_v51, %v7804_v32  ;;  %v19603_v63 = vld [vmem:[#allocation168_spill] sm:$0xff]  ;;  %v12750_v27 = vpop.permute.xlu0 %8402  ;;  %19605 = vst [vmem:[#allocation78_spill] sm:$0xff] %v12752_v53  ;;  %v19606_v26 = vld [vmem:[#allocation37_spill] sm:$0xff]  ;;  %v7830_v32 = vunpack.i.h.bf16 %v19599_v12 }
 0x20f   :  { %v12748_v44 = vsel %vm2448_vm4, %v19603_v63, %v7809_v41  ;;  %19604 = vst [vmem:[#allocation82_spill] sm:$0xff] %v12750_v27  ;;  %v12756_v55 = vsel %vm2448_vm4, %v19606_v26, %v7810_v61  ;;  %v12760_v47 = vsel %vm2448_vm4, %v12385_v48, %v7815_v2  ;;  %v12766_v41 = vsel %vm2448_vm4, %v12392_v22, %v7814_v4  ;;  %v19610_v51 = vld [vmem:[#allocation132_spill] sm:$0xff]  ;;  %v19612_v26 = vld [vmem:[#allocation153_spill] sm:$0xff]  ;;  %v19616_v12 = vld [vmem:[#allocation214_spill] sm:$0xff] }
 0x210   :  { %19607 = vst [vmem:[#allocation179_spill] sm:$0xff] %v12760_v47  ;;  %19609 = vst [vmem:[#allocation87_spill] sm:$0xff] %v12766_v41  ;;  %v7835_v63 = vunpack.i.h.bf16 %v19610_v51  ;;  %v19611_v53 = vld [vmem:[#allocation96_spill] sm:$0xff]  ;;  %v12775_v48 = vsel %vm2511_vm6, %v12404_v8, %v7825_v60  ;;  %v12779_v2 = vsel %vm2511_vm6, %v12412_v11, %v7824_v62  ;;  %v12783_v22 = vsel %vm2511_vm6, %v12416_v25, %v7829_v36  ;;  %v19621_v25 = vld [vmem:[#allocation215_spill] sm:$0xff] }
 0x211   :  { %8692 = vrot.lane.b32.xlu0 %v19611_v53, %s10016_s1  ;;  %8697 = vrot.lane.b32.xlu1 %v19612_v26, %s10016_s1  ;;  %19613 = vst [vmem:[#allocation118_spill] sm:$0xff] %v12775_v48  ;;  %19614 = vst [vmem:[#allocation120_spill] sm:$0xff] %v12779_v2  ;;  %v7834_v4 = vunpack.i.l.bf16 %v19610_v51  ;;  %v7840_v61 = vunpack.i.h.bf16 %v19616_v12  ;;  %v7839_v53 = vunpack.i.l.bf16 %v19616_v12  ;;  %v19617_v3 = vld [vmem:[#allocation136_spill] sm:$0xff]  ;;  %v12792_v48 = vpop.permute.xlu1 %8417  ;;  %v12796_v62 = vsel %vm2511_vm6, %v12422_v57, %v7830_v32  ;;  %v19625_v32 = vld [vmem:[#allocation217_spill] sm:$0xff] }
 0x212   :  { %19615 = vst [vmem:[#allocation84_spill] sm:$0xff] %v12783_v22  ;;  %v7845_v26 = vunpack.i.h.bf16 %v19617_v3  ;;  %v7844_v27 = vunpack.i.l.bf16 %v19617_v3  ;;  %v12790_v60 = vpop.permute.xlu0 %8412  ;;  %19619 = vst [vmem:[#allocation89_spill] sm:$0xff] %v12792_v48  ;;  %v7850_v36 = vunpack.i.h.bf16 %v19621_v25  ;;  %v7849_v51 = vunpack.i.l.bf16 %v19621_v25  ;;  %v19622_v22 = vld [vmem:[#allocation216_spill] sm:$0xff]  ;;  %v19624_v48 = vld [vmem:[#allocation111_spill] sm:$0xff] }
 0x213   :  { %19618 = vst [vmem:[#allocation90_spill] sm:$0xff] %v12790_v60  ;;  %19620 = vst [vmem:[#allocation180_spill] sm:$0xff] %v12796_v62  ;;  %v7854_v2 = vunpack.i.l.bf16 %v19622_v22  ;;  %v12803_v12 = vsel %vm2511_vm6, %v12435_v43, %v7835_v63  ;;  %v7855_v3 = vunpack.i.h.bf16 %v19622_v22  ;;  %v19623_v60 = vld [vmem:[#allocation108_spill] sm:$0xff]  ;;  %v12812_v57 = vsel %vm2511_vm6, %v12431_v24, %v7834_v4  ;;  %v19626_v47 = vld [vmem:[#allocation141_spill] sm:$0xff] }
 0x214   :  { %v7860_v25 = vunpack.i.h.bf16 %v19625_v32  ;;  %v7859_v62 = vunpack.i.l.bf16 %v19625_v32  ;;  %v7864_v41 = vunpack.i.l.bf16 %v19626_v47  ;;  %v12819_v43 = vsel %vm2511_vm6, %v12452_v58, %v7839_v53  ;;  %v19664_v56 = vld [vmem:[#allocation165_spill] sm:$0xff] }
 0x215   :  { %8702 = vrot.lane.b32.xlu0 %v19623_v60, %s10016_s1  ;;  %8707 = vrot.lane.b32.xlu1 %v19624_v48, %s10016_s1  ;;  %v12823_v63 = vsel %vm2511_vm6, %v12439_v35, %v7840_v61  ;;  %v12827_v48 = vsel %vm2511_vm6, %v12456_v33, %v7844_v27  ;;  %v12831_v24 = vsel %vm2511_vm6, %v12462_v31, %v7845_v26  ;;  %v12835_v4 = vpop.permute.xlu1 %8427  ;;  %v7865_v27 = vunpack.i.h.bf16 %v19626_v47  ;;  %v19629_v61 = vld [vmem:[#allocation218_spill] sm:$0xff]  ;;  %v19630_v26 = vld [vmem:[#allocation155_spill] sm:$0xff] }
 0x216   :  { %v12833_v22 = vpop.permute.xlu0 %8422  ;;  %19628 = vst [vmem:[#allocation181_spill] sm:$0xff] %v12835_v4  ;;  %v12839_v58 = vsel %vm2511_vm6, %v12478_v7, %v7849_v51  ;;  %v12843_v35 = vsel %vm2511_vm6, %v12471_v5, %v7850_v36  ;;  %v12847_v33 = vsel %vm2511_vm6, %v12482_v17, %v7854_v2  ;;  %v12852_v31 = vsel %vm2511_vm6, %v12486_v10, %v7855_v3  ;;  %v19631_v7 = vld [vmem:[#allocation156_spill] sm:$0xff]  ;;  %v19632_v2 = vld [vmem:[#allocation219_spill] sm:$0xff] }
 0x217   :  { %19627 = vst [vmem:[#allocation93_spill] sm:$0xff] %v12833_v22  ;;  %v7869_v53 = vunpack.i.l.bf16 %v19629_v61  ;;  %v12861_v5 = vsel %vm2511_vm6, %v12498_v40, %v7859_v62  ;;  %v12865_v17 = vsel %vm2511_vm6, %v12490_v20, %v7860_v25  ;;  %v12869_v10 = vsel %vm2511_vm6, %v12502_v6, %v7864_v41  ;;  %v19633_v51 = vld [vmem:[#allocation220_spill] sm:$0xff]  ;;  %v19636_v6 = vld [vmem:[#allocation221_spill] sm:$0xff] }
 0x218   :  { %v7870_v47 = vunpack.i.h.bf16 %v19629_v61  ;;  %v7875_v60 = vunpack.i.h.bf16 %v19632_v2  ;;  %v7874_v36 = vunpack.i.l.bf16 %v19632_v2  ;;  %v7880_v3 = vunpack.i.h.bf16 %v19633_v51  ;;  %v19637_v61 = vld [vmem:[#allocation222_spill] sm:$0xff]  ;;  %v19641_v4 = vld [vmem:[#allocation224_spill] sm:$0xff] }
 0x219   :  { %8712 = vrot.lane.b32.xlu0 %v19630_v26, %s10016_s1  ;;  %8717 = vrot.lane.b32.xlu1 %v19631_v7, %s10016_s1  ;;  %v7879_v32 = vunpack.i.l.bf16 %v19633_v51  ;;  %v12878_v62 = vpop.permute.xlu1 %8437  ;;  %v12882_v20 = vsel %vm2511_vm6, %v12508_v45, %v7865_v27  ;;  %v7885_v41 = vunpack.i.h.bf16 %v19636_v6  ;;  %v7884_v25 = vunpack.i.l.bf16 %v19636_v6  ;;  %v19638_v51 = vld [vmem:[#allocation123_spill] sm:$0xff] }
 0x21a   :  { %v12876_v40 = vpop.permute.xlu0 %8432  ;;  %19635 = vst [vmem:[#allocation101_spill] sm:$0xff] %v12878_v62  ;;  %v7889_v26 = vunpack.i.l.bf16 %v19637_v61  ;;  %v12889_v7 = vsel %vm2511_vm6, %v12521_v54, %v7869_v53  ;;  %v7890_v2 = vunpack.i.h.bf16 %v19637_v61  ;;  %v19639_v62 = vld [vmem:[#allocation157_spill] sm:$0xff]  ;;  %v12898_v45 = vsel %vm2511_vm6, %v12517_v50, %v7870_v47  ;;  %v19640_v27 = vld [vmem:[#allocation223_spill] sm:$0xff] }
 0x21b   :  { %19634 = vst [vmem:[#allocation95_spill] sm:$0xff] %v12876_v40  ;;  %v7895_v6 = vunpack.i.h.bf16 %v19640_v27  ;;  %v7894_v40 = vunpack.i.l.bf16 %v19640_v27  ;;  %v7899_v22 = vunpack.i.l.bf16 %v19641_v4  ;;  %v12905_v54 = vsel %vm2511_vm6, %v12525_v19, %v7874_v36  ;;  %v19644_v36 = vld [vmem:[#allocation225_spill] sm:$0xff] }
 0x21c   :  { %v12909_v53 = vsel %vm2511_vm6, %v12538_v0, %v7875_v60  ;;  %v12917_v50 = vsel %vm2511_vm6, %v12542_v30, %v7880_v3  ;;  %v12925_v19 = vsel %vm2511_vm6, %v12557_v23, %v7884_v25  ;;  %v12929_v0 = vsel %vm2511_vm6, %v12564_v39, %v7885_v41  ;;  %v19646_v23 = vld [vmem:[#allocation159_spill] sm:$0xff]  ;;  %v19647_v41 = vld [vmem:[#allocation226_spill] sm:$0xff] }
 0x21d   :  { %8722 = vrot.lane.b32.xlu0 %v19638_v51, %s10016_s1  ;;  %8727 = vrot.lane.b32.xlu1 %v19639_v62, %s10016_s1  ;;  %v12913_v62 = vsel %vm2511_vm6, %v12548_v1, %v7879_v32  ;;  %v12921_v61 = vpop.permute.xlu1 %8447  ;;  %v12933_v1 = vsel %vm2511_vm6, %v12572_v13, %v7889_v26  ;;  %v7900_v60 = vunpack.i.h.bf16 %v19641_v4  ;;  %v12938_v30 = vsel %vm2511_vm6, %v12568_v28, %v7890_v2  ;;  %v19645_v32 = vld [vmem:[#allocation131_spill] sm:$0xff]  ;;  %v19648_v2 = vld [vmem:[#allocation66_spill] sm:$0xff] }
 0x21e   :  { %v12919_v47 = vpop.permute.xlu0 %8442  ;;  %19643 = vst [vmem:[#allocation102_spill] sm:$0xff] %v12921_v61  ;;  %v7905_v3 = vunpack.i.h.bf16 %v19644_v36  ;;  %v12947_v39 = vsel %vm2511_vm6, %v12576_v21, %v7894_v40  ;;  %v12951_v13 = vsel %vm2511_vm6, %v12584_v38, %v7895_v6  ;;  %v12955_v28 = vsel %vm2511_vm6, %v12594_v9, %v7899_v22  ;;  %v19651_v9 = vld [vmem:[#allocation227_spill] sm:$0xff] }
 0x21f   :  { %19642 = vst [vmem:[#allocation182_spill] sm:$0xff] %v12919_v47  ;;  %v7904_v4 = vunpack.i.l.bf16 %v19644_v36  ;;  %v7910_v25 = vunpack.i.h.bf16 %v19647_v41  ;;  %v7909_v26 = vunpack.i.l.bf16 %v19647_v41  ;;  %v7915_v51 = vunpack.i.h.bf16 %v19648_v2  ;;  %v19652_v36 = vld [vmem:[#allocation228_spill] sm:$0xff] }
 0x220   :  { %v7914_v27 = vunpack.i.l.bf16 %v19648_v2  ;;  %v12968_v38 = vsel %vm2511_vm6, %v12588_v49, %v7900_v60  ;;  %v7920_v22 = vunpack.i.h.bf16 %v19651_v9  ;;  %v7919_v6 = vunpack.i.l.bf16 %v19651_v9  ;;  %v19653_v2 = vld [vmem:[#allocation162_spill] sm:$0xff]  ;;  %v19655_v9 = vld [vmem:[#allocation229_spill] sm:$0xff] }
 0x221   :  { %8732 = vrot.lane.b32.xlu0 %v19645_v32, %s10016_s1  ;;  %8737 = vrot.lane.b32.xlu1 %v19646_v23, %s10016_s1  ;;  %v12964_v40 = vpop.permute.xlu1 %8457  ;;  %v7924_v32 = vunpack.i.l.bf16 %v19652_v36  ;;  %v12976_v41 = vsel %vm2511_vm6, %v12404_v8, %v7905_v3  ;;  %v12984_v49 = vsel %vm2511_vm6, %v12412_v11, %v7904_v4  ;;  %v7925_v60 = vunpack.i.h.bf16 %v19652_v36 }
 0x222   :  { %v12962_v21 = vpop.permute.xlu0 %8452  ;;  %19650 = vst [vmem:[#allocation107_spill] sm:$0xff] %v12964_v40  ;;  %v7930_v61 = vunpack.i.h.bf16 %v19655_v9  ;;  %v7929_v23 = vunpack.i.l.bf16 %v19655_v9  ;;  %v12991_v3 = vsel %vm2511_vm6, %v12602_v46, %v7909_v26  ;;  %v13003_v4 = vsel %vm2511_vm6, %v12610_v37, %v7915_v51  ;;  %v19659_v26 = vld [vmem:[#allocation56_spill] sm:$0xff]  ;;  %v19663_v51 = vld [vmem:[#allocation231_spill] sm:$0xff] }
 0x223   :  { %19649 = vst [vmem:[#allocation126_spill] sm:$0xff] %v12962_v21  ;;  %v19654_v21 = vld [vmem:[#allocation163_spill] sm:$0xff]  ;;  %v13011_v46 = vsel %vm2511_vm6, %v12627_v15, %v7919_v6  ;;  %v7940_v9 = vunpack.i.h.bf16 %v19663_v51  ;;  %v7939_v8 = vunpack.i.l.bf16 %v19663_v51  ;;  %v19665_v15 = vld [vmem:[#allocation166_spill] sm:$0xff]  ;;  %v19671_v51 = vld [vmem:[#allocation232_spill] sm:$0xff] }
 0x224   :  { %19658 = vst [vmem:[#allocation104_spill] sm:$0xff] %v13011_v46  ;;  %v7950_v47 = vunpack.i.h.bf16 %v19671_v51  ;;  %v19676_v40 = vld [vmem:[#allocation235_spill] sm:$0xff] }
 0x225   :  { %8742 = vrot.lane.b32.xlu0 %v19653_v2, %s10016_s1  ;;  %8747 = vrot.lane.b32.xlu1 %v19654_v21, %s10016_s1  ;;  %v12995_v2 = vsel %vm2511_vm6, %v12606_v29, %v7910_v25  ;;  %v12999_v21 = vsel %vm2511_vm6, %v12623_v34, %v7914_v27  ;;  %v13007_v11 = vpop.permute.xlu1 %8467  ;;  %v13015_v29 = vsel %vm2511_vm6, %v19659_v26, %v7920_v22  ;;  %v19662_v25 = vld [vmem:[#allocation230_spill] sm:$0xff]  ;;  %v19670_v26 = vld [vmem:[#allocation72_spill] sm:$0xff] }
 0x226   :  { %v13005_v36 = vpop.permute.xlu0 %8462  ;;  %19657 = vst [vmem:[#allocation184_spill] sm:$0xff] %v13007_v11  ;;  %19660 = vst [vmem:[#allocation110_spill] sm:$0xff] %v13015_v29  ;;  %v13019_v34 = vsel %vm2511_vm6, %v12650_v14, %v7924_v32  ;;  %v7935_v27 = vunpack.i.h.bf16 %v19662_v25  ;;  %v7934_v37 = vunpack.i.l.bf16 %v19662_v25  ;;  %v13031_v22 = vsel %vm2511_vm6, %v12646_v42, %v7925_v60  ;;  %v19667_v14 = vld [vmem:[#allocation172_spill] sm:$0xff]  ;;  %v19672_v11 = vld [vmem:[#allocation233_spill] sm:$0xff] }
 0x227   :  { %19656 = vst [vmem:[#allocation183_spill] sm:$0xff] %v13005_v36  ;;  %19661 = vst [vmem:[#allocation109_spill] sm:$0xff] %v13019_v34  ;;  %v13035_v6 = vsel %vm2511_vm6, %v19667_v14, %v7929_v23  ;;  %v13039_v32 = vsel %vm2511_vm6, %v12658_v52, %v7930_v61  ;;  %v7944_v25 = vunpack.i.l.bf16 %v19670_v26  ;;  %v7954_v42 = vunpack.i.l.bf16 %v19672_v11  ;;  %v19675_v14 = vld [vmem:[#allocation234_spill] sm:$0xff]  ;;  %v19680_v34 = vld [vmem:[#allocation175_spill] sm:$0xff] }
 0x228   :  { %19666 = vst [vmem:[#allocation113_spill] sm:$0xff] %v13031_v22  ;;  %19668 = vst [vmem:[#allocation115_spill] sm:$0xff] %v13035_v6  ;;  %v7955_v23 = vunpack.i.h.bf16 %v19672_v11  ;;  %v7960_v52 = vunpack.i.h.bf16 %v19675_v14  ;;  %v7959_v61 = vunpack.i.l.bf16 %v19675_v14  ;;  %v19677_v6 = vld [vmem:[#allocation65_spill] sm:$0xff]  ;;  %v19678_v22 = vld [vmem:[#allocation58_spill] sm:$0xff] }
 0x229   :  { %8752 = vrot.lane.b32.xlu0 %v19664_v56, %s10016_s1  ;;  %8757 = vrot.lane.b32.xlu1 %v19665_v15, %s10016_s1  ;;  %19669 = vst [vmem:[#allocation186_spill] sm:$0xff] %v13039_v32  ;;  %v7945_v56 = vunpack.i.h.bf16 %v19670_v26  ;;  %v7949_v15 = vunpack.i.l.bf16 %v19671_v51  ;;  %v13048_v36 = vpop.permute.xlu1 %8477  ;;  %v7964_v32 = vunpack.i.l.bf16 %v19676_v40  ;;  %v13056_v26 = vsel %vm2511_vm6, %v19677_v6, %v7934_v37  ;;  %v19682_v14 = vld [vmem:[#allocation243_spill] sm:$0xff]  ;;  %v19683_v29 = vld [vmem:[#allocation106_spill] sm:$0xff]  ;;  %v19685_v6 = vld [vmem:[#allocation236_spill] sm:$0xff] }
 0x22a   :  { %v13046_v60 = vpop.permute.xlu0 %8472  ;;  %19674 = vst [vmem:[#allocation122_spill] sm:$0xff] %v13048_v36  ;;  %v13060_v51 = vsel %vm2511_vm6, %v19678_v22, %v7935_v27  ;;  %v19681_v36 = vld [vmem:[#allocation64_spill] sm:$0xff]  ;;  %v13074_v46 = vsel %vm2511_vm6, %v19683_v29, %v7944_v25  ;;  %v7965_v37 = vunpack.i.h.bf16 %v19676_v40  ;;  %v7970_v27 = vunpack.i.h.bf16 %v19685_v6  ;;  %v19689_v29 = vld [vmem:[#allocation74_spill] sm:$0xff] }
 0x22b   :  { %19673 = vst [vmem:[#allocation121_spill] sm:$0xff] %v13046_v60  ;;  %19679 = vst [vmem:[#allocation127_spill] sm:$0xff] %v13060_v51  ;;  %v13064_v60 = vsel %vm2511_vm6, %v19680_v34, %v7939_v8  ;;  %v13068_v11 = vsel %vm2511_vm6, %v19681_v36, %v7940_v9  ;;  %v7969_v22 = vunpack.i.l.bf16 %v19685_v6  ;;  %v19686_v51 = vld [vmem:[#allocation176_spill] sm:$0xff]  ;;  %v19688_v9 = vld [vmem:[#allocation71_spill] sm:$0xff]  ;;  %v13093_v25 = vsel %vm2511_vm6, %v19689_v29, %v7954_v42 }
 0x22c   :  { %19684 = vst [vmem:[#allocation187_spill] sm:$0xff] %v13074_v46  ;;  %v13081_v8 = vsel %vm2511_vm6, %v19686_v51, %v7945_v56  ;;  %v19687_v34 = vld [vmem:[#allocation112_spill] sm:$0xff]  ;;  %v19692_v6 = vld [vmem:[#allocation73_spill] sm:$0xff]  ;;  %v19694_v51 = vld [vmem:[#allocation178_spill] sm:$0xff]  ;;  %v13113_v42 = vsel %vm2511_vm6, %v12744_v18, %v7964_v32  ;;  %v13129_v18 = vsel %vm2511_vm6, %v12756_v55, %v7970_v27 }
 0x22d   :  { %8762 = vrot.lane.b32.xlu0 %v19682_v14, %s10016_s1  ;;  %v13085_v36 = vsel %vm2511_vm6, %v19687_v34, %v7949_v15  ;;  %v13089_v14 = vsel %vm2511_vm6, %v19688_v9, %v7950_v47  ;;  %v13097_v46 = vpop.permute.xlu1 %8487  ;;  %v13101_v56 = vsel %vm2511_vm6, %v19692_v6, %v7955_v23  ;;  %v13105_v15 = vsel %vm2511_vm6, %v19694_v51, %v7959_v61  ;;  %v19698_v34 = vld [vmem:[#allocation237_spill] sm:$0xff]  ;;  %v19703_v32 = vld [vmem:[#allocation240_spill] sm:$0xff] }
 0x22e   :  { %v13095_v40 = vpop.permute.xlu0 %8482  ;;  %19691 = vst [vmem:[#allocation189_spill] sm:$0xff] %v13097_v46  ;;  %19693 = vst [vmem:[#allocation124_spill] sm:$0xff] %v13101_v56  ;;  %v13109_v47 = vsel %vm2511_vm6, %v12736_v59, %v7960_v52  ;;  %v7975_v9 = vunpack.i.h.bf16 %v19698_v34  ;;  %v7974_v29 = vunpack.i.l.bf16 %v19698_v34  ;;  %v19699_v46 = vld [vmem:[#allocation239_spill] sm:$0xff]  ;;  %v13121_v61 = vsel %vm2511_vm6, %v12740_v16, %v7965_v37  ;;  %v19709_v27 = vld [vmem:[#allocation244_spill] sm:$0xff] }
 0x22f   :  { %19690 = vst [vmem:[#allocation188_spill] sm:$0xff] %v13095_v40  ;;  %19695 = vst [vmem:[#allocation130_spill] sm:$0xff] %v13105_v15  ;;  %v7985_v40 = vunpack.i.h.bf16 %v19699_v46  ;;  %v7984_v23 = vunpack.i.l.bf16 %v19699_v46  ;;  %v13125_v59 = vsel %vm2511_vm6, %v12748_v44, %v7969_v22  ;;  %v7989_v52 = vunpack.i.l.bf16 %v19703_v32  ;;  %v19708_v22 = vld [vmem:[#allocation242_spill] sm:$0xff]  ;;  %v19712_v34 = vld [vmem:[#allocation179_spill] sm:$0xff] }
 0x230   :  { %19696 = vst [vmem:[#allocation190_spill] sm:$0xff] %v13109_v47  ;;  %19697 = vst [vmem:[#allocation129_spill] sm:$0xff] %v13113_v42  ;;  %v7990_v46 = vunpack.i.h.bf16 %v19703_v32  ;;  %v19705_v42 = vld [vmem:[#allocation241_spill] sm:$0xff]  ;;  %v7999_v55 = vunpack.i.l.bf16 %v19708_v22  ;;  %v13150_v32 = vsel %vm2511_vm6, %v19712_v34, %v7975_v9  ;;  %v19713_v6 = vld [vmem:[#allocation120_spill] sm:$0xff]  ;;  %v8005_v56 = vunpack.i.h.bf16 %v19709_v27 }
 0x231   :  { %19700 = vst [vmem:[#allocation140_spill] sm:$0xff] %v13121_v61  ;;  %19701 = vst [vmem:[#allocation135_spill] sm:$0xff] %v13125_v59  ;;  %v7994_v47 = vunpack.i.l.bf16 %v19705_v42  ;;  %v13138_v37 = vpop.permute.xlu1 %8497  ;;  %v7995_v44 = vunpack.i.h.bf16 %v19705_v42  ;;  %v8000_v59 = vunpack.i.h.bf16 %v19708_v22  ;;  %v19710_v61 = vld [vmem:[#allocation87_spill] sm:$0xff]  ;;  %v19715_v15 = vld [vmem:[#allocation84_spill] sm:$0xff] }
 0x232   :  { %19702 = vst [vmem:[#allocation133_spill] sm:$0xff] %v13129_v18  ;;  %v13136_v16 = vpop.permute.xlu0 %8492  ;;  %19707 = vst [vmem:[#allocation192_spill] sm:$0xff] %v13138_v37  ;;  %v8004_v18 = vunpack.i.l.bf16 %v19709_v27  ;;  %v13146_v51 = vsel %vm2511_vm6, %v19710_v61, %v7974_v29  ;;  %v19714_v37 = vld [vmem:[#allocation118_spill] sm:$0xff]  ;;  %v13162_v22 = vsel %vm2576_vm7, %v19715_v15, %v7989_v52  ;;  %v19716_v29 = vld [vmem:[#allocation245_spill] sm:$0xff] }
 0x233   :  { %19706 = vst [vmem:[#allocation191_spill] sm:$0xff] %v13136_v16  ;;  %19711 = vst [vmem:[#allocation134_spill] sm:$0xff] %v13146_v51  ;;  %v13154_v16 = vsel %vm2576_vm7, %v19713_v6, %v7984_v23  ;;  %v13158_v42 = vsel %vm2576_vm7, %v19714_v37, %v7985_v40  ;;  %v8010_v61 = vunpack.i.h.bf16 %v19716_v29  ;;  %v8009_v51 = vunpack.i.l.bf16 %v19716_v29  ;;  %v19717_v9 = vld [vmem:[#allocation180_spill] sm:$0xff]  ;;  %v19718_v40 = vld [vmem:[#allocation246_spill] sm:$0xff] }
 0x234   :  { %v13169_v34 = vsel %vm2576_vm7, %v19717_v9, %v7990_v46  ;;  %v13173_v23 = vsel %vm2576_vm7, %v12812_v57, %v7994_v47  ;;  %v8015_v6 = vunpack.i.h.bf16 %v19718_v40  ;;  %v8014_v37 = vunpack.i.l.bf16 %v19718_v40  ;;  %v19721_v29 = vld [vmem:[#allocation247_spill] sm:$0xff] }
 0x235   :  { %v13179_v52 = vpop.permute.xlu1 %8507  ;;  %v13183_v27 = vsel %vm2576_vm7, %v12803_v12, %v7995_v44  ;;  %v13187_v46 = vsel %vm2576_vm7, %v12819_v43, %v7999_v55  ;;  %v13191_v57 = vsel %vm2576_vm7, %v12823_v63, %v8000_v59  ;;  %v13195_v47 = vsel %vm2576_vm7, %v12827_v48, %v8004_v18  ;;  %v19724_v59 = vld [vmem:[#allocation249_spill] sm:$0xff] }
 0x236   :  { %v13177_v15 = vpop.permute.xlu0 %8502  ;;  %19720 = vst [vmem:[#allocation138_spill] sm:$0xff] %v13179_v52  ;;  %v8020_v9 = vunpack.i.h.bf16 %v19721_v29  ;;  %v8019_v40 = vunpack.i.l.bf16 %v19721_v29  ;;  %v19722_v52 = vld [vmem:[#allocation248_spill] sm:$0xff]  ;;  %v13203_v43 = vsel %vm2576_vm7, %v12831_v24, %v8005_v56  ;;  %v13207_v63 = vsel %vm2576_vm7, %v12839_v58, %v8009_v51  ;;  %v19725_v56 = vld [vmem:[#allocation250_spill] sm:$0xff] }
 0x237   :  { %19719 = vst [vmem:[#allocation137_spill] sm:$0xff] %v13177_v15  ;;  %v8025_v15 = vunpack.i.h.bf16 %v19722_v52  ;;  %v8024_v12 = vunpack.i.l.bf16 %v19722_v52  ;;  %v13211_v48 = vsel %vm2576_vm7, %v12843_v35, %v8010_v61  ;;  %v8029_v18 = vunpack.i.l.bf16 %v19724_v59  ;;  %v19728_v61 = vld [vmem:[#allocation251_spill] sm:$0xff] }
 0x238   :  { %19723 = vst [vmem:[#allocation193_spill] sm:$0xff] %v13211_v48  ;;  %v13216_v44 = vsel %vm2576_vm7, %v12847_v33, %v8014_v37  ;;  %v13220_v55 = vsel %vm2576_vm7, %v12852_v31, %v8015_v6  ;;  %v8030_v24 = vunpack.i.h.bf16 %v19724_v59  ;;  %v8034_v52 = vunpack.i.l.bf16 %v19725_v56  ;;  %v19729_v33 = vld [vmem:[#allocation252_spill] sm:$0xff] }
 0x239   :  { %v13226_v51 = vpop.permute.xlu1 %8517  ;;  %v8035_v35 = vunpack.i.h.bf16 %v19725_v56  ;;  %v8040_v29 = vunpack.i.h.bf16 %v19728_v61  ;;  %v8039_v48 = vunpack.i.l.bf16 %v19728_v61  ;;  %v8044_v37 = vunpack.i.l.bf16 %v19729_v33 }
 0x23a   :  { %v13224_v58 = vpop.permute.xlu0 %8512  ;;  %19727 = vst [vmem:[#allocation143_spill] sm:$0xff] %v13226_v51  ;;  %v13234_v31 = vsel %vm2576_vm7, %v12861_v5, %v8019_v40  ;;  %v13238_v6 = vsel %vm2576_vm7, %v12865_v17, %v8020_v9  ;;  %v13242_v59 = vsel %vm2576_vm7, %v12869_v10, %v8024_v12  ;;  %v13246_v56 = vsel %vm2576_vm7, %v12882_v20, %v8025_v15  ;;  %v19730_v5 = vld [vmem:[#allocation253_spill] sm:$0xff]  ;;  %v19731_v20 = vld [vmem:[#allocation254_spill] sm:$0xff] }
 0x23b   :  { %19726 = vst [vmem:[#allocation142_spill] sm:$0xff] %v13224_v58  ;;  %v13250_v61 = vsel %vm2576_vm7, %v12889_v7, %v8029_v18  ;;  %v8045_v51 = vunpack.i.h.bf16 %v19729_v33  ;;  %v8050_v40 = vunpack.i.h.bf16 %v19730_v5  ;;  %v8049_v58 = vunpack.i.l.bf16 %v19730_v5 }
 0x23c   :  { %v13257_v17 = vsel %vm2576_vm7, %v12898_v45, %v8030_v24  ;;  %v13261_v10 = vsel %vm2576_vm7, %v12905_v54, %v8034_v52  ;;  %v8055_v15 = vunpack.i.h.bf16 %v19731_v20  ;;  %v8054_v9 = vunpack.i.l.bf16 %v19731_v20  ;;  %v19734_v52 = vld [vmem:[#allocation255_spill] sm:$0xff]  ;;  %v19735_v20 = vld [vmem:[#allocation256_spill] sm:$0xff] }
 0x23d   :  { %v13267_v12 = vpop.permute.xlu1 %8527  ;;  %v13271_v18 = vsel %vm2576_vm7, %v12909_v53, %v8035_v35  ;;  %v13275_v45 = vsel %vm2576_vm7, %v12913_v62, %v8039_v48  ;;  %v13279_v54 = vsel %vm2576_vm7, %v12917_v50, %v8040_v29  ;;  %v13283_v24 = vsel %vm2576_vm7, %v12925_v19, %v8044_v37  ;;  %v19736_v48 = vld [vmem:[#allocation257_spill] sm:$0xff] }
 0x23e   :  { %v13265_v7 = vpop.permute.xlu0 %8522  ;;  %19733 = vst [vmem:[#allocation195_spill] sm:$0xff] %v13267_v12  ;;  %v8060_v33 = vunpack.i.h.bf16 %v19734_v52  ;;  %v8059_v5 = vunpack.i.l.bf16 %v19734_v52  ;;  %v8065_v12 = vunpack.i.h.bf16 %v19735_v20  ;;  %v8064_v53 = vunpack.i.l.bf16 %v19735_v20 }
 0x23f   :  { %19732 = vst [vmem:[#allocation194_spill] sm:$0xff] %v13265_v7  ;;  %v13291_v62 = vsel %vm2576_vm7, %v12929_v0, %v8045_v51  ;;  %v13295_v50 = vsel %vm2576_vm7, %v12933_v1, %v8049_v58  ;;  %v13299_v19 = vsel %vm2576_vm7, %v12938_v30, %v8050_v40  ;;  %v8069_v35 = vunpack.i.l.bf16 %v19736_v48  ;;  %v19737_v51 = vld [vmem:[#allocation258_spill] sm:$0xff]  ;;  %v19740_v40 = vld [vmem:[#allocation259_spill] sm:$0xff] }
 0x240   :  { %v13304_v29 = vsel %vm2576_vm7, %v12947_v39, %v8054_v9  ;;  %v13308_v37 = vsel %vm2576_vm7, %v12951_v13, %v8055_v15  ;;  %v8070_v0 = vunpack.i.h.bf16 %v19736_v48  ;;  %v8074_v52 = vunpack.i.l.bf16 %v19737_v51  ;;  %v19741_v39 = vld [vmem:[#allocation6_spill] sm:$0xff] }
 0x241   :  { %v13314_v58 = vpop.permute.xlu1 %8537  ;;  %v8075_v30 = vunpack.i.h.bf16 %v19737_v51  ;;  %v8080_v20 = vunpack.i.h.bf16 %v19740_v40  ;;  %v8079_v7 = vunpack.i.l.bf16 %v19740_v40  ;;  %v8084_v9 = vunpack.i.l.bf16 %v19741_v39 }
 0x242   :  { %v13312_v1 = vpop.permute.xlu0 %8532  ;;  %19739 = vst [vmem:[#allocation13_spill] sm:$0xff] %v13314_v58  ;;  %v13322_v13 = vsel %vm2576_vm7, %v12955_v28, %v8059_v5  ;;  %v13326_v15 = vsel %vm2576_vm7, %v12968_v38, %v8060_v33  ;;  %v13330_v48 = vsel %vm2576_vm7, %v12984_v49, %v8064_v53  ;;  %v13334_v51 = vsel %vm2576_vm7, %v12976_v41, %v8065_v12  ;;  %v19742_v28 = vld [vmem:[#allocation2_spill] sm:$0xff]  ;;  %v19745_v41 = vld [vmem:[#allocation260_spill] sm:$0xff] }
 0x243   :  { %19738 = vst [vmem:[#allocation18_spill] sm:$0xff] %v13312_v1  ;;  %v13338_v40 = vsel %vm2576_vm7, %v12991_v3, %v8069_v35  ;;  %v8085_v58 = vunpack.i.h.bf16 %v19741_v39  ;;  %v8090_v5 = vunpack.i.h.bf16 %v19742_v28  ;;  %v8089_v1 = vunpack.i.l.bf16 %v19742_v28  ;;  %v19748_v39 = vld [vmem:[#allocation104_spill] sm:$0xff] }
 0x244   :  { %v13345_v38 = vsel %vm2576_vm7, %v12995_v2, %v8070_v0  ;;  %v13349_v49 = vsel %vm2576_vm7, %v12999_v21, %v8074_v52  ;;  %v8095_v12 = vunpack.i.h.bf16 %v19745_v41  ;;  %v8094_v33 = vunpack.i.l.bf16 %v19745_v41  ;;  %v19749_v0 = vld [vmem:[#allocation110_spill] sm:$0xff]  ;;  %v19751_v52 = vld [vmem:[#allocation109_spill] sm:$0xff] }
 0x245   :  { %19743 = vst [vmem:[#allocation144_spill] sm:$0xff] %v13345_v38  ;;  %19744 = vst [vmem:[#allocation145_spill] sm:$0xff] %v13349_v49  ;;  %v13355_v53 = vpop.permute.xlu1 %8547  ;;  %v13359_v35 = vsel %vm2576_vm7, %v13003_v4, %v8075_v30  ;;  %v13363_v2 = vsel %vm2576_vm7, %v19748_v39, %v8079_v7  ;;  %v13367_v21 = vsel %vm2576_vm7, %v19749_v0, %v8080_v20  ;;  %v19753_v41 = vld [vmem:[#allocation261_spill] sm:$0xff]  ;;  %v19754_v49 = vld [vmem:[#allocation262_spill] sm:$0xff] }
 0x246   :  { %v13353_v3 = vpop.permute.xlu0 %8542  ;;  %19747 = vst [vmem:[#allocation27_spill] sm:$0xff] %v13355_v53  ;;  %19750 = vst [vmem:[#allocation30_spill] sm:$0xff] %v13367_v21  ;;  %v13371_v28 = vsel %vm2576_vm7, %v19751_v52, %v8084_v9  ;;  %v8099_v53 = vunpack.i.l.bf16 %v19753_v41  ;;  %v8105_v38 = vunpack.i.h.bf16 %v19754_v49  ;;  %v8104_v4 = vunpack.i.l.bf16 %v19754_v49  ;;  %v19755_v30 = vld [vmem:[#allocation113_spill] sm:$0xff]  ;;  %v19757_v39 = vld [vmem:[#allocation115_spill] sm:$0xff] }
 0x247   :  { %19746 = vst [vmem:[#allocation20_spill] sm:$0xff] %v13353_v3  ;;  %19752 = vst [vmem:[#allocation146_spill] sm:$0xff] %v13371_v28  ;;  %v8100_v3 = vunpack.i.h.bf16 %v19753_v41  ;;  %v13379_v7 = vsel %vm2576_vm7, %v19755_v30, %v8085_v58  ;;  %v13383_v20 = vsel %vm2576_vm7, %v19757_v39, %v8089_v1  ;;  %v19759_v0 = vld [vmem:[#allocation186_spill] sm:$0xff]  ;;  %v19761_v52 = vld [vmem:[#allocation263_spill] sm:$0xff]  ;;  %v13392_v41 = vsel %vm2576_vm7, %v13056_v26, %v8094_v33 }
 0x248   :  { %19756 = vst [vmem:[#allocation147_spill] sm:$0xff] %v13379_v7  ;;  %19758 = vst [vmem:[#allocation34_spill] sm:$0xff] %v13383_v20  ;;  %v13387_v9 = vsel %vm2576_vm7, %v19759_v0, %v8090_v5  ;;  %v8109_v28 = vunpack.i.l.bf16 %v19761_v52  ;;  %v19763_v49 = vld [vmem:[#allocation127_spill] sm:$0xff]  ;;  %v8110_v58 = vunpack.i.h.bf16 %v19761_v52  ;;  %v19765_v30 = vld [vmem:[#allocation264_spill] sm:$0xff] }
 0x249   :  { %19760 = vst [vmem:[#allocation35_spill] sm:$0xff] %v13387_v9  ;;  %19762 = vst [vmem:[#allocation41_spill] sm:$0xff] %v13392_v41  ;;  %v13396_v21 = vsel %vm2576_vm7, %v19763_v49, %v8095_v12  ;;  %v8114_v1 = vunpack.i.l.bf16 %v19765_v30  ;;  %v13402_v20 = vpop.permute.xlu1 %8557  ;;  %v8115_v5 = vunpack.i.h.bf16 %v19765_v30  ;;  %v19768_v0 = vld [vmem:[#allocation265_spill] sm:$0xff]  ;;  %v19769_v26 = vld [vmem:[#allocation266_spill] sm:$0xff]  ;;  %v13410_v12 = vsel %vm2576_vm7, %v13064_v60, %v8099_v53 }
 0x24a   :  { %19764 = vst [vmem:[#allocation196_spill] sm:$0xff] %v13396_v21  ;;  %v13400_v39 = vpop.permute.xlu0 %8552  ;;  %19767 = vst [vmem:[#allocation149_spill] sm:$0xff] %v13402_v20  ;;  %v8120_v9 = vunpack.i.h.bf16 %v19768_v0  ;;  %v8119_v7 = vunpack.i.l.bf16 %v19768_v0  ;;  %v8124_v33 = vunpack.i.l.bf16 %v19769_v26  ;;  %v13414_v52 = vsel %vm2576_vm7, %v13068_v11, %v8100_v3  ;;  %v19772_v49 = vld [vmem:[#allocation187_spill] sm:$0xff] }
 0x24b   :  { %19766 = vst [vmem:[#allocation148_spill] sm:$0xff] %v13400_v39  ;;  %19770 = vst [vmem:[#allocation197_spill] sm:$0xff] %v13410_v12  ;;  %v13418_v21 = vsel %vm2576_vm7, %v19772_v49, %v8104_v4  ;;  %v13422_v30 = vsel %vm2576_vm7, %v13081_v8, %v8105_v38  ;;  %v13426_v0 = vsel %vm2576_vm7, %v13085_v36, %v8109_v28  ;;  %v8125_v41 = vunpack.i.h.bf16 %v19769_v26  ;;  %v19776_v60 = vld [vmem:[#allocation267_spill] sm:$0xff]  ;;  %v19779_v8 = vld [vmem:[#allocation268_spill] sm:$0xff] }
 0x24c   :  { %19771 = vst [vmem:[#allocation198_spill] sm:$0xff] %v13414_v52  ;;  %19773 = vst [vmem:[#allocation199_spill] sm:$0xff] %v13418_v21  ;;  %v8130_v53 = vunpack.i.h.bf16 %v19776_v60  ;;  %v8129_v12 = vunpack.i.l.bf16 %v19776_v60  ;;  %v13433_v11 = vsel %vm2576_vm7, %v13089_v14, %v8110_v58  ;;  %v13437_v3 = vsel %vm2576_vm7, %v13093_v25, %v8114_v1  ;;  %v19782_v26 = vld [vmem:[#allocation124_spill] sm:$0xff]  ;;  %v19784_v60 = vld [vmem:[#allocation130_spill] sm:$0xff] }
 0x24d   :  { %19774 = vst [vmem:[#allocation150_spill] sm:$0xff] %v13422_v30  ;;  %19775 = vst [vmem:[#allocation63_spill] sm:$0xff] %v13426_v0  ;;  %v8135_v38 = vunpack.i.h.bf16 %v19779_v8  ;;  %v8134_v4 = vunpack.i.l.bf16 %v19779_v8  ;;  %v13443_v28 = vpop.permute.xlu1 %8567  ;;  %v13447_v49 = vsel %vm2576_vm7, %v19782_v26, %v8115_v5  ;;  %v13451_v14 = vsel %vm2576_vm7, %v19784_v60, %v8119_v7  ;;  %v19786_v58 = vld [vmem:[#allocation190_spill] sm:$0xff]  ;;  %v19788_v1 = vld [vmem:[#allocation129_spill] sm:$0xff] }
 0x24e   :  { %19777 = vst [vmem:[#allocation201_spill] sm:$0xff] %v13433_v11  ;;  %19778 = vst [vmem:[#allocation202_spill] sm:$0xff] %v13437_v3  ;;  %v13441_v36 = vpop.permute.xlu0 %8562  ;;  %v13455_v25 = vsel %vm2576_vm7, %v19786_v58, %v8120_v9  ;;  %v13459_v3 = vsel %vm2576_vm7, %v19788_v1, %v8124_v33  ;;  %v19790_v8 = vld [vmem:[#allocation270_spill] sm:$0xff]  ;;  %v19791_v30 = vld [vmem:[#allocation271_spill] sm:$0xff] }
 0x24f   :  { %19780 = vst [vmem:[#allocation203_spill] sm:$0xff] %v13441_v36  ;;  %19781 = vst [vmem:[#allocation204_spill] sm:$0xff] %v13443_v28  ;;  %v8145_v11 = vunpack.i.h.bf16 %v19790_v8  ;;  %v8144_v0 = vunpack.i.l.bf16 %v19790_v8  ;;  %v8150_v21 = vunpack.i.h.bf16 %v19791_v30  ;;  %v8149_v5 = vunpack.i.l.bf16 %v19791_v30  ;;  %v19792_v26 = vld [vmem:[#allocation140_spill] sm:$0xff]  ;;  %v19794_v60 = vld [vmem:[#allocation135_spill] sm:$0xff] }
 0x250   :  { %19783 = vst [vmem:[#allocation77_spill] sm:$0xff] %v13447_v49  ;;  %19785 = vst [vmem:[#allocation205_spill] sm:$0xff] %v13451_v14  ;;  %v13467_v7 = vsel %vm2576_vm7, %v19792_v26, %v8125_v41  ;;  %v13471_v9 = vsel %vm2576_vm7, %v19794_v60, %v8129_v12  ;;  %v19796_v58 = vld [vmem:[#allocation133_spill] sm:$0xff]  ;;  %v13484_v30 = vsel %vm2576_vm7, %v13150_v32, %v8135_v38  ;;  %v19802_v26 = vld [vmem:[#allocation272_spill] sm:$0xff] }
 0x251   :  { %19787 = vst [vmem:[#allocation10_spill] sm:$0xff] %v13455_v25  ;;  %19789 = vst [vmem:[#allocation11_spill] sm:$0xff] %v13459_v3  ;;  %v13475_v33 = vsel %vm2576_vm7, %v19796_v58, %v8130_v53  ;;  %v19799_v25 = vld [vmem:[#allocation134_spill] sm:$0xff]  ;;  %v13490_v60 = vpop.permute.xlu1 %8577  ;;  %v8155_v53 = vunpack.i.h.bf16 %v19802_v26  ;;  %v19805_v58 = vld [vmem:[#allocation273_spill] sm:$0xff]  ;;  %v2642_v32 = vsel %vm2641_vm8, %v13154_v16, %v8144_v0  ;;  %v2643_v38 = vsel %vm2641_vm8, %v13158_v42, %v8145_v11 }
 0x252   :  { %19793 = vst [vmem:[#allocation158_spill] sm:$0xff] %v13467_v7  ;;  %19795 = vst [vmem:[#allocation14_spill] sm:$0xff] %v13471_v9  ;;  %v13480_v8 = vsel %vm2576_vm7, %v19799_v25, %v8134_v4  ;;  %v8154_v7 = vunpack.i.l.bf16 %v19802_v26  ;;  %v13488_v12 = vpop.permute.xlu0 %8572  ;;  %v8160_v3 = vunpack.i.h.bf16 %v19805_v58  ;;  %v19806_v4 = vld [vmem:[#allocation274_spill] sm:$0xff]  ;;  %v2644_v41 = vsel %vm2641_vm8, %v13162_v22, %v8149_v5  ;;  %v19808_v9 = vld [vmem:[#allocation276_spill] sm:$0xff] }
 0x253   :  { %19797 = vst [vmem:[#allocation22_spill] sm:$0xff] %v13475_v33  ;;  %19800 = vst [vmem:[#allocation206_spill] sm:$0xff] %v13480_v8  ;;  %v8159_v33 = vunpack.i.l.bf16 %v19805_v58  ;;  %v8164_v25 = vunpack.i.l.bf16 %v19806_v4  ;;  %v2645_v1 = vsel %vm2641_vm8, %v13169_v34, %v8150_v21  ;;  %v8165_v26 = vunpack.i.h.bf16 %v19806_v4  ;;  %v19809_v0 = vld [vmem:[#allocation277_spill] sm:$0xff]  ;;  %v19813_v49 = vld [vmem:[#allocation279_spill] sm:$0xff] }
 0x254   :  { %19801 = vst [vmem:[#allocation160_spill] sm:$0xff] %v13484_v30  ;;  %19803 = vst [vmem:[#allocation21_spill] sm:$0xff] %v13488_v12  ;;  %v19807_v30 = vld [vmem:[#allocation275_spill] sm:$0xff]  ;;  %v8174_v14 = vunpack.i.l.bf16 %v19808_v9  ;;  %v2646_v16 = vsel %vm2641_vm8, %v13173_v23, %v8154_v7  ;;  %v8175_v42 = vunpack.i.h.bf16 %v19808_v9  ;;  %v8180_v11 = vunpack.i.h.bf16 %v19809_v0  ;;  %v19812_v9 = vld [vmem:[#allocation278_spill] sm:$0xff] }
 0x255   :  { %19804 = vst [vmem:[#allocation75_spill] sm:$0xff] %v13490_v60  ;;  %v8170_v8 = vunpack.i.h.bf16 %v19807_v30  ;;  %v8169_v58 = vunpack.i.l.bf16 %v19807_v30  ;;  %v8179_v22 = vunpack.i.l.bf16 %v19809_v0  ;;  %v13515_v34 = vpop.permute.xlu1 %8587  ;;  %v2647_v21 = vsel %vm2641_vm8, %v13183_v27, %v8155_v53  ;;  %v19815_v53 = vld [vmem:[#allocation280_spill] sm:$0xff] }
 0x256   :  { %v13513_v5 = vpop.permute.xlu0 %8582  ;;  %19811 = vst [vmem:[#allocation23_spill] sm:$0xff] %v13515_v34  ;;  %v13521_v30 = vsel %vm2641_vm8, %v13187_v46, %v8159_v33  ;;  %v13525_v23 = vsel %vm2641_vm8, %v13191_v57, %v8160_v3  ;;  %v13529_v7 = vsel %vm2641_vm8, %v13195_v47, %v8164_v25  ;;  %v8185_v4 = vunpack.i.h.bf16 %v19812_v9  ;;  %v19814_v3 = vld [vmem:[#allocation193_spill] sm:$0xff]  ;;  %v19826_v60 = vld [vmem:[#allocation36_spill] sm:$0xff] }
 0x257   :  { %19810 = vst [vmem:[#allocation152_spill] sm:$0xff] %v13513_v5  ;;  %v8184_v0 = vunpack.i.l.bf16 %v19812_v9  ;;  %v8190_v34 = vunpack.i.h.bf16 %v19813_v49  ;;  %v8189_v27 = vunpack.i.l.bf16 %v19813_v49  ;;  %v13537_v46 = vsel %vm2641_vm8, %v13203_v43, %v8165_v26 }
 0x258   :  { %v13541_v57 = vsel %vm2641_vm8, %v13207_v63, %v8169_v58  ;;  %v13545_v47 = vsel %vm2641_vm8, %v19814_v3, %v8170_v8  ;;  %v13549_v33 = vsel %vm2641_vm8, %v13216_v44, %v8174_v14  ;;  %v13553_v49 = vsel %vm2641_vm8, %v13220_v55, %v8175_v42  ;;  %v19818_v44 = vld [vmem:[#allocation81_spill] sm:$0xff]  ;;  %v19819_v55 = vld [vmem:[#allocation24_spill] sm:$0xff] }
 0x259   :  { %v13557_v43 = vsel %vm2641_vm8, %v13234_v31, %v8179_v22  ;;  %v13561_v63 = vsel %vm2641_vm8, %v13238_v6, %v8180_v11  ;;  %v8194_v8 = vunpack.i.l.bf16 %v19815_v53  ;;  %v13566_v26 = vpop.permute.xlu1 %8597  ;;  %v8305_v14 = vunpack.i.h.bf16 %v19818_v44 }
 0x25a   :  { %v13564_v25 = vpop.permute.xlu0 %8592  ;;  %19817 = vst [vmem:[#allocation208_spill] sm:$0xff] %v13566_v26  ;;  %v8304_v58 = vunpack.i.l.bf16 %v19818_v44  ;;  %v8310_v42 = vunpack.i.h.bf16 %v19819_v55  ;;  %v8309_v9 = vunpack.i.l.bf16 %v19819_v55  ;;  %v13574_v31 = vsel %vm2641_vm8, %v13242_v59, %v8184_v0  ;;  %v19820_v44 = vld [vmem:[#allocation281_spill] sm:$0xff]  ;;  %v19821_v26 = vld [vmem:[#allocation32_spill] sm:$0xff] }
 0x25b   :  { %19816 = vst [vmem:[#allocation207_spill] sm:$0xff] %v13564_v25  ;;  %v13578_v6 = vsel %vm2641_vm8, %v13246_v56, %v8185_v4  ;;  %v13582_v11 = vsel %vm2641_vm8, %v13250_v61, %v8189_v27  ;;  %v13586_v22 = vsel %vm2641_vm8, %v13257_v17, %v8190_v34  ;;  %v8195_v3 = vunpack.i.h.bf16 %v19815_v53 }
 0x25c   :  { %v8315_v25 = vunpack.i.h.bf16 %v19821_v26  ;;  %v8314_v59 = vunpack.i.l.bf16 %v19821_v26  ;;  %v13594_v56 = vsel %vm2641_vm8, %v13261_v10, %v8194_v8  ;;  %v2709_v17 = vsel %vm2706_vm9, %v2644_v41, %v8309_v9  ;;  %v19824_v26 = vld [vmem:[#allocation107_spill] sm:$0xff] }
 0x25d   :  { %v2710_v34 = vsel %vm2706_vm9, %v2645_v1, %v8310_v42  ;;  %v2707_v27 = vsel %vm2706_vm9, %v2642_v32, %v8304_v58  ;;  %v2708_v53 = vsel %vm2706_vm9, %v2643_v38, %v8305_v14  ;;  %v8460_v55 = vunpack.i.h.bf16 %v19824_v26  ;;  %v19825_v8 = vld [vmem:[#allocation183_spill] sm:$0xff]  ;;  %v19827_v42 = vld [vmem:[#allocation169_spill] sm:$0xff]  ;;  %v19828_v14 = vld [vmem:[#allocation184_spill] sm:$0xff] }
 0x25e   :  { %v13597_v61 = vpop.permute.xlu0 %8602  ;;  %v13599_v0 = vpop.permute.xlu1 %8607  ;;  %v8459_v10 = vunpack.i.l.bf16 %v19824_v26  ;;  %v8465_v4 = vunpack.i.h.bf16 %v19825_v8  ;;  %v2712_v5 = vsel %vm2706_vm9, %v2647_v21, %v8315_v25  ;;  %v8320_v41 = vunpack.i.h.bf16 %v19826_v60 }
 0x25f   :  { %19822 = vst [vmem:[#allocation209_spill] sm:$0xff] %v13597_v61  ;;  %19823 = vst [vmem:[#allocation8_spill] sm:$0xff] %v13599_v0  ;;  %v8464_v61 = vunpack.i.l.bf16 %v19825_v8  ;;  %v2711_v0 = vsel %vm2706_vm9, %v2646_v16, %v8314_v59  ;;  %v8319_v1 = vunpack.i.l.bf16 %v19826_v60  ;;  %v8325_v32 = vunpack.i.h.bf16 %v19827_v42 }
 0x260   :  { %v8324_v38 = vunpack.i.l.bf16 %v19827_v42  ;;  %v8470_v58 = vunpack.i.h.bf16 %v19828_v14  ;;  %v8469_v9 = vunpack.i.l.bf16 %v19828_v14  ;;  %v2775_v25 = vsel %vm2771_vm10, %v2710_v34, %v8465_v4  ;;  %v19829_v34 = vld [vmem:[#allocation121_spill] sm:$0xff] }
 0x261   :  { %v2774_v21 = vsel %vm2771_vm10, %v2709_v17, %v8464_v61  ;;  %v2772_v60 = vsel %vm2771_vm10, %v2707_v27, %v8459_v10  ;;  %v2773_v59 = vsel %vm2771_vm10, %v2708_v53, %v8460_v55  ;;  %v8475_v27 = vunpack.i.h.bf16 %v19829_v34 }
 0x262   :  { %v8613_v26 = vpop.permute.xlu0 %8612  ;;  %v8474_v55 = vunpack.i.l.bf16 %v19829_v34  ;;  %v19834_v34 = vld [vmem:[#allocation42_spill] sm:$0xff] }
 0x263   :  { %v8618_v12 = vpop.permute.xlu1 %8617  ;;  %v8615_v28 = vunpack.i.h.bf16 %v8613_v26  ;;  %v8614_v8 = vunpack.i.l.bf16 %v8613_v26  ;;  %v2776_v26 = vsel %vm2771_vm10, %v2711_v0, %v8469_v9  ;;  %v2715_v9 = vsel %vm2706_vm9, %v13529_v7, %v8324_v38 }
 0x264   :  { %v8620_v36 = vunpack.i.h.bf16 %v8618_v12  ;;  %v8619_v16 = vunpack.i.l.bf16 %v8618_v12  ;;  %v2777_v12 = vsel %vm2771_vm10, %v2712_v5, %v8470_v58  ;;  %v13634_v5 = vsel %vm2641_vm8, %v13271_v18, %v8195_v3 }
 0x265   :  { %v2837_v14 = vsel %vm2836_vm11, %v2772_v60, %v8614_v8  ;;  %v2838_v20 = vsel %vm2836_vm11, %v2773_v59, %v8615_v28  ;;  %v19831_v7 = vunpack.i.l.bf16 %v19820_v44 }
 0x266   :  { %v2839_v42 = vsel %vm2836_vm11, %v2774_v21, %v8619_v16  ;;  %v2840_v52 = vsel %vm2836_vm11, %v2775_v25, %v8620_v36  ;;  %v8623_v39 = vpop.permute.xlu0 %8622  ;;  %v2901_v61 = vpack.c.bf16 %v2838_v20, %v2837_v14  ;;  %v19830_v16 = vld [vmem:[#allocation122_spill] sm:$0xff]  ;;  %v2713_v20 = vsel %vm2706_vm9, %v13521_v30, %v8319_v1 }
 0x267   :  { %v8628_v17 = vpop.permute.xlu1 %8627  ;;  %v2902_v4 = vpack.c.bf16 %v2840_v52, %v2839_v42  ;;  %v8625_v53 = vunpack.i.h.bf16 %v8623_v39  ;;  %v8624_v10 = vunpack.i.l.bf16 %v8623_v39  ;;  %v8480_v36 = vunpack.i.h.bf16 %v19830_v16 }
 0x268   :  { %v8479_v8 = vunpack.i.l.bf16 %v19830_v16  ;;  %7362 = vmatprep.mubr.msk.bf16.mxu0 %vm2969_vm12, %v2901_v61  ;;  %v8630_v28 = vunpack.i.h.bf16 %v8628_v17  ;;  %v8629_v0 = vunpack.i.l.bf16 %v8628_v17  ;;  %v2714_v39 = vsel %vm2706_vm9, %v13525_v23, %v8320_v41  ;;  %v19833_v61 = vld [vmem:[#allocation40_spill] sm:$0xff] }
 0x269   :  { %v2841_v52 = vsel %vm2836_vm11, %v2776_v26, %v8624_v10  ;;  %v2842_v58 = vsel %vm2836_vm11, %v2777_v12, %v8625_v53  ;;  %7363 = vmatmul.mubr.msk.bf16.vlgmr.msra.gmra.mrb[0].mxu0 %vm2969_vm12, %v2902_v4  ;;  %v2716_v21 = vsel %vm2706_vm9, %v13537_v46, %v8325_v32  ;;  %v2778_v25 = vsel %vm2771_vm10, %v2713_v20, %v8474_v55  ;;  %v19835_v53 = vld [vmem:[#allocation188_spill] sm:$0xff] }
 0x26a   :  { %v8633_v18 = vpop.permute.xlu0 %8632  ;;  %v2903_v3 = vpack.c.bf16 %v2842_v58, %v2841_v52  ;;  %v2779_v30 = vsel %vm2771_vm10, %v2714_v39, %v8475_v27  ;;  %v2780_v59 = vsel %vm2771_vm10, %v2715_v9, %v8479_v8  ;;  %v2781_v42 = vsel %vm2771_vm10, %v2716_v21, %v8480_v36  ;;  %v19837_v52 = vld [vmem:[#allocation282_spill] sm:$0xff] }
 0x26b   :  { %v8635_v1 = vunpack.i.h.bf16 %v8633_v18  ;;  %v8634_v60 = vunpack.i.l.bf16 %v8633_v18  ;;  %v2843_v23 = vsel %vm2836_vm11, %v2778_v25, %v8629_v0  ;;  %v2844_v41 = vsel %vm2836_vm11, %v2779_v30, %v8630_v28  ;;  %v8638_v12 = vpop.permute.xlu1 %8637  ;;  %v19838_v18 = vld [vmem:[#allocation283_spill] sm:$0xff] }
 0x26c   :  { %7366 = vmatprep.mubr.msk.bf16.mxu0 %vm2969_vm12, %v2903_v3  ;;  %v13658_v46 = vsel %vm2641_vm8, %v13275_v45, %v19831_v7  ;;  %v19832_v32 = vunpack.i.h.bf16 %v19820_v44  ;;  %v8330_v17 = vunpack.i.h.bf16 %v19833_v61  ;;  %v8329_v4 = vunpack.i.l.bf16 %v19833_v61 }
 0x26d   :  { %v2845_v14 = vsel %vm2836_vm11, %v2780_v59, %v8634_v60  ;;  %v2846_v26 = vsel %vm2836_vm11, %v2781_v42, %v8635_v1  ;;  %v8335_v27 = vunpack.i.h.bf16 %v19834_v34  ;;  %v8334_v45 = vunpack.i.l.bf16 %v19834_v34 }
 0x26e   :  { %v13664_v38 = vsel %vm2641_vm8, %v13279_v54, %v19832_v32  ;;  %v8643_v55 = vpop.permute.xlu0 %8642  ;;  %v8485_v44 = vunpack.i.h.bf16 %v19835_v53  ;;  %v8484_v10 = vunpack.i.l.bf16 %v19835_v53  ;;  %v19836_v54 = vld [vmem:[#allocation189_spill] sm:$0xff]  ;;  %v2904_v36 = vpack.c.bf16 %v2844_v41, %v2843_v23 }
 0x26f   :  { %v8490_v16 = vunpack.i.h.bf16 %v19836_v54  ;;  %v8489_v8 = vunpack.i.l.bf16 %v19836_v54  ;;  %v8640_v28 = vunpack.i.h.bf16 %v8638_v12  ;;  %v8639_v0 = vunpack.i.l.bf16 %v8638_v12  ;;  %v19839_v12 = vld [vmem:[#allocation170_spill] sm:$0xff] }
 0x270   :  { %v2905_v20 = vpack.c.bf16 %v2846_v26, %v2845_v14  ;;  %v8205_v58 = vunpack.i.h.bf16 %v19837_v52  ;;  %v8204_v39 = vunpack.i.l.bf16 %v19837_v52  ;;  %v8645_v9 = vunpack.i.h.bf16 %v8643_v55  ;;  %v8648_v26 = vpop.permute.xlu1 %8647 }
 0x271   :  { %v8644_v21 = vunpack.i.l.bf16 %v8643_v55  ;;  %7367 = vmatmul.mubr.msk.bf16.gmra.mrb[4].mxu0 %vm2969_vm12, %v2904_v36  ;;  %v8210_v3 = vunpack.i.h.bf16 %v19838_v18  ;;  %v8209_v25 = vunpack.i.l.bf16 %v19838_v18  ;;  %v2717_v30 = vsel %vm2706_vm9, %v13541_v57, %v8329_v4  ;;  %v19840_v4 = vld [vmem:[#allocation48_spill] sm:$0xff] }
 0x272   :  { %v2718_v1 = vsel %vm2706_vm9, %v13545_v47, %v8330_v17  ;;  %7370 = vmatprep.mubr.msk.bf16.mxu0 %vm2969_vm12, %v2905_v20  ;;  %v2719_v60 = vsel %vm2706_vm9, %v13549_v33, %v8334_v45  ;;  %v2720_v59 = vsel %vm2706_vm9, %v13553_v49, %v8335_v27  ;;  %v2782_v42 = vsel %vm2771_vm10, %v2717_v30, %v8484_v10  ;;  %v8653_v45 = vpop.permute.xlu0 %8652 }
 0x273   :  { %v2783_v23 = vsel %vm2771_vm10, %v2718_v1, %v8485_v44  ;;  %v2784_v41 = vsel %vm2771_vm10, %v2719_v60, %v8489_v8  ;;  %v2785_v7 = vsel %vm2771_vm10, %v2720_v59, %v8490_v16  ;;  %v2847_v57 = vsel %vm2836_vm11, %v2782_v42, %v8639_v0  ;;  %v19844_v60 = vld [vmem:[#allocation50_spill] sm:$0xff] }
 0x274   :  { %v2848_v47 = vsel %vm2836_vm11, %v2783_v23, %v8640_v28  ;;  %v13698_v32 = vsel %vm2641_vm8, %v13283_v24, %v8204_v39  ;;  %v13702_v33 = vsel %vm2641_vm8, %v13291_v62, %v8205_v58  ;;  %v2849_v49 = vsel %vm2836_vm11, %v2784_v41, %v8644_v21  ;;  %v19841_v24 = vld [vmem:[#allocation191_spill] sm:$0xff]  ;;  %v19842_v62 = vld [vmem:[#allocation192_spill] sm:$0xff]  ;;  %v19843_v58 = vld [vmem:[#allocation45_spill] sm:$0xff]  ;;  %v8658_v23 = vpop.permute.xlu1 %8657 }
 0x275   :  { %v2850_v14 = vsel %vm2836_vm11, %v2785_v7, %v8645_v9  ;;  %v8340_v61 = vunpack.i.h.bf16 %v19839_v12  ;;  %v8339_v17 = vunpack.i.l.bf16 %v19839_v12  ;;  %v8345_v34 = vunpack.i.h.bf16 %v19840_v4  ;;  %v19845_v41 = vld [vmem:[#allocation47_spill] sm:$0xff]  ;;  %v19847_v12 = vld [vmem:[#allocation137_spill] sm:$0xff] }
 0x276   :  { %v8344_v27 = vunpack.i.l.bf16 %v19840_v4  ;;  %v8495_v55 = vunpack.i.h.bf16 %v19841_v24  ;;  %v8494_v53 = vunpack.i.l.bf16 %v19841_v24  ;;  %v8500_v44 = vunpack.i.h.bf16 %v19842_v62  ;;  %v19848_v4 = vld [vmem:[#allocation138_spill] sm:$0xff] }
 0x277   :  { %v2906_v10 = vpack.c.bf16 %v2848_v47, %v2847_v57  ;;  %v8499_v54 = vunpack.i.l.bf16 %v19842_v62  ;;  %v8650_v16 = vunpack.i.h.bf16 %v8648_v26  ;;  %v8649_v36 = vunpack.i.l.bf16 %v8648_v26  ;;  %v19846_v47 = vld [vmem:[#allocation171_spill] sm:$0xff]  ;;  %v8663_v26 = vpop.permute.xlu0 %8662 }
 0x278   :  { %v2907_v8 = vpack.c.bf16 %v2850_v14, %v2849_v49  ;;  %v13716_v28 = vsel %vm2641_vm8, %v13295_v50, %v8209_v25  ;;  %v13720_v0 = vsel %vm2641_vm8, %v13299_v19, %v8210_v3  ;;  %v8655_v20 = vunpack.i.h.bf16 %v8653_v45 }
 0x279   :  { %v8654_v52 = vunpack.i.l.bf16 %v8653_v45  ;;  %7371 = vmatmul.mubr.msk.bf16.gmra.mrb[8].mxu0 %vm2969_vm12, %v2906_v10  ;;  %v8215_v39 = vunpack.i.h.bf16 %v19843_v58  ;;  %v8214_v9 = vunpack.i.l.bf16 %v19843_v58  ;;  %v2721_v21 = vsel %vm2706_vm9, %v13557_v43, %v8339_v17 }
 0x27a   :  { %v2722_v18 = vsel %vm2706_vm9, %v13561_v63, %v8340_v61  ;;  %7374 = vmatprep.mubr.msk.bf16.mxu0 %vm2969_vm12, %v2907_v8  ;;  %v2723_v50 = vsel %vm2706_vm9, %v13574_v31, %v8344_v27  ;;  %v2724_v19 = vsel %vm2706_vm9, %v13578_v6, %v8345_v34  ;;  %v2786_v3 = vsel %vm2771_vm10, %v2721_v21, %v8494_v53 }
 0x27b   :  { %v2787_v25 = vsel %vm2771_vm10, %v2722_v18, %v8495_v55  ;;  %v2788_v30 = vsel %vm2771_vm10, %v2723_v50, %v8499_v54  ;;  %v2789_v1 = vsel %vm2771_vm10, %v2724_v19, %v8500_v44  ;;  %v2851_v43 = vsel %vm2836_vm11, %v2786_v3, %v8649_v36  ;;  %v8668_v18 = vpop.permute.xlu1 %8667  ;;  %v19850_v50 = vld [vmem:[#allocation52_spill] sm:$0xff] }
 0x27c   :  { %v2852_v63 = vsel %vm2836_vm11, %v2787_v25, %v8650_v16  ;;  %v8220_v59 = vunpack.i.h.bf16 %v19844_v60  ;;  %v8219_v42 = vunpack.i.l.bf16 %v19844_v60  ;;  %v2853_v31 = vsel %vm2836_vm11, %v2788_v30, %v8654_v52  ;;  %v19851_v25 = vld [vmem:[#allocation98_spill] sm:$0xff] }
 0x27d   :  { %v2854_v6 = vsel %vm2836_vm11, %v2789_v1, %v8655_v20  ;;  %v8350_v7 = vunpack.i.h.bf16 %v19845_v41  ;;  %v8349_v57 = vunpack.i.l.bf16 %v19845_v41  ;;  %v8355_v49 = vunpack.i.h.bf16 %v19846_v47 }
 0x27e   :  { %v8354_v14 = vunpack.i.l.bf16 %v19846_v47  ;;  %v8505_v61 = vunpack.i.h.bf16 %v19847_v12  ;;  %v8504_v17 = vunpack.i.l.bf16 %v19847_v12  ;;  %v8510_v34 = vunpack.i.h.bf16 %v19848_v4  ;;  %v19854_v47 = vld [vmem:[#allocation57_spill] sm:$0xff] }
 0x27f   :  { %v2908_v27 = vpack.c.bf16 %v2852_v63, %v2851_v43  ;;  %v8509_v45 = vunpack.i.l.bf16 %v19848_v4  ;;  %v8660_v24 = vunpack.i.h.bf16 %v8658_v23  ;;  %v8659_v55 = vunpack.i.l.bf16 %v8658_v23  ;;  %v8673_v43 = vpop.permute.xlu0 %8672  ;;  %v19852_v63 = vld [vmem:[#allocation142_spill] sm:$0xff] }
 0x280   :  { %v2909_v53 = vpack.c.bf16 %v2854_v6, %v2853_v31  ;;  %v13754_v62 = vsel %vm2641_vm8, %v13304_v29, %v8214_v9  ;;  %v13758_v44 = vsel %vm2641_vm8, %v13308_v37, %v8215_v39  ;;  %v8665_v10 = vunpack.i.h.bf16 %v8663_v26  ;;  %v19849_v39 = vld [vmem:[#allocation51_spill] sm:$0xff] }
 0x281   :  { %v8664_v54 = vunpack.i.l.bf16 %v8663_v26  ;;  %7375 = vmatmul.mubr.msk.bf16.gmra.mrb[12].mxu0 %vm2969_vm12, %v2908_v27  ;;  %v13763_v16 = vsel %vm2641_vm8, %v13322_v13, %v8219_v42  ;;  %v13767_v36 = vsel %vm2641_vm8, %v13326_v15, %v8220_v59  ;;  %v2725_v29 = vsel %vm2706_vm9, %v13582_v11, %v8349_v57  ;;  %v19853_v42 = vld [vmem:[#allocation143_spill] sm:$0xff] }
 0x282   :  { %v2726_v8 = vsel %vm2706_vm9, %v13586_v22, %v8350_v7  ;;  %7378 = vmatprep.mubr.msk.bf16.mxu0 %vm2969_vm12, %v2909_v53  ;;  %v2727_v37 = vsel %vm2706_vm9, %v13594_v56, %v8354_v14  ;;  %v2728_v20 = vsel %vm2706_vm9, %v13634_v5, %v8355_v49  ;;  %v2790_v13 = vsel %vm2771_vm10, %v2725_v29, %v8504_v17  ;;  %v8678_v29 = vpop.permute.xlu1 %8677 }
 0x283   :  { %v2791_v52 = vsel %vm2771_vm10, %v2726_v8, %v8505_v61  ;;  %v2792_v15 = vsel %vm2771_vm10, %v2727_v37, %v8509_v45  ;;  %v2793_v58 = vsel %vm2771_vm10, %v2728_v20, %v8510_v34  ;;  %v2855_v11 = vsel %vm2836_vm11, %v2790_v13, %v8659_v55  ;;  %v19856_v8 = vld [vmem:[#allocation100_spill] sm:$0xff]  ;;  %v19857_v13 = vld [vmem:[#allocation53_spill] sm:$0xff] }
 0x284   :  { %v2856_v22 = vsel %vm2836_vm11, %v2791_v52, %v8660_v24  ;;  %v8225_v9 = vunpack.i.h.bf16 %v19849_v39  ;;  %v8224_v21 = vunpack.i.l.bf16 %v19849_v39  ;;  %v2857_v56 = vsel %vm2836_vm11, %v2792_v15, %v8664_v54  ;;  %v19859_v39 = vld [vmem:[#allocation195_spill] sm:$0xff] }
 0x285   :  { %v2858_v5 = vsel %vm2836_vm11, %v2793_v58, %v8665_v10  ;;  %v8360_v19 = vunpack.i.h.bf16 %v19850_v50  ;;  %v8359_v3 = vunpack.i.l.bf16 %v19850_v50  ;;  %v8365_v30 = vunpack.i.h.bf16 %v19851_v25  ;;  %v8683_v58 = vpop.permute.xlu0 %8682 }
 0x286   :  { %v8364_v1 = vunpack.i.l.bf16 %v19851_v25  ;;  %v8515_v60 = vunpack.i.h.bf16 %v19852_v63  ;;  %v8514_v59 = vunpack.i.l.bf16 %v19852_v63  ;;  %v8520_v31 = vunpack.i.h.bf16 %v19853_v42 }
 0x287   :  { %v2910_v6 = vpack.c.bf16 %v2856_v22, %v2855_v11  ;;  %v8519_v23 = vunpack.i.l.bf16 %v19853_v42  ;;  %v8670_v41 = vunpack.i.h.bf16 %v8668_v18  ;;  %v8669_v7 = vunpack.i.l.bf16 %v8668_v18 }
 0x288   :  { %v2911_v57 = vpack.c.bf16 %v2858_v5, %v2857_v56  ;;  %v8230_v49 = vunpack.i.h.bf16 %v19854_v47  ;;  %v8229_v14 = vunpack.i.l.bf16 %v19854_v47  ;;  %v8675_v26 = vunpack.i.h.bf16 %v8673_v43  ;;  %v19862_v47 = vld [vmem:[#allocation145_spill] sm:$0xff] }
 0x289   :  { %v8674_v12 = vunpack.i.l.bf16 %v8673_v43  ;;  %7379 = vmatmul.mubr.msk.bf16.gmra.mrb[16].mxu0 %vm2969_vm12, %v2910_v6  ;;  %v13801_v61 = vsel %vm2641_vm8, %v13330_v48, %v8224_v21  ;;  %v13805_v17 = vsel %vm2641_vm8, %v13334_v51, %v8225_v9  ;;  %v2729_v4 = vsel %vm2706_vm9, %v13658_v46, %v8359_v3  ;;  %v19861_v43 = vld [vmem:[#allocation88_spill] sm:$0xff] }
 0x28a   :  { %v2730_v34 = vsel %vm2706_vm9, %v13664_v38, %v8360_v19  ;;  %7382 = vmatprep.mubr.msk.bf16.mxu0 %vm2969_vm12, %v2911_v57  ;;  %v2731_v27 = vsel %vm2706_vm9, %v13698_v32, %v8364_v1  ;;  %v2732_v45 = vsel %vm2706_vm9, %v13702_v33, %v8365_v30  ;;  %v2794_v48 = vsel %vm2771_vm10, %v2729_v4, %v8514_v59  ;;  %v19855_v32 = vld [vmem:[#allocation144_spill] sm:$0xff]  ;;  %v19860_v19 = vld [vmem:[#allocation83_spill] sm:$0xff] }
 0x28b   :  { %v2795_v24 = vsel %vm2771_vm10, %v2730_v34, %v8515_v60  ;;  %v2796_v51 = vsel %vm2771_vm10, %v2731_v27, %v8519_v23  ;;  %v2797_v55 = vsel %vm2771_vm10, %v2732_v45, %v8520_v31  ;;  %v2859_v46 = vsel %vm2836_vm11, %v2794_v48, %v8669_v7  ;;  %v19866_v27 = vld [vmem:[#allocation62_spill] sm:$0xff] }
 0x28c   :  { %v2860_v38 = vsel %vm2836_vm11, %v2795_v24, %v8670_v41  ;;  %v13824_v53 = vsel %vm2641_vm8, %v13338_v40, %v8229_v14  ;;  %v13828_v10 = vsel %vm2641_vm8, %v19855_v32, %v8230_v49  ;;  %v2861_v33 = vsel %vm2836_vm11, %v2796_v51, %v8674_v12  ;;  %v19858_v40 = vld [vmem:[#allocation194_spill] sm:$0xff]  ;;  %v8693_v24 = vpop.permute.xlu0 %8692 }
 0x28d   :  { %v2862_v54 = vsel %vm2836_vm11, %v2797_v55, %v8675_v26  ;;  %v8370_v37 = vunpack.i.h.bf16 %v19856_v8  ;;  %v8369_v20 = vunpack.i.l.bf16 %v19856_v8  ;;  %v8375_v52 = vunpack.i.h.bf16 %v19857_v13  ;;  %v8688_v26 = vpop.permute.xlu1 %8687  ;;  %v19863_v12 = vld [vmem:[#allocation54_spill] sm:$0xff] }
 0x28e   :  { %v8374_v15 = vunpack.i.l.bf16 %v19857_v13  ;;  %v8525_v11 = vunpack.i.h.bf16 %v19858_v40  ;;  %v8524_v22 = vunpack.i.l.bf16 %v19858_v40  ;;  %v8530_v9 = vunpack.i.h.bf16 %v19859_v39  ;;  %v19867_v51 = vld [vmem:[#allocation18_spill] sm:$0xff] }
 0x28f   :  { %v2912_v21 = vpack.c.bf16 %v2860_v38, %v2859_v46  ;;  %v8529_v56 = vunpack.i.l.bf16 %v19859_v39  ;;  %v8680_v5 = vunpack.i.h.bf16 %v8678_v29  ;;  %v8679_v18 = vunpack.i.l.bf16 %v8678_v29  ;;  %v19870_v46 = vld [vmem:[#allocation13_spill] sm:$0xff] }
 0x290   :  { %v2913_v50 = vpack.c.bf16 %v2862_v54, %v2861_v33  ;;  %v8235_v3 = vunpack.i.h.bf16 %v19860_v19  ;;  %v8234_v25 = vunpack.i.l.bf16 %v19860_v19  ;;  %v8685_v30 = vunpack.i.h.bf16 %v8683_v58 }
 0x291   :  { %v8684_v1 = vunpack.i.l.bf16 %v8683_v58  ;;  %7383 = vmatmul.mubr.msk.bf16.gmra.mrb[20].mxu0 %vm2969_vm12, %v2912_v21  ;;  %v8240_v63 = vunpack.i.h.bf16 %v19861_v43  ;;  %v8239_v60 = vunpack.i.l.bf16 %v19861_v43  ;;  %v2733_v59 = vsel %vm2706_vm9, %v13716_v28, %v8369_v20  ;;  %v19873_v20 = vld [vmem:[#allocation30_spill] sm:$0xff]  ;;  %v19874_v58 = vld [vmem:[#allocation61_spill] sm:$0xff] }
 0x292   :  { %v2734_v42 = vsel %vm2706_vm9, %v13720_v0, %v8370_v37  ;;  %7386 = vmatprep.mubr.msk.bf16.mxu0 %vm2969_vm12, %v2913_v50  ;;  %v2735_v31 = vsel %vm2706_vm9, %v13754_v62, %v8374_v15  ;;  %v2736_v6 = vsel %vm2706_vm9, %v13758_v44, %v8375_v52  ;;  %v2798_v23 = vsel %vm2771_vm10, %v2733_v59, %v8524_v22 }
 0x293   :  { %v2799_v41 = vsel %vm2771_vm10, %v2734_v42, %v8525_v11  ;;  %v2800_v7 = vsel %vm2771_vm10, %v2735_v31, %v8529_v56  ;;  %v2801_v57 = vsel %vm2771_vm10, %v2736_v6, %v8530_v9  ;;  %v2863_v28 = vsel %vm2836_vm11, %v2798_v23, %v8679_v18  ;;  %v8703_v42 = vpop.permute.xlu0 %8702  ;;  %v19878_v31 = vld [vmem:[#allocation20_spill] sm:$0xff] }
 0x294   :  { %v2864_v0 = vsel %vm2836_vm11, %v2799_v41, %v8680_v5  ;;  %v13862_v49 = vsel %vm2641_vm8, %v19862_v47, %v8234_v25  ;;  %v13866_v62 = vsel %vm2641_vm8, %v13359_v35, %v8235_v3  ;;  %v2865_v44 = vsel %vm2836_vm11, %v2800_v7, %v8684_v1  ;;  %v8698_v25 = vpop.permute.xlu1 %8697  ;;  %v19879_v41 = vld [vmem:[#allocation27_spill] sm:$0xff] }
 0x295   :  { %v2866_v14 = vsel %vm2836_vm11, %v2801_v57, %v8685_v30  ;;  %v13871_v4 = vunpack.i.h.bf16 %v19863_v12  ;;  %v13874_v34 = vunpack.i.l.bf16 %v19863_v12  ;;  %v8385_v45 = vunpack.i.h.bf16 %v19866_v27  ;;  %v19876_v30 = vld [vmem:[#allocation174_spill] sm:$0xff]  ;;  %v19881_v12 = vld [vmem:[#allocation147_spill] sm:$0xff] }
 0x296   :  { %v8384_v48 = vunpack.i.l.bf16 %v19866_v27  ;;  %v13879_v55 = vunpack.i.h.bf16 %v19867_v51  ;;  %v13882_v35 = vunpack.i.l.bf16 %v19867_v51  ;;  %v8540_v38 = vunpack.i.h.bf16 %v19870_v46 }
 0x297   :  { %19864 = vst [vmem:[#allocation28_spill] sm:$0xff] %v13871_v4  ;;  %19865 = vst [vmem:[#allocation210_spill] sm:$0xff] %v13874_v34  ;;  %v2914_v32 = vpack.c.bf16 %v2864_v0, %v2863_v28  ;;  %v8539_v33 = vunpack.i.l.bf16 %v19870_v46  ;;  %v13886_v54 = vunpack.i.h.bf16 %v8688_v26  ;;  %v13888_v29 = vunpack.i.l.bf16 %v8688_v26  ;;  %v19883_v46 = vld [vmem:[#allocation35_spill] sm:$0xff] }
 0x298   :  { %19868 = vst [vmem:[#allocation25_spill] sm:$0xff] %v13879_v55  ;;  %19869 = vst [vmem:[#allocation151_spill] sm:$0xff] %v13882_v35  ;;  %v2915_v8 = vpack.c.bf16 %v2866_v14, %v2865_v44  ;;  %v13892_v37 = vsel %vm2641_vm8, %v13363_v2, %v8239_v60  ;;  %v13896_v13 = vsel %vm2641_vm8, %v19873_v20, %v8240_v63  ;;  %v8695_v52 = vunpack.i.h.bf16 %v8693_v24  ;;  %v19877_v63 = vld [vmem:[#allocation70_spill] sm:$0xff] }
 0x299   :  { %19871 = vst [vmem:[#allocation139_spill] sm:$0xff] %v13886_v54  ;;  %19872 = vst [vmem:[#allocation31_spill] sm:$0xff] %v13888_v29  ;;  %v8694_v15 = vunpack.i.l.bf16 %v8693_v24  ;;  %7387 = vmatmul.mubr.msk.bf16.gmra.mrb[24].mxu0 %vm2969_vm12, %v2914_v32  ;;  %v8245_v40 = vunpack.i.h.bf16 %v19874_v58  ;;  %v8244_v11 = vunpack.i.l.bf16 %v19874_v58  ;;  %v2737_v22 = vsel %vm2706_vm9, %v13763_v16, %v13874_v34  ;;  %v19880_v14 = vld [vmem:[#allocation146_spill] sm:$0xff] }
 0x29a   :  { %v2738_v2 = vsel %vm2706_vm9, %v13767_v36, %v13871_v4  ;;  %7390 = vmatprep.mubr.msk.bf16.mxu0 %vm2969_vm12, %v2915_v8  ;;  %v2739_v39 = vsel %vm2706_vm9, %v13801_v61, %v8384_v48  ;;  %v2740_v9 = vsel %vm2706_vm9, %v13805_v17, %v8385_v45  ;;  %v2802_v21 = vsel %vm2771_vm10, %v2737_v22, %v13882_v35  ;;  %v19875_v61 = vld [vmem:[#allocation68_spill] sm:$0xff]  ;;  %v19882_v24 = vld [vmem:[#allocation34_spill] sm:$0xff] }
 0x29b   :  { %v2803_v56 = vsel %vm2771_vm10, %v2738_v2, %v13879_v55  ;;  %v2804_v16 = vsel %vm2771_vm10, %v2739_v39, %v8539_v33  ;;  %v2805_v5 = vsel %vm2771_vm10, %v2740_v9, %v8540_v38  ;;  %v2867_v36 = vsel %vm2836_vm11, %v2802_v21, %v13888_v29  ;;  %v8708_v39 = vpop.permute.xlu1 %8707  ;;  %v19885_v9 = vld [vmem:[#allocation177_spill] sm:$0xff] }
 0x29c   :  { %v2868_v18 = vsel %vm2836_vm11, %v2803_v56, %v13886_v54  ;;  %v8250_v50 = vunpack.i.h.bf16 %v19875_v61  ;;  %v8249_v17 = vunpack.i.l.bf16 %v19875_v61  ;;  %v2869_v19 = vsel %vm2836_vm11, %v2804_v16, %v8694_v15  ;;  %v19886_v16 = vld [vmem:[#allocation82_spill] sm:$0xff]  ;;  %v19887_v61 = vld [vmem:[#allocation148_spill] sm:$0xff] }
 0x29d   :  { %v2870_v3 = vsel %vm2836_vm11, %v2805_v5, %v8695_v52  ;;  %v8390_v1 = vunpack.i.h.bf16 %v19876_v30  ;;  %v8389_v43 = vunpack.i.l.bf16 %v19876_v30  ;;  %v8395_v60 = vunpack.i.h.bf16 %v19877_v63 }
 0x29e   :  { %v8394_v59 = vunpack.i.l.bf16 %v19877_v63  ;;  %v8545_v6 = vunpack.i.h.bf16 %v19878_v31  ;;  %v8544_v23 = vunpack.i.l.bf16 %v19878_v31  ;;  %v8550_v7 = vunpack.i.h.bf16 %v19879_v41 }
 0x29f   :  { %v2916_v57 = vpack.c.bf16 %v2868_v18, %v2867_v36  ;;  %v8549_v28 = vunpack.i.l.bf16 %v19879_v41  ;;  %v8700_v0 = vunpack.i.h.bf16 %v8698_v25  ;;  %v8699_v47 = vunpack.i.l.bf16 %v8698_v25  ;;  %v8713_v18 = vpop.permute.xlu0 %8712 }
 0x2a0   :  { %v2917_v44 = vpack.c.bf16 %v2870_v3, %v2869_v19  ;;  %v2682_v26 = vsel %vm2641_vm8, %v19880_v14, %v8244_v11  ;;  %v2683_v27 = vsel %vm2641_vm8, %v19881_v12, %v8245_v40  ;;  %v8705_v45 = vunpack.i.h.bf16 %v8703_v42  ;;  %v19884_v11 = vld [vmem:[#allocation91_spill] sm:$0xff]  ;;  %v19888_v19 = vld [vmem:[#allocation149_spill] sm:$0xff] }
 0x2a1   :  { %v8704_v48 = vunpack.i.l.bf16 %v8703_v42  ;;  %7391 = vmatmul.mubr.msk.bf16.gmra.mrb[28].mxu0 %vm2969_vm12, %v2916_v57  ;;  %v13941_v51 = vsel %vm2641_vm8, %v19882_v24, %v8249_v17  ;;  %v13945_v38 = vsel %vm2641_vm8, %v19883_v46, %v8250_v50  ;;  %v2741_v32 = vsel %vm2706_vm9, %v13824_v53, %v8389_v43  ;;  %v19892_v46 = vld [vmem:[#allocation197_spill] sm:$0xff] }
 0x2a2   :  { %v2742_v33 = vsel %vm2706_vm9, %v13828_v10, %v8390_v1  ;;  %7394 = vmatprep.mubr.msk.bf16.mxu0 %vm2969_vm12, %v2917_v44  ;;  %v2743_v8 = vsel %vm2706_vm9, %v13862_v49, %v8394_v59  ;;  %v2744_v20 = vsel %vm2706_vm9, %v13866_v62, %v8395_v60  ;;  %v2806_v52 = vsel %vm2771_vm10, %v2741_v32, %v8544_v23  ;;  %v19889_v60 = vld [vmem:[#allocation103_spill] sm:$0xff]  ;;  %v19890_v23 = vld [vmem:[#allocation41_spill] sm:$0xff]  ;;  %v19893_v32 = vld [vmem:[#allocation198_spill] sm:$0xff] }
 0x2a3   :  { %v2807_v15 = vsel %vm2771_vm10, %v2742_v33, %v8545_v6  ;;  %v2808_v58 = vsel %vm2771_vm10, %v2743_v8, %v8549_v28  ;;  %v2809_v40 = vsel %vm2771_vm10, %v2744_v20, %v8550_v7  ;;  %v2871_v53 = vsel %vm2836_vm11, %v2806_v52, %v8699_v47  ;;  %v19891_v7 = vld [vmem:[#allocation196_spill] sm:$0xff]  ;;  %v8718_v8 = vpop.permute.xlu1 %8717  ;;  %v19894_v20 = vld [vmem:[#allocation78_spill] sm:$0xff] }
 0x2a4   :  { %v2872_v10 = vsel %vm2836_vm11, %v2807_v15, %v8700_v0  ;;  %v8255_v22 = vunpack.i.h.bf16 %v19884_v11  ;;  %v8254_v2 = vunpack.i.l.bf16 %v19884_v11  ;;  %v2873_v49 = vsel %vm2836_vm11, %v2808_v58, %v8704_v48  ;;  %v19895_v58 = vld [vmem:[#allocation90_spill] sm:$0xff]  ;;  %v19896_v11 = vld [vmem:[#allocation203_spill] sm:$0xff] }
 0x2a5   :  { %v2874_v62 = vsel %vm2836_vm11, %v2809_v40, %v8705_v45  ;;  %v8400_v21 = vunpack.i.h.bf16 %v19885_v9  ;;  %v8399_v56 = vunpack.i.l.bf16 %v19885_v9  ;;  %v8405_v5 = vunpack.i.h.bf16 %v19886_v16 }
 0x2a6   :  { %v8404_v36 = vunpack.i.l.bf16 %v19886_v16  ;;  %v8555_v50 = vunpack.i.h.bf16 %v19887_v61  ;;  %v8554_v17 = vunpack.i.l.bf16 %v19887_v61  ;;  %v8560_v3 = vunpack.i.h.bf16 %v19888_v19 }
 0x2a7   :  { %v2918_v25 = vpack.c.bf16 %v2872_v10, %v2871_v53  ;;  %v8559_v30 = vunpack.i.l.bf16 %v19888_v19  ;;  %v8710_v1 = vunpack.i.h.bf16 %v8708_v39  ;;  %v8709_v43 = vunpack.i.l.bf16 %v8708_v39  ;;  %v8723_v10 = vpop.permute.xlu0 %8722 }
 0x2a8   :  { %v2919_v63 = vpack.c.bf16 %v2874_v62, %v2873_v49  ;;  %v8260_v59 = vunpack.i.h.bf16 %v19889_v60  ;;  %v8259_v42 = vunpack.i.l.bf16 %v19889_v60  ;;  %v8715_v31 = vunpack.i.h.bf16 %v8713_v18  ;;  %v19897_v49 = vld [vmem:[#allocation204_spill] sm:$0xff] }
 0x2a9   :  { %v8714_v6 = vunpack.i.l.bf16 %v8713_v18  ;;  %7395 = vmatmul.mubr.msk.bf16.gmra.mrb[32].mxu0 %vm2969_vm12, %v2918_v25  ;;  %v2686_v41 = vsel %vm2641_vm8, %v19890_v23, %v8254_v2  ;;  %v2687_v57 = vsel %vm2641_vm8, %v19891_v7, %v8255_v22  ;;  %v2745_v28 = vsel %vm2706_vm9, %v13892_v37, %v8399_v56  ;;  %v19901_v23 = vld [vmem:[#allocation150_spill] sm:$0xff] }
 0x2aa   :  { %v2746_v0 = vsel %vm2706_vm9, %v13896_v13, %v8400_v21  ;;  %7398 = vmatprep.mubr.msk.bf16.mxu0 %vm2969_vm12, %v2919_v63  ;;  %v2747_v47 = vsel %vm2706_vm9, %v2682_v26, %v8404_v36  ;;  %v2748_v44 = vsel %vm2706_vm9, %v2683_v27, %v8405_v5  ;;  %v2810_v14 = vsel %vm2771_vm10, %v2745_v28, %v8554_v17  ;;  %v19898_v5 = vld [vmem:[#allocation154_spill] sm:$0xff]  ;;  %v19899_v17 = vld [vmem:[#allocation9_spill] sm:$0xff]  ;;  %v8728_v28 = vpop.permute.xlu1 %8727 }
 0x2ab   :  { %v2811_v12 = vsel %vm2771_vm10, %v2746_v0, %v8555_v50  ;;  %v2812_v45 = vsel %vm2771_vm10, %v2747_v47, %v8559_v30  ;;  %v2813_v48 = vsel %vm2771_vm10, %v2748_v44, %v8560_v3  ;;  %v2875_v24 = vsel %vm2836_vm11, %v2810_v14, %v8709_v43  ;;  %v19902_v0 = vld [vmem:[#allocation89_spill] sm:$0xff] }
 0x2ac   :  { %v2876_v37 = vsel %vm2836_vm11, %v2811_v12, %v8710_v1  ;;  %v2688_v13 = vsel %vm2641_vm8, %v19892_v46, %v8259_v42  ;;  %v2689_v26 = vsel %vm2641_vm8, %v19893_v32, %v8260_v59  ;;  %v2877_v27 = vsel %vm2836_vm11, %v2812_v45, %v8714_v6  ;;  %v19900_v6 = vld [vmem:[#allocation199_spill] sm:$0xff]  ;;  %v19903_v14 = vld [vmem:[#allocation93_spill] sm:$0xff] }
 0x2ad   :  { %v2878_v33 = vsel %vm2836_vm11, %v2813_v48, %v8715_v31  ;;  %v8410_v52 = vunpack.i.h.bf16 %v19894_v20  ;;  %v8409_v15 = vunpack.i.l.bf16 %v19894_v20  ;;  %v8415_v40 = vunpack.i.h.bf16 %v19895_v58  ;;  %v8733_v48 = vpop.permute.xlu0 %8732  ;;  %v19905_v32 = vld [vmem:[#allocation75_spill] sm:$0xff] }
 0x2ae   :  { %v8414_v53 = vunpack.i.l.bf16 %v19895_v58  ;;  %v8565_v22 = vunpack.i.h.bf16 %v19896_v11  ;;  %v8564_v2 = vunpack.i.l.bf16 %v19896_v11  ;;  %v8570_v62 = vunpack.i.h.bf16 %v19897_v49  ;;  %v19906_v58 = vld [vmem:[#allocation63_spill] sm:$0xff] }
 0x2af   :  { %v2920_v39 = vpack.c.bf16 %v2876_v37, %v2875_v24  ;;  %v8569_v9 = vunpack.i.l.bf16 %v19897_v49  ;;  %v8720_v21 = vunpack.i.h.bf16 %v8718_v8  ;;  %v8719_v56 = vunpack.i.l.bf16 %v8718_v8  ;;  %v19904_v24 = vld [vmem:[#allocation21_spill] sm:$0xff] }
 0x2b0   :  { %v2921_v16 = vpack.c.bf16 %v2878_v33, %v2877_v27  ;;  %v8265_v36 = vunpack.i.h.bf16 %v19898_v5  ;;  %v8264_v18 = vunpack.i.l.bf16 %v19898_v5  ;;  %v8725_v61 = vunpack.i.h.bf16 %v8723_v10 }
 0x2b1   :  { %v8724_v50 = vunpack.i.l.bf16 %v8723_v10  ;;  %7399 = vmatmul.mubr.msk.bf16.gmra.mrb[36].mxu0 %vm2969_vm12, %v2920_v39  ;;  %v8270_v19 = vunpack.i.h.bf16 %v19899_v17  ;;  %v8269_v3 = vunpack.i.l.bf16 %v19899_v17  ;;  %v2749_v25 = vsel %vm2706_vm9, %v13941_v51, %v8409_v15 }
 0x2b2   :  { %v2750_v30 = vsel %vm2706_vm9, %v13945_v38, %v8410_v52  ;;  %7402 = vmatprep.mubr.msk.bf16.mxu0 %vm2969_vm12, %v2921_v16  ;;  %v2751_v1 = vsel %vm2706_vm9, %v2686_v41, %v8414_v53  ;;  %v2752_v43 = vsel %vm2706_vm9, %v2687_v57, %v8415_v40  ;;  %v2814_v63 = vsel %vm2771_vm10, %v2749_v25, %v8564_v2  ;;  %v19907_v53 = vld [vmem:[#allocation201_spill] sm:$0xff]  ;;  %v19908_v2 = vld [vmem:[#allocation7_spill] sm:$0xff]  ;;  %v8738_v25 = vpop.permute.xlu1 %8737 }
 0x2b3   :  { %v2815_v60 = vsel %vm2771_vm10, %v2750_v30, %v8565_v22  ;;  %v2816_v59 = vsel %vm2771_vm10, %v2751_v1, %v8569_v9  ;;  %v2817_v42 = vsel %vm2771_vm10, %v2752_v43, %v8570_v62  ;;  %v2879_v31 = vsel %vm2836_vm11, %v2814_v63, %v8719_v56  ;;  %v19910_v30 = vld [vmem:[#allocation181_spill] sm:$0xff]  ;;  %v19911_v63 = vld [vmem:[#allocation95_spill] sm:$0xff] }
 0x2b4   :  { %v2880_v51 = vsel %vm2836_vm11, %v2815_v60, %v8720_v21  ;;  %v2690_v38 = vsel %vm2641_vm8, %v19900_v6, %v8264_v18  ;;  %v2691_v41 = vsel %vm2641_vm8, %v19901_v23, %v8265_v36  ;;  %v2881_v7 = vsel %vm2836_vm11, %v2816_v59, %v8724_v50  ;;  %v19909_v50 = vld [vmem:[#allocation116_spill] sm:$0xff] }
 0x2b5   :  { %v2882_v57 = vsel %vm2836_vm11, %v2817_v42, %v8725_v61  ;;  %v8420_v47 = vunpack.i.h.bf16 %v19902_v0  ;;  %v8419_v44 = vunpack.i.l.bf16 %v19902_v0  ;;  %v8425_v12 = vunpack.i.h.bf16 %v19903_v14  ;;  %v8743_v42 = vpop.permute.xlu0 %8742 }
 0x2b6   :  { %v8424_v45 = vunpack.i.l.bf16 %v19903_v14  ;;  %v8575_v37 = vunpack.i.h.bf16 %v19904_v24  ;;  %v8574_v46 = vunpack.i.l.bf16 %v19904_v24  ;;  %v8580_v27 = vunpack.i.h.bf16 %v19905_v32  ;;  %v19915_v14 = vld [vmem:[#allocation77_spill] sm:$0xff] }
 0x2b7   :  { %v2922_v33 = vpack.c.bf16 %v2880_v51, %v2879_v31  ;;  %v8579_v8 = vunpack.i.l.bf16 %v19905_v32  ;;  %v8730_v20 = vunpack.i.h.bf16 %v8728_v28  ;;  %v8729_v52 = vunpack.i.l.bf16 %v8728_v28  ;;  %v19912_v31 = vld [vmem:[#allocation152_spill] sm:$0xff]  ;;  %v19916_v24 = vld [vmem:[#allocation205_spill] sm:$0xff] }
 0x2b8   :  { %v2923_v15 = vpack.c.bf16 %v2882_v57, %v2881_v7  ;;  %v2692_v40 = vsel %vm2641_vm8, %v19906_v58, %v8269_v3  ;;  %v2693_v10 = vsel %vm2641_vm8, %v19907_v53, %v8270_v19  ;;  %v8735_v11 = vunpack.i.h.bf16 %v8733_v48 }
 0x2b9   :  { %v8734_v22 = vunpack.i.l.bf16 %v8733_v48  ;;  %7403 = vmatmul.mubr.msk.bf16.gmra.mrb[40].mxu0 %vm2969_vm12, %v2922_v33  ;;  %v8275_v49 = vunpack.i.h.bf16 %v19908_v2  ;;  %v8274_v62 = vunpack.i.l.bf16 %v19908_v2  ;;  %v2753_v39 = vsel %vm2706_vm9, %v2688_v13, %v8419_v44 }
 0x2ba   :  { %v2754_v9 = vsel %vm2706_vm9, %v2689_v26, %v8420_v47  ;;  %7406 = vmatprep.mubr.msk.bf16.mxu0 %vm2969_vm12, %v2923_v15  ;;  %v2755_v21 = vsel %vm2706_vm9, %v2690_v38, %v8424_v45  ;;  %v2756_v56 = vsel %vm2706_vm9, %v2691_v41, %v8425_v12  ;;  %v2818_v16 = vsel %vm2771_vm10, %v2753_v39, %v8574_v46  ;;  %v19913_v38 = vld [vmem:[#allocation23_spill] sm:$0xff]  ;;  %v19914_v47 = vld [vmem:[#allocation202_spill] sm:$0xff]  ;;  %v8748_v39 = vpop.permute.xlu1 %8747 }
 0x2bb   :  { %v2819_v5 = vsel %vm2771_vm10, %v2754_v9, %v8575_v37  ;;  %v2820_v36 = vsel %vm2771_vm10, %v2755_v21, %v8579_v8  ;;  %v2821_v18 = vsel %vm2771_vm10, %v2756_v56, %v8580_v27  ;;  %v2883_v61 = vsel %vm2836_vm11, %v2818_v16, %v8729_v52  ;;  %v19917_v46 = vld [vmem:[#allocation10_spill] sm:$0xff]  ;;  %v19919_v9 = vld [vmem:[#allocation101_spill] sm:$0xff] }
 0x2bc   :  { %v2884_v13 = vsel %vm2836_vm11, %v2819_v5, %v8730_v20  ;;  %v8280_v26 = vunpack.i.h.bf16 %v19909_v50  ;;  %v8279_v17 = vunpack.i.l.bf16 %v19909_v50  ;;  %v2885_v19 = vsel %vm2836_vm11, %v2820_v36, %v8734_v22  ;;  %v19918_v22 = vld [vmem:[#allocation69_spill] sm:$0xff]  ;;  %v19920_v16 = vld [vmem:[#allocation182_spill] sm:$0xff] }
 0x2bd   :  { %v2886_v3 = vsel %vm2836_vm11, %v2821_v18, %v8735_v11  ;;  %v8430_v1 = vunpack.i.h.bf16 %v19910_v30  ;;  %v8429_v43 = vunpack.i.l.bf16 %v19910_v30  ;;  %v8435_v60 = vunpack.i.h.bf16 %v19911_v63  ;;  %v8753_v18 = vpop.permute.xlu0 %8752 }
 0x2be   :  { %v8434_v59 = vunpack.i.l.bf16 %v19911_v63  ;;  %v8585_v51 = vunpack.i.h.bf16 %v19912_v31  ;;  %v8584_v6 = vunpack.i.l.bf16 %v19912_v31  ;;  %v8590_v23 = vunpack.i.h.bf16 %v19913_v38  ;;  %v19924_v31 = vld [vmem:[#allocation11_spill] sm:$0xff] }
 0x2bf   :  { %v2924_v41 = vpack.c.bf16 %v2884_v13, %v2883_v61  ;;  %v8589_v7 = vunpack.i.l.bf16 %v19913_v38  ;;  %v8740_v57 = vunpack.i.h.bf16 %v8738_v25  ;;  %v8739_v28 = vunpack.i.l.bf16 %v8738_v25  ;;  %v19921_v61 = vld [vmem:[#allocation207_spill] sm:$0xff] }
 0x2c0   :  { %v2925_v0 = vpack.c.bf16 %v2886_v3, %v2885_v19  ;;  %v2694_v44 = vsel %vm2641_vm8, %v19914_v47, %v8274_v62  ;;  %v2695_v12 = vsel %vm2641_vm8, %v19915_v14, %v8275_v49  ;;  %v8745_v45 = vunpack.i.h.bf16 %v8743_v42 }
 0x2c1   :  { %v8744_v48 = vunpack.i.l.bf16 %v8743_v42  ;;  %7407 = vmatmul.mubr.msk.bf16.gmra.mrb[44].mxu0 %vm2969_vm12, %v2924_v41  ;;  %v2696_v37 = vsel %vm2641_vm8, %v19916_v24, %v8279_v17  ;;  %v2697_v32 = vsel %vm2641_vm8, %v19917_v46, %v8280_v26  ;;  %v2757_v27 = vsel %vm2706_vm9, %v2692_v40, %v8429_v43  ;;  %v19922_v26 = vld [vmem:[#allocation208_spill] sm:$0xff] }
 0x2c2   :  { %v2758_v33 = vsel %vm2706_vm9, %v2693_v10, %v8430_v1  ;;  %7410 = vmatprep.mubr.msk.bf16.mxu0 %vm2969_vm12, %v2925_v0  ;;  %v2759_v8 = vsel %vm2706_vm9, %v2694_v44, %v8434_v59  ;;  %v2760_v20 = vsel %vm2706_vm9, %v2695_v12, %v8435_v60  ;;  %v2822_v52 = vsel %vm2771_vm10, %v2757_v27, %v8584_v6  ;;  %v19923_v43 = vld [vmem:[#allocation200_spill] sm:$0xff]  ;;  %v19925_v6 = vld [vmem:[#allocation158_spill] sm:$0xff] }
 0x2c3   :  { %v2823_v15 = vsel %vm2771_vm10, %v2758_v33, %v8585_v51  ;;  %v2824_v58 = vsel %vm2771_vm10, %v2759_v8, %v8589_v7  ;;  %v2825_v53 = vsel %vm2771_vm10, %v2760_v20, %v8590_v23  ;;  %v2887_v11 = vsel %vm2836_vm11, %v2822_v52, %v8739_v28  ;;  %v19927_v27 = vld [vmem:[#allocation102_spill] sm:$0xff] }
 0x2c4   :  { %v2888_v40 = vsel %vm2836_vm11, %v2823_v15, %v8740_v57  ;;  %v8285_v10 = vunpack.i.h.bf16 %v19918_v22  ;;  %v8284_v2 = vunpack.i.l.bf16 %v19918_v22  ;;  %v2889_v49 = vsel %vm2836_vm11, %v2824_v58, %v8744_v48  ;;  %v19928_v20 = vld [vmem:[#allocation126_spill] sm:$0xff]  ;;  %v8763_v58 = vpop.permute.xlu0 %8762  ;;  %v19930_v22 = vld [vmem:[#allocation8_spill] sm:$0xff] }
 0x2c5   :  { %v2890_v62 = vsel %vm2836_vm11, %v2825_v53, %v8745_v45  ;;  %v8440_v21 = vunpack.i.h.bf16 %v19919_v9  ;;  %v8439_v56 = vunpack.i.l.bf16 %v19919_v9  ;;  %v8445_v5 = vunpack.i.h.bf16 %v19920_v16  ;;  %v19926_v45 = vld [vmem:[#allocation16_spill] sm:$0xff]  ;;  %v19929_v53 = vld [vmem:[#allocation209_spill] sm:$0xff] }
 0x2c6   :  { %v8444_v36 = vunpack.i.l.bf16 %v19920_v16  ;;  %v8595_v13 = vunpack.i.h.bf16 %v19921_v61  ;;  %v8594_v50 = vunpack.i.l.bf16 %v19921_v61  ;;  %v8600_v17 = vunpack.i.h.bf16 %v19922_v26  ;;  %v19932_v16 = vld [vmem:[#allocation22_spill] sm:$0xff] }
 0x2c7   :  { %v2926_v19 = vpack.c.bf16 %v2888_v40, %v2887_v11  ;;  %v8599_v3 = vunpack.i.l.bf16 %v19922_v26  ;;  %v8750_v25 = vunpack.i.h.bf16 %v8748_v39  ;;  %v8749_v30 = vunpack.i.l.bf16 %v8748_v39  ;;  %v19933_v61 = vld [vmem:[#allocation206_spill] sm:$0xff] }
 0x2c8   :  { %v2927_v1 = vpack.c.bf16 %v2890_v62, %v2889_v49  ;;  %v8290_v63 = vunpack.i.h.bf16 %v19923_v43  ;;  %v8289_v60 = vunpack.i.l.bf16 %v19923_v43  ;;  %v8755_v59 = vunpack.i.h.bf16 %v8753_v18 }
 0x2c9   :  { %v8754_v42 = vunpack.i.l.bf16 %v8753_v18  ;;  %7411 = vmatmul.mubr.msk.bf16.gmra.mrb[48].mxu0 %vm2969_vm12, %v2926_v19  ;;  %v2698_v51 = vsel %vm2641_vm8, %v19924_v31, %v8284_v2  ;;  %v2699_v38 = vsel %vm2641_vm8, %v19925_v6, %v8285_v10  ;;  %v2761_v23 = vsel %vm2706_vm9, %v2696_v37, %v8439_v56 }
 0x2ca   :  { %v2762_v41 = vsel %vm2706_vm9, %v2697_v32, %v8440_v21  ;;  %7414 = vmatprep.mubr.msk.bf16.mxu0 %vm2969_vm12, %v2927_v1  ;;  %v2763_v7 = vsel %vm2706_vm9, %v2698_v51, %v8444_v36  ;;  %v2764_v57 = vsel %vm2706_vm9, %v2699_v38, %v8445_v5  ;;  %v2826_v28 = vsel %vm2771_vm10, %v2761_v23, %v8594_v50  ;;  %v8758_v32 = vpop.permute.xlu1 %8757  ;;  %v19931_v21 = vld [vmem:[#allocation14_spill] sm:$0xff]  ;;  %v19934_v50 = vld [vmem:[#allocation160_spill] sm:$0xff]  ;;  %v19936_v23 = vld [vmem:[#allocation211_spill] sm:$0xff] }
 0x2cb   :  { %v2827_v0 = vsel %vm2771_vm10, %v2762_v41, %v8595_v13  ;;  %v2828_v47 = vsel %vm2771_vm10, %v2763_v7, %v8599_v3  ;;  %v2829_v44 = vsel %vm2771_vm10, %v2764_v57, %v8600_v17  ;;  %v2891_v14 = vsel %vm2836_vm11, %v2826_v28, %v8749_v30  ;;  %v19938_v7 = vld [vmem:[#allocation92_spill] sm:$0xff] }
 0x2cc   :  { %v2892_v12 = vsel %vm2836_vm11, %v2827_v0, %v8750_v25  ;;  %v8295_v48 = vunpack.i.h.bf16 %v19926_v45  ;;  %v8294_v24 = vunpack.i.l.bf16 %v19926_v45  ;;  %v2893_v37 = vsel %vm2836_vm11, %v2828_v47, %v8754_v42  ;;  %v19935_v42 = vld [vmem:[#allocation128_spill] sm:$0xff]  ;;  %v19940_v0 = vld [vmem:[#allocation86_spill] sm:$0xff] }
 0x2cd   :  { %v2894_v46 = vsel %vm2836_vm11, %v2829_v44, %v8755_v59  ;;  %v8450_v33 = vunpack.i.h.bf16 %v19927_v27  ;;  %v8449_v8 = vunpack.i.l.bf16 %v19927_v27  ;;  %v8455_v52 = vunpack.i.h.bf16 %v19928_v20  ;;  %v19941_v44 = vld [vmem:[#allocation238_spill] sm:$0xff] }
 0x2ce   :  { %v8454_v15 = vunpack.i.l.bf16 %v19928_v20  ;;  %v8605_v11 = vunpack.i.h.bf16 %v19929_v53  ;;  %v8604_v40 = vunpack.i.l.bf16 %v19929_v53  ;;  %v8610_v10 = vunpack.i.h.bf16 %v19930_v22 }
 0x2cf   :  { %v2928_v2 = vpack.c.bf16 %v2892_v12, %v2891_v14  ;;  %v8609_v49 = vunpack.i.l.bf16 %v19930_v22  ;;  %v8760_v62 = vunpack.i.h.bf16 %v8758_v32  ;;  %v8759_v39 = vunpack.i.l.bf16 %v8758_v32 }
 0x2d0   :  { %v2929_v9 = vpack.c.bf16 %v2894_v46, %v2893_v37  ;;  %v2700_v56 = vsel %vm2641_vm8, %v19931_v21, %v8289_v60  ;;  %v2701_v5 = vsel %vm2641_vm8, %v19932_v16, %v8290_v63  ;;  %v8765_v36 = vunpack.i.h.bf16 %v8763_v58  ;;  %v19944_v37 = vld [vmem:[#allocation269_spill] sm:$0xff] }
 0x2d1   :  { %v8764_v18 = vunpack.i.l.bf16 %v8763_v58  ;;  %7415 = vmatmul.mubr.msk.bf16.gmra.mrb[52].mxu0 %vm2969_vm12, %v2928_v2  ;;  %v2702_v13 = vsel %vm2641_vm8, %v19933_v61, %v8294_v24  ;;  %v2703_v26 = vsel %vm2641_vm8, %v19934_v50, %v8295_v48  ;;  %v2765_v17 = vsel %vm2706_vm9, %v2700_v56, %v8449_v8  ;;  %v14196_v2 = vld [vmem:[%s17928_s3] ss:$0 sm:$0xff] }
 0x2d2   :  { %v2766_v19 = vsel %vm2706_vm9, %v2701_v5, %v8450_v33  ;;  %7418 = vmatprep.mubr.msk.bf16.mxu0 %vm2969_vm12, %v2929_v9  ;;  %v2767_v3 = vsel %vm2706_vm9, %v2702_v13, %v8454_v15  ;;  %v2768_v25 = vsel %vm2706_vm9, %v2703_v26, %v8455_v52  ;;  %v2830_v30 = vsel %vm2771_vm10, %v2765_v17, %v8604_v40 }
 0x2d3   :  { %v2831_v1 = vsel %vm2771_vm10, %v2766_v19, %v8605_v11  ;;  %v2832_v43 = vsel %vm2771_vm10, %v2767_v3, %v8609_v49  ;;  %v2833_v63 = vsel %vm2771_vm10, %v2768_v25, %v8610_v10  ;;  %v2895_v60 = vsel %vm2836_vm11, %v2830_v30, %v8759_v39 }
 0x2d4   :  { %v2896_v59 = vsel %vm2836_vm11, %v2831_v1, %v8760_v62  ;;  %v8300_v31 = vunpack.i.h.bf16 %v19935_v42  ;;  %v8299_v51 = vunpack.i.l.bf16 %v19935_v42  ;;  %v2897_v6 = vsel %vm2836_vm11, %v2832_v43, %v8764_v18  ;;  %v14201_v62 = vld [vmem:[%s17929_s4] ss:$0 sm:$0xff] }
 0x2d5   :  { %v2898_v38 = vsel %vm2836_vm11, %v2833_v63, %v8765_v36  ;;  %v19937_v41 = vunpack.i.l.bf16 %v19936_v23  ;;  %v19939_v28 = vunpack.i.h.bf16 %v19936_v23  ;;  %v19942_v14 = vunpack.i.l.bf16 %v19941_v44 }
 0x2d6   :  { %v19943_v45 = vunpack.i.h.bf16 %v19941_v44  ;;  %v2930_v24 = vpack.c.bf16 %v2896_v59, %v2895_v60  ;;  %v19945_v46 = vunpack.i.l.bf16 %v19944_v37  ;;  %v19946_v27 = vunpack.i.h.bf16 %v19944_v37 }
 0x2d7   :  { %v2509_v57 = vsel %vm2448_vm4, %v19938_v7, %v19937_v41  ;;  %v2510_v47 = vsel %vm2448_vm4, %v19940_v0, %v19939_v28  ;;  %v2931_v8 = vpack.c.bf16 %v2898_v38, %v2897_v6 }
 0x2d8   :  { %v2574_v12 = vsel %vm2511_vm6, %v2509_v57, %v19942_v14  ;;  %v2575_v48 = vsel %vm2511_vm6, %v2510_v47, %v19943_v45 }
 0x2d9   :  { %v2639_v32 = vsel %vm2576_vm7, %v2574_v12, %v19945_v46  ;;  %v2640_v33 = vsel %vm2576_vm7, %v2575_v48, %v19946_v27  ;;  %7419 = vmatmul.mubr.msk.bf16.gmra.mrb[56].mxu0 %vm2969_vm12, %v2930_v24 }
 0x2da   :  { %v2704_v20 = vsel %vm2641_vm8, %v2639_v32, %v8299_v51  ;;  %v2705_v52 = vsel %vm2641_vm8, %v2640_v33, %v8300_v31  ;;  %7422 = vmatprep.mubr.msk.bf16.mxu0 %vm2969_vm12, %v2931_v8 }
 0x2db   :  { %v2769_v15 = vsel %vm2706_vm9, %v2704_v20, %v13874_v34  ;;  %v2770_v58 = vsel %vm2706_vm9, %v2705_v52, %v13871_v4 }
 0x2dc   :  { %v2834_v53 = vsel %vm2771_vm10, %v2769_v15, %v13882_v35  ;;  %v2835_v11 = vsel %vm2771_vm10, %v2770_v58, %v13879_v55 }
 0x2dd   :  { %v2899_v40 = vsel %vm2836_vm11, %v2834_v53, %v13888_v29  ;;  %v2900_v22 = vsel %vm2836_vm11, %v2835_v11, %v13886_v54 }
 0x2de   :  { %v2932_v10 = vpack.c.bf16 %v2900_v22, %v2899_v40 }
 0x2e1   :  { %7423 = vmatmul.mubr.msk.bf16.gmra.mrb[60].mxu0 %vm2969_vm12, %v2932_v10 }
 0x33c   :  { %v7364_v49 = vpop.f32.mrb[0].mxu0 }
 0x33d   :  { %v3368_v39 = vmul.f32 %v7364_v49, %v14196_v2  ;;  %v3104_v9 = vpop.f32.mrb[1].mxu0 }
 0x33e   :  { %v3366_v21 = vmul.f32 %v14196_v2, %v3104_v9  ;;  %v7365_v56 = vpop.f32.mrb[2].mxu0 }
 0x33f   :  { %v3439_v16 = vadd.f32 %v14201_v62, %v3368_v39  ;;  %v3369_v5 = vmul.f32 %v7365_v56, %v14196_v2  ;;  %v3107_v36 = vpop.f32.mrb[3].mxu0 }
 0x340   :  { %v3437_v18 = vadd.f32 %v14201_v62, %v3366_v21  ;;  %v3367_v61 = vmul.f32 %v14196_v2, %v3107_v36 }
 0x341   :  { %v3503_v13 = vmax.f32 %v3439_v16, 0.0  ;;  %v3440_v50 = vadd.f32 %v14201_v62, %v3369_v5 }
 0x342   :  { %v3501_v26 = vmax.f32 %v3437_v18, 0.0  ;;  %v3438_v17 = vadd.f32 %v14201_v62, %v3367_v61 }
 0x343   :  { %v3504_v19 = vmax.f32 %v3440_v50, 0.0  ;;  %v3632_v3 = vrot.slane %v3503_v13, 7 }
 0x344   :  { %v3629_v25 = vrot.slane %v3501_v26, 7  ;;  %v3502_v30 = vmax.f32 %v3438_v17, 0.0  ;;  %v7368_v1 = vpop.f32.mrb[4].mxu0 }
 0x345   :  { %v3633_v43 = vrot.slane %v3504_v19, 7  ;;  %v3120_v63 = vpop.f32.mrb[5].mxu0  ;;  %v3372_v42 = vmul.f32 %v7368_v1, %v14196_v2  ;;  %v14222_v23 = vsel %vm220_vm0, 0.0, %v3632_v3 }
 0x346   :  { %v14212_v60 = vsel %vm220_vm0, 0.0, %v3629_v25  ;;  %v3630_v59 = vrot.slane %v3502_v30, 7  ;;  %v7369_v31 = vpop.f32.mrb[6].mxu0  ;;  %v3370_v14 = vmul.f32 %v14196_v2, %v3120_v63  ;;  %v3948_v48 = vrot.slane %v14222_v23, 1 }
 0x347   :  { %v14216_v51 = vsel %vm220_vm0, %v3632_v3, %v3633_v43  ;;  %v14219_v6 = vsel %vm220_vm0, %v3633_v43, 0.0  ;;  %v3123_v38 = vpop.f32.mrb[7].mxu0  ;;  %v3943_v57 = vrot.slane %v14212_v60, 1  ;;  %v3443_v44 = vadd.f32 %v14201_v62, %v3372_v42 }
 0x348   :  { %v14225_v41 = vsel %vm220_vm0, %v3629_v25, %v3630_v59  ;;  %v14228_v7 = vsel %vm220_vm0, %v3630_v59, 0.0  ;;  %v3951_v28 = vrot.slane %v14219_v6, 1  ;;  %v3373_v12 = vmul.f32 %v7369_v31, %v14196_v2 }
 0x349   :  { %19947 = vst [vmem:[#allocation212_spill] sm:$0xff] %v14225_v41  ;;  %v3944_v0 = vrot.slane %v14225_v41, 1  ;;  %v3946_v47 = vrot.slane %v14228_v7, 1  ;;  %v3371_v45 = vmul.f32 %v14196_v2, %v3123_v38  ;;  %v3949_v24 = vrot.slane %v14216_v51, 1 }
 0x34a   :  { %v3507_v32 = vmax.f32 %v3443_v44, 0.0  ;;  %v3441_v27 = vadd.f32 %v14201_v62, %v3370_v14  ;;  %v3444_v33 = vadd.f32 %v14201_v62, %v3373_v12 }
 0x34b   :  { %v3945_v37 = vsel %vm543_vm1, %v3943_v57, %v3944_v0  ;;  %v3947_v46 = vsel %vm543_vm1, %v3944_v0, %v3946_v47  ;;  %v3442_v8 = vadd.f32 %v14201_v62, %v3371_v45  ;;  %v3950_v15 = vsel %vm543_vm1, %v3948_v48, %v3949_v24 }
 0x34c   :  { %v7372_v20 = vpop.f32.mrb[8].mxu0  ;;  %v3952_v58 = vsel %vm543_vm1, %v3949_v24, %v3951_v28  ;;  %v14248_v11 = vpack.i.bf16 %v3947_v46, %v3945_v37  ;;  %v3505_v40 = vmax.f32 %v3441_v27, 0.0  ;;  %v3508_v22 = vmax.f32 %v3444_v33, 0.0 }
 0x34d   :  { %v3376_v52 = vmul.f32 %v7372_v20, %v14196_v2  ;;  %v3136_v53 = vpop.f32.mrb[9].mxu0  ;;  %v3506_v10 = vmax.f32 %v3442_v8, 0.0  ;;  %v3638_v39 = vrot.slane %v3507_v32, 7  ;;  %v14251_v21 = vpack.i.bf16 %v3952_v58, %v3950_v15 }
 0x34e   :  { %19948 = vst [vmem:[#allocation213_spill] sm:$0xff] %v14248_v11  ;;  %v7373_v49 = vpop.f32.mrb[10].mxu0  ;;  %v3374_v56 = vmul.f32 %v14196_v2, %v3136_v53  ;;  %8767 = vrot.lane.b32.xlu1 %v14248_v11, %s10009_s30  ;;  %v3635_v5 = vrot.slane %v3505_v40, 7  ;;  %v3639_v36 = vrot.slane %v3508_v22, 7 }
 0x34f   :  { %v3447_v9 = vadd.f32 %v14201_v62, %v3376_v52  ;;  %19949 = vst [vmem:[#allocation161_spill] sm:$0xff] %v14251_v21  ;;  %v3139_v16 = vpop.f32.mrb[11].mxu0  ;;  %v3636_v18 = vrot.slane %v3506_v10, 7  ;;  %v3377_v61 = vmul.f32 %v7373_v49, %v14196_v2  ;;  %8772 = vrot.lane.b32.xlu0 %v14251_v21, %s10009_s30  ;;  %v14270_v19 = vsel %vm220_vm0, 0.0, %v3638_v39 }
 0x350   :  { %v3445_v13 = vadd.f32 %v14201_v62, %v3374_v56  ;;  %v14261_v50 = vsel %vm220_vm0, %v3638_v39, %v3639_v36  ;;  %v14264_v26 = vsel %vm220_vm0, %v3639_v36, 0.0  ;;  %v3375_v63 = vmul.f32 %v14196_v2, %v3139_v16 }
 0x351   :  { %v14267_v17 = vsel %vm220_vm0, %v3635_v5, %v3636_v18  ;;  %v3511_v3 = vmax.f32 %v3447_v9, 0.0  ;;  %v3961_v25 = vrot.slane %v14264_v26, 1  ;;  %v3448_v30 = vadd.f32 %v14201_v62, %v3377_v61 }
 0x352   :  { %v3509_v43 = vmax.f32 %v3445_v13, 0.0  ;;  %v3958_v31 = vrot.slane %v14270_v19, 1  ;;  %v3959_v57 = vrot.slane %v14261_v50, 1  ;;  %v3446_v47 = vadd.f32 %v14201_v62, %v3375_v63 }
 0x353   :  { %v3512_v38 = vmax.f32 %v3448_v30, 0.0  ;;  %v3644_v0 = vrot.slane %v3511_v3, 7  ;;  %v14281_v12 = vsel %vm220_vm0, %v3636_v18, 0.0  ;;  %v14286_v37 = vsel %vm220_vm0, 0.0, %v3635_v5 }
 0x354   :  { %v7376_v1 = vpop.f32.mrb[12].mxu0  ;;  %v3960_v48 = vsel %vm543_vm1, %v3958_v31, %v3959_v57  ;;  %v3962_v24 = vsel %vm543_vm1, %v3959_v57, %v3961_v25  ;;  %19950 = vst [vmem:[#allocation164_spill] sm:$0xff] %v14286_v37  ;;  %v3641_v46 = vrot.slane %v3509_v43, 7  ;;  %v3510_v32 = vmax.f32 %v3446_v47, 0.0 }
 0x355   :  { %v3380_v59 = vmul.f32 %v7376_v1, %v14196_v2  ;;  %v3152_v42 = vpop.f32.mrb[13].mxu0  ;;  %v3645_v45 = vrot.slane %v3512_v38, 7  ;;  %v14291_v8 = vpack.i.bf16 %v3962_v24, %v3960_v48  ;;  %v3956_v52 = vrot.slane %v14281_v12, 1 }
 0x356   :  { %v7377_v28 = vpop.f32.mrb[14].mxu0  ;;  %v3378_v20 = vmul.f32 %v14196_v2, %v3152_v42  ;;  %v14296_v15 = vsel %vm220_vm0, 0.0, %v3644_v0  ;;  %v3642_v53 = vrot.slane %v3510_v32, 7  ;;  %v3954_v22 = vrot.slane %v14267_v17, 1 }
 0x357   :  { %v3451_v44 = vadd.f32 %v14201_v62, %v3380_v59  ;;  %v3155_v14 = vpop.f32.mrb[15].mxu0  ;;  %v14289_v27 = vsel %vm220_vm0, %v3644_v0, %v3645_v45  ;;  %19952 = vst [vmem:[#allocation168_spill] sm:$0xff] %v14291_v8  ;;  %19953 = vst [vmem:[#allocation37_spill] sm:$0xff] %v14296_v15  ;;  %v14299_v58 = vsel %vm220_vm0, %v3645_v45, 0.0  ;;  %8782 = vrot.lane.b32.xlu0 %v14291_v8, %s10009_s30  ;;  %v3953_v9 = vrot.slane %v14286_v37, 1 }
 0x358   :  { %19951 = vst [vmem:[#allocation167_spill] sm:$0xff] %v14289_v27  ;;  %v3449_v40 = vadd.f32 %v14201_v62, %v3378_v20  ;;  %v3381_v10 = vmul.f32 %v7377_v28, %v14196_v2  ;;  %v3379_v49 = vmul.f32 %v14196_v2, %v3155_v14  ;;  %v14309_v56 = vsel %vm220_vm0, %v3641_v46, %v3642_v53 }
 0x359   :  { %v3515_v33 = vmax.f32 %v3451_v44, 0.0  ;;  %19954 = vst [vmem:[#allocation132_spill] sm:$0xff] %v14309_v56  ;;  %v3968_v36 = vrot.slane %v14296_v15, 1  ;;  %v14314_v18 = vsel %vm220_vm0, 0.0, %v3641_v46  ;;  %v3971_v61 = vrot.slane %v14299_v58, 1 }
 0x35a   :  { %19955 = vst [vmem:[#allocation96_spill] sm:$0xff] %v14314_v18  ;;  %v3513_v25 = vmax.f32 %v3449_v40, 0.0  ;;  %v3955_v30 = vsel %vm543_vm1, %v3953_v9, %v3954_v22  ;;  %v3957_v1 = vsel %vm543_vm1, %v3954_v22, %v3956_v52  ;;  %v3452_v43 = vadd.f32 %v14201_v62, %v3381_v10 }
 0x35b   :  { %v3650_v13 = vrot.slane %v3515_v33, 7  ;;  %v14321_v59 = vsel %vm220_vm0, %v3642_v53, 0.0  ;;  %v14323_v42 = vpack.i.bf16 %v3957_v1, %v3955_v30  ;;  %v3450_v31 = vadd.f32 %v14201_v62, %v3379_v49 }
 0x35c   :  { %v7380_v39 = vpop.f32.mrb[16].mxu0  ;;  %v3969_v38 = vrot.slane %v14289_v27, 1  ;;  %v3647_v57 = vrot.slane %v3513_v25, 7  ;;  %v3516_v28 = vmax.f32 %v3452_v43, 0.0  ;;  %v3964_v48 = vrot.slane %v14309_v56, 1 }
 0x35d   :  { %v3384_v16 = vmul.f32 %v7380_v39, %v14196_v2  ;;  %v3168_v5 = vpop.f32.mrb[17].mxu0  ;;  %19956 = vst [vmem:[#allocation153_spill] sm:$0xff] %v14323_v42  ;;  %8777 = vrot.lane.b32.xlu1 %v14323_v42, %s10009_s30  ;;  %v3514_v44 = vmax.f32 %v3450_v31, 0.0  ;;  %v3963_v32 = vrot.slane %v14314_v18, 1  ;;  %v3966_v33 = vrot.slane %v14321_v59, 1 }
 0x35e   :  { %v7381_v3 = vpop.f32.mrb[18].mxu0  ;;  %v3382_v47 = vmul.f32 %v14196_v2, %v3168_v5  ;;  %v3970_v14 = vsel %vm543_vm1, %v3968_v36, %v3969_v38  ;;  %v3972_v45 = vsel %vm543_vm1, %v3969_v38, %v3971_v61  ;;  %v3651_v24 = vrot.slane %v3516_v28, 7 }
 0x35f   :  { %v3171_v63 = vpop.f32.mrb[19].mxu0  ;;  %v3455_v0 = vadd.f32 %v14201_v62, %v3384_v16  ;;  %v14334_v46 = vpack.i.bf16 %v3972_v45, %v3970_v14  ;;  %v14339_v20 = vsel %vm220_vm0, 0.0, %v3650_v13  ;;  %v3648_v52 = vrot.slane %v3514_v44, 7 }
 0x360   :  { %19958 = vst [vmem:[#allocation136_spill] sm:$0xff] %v14339_v20  ;;  %v14342_v40 = vsel %vm220_vm0, 0.0, %v3647_v57  ;;  %v14345_v22 = vsel %vm220_vm0, %v3650_v13, %v3651_v24  ;;  %v14348_v10 = vsel %vm220_vm0, %v3651_v24, 0.0  ;;  %v3453_v49 = vadd.f32 %v14201_v62, %v3382_v47 }
 0x361   :  { %19957 = vst [vmem:[#allocation214_spill] sm:$0xff] %v14334_v46  ;;  %19959 = vst [vmem:[#allocation215_spill] sm:$0xff] %v14342_v40  ;;  %8792 = vrot.lane.b32.xlu0 %v14334_v46, %s10009_s30  ;;  %v14354_v9 = vsel %vm220_vm0, %v3647_v57, %v3648_v52  ;;  %v3519_v16 = vmax.f32 %v3455_v0, 0.0  ;;  %v3965_v5 = vsel %vm543_vm1, %v3963_v32, %v3964_v48  ;;  %v3978_v61 = vrot.slane %v14339_v20, 1 }
 0x362   :  { %19960 = vst [vmem:[#allocation216_spill] sm:$0xff] %v14354_v9  ;;  %v14359_v13 = vsel %vm220_vm0, %v3648_v52, 0.0  ;;  %v3973_v30 = vrot.slane %v14342_v40, 1  ;;  %v3981_v1 = vrot.slane %v14348_v10, 1  ;;  %v3967_v43 = vsel %vm543_vm1, %v3964_v48, %v3966_v33 }
 0x363   :  { %v3385_v31 = vmul.f32 %v7381_v3, %v14196_v2  ;;  %v3517_v38 = vmax.f32 %v3453_v49, 0.0  ;;  %v14365_v57 = vpack.i.bf16 %v3967_v43, %v3965_v5  ;;  %v3383_v28 = vmul.f32 %v14196_v2, %v3171_v63 }
 0x364   :  { %v7384_v53 = vpop.f32.mrb[20].mxu0  ;;  %v3976_v47 = vrot.slane %v14359_v13, 1  ;;  %v3656_v44 = vrot.slane %v3519_v16, 7  ;;  %v3979_v45 = vrot.slane %v14345_v22, 1  ;;  %v3974_v63 = vrot.slane %v14354_v9, 1 }
 0x365   :  { %v3184_v39 = vpop.f32.mrb[21].mxu0  ;;  %19961 = vst [vmem:[#allocation108_spill] sm:$0xff] %v14365_v57  ;;  %v3388_v0 = vmul.f32 %v7384_v53, %v14196_v2  ;;  %v3456_v14 = vadd.f32 %v14201_v62, %v3385_v31  ;;  %8787 = vrot.lane.b32.xlu1 %v14365_v57, %s10009_s30  ;;  %v3454_v48 = vadd.f32 %v14201_v62, %v3383_v28  ;;  %v3653_v16 = vrot.slane %v3517_v38, 7 }
 0x366   :  { %v7385_v36 = vpop.f32.mrb[22].mxu0  ;;  %v3386_v24 = vmul.f32 %v14196_v2, %v3184_v39  ;;  %v3980_v33 = vsel %vm543_vm1, %v3978_v61, %v3979_v45  ;;  %v3982_v52 = vsel %vm543_vm1, %v3979_v45, %v3981_v1  ;;  %v3975_v39 = vsel %vm543_vm1, %v3973_v30, %v3974_v63 }
 0x367   :  { %v3187_v25 = vpop.f32.mrb[23].mxu0  ;;  %v3459_v3 = vadd.f32 %v14201_v62, %v3388_v0  ;;  %v3520_v32 = vmax.f32 %v3456_v14, 0.0  ;;  %v3389_v53 = vmul.f32 %v7385_v36, %v14196_v2  ;;  %v3518_v5 = vmax.f32 %v3454_v48, 0.0 }
 0x368   :  { %v14381_v43 = vpack.i.bf16 %v3982_v52, %v3980_v33  ;;  %v3457_v31 = vadd.f32 %v14201_v62, %v3386_v24  ;;  %v3977_v54 = vsel %vm543_vm1, %v3974_v63, %v3976_v47  ;;  %v3387_v47 = vmul.f32 %v14196_v2, %v3187_v25 }
 0x369   :  { %v3657_v0 = vrot.slane %v3520_v32, 7  ;;  %v3460_v14 = vadd.f32 %v14201_v62, %v3389_v53  ;;  %v3654_v29 = vrot.slane %v3518_v5, 7  ;;  %v3523_v1 = vmax.f32 %v3459_v3, 0.0 }
 0x36a   :  { %19962 = vst [vmem:[#allocation111_spill] sm:$0xff] %v14381_v43  ;;  %8802 = vrot.lane.b32.xlu0 %v14381_v43, %s10009_s30  ;;  %v14389_v36 = vpack.i.bf16 %v3977_v54, %v3975_v39  ;;  %v14404_v3 = vsel %vm220_vm0, 0.0, %v3656_v44  ;;  %v14407_v54 = vsel %vm220_vm0, 0.0, %v3653_v16  ;;  %v3521_v32 = vmax.f32 %v3457_v31, 0.0 }
 0x36b   :  { %v14392_v45 = vsel %vm220_vm0, %v3656_v44, %v3657_v0  ;;  %v14395_v48 = vsel %vm220_vm0, %v3657_v0, 0.0  ;;  %v3524_v30 = vmax.f32 %v3460_v14, 0.0  ;;  %v14399_v24 = vsel %vm220_vm0, %v3653_v16, %v3654_v29  ;;  %19967 = vst [vmem:[#allocation156_spill] sm:$0xff] %v14404_v3  ;;  %19968 = vst [vmem:[#allocation219_spill] sm:$0xff] %v14407_v54 }
 0x36c   :  { %v7388_v49 = vpop.f32.mrb[24].mxu0  ;;  %19963 = vst [vmem:[#allocation217_spill] sm:$0xff] %v14389_v36  ;;  %19964 = vst [vmem:[#allocation141_spill] sm:$0xff] %v14392_v45  ;;  %8797 = vrot.lane.b32.xlu1 %v14389_v36, %s10009_s30  ;;  %v14410_v63 = vsel %vm220_vm0, %v3654_v29, 0.0  ;;  %v3991_v33 = vrot.slane %v14395_v48, 1  ;;  %v3662_v52 = vrot.slane %v3523_v1, 7  ;;  %v3458_v53 = vadd.f32 %v14201_v62, %v3387_v47 }
 0x36d   :  { %v3200_v28 = vpop.f32.mrb[25].mxu0  ;;  %19965 = vst [vmem:[#allocation218_spill] sm:$0xff] %v14395_v48  ;;  %19966 = vst [vmem:[#allocation155_spill] sm:$0xff] %v14399_v24  ;;  %v3663_v25 = vrot.slane %v3524_v30, 7  ;;  %v3392_v5 = vmul.f32 %v7388_v49, %v14196_v2  ;;  %v3989_v0 = vrot.slane %v14392_v45, 1  ;;  %v3988_v16 = vrot.slane %v14404_v3, 1 }
 0x36e   :  { %v7389_v61 = vpop.f32.mrb[26].mxu0  ;;  %v3390_v44 = vmul.f32 %v14196_v2, %v3200_v28  ;;  %v3986_v14 = vrot.slane %v14410_v63, 1  ;;  %v3983_v1 = vrot.slane %v14407_v54, 1  ;;  %v3659_v30 = vrot.slane %v3521_v32, 7 }
 0x36f   :  { %v3203_v38 = vpop.f32.mrb[27].mxu0  ;;  %v14420_v29 = vsel %vm220_vm0, %v3662_v52, %v3663_v25  ;;  %v3522_v55 = vmax.f32 %v3458_v53, 0.0  ;;  %v3463_v47 = vadd.f32 %v14201_v62, %v3392_v5  ;;  %v14425_v35 = vsel %vm220_vm0, %v3663_v25, 0.0 }
 0x370   :  { %19969 = vst [vmem:[#allocation220_spill] sm:$0xff] %v14420_v29  ;;  %19970 = vst [vmem:[#allocation221_spill] sm:$0xff] %v14425_v35  ;;  %v3990_v28 = vsel %vm543_vm1, %v3988_v16, %v3989_v0  ;;  %v3992_v4 = vsel %vm543_vm1, %v3989_v0, %v3991_v33  ;;  %v3984_v34 = vrot.slane %v14399_v24, 1  ;;  %v3461_v8 = vadd.f32 %v14201_v62, %v3390_v44 }
 0x371   :  { %v3660_v46 = vrot.slane %v3522_v55, 7  ;;  %v14430_v36 = vpack.i.bf16 %v3992_v4, %v3990_v28  ;;  %v3393_v32 = vmul.f32 %v7389_v61, %v14196_v2  ;;  %v3391_v25 = vmul.f32 %v14196_v2, %v3203_v38 }
 0x372   :  { %v3985_v53 = vsel %vm543_vm1, %v3983_v1, %v3984_v34  ;;  %v3987_v5 = vsel %vm543_vm1, %v3984_v34, %v3986_v14  ;;  %v14438_v16 = vsel %vm220_vm0, 0.0, %v3662_v52  ;;  %v3527_v0 = vmax.f32 %v3463_v47, 0.0 }
 0x373   :  { %19971 = vst [vmem:[#allocation222_spill] sm:$0xff] %v14430_v36  ;;  %19972 = vst [vmem:[#allocation123_spill] sm:$0xff] %v14438_v16  ;;  %v14441_v33 = vsel %vm220_vm0, %v3659_v30, %v3660_v46  ;;  %8812 = vrot.lane.b32.xlu0 %v14430_v36, %s10009_s30  ;;  %v14445_v4 = vpack.i.bf16 %v3987_v5, %v3985_v53  ;;  %v4001_v55 = vrot.slane %v14425_v35, 1  ;;  %v14449_v61 = vsel %vm220_vm0, %v3660_v46, 0.0 }
 0x374   :  { %v7392_v39 = vpop.f32.mrb[28].mxu0  ;;  %19973 = vst [vmem:[#allocation157_spill] sm:$0xff] %v14441_v33  ;;  %v3464_v34 = vadd.f32 %v14201_v62, %v3393_v32  ;;  %v3525_v38 = vmax.f32 %v3461_v8, 0.0  ;;  %v3462_v52 = vadd.f32 %v14201_v62, %v3391_v25  ;;  %v3999_v14 = vrot.slane %v14420_v29, 1 }
 0x375   :  { %v3216_v31 = vpop.f32.mrb[29].mxu0  ;;  %19974 = vst [vmem:[#allocation223_spill] sm:$0xff] %v14445_v4  ;;  %8807 = vrot.lane.b32.xlu1 %v14445_v4, %s10009_s30  ;;  %v3396_v44 = vmul.f32 %v7392_v39, %v14196_v2  ;;  %v3998_v47 = vrot.slane %v14438_v16, 1  ;;  %v14459_v28 = vsel %vm220_vm0, 0.0, %v3659_v30  ;;  %v3996_v32 = vrot.slane %v14449_v61, 1 }
 0x376   :  { %v7393_v49 = vpop.f32.mrb[30].mxu0  ;;  %19975 = vst [vmem:[#allocation224_spill] sm:$0xff] %v14459_v28  ;;  %v3528_v46 = vmax.f32 %v3464_v34, 0.0  ;;  %v3668_v8 = vrot.slane %v3527_v0, 7  ;;  %v3526_v5 = vmax.f32 %v3462_v52, 0.0  ;;  %v4002_v57 = vsel %vm543_vm1, %v3999_v14, %v4001_v55 }
 0x377   :  { %v3219_v43 = vpop.f32.mrb[31].mxu0  ;;  %v3467_v36 = vadd.f32 %v14201_v62, %v3396_v44  ;;  %v4000_v39 = vsel %vm543_vm1, %v3998_v47, %v3999_v14  ;;  %v3394_v21 = vmul.f32 %v14196_v2, %v3216_v31  ;;  %v3665_v11 = vrot.slane %v3525_v38, 7 }
 0x378   :  { %v3669_v25 = vrot.slane %v3528_v46, 7  ;;  %v3666_v30 = vrot.slane %v3526_v5, 7  ;;  %v14466_v16 = vpack.i.bf16 %v4002_v57, %v4000_v39  ;;  %v3994_v34 = vrot.slane %v14441_v33, 1 }
 0x379   :  { %v3397_v52 = vmul.f32 %v7393_v49, %v14196_v2  ;;  %v3993_v44 = vrot.slane %v14459_v28, 1  ;;  %v3465_v57 = vadd.f32 %v14201_v62, %v3394_v21  ;;  %v14484_v31 = vsel %vm220_vm0, 0.0, %v3668_v8 }
 0x37a   :  { %19976 = vst [vmem:[#allocation225_spill] sm:$0xff] %v14466_v16  ;;  %v14470_v0 = vsel %vm220_vm0, %v3668_v8, %v3669_v25  ;;  %v14475_v47 = vsel %vm220_vm0, %v3669_v25, 0.0  ;;  %v14478_v55 = vsel %vm220_vm0, %v3665_v11, %v3666_v30  ;;  %8822 = vrot.lane.b32.xlu0 %v14466_v16, %s10009_s30  ;;  %19980 = vst [vmem:[#allocation66_spill] sm:$0xff] %v14484_v31  ;;  %v3531_v38 = vmax.f32 %v3467_v36, 0.0 }
 0x37b   :  { %19977 = vst [vmem:[#allocation131_spill] sm:$0xff] %v14470_v0  ;;  %19978 = vst [vmem:[#allocation159_spill] sm:$0xff] %v14475_v47  ;;  %v3995_v14 = vsel %vm543_vm1, %v3993_v44, %v3994_v34  ;;  %v3997_v49 = vsel %vm543_vm1, %v3994_v34, %v3996_v32  ;;  %v3468_v46 = vadd.f32 %v14201_v62, %v3397_v52  ;;  %v4011_v39 = vrot.slane %v14475_v47, 1 }
 0x37c   :  { %v7396_v1 = vpop.f32.mrb[32].mxu0  ;;  %19979 = vst [vmem:[#allocation226_spill] sm:$0xff] %v14478_v55  ;;  %v3395_v5 = vmul.f32 %v14196_v2, %v3219_v43  ;;  %v14491_v29 = vpack.i.bf16 %v3997_v49, %v3995_v14  ;;  %v3529_v35 = vmax.f32 %v3465_v57, 0.0  ;;  %v4008_v44 = vrot.slane %v14484_v31, 1 }
 0x37d   :  { %v3232_v53 = vpop.f32.mrb[33].mxu0  ;;  %v3400_v16 = vmul.f32 %v7396_v1, %v14196_v2  ;;  %v3532_v8 = vmax.f32 %v3468_v46, 0.0  ;;  %v4009_v32 = vrot.slane %v14470_v0, 1  ;;  %v14502_v1 = vsel %vm220_vm0, %v3666_v30, 0.0 }
 0x37e   :  { %v7397_v4 = vpop.f32.mrb[34].mxu0  ;;  %19981 = vst [vmem:[#allocation227_spill] sm:$0xff] %v14491_v29  ;;  %v3466_v36 = vadd.f32 %v14201_v62, %v3395_v5  ;;  %8817 = vrot.lane.b32.xlu1 %v14491_v29, %s10009_s30  ;;  %v3398_v34 = vmul.f32 %v14196_v2, %v3232_v53  ;;  %19982 = vst [vmem:[#allocation228_spill] sm:$0xff] %v14502_v1  ;;  %v14504_v57 = vrot.slane %v3531_v38, 7  ;;  %v14509_v46 = vsel %vm220_vm0, 0.0, %v3665_v11 }
 0x37f   :  { %v3235_v42 = vpop.f32.mrb[35].mxu0  ;;  %v3471_v43 = vadd.f32 %v14201_v62, %v3400_v16  ;;  %v14506_v14 = vrot.slane %v3532_v8, 7  ;;  %19985 = vst [vmem:[#allocation229_spill] sm:$0xff] %v14509_v46  ;;  %v4010_v5 = vsel %vm543_vm1, %v4008_v44, %v4009_v32  ;;  %v4012_v16 = vsel %vm543_vm1, %v4009_v32, %v4011_v39 }
 0x380   :  { %19983 = vst [vmem:[#allocation162_spill] sm:$0xff] %v14504_v57  ;;  %v3530_v49 = vmax.f32 %v3466_v36, 0.0  ;;  %v3469_v29 = vadd.f32 %v14201_v62, %v3398_v34  ;;  %v3671_v31 = vrot.slane %v3529_v35, 7  ;;  %v14519_v38 = vpack.i.bf16 %v4012_v16, %v4010_v5 }
 0x381   :  { %19984 = vst [vmem:[#allocation163_spill] sm:$0xff] %v14506_v14  ;;  %v14517_v53 = vsel %vm220_vm0, %v14504_v57, %v14506_v14  ;;  %v4006_v8 = vrot.slane %v14502_v1, 1  ;;  %v3535_v36 = vmax.f32 %v3471_v43, 0.0  ;;  %v4003_v35 = vrot.slane %v14509_v46, 1 }
 0x382   :  { %19986 = vst [vmem:[#allocation56_spill] sm:$0xff] %v14517_v53  ;;  %v3672_v30 = vrot.slane %v3530_v49, 7  ;;  %19987 = vst [vmem:[#allocation230_spill] sm:$0xff] %v14519_v38  ;;  %8832 = vrot.lane.b32.xlu0 %v14519_v38, %s10009_s30  ;;  %v3533_v39 = vmax.f32 %v3469_v29, 0.0  ;;  %v4004_v34 = vrot.slane %v14478_v55, 1  ;;  %v3401_v49 = vmul.f32 %v7397_v4, %v14196_v2 }
 0x383   :  { %v14534_v43 = vsel %vm220_vm0, 0.0, %v3671_v31  ;;  %v3399_v16 = vmul.f32 %v14196_v2, %v3235_v42  ;;  %v3680_v29 = vrot.slane %v3535_v36, 7 }
 0x384   :  { %v7400_v25 = vpop.f32.mrb[36].mxu0  ;;  %v14523_v11 = vsel %vm220_vm0, %v3671_v31, %v3672_v30  ;;  %v14529_v32 = vsel %vm220_vm0, %v3672_v30, 0.0  ;;  %19990 = vst [vmem:[#allocation166_spill] sm:$0xff] %v14534_v43  ;;  %v3677_v57 = vrot.slane %v3533_v39, 7  ;;  %v4005_v14 = vsel %vm543_vm1, %v4003_v35, %v4004_v34 }
 0x385   :  { %v3248_v21 = vpop.f32.mrb[37].mxu0  ;;  %19988 = vst [vmem:[#allocation231_spill] sm:$0xff] %v14523_v11  ;;  %19989 = vst [vmem:[#allocation165_spill] sm:$0xff] %v14529_v32  ;;  %v3404_v53 = vmul.f32 %v7400_v25, %v14196_v2  ;;  %v4007_v30 = vsel %vm543_vm1, %v4004_v34, %v4006_v8  ;;  %v4016_v4 = vrot.slane %v14529_v32, 1  ;;  %v3472_v31 = vadd.f32 %v14201_v62, %v3401_v49 }
 0x386   :  { %v7401_v3 = vpop.f32.mrb[38].mxu0  ;;  %v14545_v47 = vpack.i.bf16 %v4007_v30, %v4005_v14  ;;  %v3470_v42 = vadd.f32 %v14201_v62, %v3399_v16  ;;  %v4013_v25 = vrot.slane %v14534_v43, 1  ;;  %v3402_v36 = vmul.f32 %v14196_v2, %v3248_v21 }
 0x387   :  { %v3251_v52 = vpop.f32.mrb[39].mxu0  ;;  %v3475_v46 = vadd.f32 %v14201_v62, %v3404_v53  ;;  %v3536_v8 = vmax.f32 %v3472_v31, 0.0  ;;  %v4014_v35 = vrot.slane %v14523_v11, 1  ;;  %v3405_v14 = vmul.f32 %v7401_v3, %v14196_v2 }
 0x388   :  { %19991 = vst [vmem:[#allocation172_spill] sm:$0xff] %v14545_v47  ;;  %8827 = vrot.lane.b32.xlu1 %v14545_v47, %s10009_s30  ;;  %v3534_v39 = vmax.f32 %v3470_v42, 0.0  ;;  %v14557_v34 = vsel %vm220_vm0, 0.0, %v3680_v29  ;;  %v14560_v49 = vsel %vm220_vm0, 0.0, %v3677_v57  ;;  %v3473_v53 = vadd.f32 %v14201_v62, %v3402_v36 }
 0x389   :  { %19992 = vst [vmem:[#allocation72_spill] sm:$0xff] %v14557_v34  ;;  %19993 = vst [vmem:[#allocation232_spill] sm:$0xff] %v14560_v49  ;;  %v3539_v16 = vmax.f32 %v3475_v46, 0.0  ;;  %v3681_v30 = vrot.slane %v3536_v8, 7  ;;  %v4015_v43 = vsel %vm543_vm1, %v4013_v25, %v4014_v35  ;;  %v4017_v31 = vsel %vm543_vm1, %v4014_v35, %v4016_v4 }
 0x38a   :  { %v3678_v21 = vrot.slane %v3534_v39, 7  ;;  %v14565_v47 = vpack.i.bf16 %v4017_v31, %v4015_v43  ;;  %v3476_v3 = vadd.f32 %v14201_v62, %v3405_v14  ;;  %v3403_v11 = vmul.f32 %v14196_v2, %v3251_v52 }
 0x38b   :  { %v14571_v46 = vsel %vm220_vm0, %v3680_v29, %v3681_v30  ;;  %v14574_v36 = vsel %vm220_vm0, %v3681_v30, 0.0  ;;  %v3537_v4 = vmax.f32 %v3473_v53, 0.0  ;;  %v4023_v52 = vrot.slane %v14557_v34, 1 }
 0x38c   :  { %v7404_v44 = vpop.f32.mrb[40].mxu0  ;;  %19994 = vst [vmem:[#allocation233_spill] sm:$0xff] %v14565_v47  ;;  %19995 = vst [vmem:[#allocation234_spill] sm:$0xff] %v14571_v46  ;;  %v14577_v25 = vsel %vm220_vm0, %v3677_v57, %v3678_v21  ;;  %8837 = vrot.lane.b32.xlu1 %v14565_v47, %s10009_s30  ;;  %v14588_v29 = vsel %vm220_vm0, %v3678_v21, 0.0  ;;  %v4018_v39 = vrot.slane %v14560_v49, 1  ;;  %v3686_v35 = vrot.slane %v3539_v16, 7 }
 0x38d   :  { %v3264_v5 = vpop.f32.mrb[41].mxu0  ;;  %v3408_v32 = vmul.f32 %v7404_v44, %v14196_v2  ;;  %19996 = vst [vmem:[#allocation235_spill] sm:$0xff] %v14574_v36  ;;  %19997 = vst [vmem:[#allocation65_spill] sm:$0xff] %v14577_v25  ;;  %v4026_v44 = vrot.slane %v14574_v36, 1  ;;  %v3540_v57 = vmax.f32 %v3476_v3, 0.0  ;;  %v3474_v14 = vadd.f32 %v14201_v62, %v3403_v11 }
 0x38e   :  { %v14538_v38 = vpop.f32.mrb[42].mxu0  ;;  %19998 = vst [vmem:[#allocation58_spill] sm:$0xff] %v14588_v29  ;;  %v3683_v53 = vrot.slane %v3537_v4, 7  ;;  %v4024_v31 = vrot.slane %v14571_v46, 1  ;;  %v3406_v47 = vmul.f32 %v14196_v2, %v3264_v5  ;;  %v4019_v34 = vrot.slane %v14577_v25, 1 }
 0x38f   :  { %v14542_v0 = vpop.f32.mrb[43].mxu0  ;;  %v3479_v30 = vadd.f32 %v14201_v62, %v3408_v32  ;;  %v4021_v36 = vrot.slane %v14588_v29, 1  ;;  %v3687_v1 = vrot.slane %v3540_v57, 7  ;;  %v3538_v21 = vmax.f32 %v3474_v14, 0.0 }
 0x390   :  { %v4025_v49 = vsel %vm543_vm1, %v4023_v52, %v4024_v31  ;;  %v4027_v16 = vsel %vm543_vm1, %v4024_v31, %v4026_v44  ;;  %v3477_v11 = vadd.f32 %v14201_v62, %v3406_v47  ;;  %v14613_v14 = vsel %vm220_vm0, 0.0, %v3686_v35 }
 0x391   :  { %v3543_v45 = vmax.f32 %v3479_v30, 0.0  ;;  %v14603_v32 = vsel %vm220_vm0, %v3686_v35, %v3687_v1  ;;  %v14606_v5 = vsel %vm220_vm0, %v3687_v1, 0.0  ;;  %v3684_v4 = vrot.slane %v3538_v21, 7  ;;  %20002 = vst [vmem:[#allocation106_spill] sm:$0xff] %v14613_v14 }
 0x392   :  { %19999 = vst [vmem:[#allocation175_spill] sm:$0xff] %v14603_v32  ;;  %20000 = vst [vmem:[#allocation64_spill] sm:$0xff] %v14606_v5  ;;  %v14608_v25 = vpack.i.bf16 %v4027_v16, %v4025_v49  ;;  %v14616_v52 = vsel %vm220_vm0, 0.0, %v3683_v53  ;;  %v3541_v44 = vmax.f32 %v3477_v11, 0.0  ;;  %v4020_v49 = vsel %vm543_vm1, %v4018_v39, %v4019_v34 }
 0x393   :  { %20003 = vst [vmem:[#allocation236_spill] sm:$0xff] %v14616_v52  ;;  %v3692_v47 = vrot.slane %v3543_v45, 7  ;;  %v14621_v31 = vsel %vm220_vm0, %v3683_v53, %v3684_v4  ;;  %v14624_v1 = vsel %vm220_vm0, %v3684_v4, 0.0  ;;  %v4022_v35 = vsel %vm543_vm1, %v4019_v34, %v4021_v36 }
 0x394   :  { %v7408_v42 = vpop.f32.mrb[44].mxu0  ;;  %20001 = vst [vmem:[#allocation243_spill] sm:$0xff] %v14608_v25  ;;  %20004 = vst [vmem:[#allocation176_spill] sm:$0xff] %v14621_v31  ;;  %8847 = vrot.lane.b32.xlu1 %v14608_v25, %s10009_s30  ;;  %v4036_v16 = vrot.slane %v14606_v5, 1  ;;  %v4033_v45 = vrot.slane %v14613_v14, 1  ;;  %v4028_v11 = vrot.slane %v14616_v52, 1  ;;  %v14633_v29 = vpack.i.bf16 %v4022_v35, %v4020_v49 }
 0x395   :  { %v3280_v55 = vpop.f32.mrb[45].mxu0  ;;  %20005 = vst [vmem:[#allocation112_spill] sm:$0xff] %v14624_v1  ;;  %v3409_v53 = vmul.f32 %v14538_v38, %v14196_v2  ;;  %v4031_v4 = vrot.slane %v14624_v1, 1  ;;  %v3407_v25 = vmul.f32 %v14196_v2, %v14542_v0  ;;  %v3412_v39 = vmul.f32 %v7408_v42, %v14196_v2 }
 0x396   :  { %v14579_v8 = vpop.f32.mrb[46].mxu0  ;;  %20006 = vst [vmem:[#allocation71_spill] sm:$0xff] %v14633_v29  ;;  %v4034_v34 = vrot.slane %v14603_v32, 1  ;;  %v14643_v36 = vsel %vm220_vm0, 0.0, %v3692_v47  ;;  %v3689_v14 = vrot.slane %v3541_v44, 7  ;;  %8842 = vrot.lane.b32.xlu0 %v14633_v29, %s10009_s30  ;;  %v3410_v38 = vmul.f32 %v14196_v2, %v3280_v55 }
 0x397   :  { %v14583_v43 = vpop.f32.mrb[47].mxu0  ;;  %20007 = vst [vmem:[#allocation74_spill] sm:$0xff] %v14643_v36  ;;  %v3480_v49 = vadd.f32 %v14201_v62, %v3409_v53  ;;  %v3478_v35 = vadd.f32 %v14201_v62, %v3407_v25  ;;  %v3483_v52 = vadd.f32 %v14201_v62, %v3412_v39  ;;  %v4029_v29 = vrot.slane %v14621_v31, 1 }
 0x398   :  { %v4035_v0 = vsel %vm543_vm1, %v4033_v45, %v4034_v34  ;;  %v4037_v42 = vsel %vm543_vm1, %v4034_v34, %v4036_v16  ;;  %v3481_v44 = vadd.f32 %v14201_v62, %v3410_v38  ;;  %v3413_v25 = vmul.f32 %v14579_v8, %v14196_v2 }
 0x399   :  { %v3544_v32 = vmax.f32 %v3480_v49, 0.0  ;;  %v14655_v5 = vpack.i.bf16 %v4037_v42, %v4035_v0  ;;  %v3542_v55 = vmax.f32 %v3478_v35, 0.0  ;;  %v3547_v46 = vmax.f32 %v3483_v52, 0.0 }
 0x39a   :  { %v3411_v45 = vmul.f32 %v14196_v2, %v14583_v43  ;;  %v14668_v39 = vsel %vm220_vm0, 0.0, %v3689_v14  ;;  %v4030_v49 = vsel %vm543_vm1, %v4028_v11, %v4029_v29  ;;  %v4032_v38 = vsel %vm543_vm1, %v4029_v29, %v4031_v4 }
 0x39b   :  { %20008 = vst [vmem:[#allocation73_spill] sm:$0xff] %v14655_v5  ;;  %20009 = vst [vmem:[#allocation178_spill] sm:$0xff] %v14668_v39  ;;  %v3693_v34 = vrot.slane %v3544_v32, 7  ;;  %8857 = vrot.lane.b32.xlu1 %v14655_v5, %s10009_s30  ;;  %v3690_v35 = vrot.slane %v3542_v55, 7  ;;  %v3698_v8 = vrot.slane %v3547_v46, 7  ;;  %v3545_v0 = vmax.f32 %v3481_v44, 0.0 }
 0x39c   :  { %v14600_v3 = vpop.f32.mrb[48].mxu0  ;;  %v14676_v42 = vpack.i.bf16 %v4032_v38, %v4030_v49  ;;  %v3484_v32 = vadd.f32 %v14201_v62, %v3413_v25  ;;  %v3482_v5 = vadd.f32 %v14201_v62, %v3411_v45  ;;  %v4043_v46 = vrot.slane %v14643_v36, 1 }
 0x39d   :  { %v14610_v57 = vpop.f32.mrb[49].mxu0  ;;  %v14679_v43 = vsel %vm220_vm0, %v3692_v47, %v3693_v34  ;;  %v14682_v31 = vsel %vm220_vm0, %v3693_v34, 0.0  ;;  %v14687_v11 = vsel %vm220_vm0, %v3689_v14, %v3690_v35  ;;  %v14690_v29 = vsel %vm220_vm0, %v3690_v35, 0.0 }
 0x39e   :  { %v14618_v30 = vpop.f32.mrb[50].mxu0  ;;  %20010 = vst [vmem:[#allocation237_spill] sm:$0xff] %v14676_v42  ;;  %20011 = vst [vmem:[#allocation239_spill] sm:$0xff] %v14679_v43  ;;  %8852 = vrot.lane.b32.xlu0 %v14676_v42, %s10009_s30  ;;  %v4038_v47 = vrot.slane %v14668_v39, 1  ;;  %v4046_v4 = vrot.slane %v14682_v31, 1  ;;  %v4041_v44 = vrot.slane %v14690_v29, 1  ;;  %v3416_v49 = vmul.f32 %v14600_v3, %v14196_v2 }
 0x39f   :  { %v3299_v21 = vpop.f32.mrb[51].mxu0  ;;  %20012 = vst [vmem:[#allocation240_spill] sm:$0xff] %v14682_v31  ;;  %20013 = vst [vmem:[#allocation241_spill] sm:$0xff] %v14687_v11  ;;  %v14699_v55 = vsel %vm220_vm0, 0.0, %v3698_v8  ;;  %v3695_v25 = vrot.slane %v3545_v0, 7  ;;  %v3548_v45 = vmax.f32 %v3484_v32, 0.0  ;;  %v3414_v42 = vmul.f32 %v14196_v2, %v14610_v57 }
 0x3a0   :  { %20014 = vst [vmem:[#allocation242_spill] sm:$0xff] %v14690_v29  ;;  %20015 = vst [vmem:[#allocation244_spill] sm:$0xff] %v14699_v55  ;;  %v3546_v34 = vmax.f32 %v3482_v5, 0.0  ;;  %v4044_v38 = vrot.slane %v14679_v43, 1  ;;  %v4039_v39 = vrot.slane %v14687_v11, 1  ;;  %v3417_v29 = vmul.f32 %v14618_v30, %v14196_v2 }
 0x3a1   :  { %v3415_v0 = vmul.f32 %v14196_v2, %v3299_v21  ;;  %v3699_v5 = vrot.slane %v3548_v45, 7  ;;  %v3487_v3 = vadd.f32 %v14201_v62, %v3416_v49  ;;  %v3485_v57 = vadd.f32 %v14201_v62, %v3414_v42 }
 0x3a2   :  { %v3696_v32 = vrot.slane %v3546_v34, 7  ;;  %v4045_v43 = vsel %vm543_vm1, %v4043_v46, %v4044_v38  ;;  %v4047_v28 = vsel %vm543_vm1, %v4044_v38, %v4046_v4  ;;  %v4040_v11 = vsel %vm543_vm1, %v4038_v47, %v4039_v39 }
 0x3a3   :  { %v4042_v30 = vsel %vm543_vm1, %v4039_v39, %v4041_v44  ;;  %v14725_v21 = vsel %vm220_vm0, %v3698_v8, %v3699_v5  ;;  %v14728_v45 = vsel %vm220_vm0, %v3699_v5, 0.0  ;;  %v4053_v46 = vrot.slane %v14699_v55, 1 }
 0x3a4   :  { %v14653_v1 = vpop.f32.mrb[52].mxu0  ;;  %20016 = vst [vmem:[#allocation87_spill] sm:$0xff] %v14725_v21  ;;  %20017 = vst [vmem:[#allocation179_spill] sm:$0xff] %v14728_v45  ;;  %v14731_v34 = vsel %vm220_vm0, %v3695_v25, %v3696_v32  ;;  %v14735_v49 = vsel %vm220_vm0, 0.0, %v3695_v25  ;;  %v4056_v42 = vrot.slane %v14728_v45, 1  ;;  %v14739_v47 = vsel %vm220_vm0, %v3696_v32, 0.0 }
 0x3a5   :  { %v14659_v53 = vpop.f32.mrb[53].mxu0  ;;  %20018 = vst [vmem:[#allocation120_spill] sm:$0xff] %v14731_v34  ;;  %20019 = vst [vmem:[#allocation118_spill] sm:$0xff] %v14735_v49  ;;  %v3551_v39 = vmax.f32 %v3487_v3, 0.0  ;;  %v14741_v4 = vpack.i.bf16 %v4047_v28, %v4045_v43  ;;  %v3549_v8 = vmax.f32 %v3485_v57, 0.0  ;;  %v14743_v44 = vpack.i.bf16 %v4042_v30, %v4040_v11 }
 0x3a6   :  { %v14665_v16 = vpop.f32.mrb[54].mxu0  ;;  %20020 = vst [vmem:[#allocation84_spill] sm:$0xff] %v14739_v47  ;;  %v3488_v38 = vadd.f32 %v14201_v62, %v3417_v29  ;;  %v3486_v5 = vadd.f32 %v14201_v62, %v3415_v0  ;;  %v3420_v55 = vmul.f32 %v14653_v1, %v14196_v2  ;;  %v4054_v25 = vrot.slane %v14725_v21, 1 }
 0x3a7   :  { %v14674_v52 = vpop.f32.mrb[55].mxu0  ;;  %20021 = vst [vmem:[#allocation245_spill] sm:$0xff] %v14741_v4  ;;  %20022 = vst [vmem:[#allocation180_spill] sm:$0xff] %v14743_v44  ;;  %v4051_v32 = vrot.slane %v14739_v47, 1  ;;  %8867 = vrot.lane.b32.xlu1 %v14741_v4, %s10009_s30  ;;  %8862 = vrot.lane.b32.xlu0 %v14743_v44, %s10009_s30  ;;  %v3418_v28 = vmul.f32 %v14196_v2, %v14659_v53  ;;  %v4049_v0 = vrot.slane %v14731_v34, 1  ;;  %v4048_v57 = vrot.slane %v14735_v49, 1 }
 0x3a8   :  { %v3552_v11 = vmax.f32 %v3488_v38, 0.0  ;;  %v3550_v29 = vmax.f32 %v3486_v5, 0.0  ;;  %v4055_v1 = vsel %vm543_vm1, %v4053_v46, %v4054_v25  ;;  %v4057_v30 = vsel %vm543_vm1, %v4054_v25, %v4056_v42 }
 0x3a9   :  { %v3704_v44 = vrot.slane %v3551_v39, 7  ;;  %v3701_v47 = vrot.slane %v3549_v8, 7  ;;  %v3491_v53 = vadd.f32 %v14201_v62, %v3420_v55  ;;  %v3489_v21 = vadd.f32 %v14201_v62, %v3418_v28 }
 0x3aa   :  { %v3705_v38 = vrot.slane %v3552_v11, 7  ;;  %v3702_v5 = vrot.slane %v3550_v29, 7  ;;  %v14771_v45 = vpack.i.bf16 %v4057_v30, %v4055_v1  ;;  %v4050_v46 = vsel %vm543_vm1, %v4048_v57, %v4049_v0  ;;  %v14804_v29 = vld [vmem:[%s17929_s4] ss:$0 sm:$0xff] }
 0x3ab   :  { %v4052_v34 = vsel %vm543_vm1, %v4049_v0, %v4051_v32  ;;  %v3421_v49 = vmul.f32 %v14665_v16, %v14196_v2  ;;  %v14792_v8 = vsel %vm220_vm0, 0.0, %v3704_v44  ;;  %v14795_v2 = vsel %vm220_vm0, 0.0, %v3701_v47 }
 0x3ac   :  { %v14701_v14 = vpop.f32.mrb[56].mxu0  ;;  %20023 = vst [vmem:[#allocation246_spill] sm:$0xff] %v14771_v45  ;;  %v14778_v42 = vsel %vm220_vm0, %v3704_v44, %v3705_v38  ;;  %v14781_v39 = vsel %vm220_vm0, %v3705_v38, 0.0  ;;  %v14784_v55 = vsel %vm220_vm0, %v3701_v47, %v3702_v5  ;;  %v14787_v62 = vsel %vm220_vm0, %v3702_v5, 0.0  ;;  %8877 = vrot.lane.b32.xlu1 %v14771_v45, %s10009_s30  ;;  %20027 = vst [vmem:[#allocation250_spill] sm:$0xff] %v14792_v8 }
 0x3ad   :  { %v14706_v35 = vpop.f32.mrb[57].mxu0  ;;  %20024 = vst [vmem:[#allocation247_spill] sm:$0xff] %v14778_v42  ;;  %20025 = vst [vmem:[#allocation248_spill] sm:$0xff] %v14784_v55  ;;  %v3555_v16 = vmax.f32 %v3491_v53, 0.0  ;;  %v3553_v25 = vmax.f32 %v3489_v21, 0.0  ;;  %v4066_v32 = vrot.slane %v14781_v39, 1  ;;  %v14799_v11 = vpack.i.bf16 %v4052_v34, %v4050_v46 }
 0x3ae   :  { %v14714_v36 = vpop.f32.mrb[58].mxu0  ;;  %20026 = vst [vmem:[#allocation249_spill] sm:$0xff] %v14787_v62  ;;  %20028 = vst [vmem:[#allocation251_spill] sm:$0xff] %v14795_v2  ;;  %v4061_v28 = vrot.slane %v14787_v62, 1  ;;  %v3492_v1 = vadd.f32 %v14804_v29, %v3421_v49  ;;  %v10007_v47 = vld [vmem:[%s17928_s3] ss:$0 sm:$0xff] }
 0x3af   :  { %v14718_v31 = vpop.f32.mrb[59].mxu0  ;;  %20029 = vst [vmem:[#allocation252_spill] sm:$0xff] %v14799_v11  ;;  %v3419_v44 = vmul.f32 %v10007_v47, %v14674_v52  ;;  %v3424_v21 = vmul.f32 %v10007_v47, %v14701_v14  ;;  %v4064_v0 = vrot.slane %v14778_v42, 1  ;;  %v3422_v34 = vmul.f32 %v10007_v47, %v14706_v35  ;;  %8872 = vrot.lane.b32.xlu0 %v14799_v11, %s10009_s30 }
 0x3b0   :  { %v4063_v57 = vrot.slane %v14792_v8, 1  ;;  %v3556_v30 = vmax.f32 %v3492_v1, 0.0  ;;  %v4059_v49 = vrot.slane %v14784_v55, 1  ;;  %v4058_v53 = vrot.slane %v14795_v2, 1 }
 0x3b1   :  { %v3710_v38 = vrot.slane %v3555_v16, 7  ;;  %v3707_v5 = vrot.slane %v3553_v25, 7  ;;  %v3490_v52 = vadd.f32 %v14804_v29, %v3419_v44  ;;  %v3495_v14 = vadd.f32 %v14804_v29, %v3424_v21 }
 0x3b2   :  { %v3711_v46 = vrot.slane %v3556_v30, 7  ;;  %v4065_v45 = vsel %vm543_vm1, %v4063_v57, %v4064_v0  ;;  %v4067_v35 = vsel %vm543_vm1, %v4064_v0, %v4066_v32  ;;  %v3493_v62 = vadd.f32 %v14804_v29, %v3422_v34 }
 0x3b3   :  { %v4060_v11 = vsel %vm543_vm1, %v4058_v53, %v4059_v49  ;;  %v4062_v1 = vsel %vm543_vm1, %v4059_v49, %v4061_v28  ;;  %v3554_v25 = vmax.f32 %v3490_v52, 0.0  ;;  %v14833_v44 = vsel %vm220_vm0, 0.0, %v3710_v38 }
 0x3b4   :  { %v14750_v48 = vpop.f32.mrb[60].mxu0  ;;  %v14827_v55 = vsel %vm220_vm0, %v3710_v38, %v3711_v46  ;;  %v14830_v16 = vsel %vm220_vm0, %v3711_v46, 0.0  ;;  %20031 = vst [vmem:[#allocation254_spill] sm:$0xff] %v14833_v44  ;;  %v14836_v21 = vsel %vm220_vm0, 0.0, %v3707_v5  ;;  %v14838_v32 = vpack.i.bf16 %v4067_v35, %v4065_v45 }
 0x3b5   :  { %v14759_v43 = vpop.f32.mrb[61].mxu0  ;;  %20030 = vst [vmem:[#allocation253_spill] sm:$0xff] %v14827_v55  ;;  %20032 = vst [vmem:[#allocation255_spill] sm:$0xff] %v14836_v21  ;;  %v3708_v0 = vrot.slane %v3554_v25, 7  ;;  %v3559_v34 = vmax.f32 %v3495_v14, 0.0  ;;  %v14840_v57 = vpack.i.bf16 %v4062_v1, %v4060_v11  ;;  %v3425_v28 = vmul.f32 %v10007_v47, %v14714_v36 }
 0x3b6   :  { %v14763_v3 = vpop.f32.mrb[62].mxu0  ;;  %20033 = vst [vmem:[#allocation256_spill] sm:$0xff] %v14838_v32  ;;  %v4076_v30 = vrot.slane %v14830_v16, 1  ;;  %8887 = vrot.lane.b32.xlu1 %v14838_v32, %s10009_s30  ;;  %v3557_v49 = vmax.f32 %v3493_v62, 0.0  ;;  %v3423_v53 = vmul.f32 %v10007_v47, %v14718_v31  ;;  %v4074_v38 = vrot.slane %v14827_v55, 1 }
 0x3b7   :  { %v14767_v4 = vpop.f32.mrb[63].mxu0  ;;  %20034 = vst [vmem:[#allocation257_spill] sm:$0xff] %v14840_v57  ;;  %v14849_v46 = vsel %vm220_vm0, %v3707_v5, %v3708_v0  ;;  %8882 = vrot.lane.b32.xlu0 %v14840_v57, %s10009_s30  ;;  %v3496_v45 = vadd.f32 %v14804_v29, %v3425_v28  ;;  %v4073_v36 = vrot.slane %v14833_v44, 1  ;;  %v14856_v11 = vsel %vm220_vm0, %v3708_v0, 0.0 }
 0x3b8   :  { %20035 = vst [vmem:[#allocation258_spill] sm:$0xff] %v14849_v46  ;;  %v3428_v52 = vmul.f32 %v10007_v47, %v14750_v48  ;;  %v4068_v62 = vrot.slane %v14836_v21, 1  ;;  %v3494_v14 = vadd.f32 %v14804_v29, %v3423_v53  ;;  %v3716_v35 = vrot.slane %v3559_v34, 7 }
 0x3b9   :  { %v3560_v31 = vmax.f32 %v3496_v45, 0.0  ;;  %v3713_v5 = vrot.slane %v3557_v49, 7  ;;  %v4075_v1 = vsel %vm543_vm1, %v4073_v36, %v4074_v38  ;;  %v4077_v25 = vsel %vm543_vm1, %v4074_v38, %v4076_v30 }
 0x3ba   :  { %v4071_v28 = vrot.slane %v14856_v11, 1  ;;  %v3558_v57 = vmax.f32 %v3494_v14, 0.0  ;;  %v14864_v44 = vpack.i.bf16 %v4077_v25, %v4075_v1  ;;  %v3499_v0 = vadd.f32 %v14804_v29, %v3428_v52 }
 0x3bb   :  { %v3717_v32 = vrot.slane %v3560_v31, 7  ;;  %v3426_v48 = vmul.f32 %v10007_v47, %v14759_v43  ;;  %v4069_v45 = vrot.slane %v14849_v46, 1  ;;  %v3429_v53 = vmul.f32 %v10007_v47, %v14763_v3 }
 0x3bc   :  { %20036 = vst [vmem:[#allocation259_spill] sm:$0xff] %v14864_v44  ;;  %v3714_v30 = vrot.slane %v3558_v57, 7  ;;  %8897 = vrot.lane.b32.xlu1 %v14864_v44, %s10009_s30  ;;  %v3427_v38 = vmul.f32 %v10007_v47, %v14767_v4  ;;  %v14880_v36 = vsel %vm220_vm0, 0.0, %v3716_v35  ;;  %v14885_v3 = vsel %vm220_vm0, 0.0, %v3713_v5 }
 0x3bd   :  { %v14871_v34 = vsel %vm220_vm0, %v3716_v35, %v3717_v32  ;;  %v14874_v49 = vsel %vm220_vm0, %v3717_v32, 0.0  ;;  %20038 = vst [vmem:[#allocation2_spill] sm:$0xff] %v14880_v36  ;;  %v3497_v43 = vadd.f32 %v14804_v29, %v3426_v48  ;;  %v4070_v52 = vsel %vm543_vm1, %v4068_v62, %v4069_v45  ;;  %20039 = vst [vmem:[#allocation260_spill] sm:$0xff] %v14885_v3 }
 0x3be   :  { %20037 = vst [vmem:[#allocation6_spill] sm:$0xff] %v14871_v34  ;;  %v14888_v31 = vsel %vm220_vm0, %v3713_v5, %v3714_v30  ;;  %v14891_v32 = vsel %vm220_vm0, %v3714_v30, 0.0  ;;  %v4072_v57 = vsel %vm543_vm1, %v4069_v45, %v4071_v28  ;;  %v4086_v4 = vrot.slane %v14874_v49, 1 }
 0x3bf   :  { %20040 = vst [vmem:[#allocation104_spill] sm:$0xff] %v14888_v31  ;;  %v4081_v47 = vrot.slane %v14891_v32, 1  ;;  %v3563_v14 = vmax.f32 %v3499_v0, 0.0  ;;  %v3561_v35 = vmax.f32 %v3497_v43, 0.0  ;;  %v14896_v1 = vpack.i.bf16 %v4072_v57, %v4070_v52 }
 0x3c0   :  { %v3500_v62 = vadd.f32 %v14804_v29, %v3429_v53  ;;  %v3498_v25 = vadd.f32 %v14804_v29, %v3427_v38  ;;  %v4083_v5 = vrot.slane %v14880_v36, 1  ;;  %v4078_v48 = vrot.slane %v14885_v3, 1 }
 0x3c1   :  { %20041 = vst [vmem:[#allocation110_spill] sm:$0xff] %v14896_v1  ;;  %v4084_v30 = vrot.slane %v14871_v34, 1  ;;  %v4079_v28 = vrot.slane %v14888_v31, 1  ;;  %v4274_v45 = vrot.slane %v14225_v41, 2  ;;  %v3719_v44 = vrot.slane %v3561_v35, 7  ;;  %8892 = vrot.lane.b32.xlu0 %v14896_v1, %s10009_s30  ;;  %v20070_v1 = vld [vmem:[#allocation231_spill] sm:$0xff] }
 0x3c2   :  { %v3564_v0 = vmax.f32 %v3500_v62, 0.0  ;;  %v3562_v43 = vmax.f32 %v3498_v25, 0.0  ;;  %v14911_v57 = vrot.slane %v3563_v14, 7  ;;  %v4273_v35 = vrot.slane %v14212_v60, 2 }
 0x3c3   :  { %v4085_v53 = vsel %vm543_vm1, %v4083_v5, %v4084_v30  ;;  %v4087_v29 = vsel %vm543_vm1, %v4084_v30, %v4086_v4  ;;  %v4080_v38 = vsel %vm543_vm1, %v4078_v48, %v4079_v28  ;;  %v4082_v52 = vsel %vm543_vm1, %v4079_v28, %v4081_v47 }
 0x3c4   :  { %20042 = vst [vmem:[#allocation109_spill] sm:$0xff] %v14911_v57  ;;  %v14913_v3 = vrot.slane %v3564_v0, 7  ;;  %v3720_v31 = vrot.slane %v3562_v43, 7  ;;  %v14915_v41 = vpack.i.bf16 %v4087_v29, %v4085_v53  ;;  %v4276_v62 = vrot.slane %v14228_v7, 2 }
 0x3c5   :  { %v14919_v25 = vpack.i.bf16 %v4082_v52, %v4080_v38  ;;  %v14922_v5 = vsel %vm220_vm0, 0.0, %v3719_v44  ;;  %v4286_v7 = vrot.slane %v14281_v12, 2  ;;  %v4275_v48 = vsel %vm885_vm2, %v4273_v35, %v4274_v45 }
 0x3c6   :  { %20043 = vst [vmem:[#allocation261_spill] sm:$0xff] %v14913_v3  ;;  %20044 = vst [vmem:[#allocation262_spill] sm:$0xff] %v14915_v41  ;;  %v14927_v4 = vsel %vm220_vm0, %v14911_v57, %v14913_v3  ;;  %v14930_v47 = vsel %vm220_vm0, %v3719_v44, %v3720_v31  ;;  %v14933_v14 = vsel %vm220_vm0, %v3720_v31, 0.0  ;;  %8907 = vrot.lane.b32.xlu1 %v14915_v41, %s10009_s30  ;;  %v4283_v30 = vrot.slane %v14286_v37, 2  ;;  %v20077_v57 = vld [vmem:[#allocation235_spill] sm:$0xff] }
 0x3c7   :  { %20045 = vst [vmem:[#allocation113_spill] sm:$0xff] %v14919_v25  ;;  %20046 = vst [vmem:[#allocation115_spill] sm:$0xff] %v14922_v5  ;;  %8902 = vrot.lane.b32.xlu0 %v14919_v25, %s10009_s30  ;;  %v4091_v28 = vrot.slane %v14933_v14, 1  ;;  %v4088_v44 = vrot.slane %v14922_v5, 1  ;;  %v4277_v0 = vsel %vm885_vm2, %v4274_v45, %v4276_v62  ;;  %v4284_v31 = vrot.slane %v14267_v17, 2 }
 0x3c8   :  { %20047 = vst [vmem:[#allocation186_spill] sm:$0xff] %v14927_v4  ;;  %20048 = vst [vmem:[#allocation263_spill] sm:$0xff] %v14930_v47  ;;  %v4089_v43 = vrot.slane %v14930_v47, 1  ;;  %v14947_v53 = vpack.i.bf16 %v4277_v0, %v4275_v48  ;;  %v4296_v12 = vrot.slane %v14321_v59, 2  ;;  %v4281_v35 = vrot.slane %v14219_v6, 2 }
 0x3c9   :  { %v4285_v29 = vsel %vm885_vm2, %v4283_v30, %v4284_v31  ;;  %v4287_v38 = vsel %vm885_vm2, %v4284_v31, %v4286_v7  ;;  %v4278_v62 = vrot.slane %v14222_v23, 2  ;;  %v4293_v48 = vrot.slane %v14314_v18, 2 }
 0x3ca   :  { %20049 = vst [vmem:[#allocation127_spill] sm:$0xff] %v14947_v53  ;;  %v4090_v52 = vsel %vm543_vm1, %v4088_v44, %v4089_v43  ;;  %8917 = vrot.lane.b32.xlu1 %v14947_v53, %s10010_s18  ;;  %v4092_v45 = vsel %vm543_vm1, %v4089_v43, %v4091_v28  ;;  %v4294_v59 = vrot.slane %v14309_v56, 2  ;;  %v4291_v30 = vrot.slane %v14264_v26, 2 }
 0x3cb   :  { %v14959_v0 = vpack.i.bf16 %v4092_v45, %v4090_v52  ;;  %v14963_v7 = vpack.i.bf16 %v4287_v38, %v4285_v29  ;;  %v4279_v44 = vrot.slane %v14216_v51, 2  ;;  %v4289_v6 = vrot.slane %v14261_v50, 2 }
 0x3cc   :  { %v4306_v31 = vrot.slane %v14359_v13, 2  ;;  %v4295_v28 = vsel %vm885_vm2, %v4293_v48, %v4294_v59  ;;  %v4297_v43 = vsel %vm885_vm2, %v4294_v59, %v4296_v12  ;;  %v4304_v52 = vrot.slane %v14354_v9, 2 }
 0x3cd   :  { %20050 = vst [vmem:[#allocation264_spill] sm:$0xff] %v14959_v0  ;;  %20051 = vst [vmem:[#allocation265_spill] sm:$0xff] %v14963_v7  ;;  %8912 = vrot.lane.b32.xlu0 %v14959_v0, %s10009_s30  ;;  %v4288_v45 = vrot.slane %v14270_v19, 2  ;;  %v4280_v26 = vsel %vm885_vm2, %v4278_v62, %v4279_v44  ;;  %v4282_v29 = vsel %vm885_vm2, %v4279_v44, %v4281_v35  ;;  %v4301_v13 = vrot.slane %v14299_v58, 2  ;;  %v20069_v0 = vld [vmem:[#allocation165_spill] sm:$0xff] }
 0x3ce   :  { %8927 = vrot.lane.b32.xlu1 %v14963_v7, %s10010_s18  ;;  %v4303_v38 = vrot.slane %v14342_v40, 2  ;;  %v14980_v53 = vpack.i.bf16 %v4282_v29, %v4280_v26  ;;  %v4316_v48 = vrot.slane %v14410_v63, 2  ;;  %v14983_v12 = vpack.i.bf16 %v4297_v43, %v4295_v28 }
 0x3cf   :  { %v4290_v59 = vsel %vm885_vm2, %v4288_v45, %v4289_v6  ;;  %v4292_v41 = vsel %vm885_vm2, %v4289_v6, %v4291_v30  ;;  %v4307_v35 = vsel %vm885_vm2, %v4304_v52, %v4306_v31  ;;  %v4314_v58 = vrot.slane %v14399_v24, 2 }
 0x3d0   :  { %20052 = vst [vmem:[#allocation266_spill] sm:$0xff] %v14980_v53  ;;  %20053 = vst [vmem:[#allocation187_spill] sm:$0xff] %v14983_v12  ;;  %v4305_v62 = vsel %vm885_vm2, %v4303_v38, %v4304_v52  ;;  %v4299_v44 = vrot.slane %v14289_v27, 2  ;;  %v4298_v26 = vrot.slane %v14296_v15, 2  ;;  %v4311_v63 = vrot.slane %v14348_v10, 2 }
 0x3d1   :  { %8922 = vrot.lane.b32.xlu0 %v14980_v53, %s10010_s18  ;;  %v4313_v30 = vrot.slane %v14407_v54, 2  ;;  %v14998_v6 = vpack.i.bf16 %v4292_v41, %v4290_v59  ;;  %v15000_v28 = vpack.i.bf16 %v4307_v35, %v4305_v62  ;;  %v4309_v52 = vrot.slane %v14345_v22, 2  ;;  %v20056_v59 = vld [vmem:[#allocation218_spill] sm:$0xff]  ;;  %v20057_v62 = vld [vmem:[#allocation224_spill] sm:$0xff] }
 0x3d2   :  { %8937 = vrot.lane.b32.xlu1 %v14983_v12, %s10010_s18  ;;  %v4300_v43 = vsel %vm885_vm2, %v4298_v26, %v4299_v44  ;;  %v4302_v31 = vsel %vm885_vm2, %v4299_v44, %v4301_v13  ;;  %v4326_v45 = vrot.slane %v14449_v61, 2  ;;  %v4317_v10 = vsel %vm885_vm2, %v4314_v58, %v4316_v48  ;;  %v20060_v48 = vld [vmem:[#allocation141_spill] sm:$0xff]  ;;  %v20062_v53 = vld [vmem:[#allocation226_spill] sm:$0xff] }
 0x3d3   :  { %20054 = vst [vmem:[#allocation267_spill] sm:$0xff] %v14998_v6  ;;  %20055 = vst [vmem:[#allocation268_spill] sm:$0xff] %v15000_v28  ;;  %v4315_v29 = vsel %vm885_vm2, %v4313_v30, %v4314_v58  ;;  %v4324_v41 = vrot.slane %v14441_v33, 2  ;;  %v4308_v38 = vrot.slane %v14339_v20, 2  ;;  %v4321_v13 = vrot.slane %v20056_v59, 2 }
 0x3d4   :  { %v4323_v35 = vrot.slane %v20057_v62, 2  ;;  %v15016_v44 = vpack.i.bf16 %v4302_v31, %v4300_v43  ;;  %v15018_v61 = vpack.i.bf16 %v4317_v10, %v4315_v29  ;;  %v4312_v30 = vsel %vm885_vm2, %v4309_v52, %v4311_v63  ;;  %v20063_v31 = vld [vmem:[#allocation156_spill] sm:$0xff]  ;;  %v20064_v10 = vld [vmem:[#allocation221_spill] sm:$0xff] }
 0x3d5   :  { %8932 = vrot.lane.b32.xlu0 %v14998_v6, %s10010_s18  ;;  %v4310_v26 = vsel %vm885_vm2, %v4308_v38, %v4309_v52  ;;  %v4319_v58 = vrot.slane %v20060_v48, 2  ;;  %v20061_v6 = vld [vmem:[#allocation228_spill] sm:$0xff]  ;;  %v4327_v59 = vsel %vm885_vm2, %v4324_v41, %v4326_v45  ;;  %v4334_v43 = vrot.slane %v20062_v53, 2  ;;  %v20065_v52 = vld [vmem:[#allocation229_spill] sm:$0xff] }
 0x3d6   :  { %8947 = vrot.lane.b32.xlu1 %v15000_v28, %s10010_s18  ;;  %20058 = vst [vmem:[#allocation124_spill] sm:$0xff] %v15016_v44  ;;  %20059 = vst [vmem:[#allocation130_spill] sm:$0xff] %v15018_v61  ;;  %v4336_v12 = vrot.slane %v20061_v6, 2  ;;  %v4325_v28 = vsel %vm885_vm2, %v4323_v35, %v4324_v41  ;;  %v4318_v29 = vrot.slane %v20063_v31, 2  ;;  %v4331_v63 = vrot.slane %v20064_v10, 2  ;;  %v20068_v45 = vld [vmem:[#allocation220_spill] sm:$0xff] }
 0x3d7   :  { %v4333_v38 = vrot.slane %v20065_v52, 2  ;;  %v15034_v7 = vpack.i.bf16 %v4312_v30, %v4310_v26  ;;  %v15036_v6 = vpack.i.bf16 %v4327_v59, %v4325_v28  ;;  %v4322_v35 = vsel %vm885_vm2, %v4319_v58, %v4321_v13  ;;  %v20071_v30 = vld [vmem:[#allocation123_spill] sm:$0xff] }
 0x3d8   :  { %v4329_v41 = vrot.slane %v20068_v45, 2  ;;  %v4346_v25 = vrot.slane %v20069_v0, 2  ;;  %v4337_v10 = vsel %vm885_vm2, %v4334_v43, %v4336_v12  ;;  %v4344_v26 = vrot.slane %v20070_v1, 2  ;;  %v20072_v59 = vld [vmem:[#allocation159_spill] sm:$0xff]  ;;  %v20078_v1 = vld [vmem:[#allocation234_spill] sm:$0xff] }
 0x3d9   :  { %8942 = vrot.lane.b32.xlu0 %v15016_v44, %s10010_s18  ;;  %20066 = vst [vmem:[#allocation190_spill] sm:$0xff] %v15034_v7  ;;  %20067 = vst [vmem:[#allocation129_spill] sm:$0xff] %v15036_v6  ;;  %v4320_v44 = vsel %vm885_vm2, %v4318_v29, %v4319_v58  ;;  %v4328_v28 = vrot.slane %v20071_v30, 2  ;;  %v4341_v13 = vrot.slane %v20072_v59, 2  ;;  %v20073_v58 = vld [vmem:[#allocation166_spill] sm:$0xff]  ;;  %v20076_v12 = vld [vmem:[#allocation131_spill] sm:$0xff] }
 0x3da   :  { %8957 = vrot.lane.b32.xlu1 %v15018_v61, %s10010_s18  ;;  %v4335_v61 = vsel %vm885_vm2, %v4333_v38, %v4334_v43  ;;  %v4343_v29 = vrot.slane %v20073_v58, 2  ;;  %v15052_v4 = vpack.i.bf16 %v4322_v35, %v4320_v44  ;;  %v4332_v38 = vsel %vm885_vm2, %v4329_v41, %v4331_v63  ;;  %v20079_v35 = vld [vmem:[#allocation66_spill] sm:$0xff] }
 0x3db   :  { %v15054_v0 = vpack.i.bf16 %v4337_v10, %v4335_v61  ;;  %v4339_v43 = vrot.slane %v20076_v12, 2  ;;  %v4356_v3 = vrot.slane %v20077_v57, 2  ;;  %v4347_v59 = vsel %vm885_vm2, %v4344_v26, %v4346_v25  ;;  %v20080_v10 = vld [vmem:[#allocation72_spill] sm:$0xff]  ;;  %v20083_v57 = vld [vmem:[#allocation58_spill] sm:$0xff] }
 0x3dc   :  { %20074 = vst [vmem:[#allocation270_spill] sm:$0xff] %v15052_v4  ;;  %v4354_v44 = vrot.slane %v20078_v1, 2  ;;  %v4338_v61 = vrot.slane %v20079_v35, 2  ;;  %v4353_v63 = vrot.slane %v20080_v10, 2  ;;  %v4351_v58 = vrot.slane %v20083_v57, 2 }
 0x3dd   :  { %8952 = vrot.lane.b32.xlu0 %v15034_v7, %s10010_s18  ;;  %20075 = vst [vmem:[#allocation271_spill] sm:$0xff] %v15054_v0  ;;  %v4330_v7 = vsel %vm885_vm2, %v4328_v28, %v4329_v41  ;;  %v20081_v41 = vld [vmem:[#allocation65_spill] sm:$0xff]  ;;  %v4342_v25 = vsel %vm885_vm2, %v4339_v43, %v4341_v13 }
 0x3de   :  { %8967 = vrot.lane.b32.xlu1 %v15036_v6, %s10010_s18  ;;  %v4345_v6 = vsel %vm885_vm2, %v4343_v29, %v4344_v26  ;;  %v4349_v28 = vrot.slane %v20081_v41, 2  ;;  %v15070_v12 = vpack.i.bf16 %v4332_v38, %v4330_v7  ;;  %v4340_v29 = vsel %vm885_vm2, %v4338_v61, %v4339_v43  ;;  %v20085_v26 = vld [vmem:[#allocation64_spill] sm:$0xff]  ;;  %v20086_v41 = vld [vmem:[#allocation175_spill] sm:$0xff] }
 0x3df   :  { %v4366_v1 = vrot.slane %v20085_v26, 2  ;;  %v4357_v10 = vsel %vm885_vm2, %v4354_v44, %v4356_v3  ;;  %v4364_v7 = vrot.slane %v20086_v41, 2  ;;  %v20087_v38 = vld [vmem:[#allocation232_spill] sm:$0xff]  ;;  %v15088_v43 = vpack.i.bf16 %v4342_v25, %v4340_v29 }
 0x3e0   :  { %20082 = vst [vmem:[#allocation140_spill] sm:$0xff] %v15070_v12  ;;  %v4348_v35 = vrot.slane %v20087_v38, 2  ;;  %v20089_v61 = vld [vmem:[#allocation112_spill] sm:$0xff] }
 0x3e1   :  { %8962 = vrot.lane.b32.xlu0 %v15052_v4, %s10010_s18  ;;  %v15073_v4 = vpack.i.bf16 %v4347_v59, %v4345_v6  ;;  %v20088_v6 = vld [vmem:[#allocation106_spill] sm:$0xff]  ;;  %v4361_v13 = vrot.slane %v20089_v61, 2  ;;  %20090 = vst [vmem:[#allocation133_spill] sm:$0xff] %v15088_v43  ;;  %v20092_v3 = vld [vmem:[#allocation176_spill] sm:$0xff]  ;;  %v20094_v61 = vld [vmem:[#allocation239_spill] sm:$0xff] }
 0x3e2   :  { %8977 = vrot.lane.b32.xlu1 %v15054_v0, %s10010_s18  ;;  %v4355_v0 = vsel %vm885_vm2, %v4353_v63, %v4354_v44  ;;  %v4363_v59 = vrot.slane %v20088_v6, 2  ;;  %v4350_v26 = vsel %vm885_vm2, %v4348_v35, %v4349_v28  ;;  %v4352_v63 = vsel %vm885_vm2, %v4349_v28, %v4351_v58  ;;  %v20095_v25 = vld [vmem:[#allocation236_spill] sm:$0xff]  ;;  %v20096_v35 = vld [vmem:[#allocation74_spill] sm:$0xff] }
 0x3e3   :  { %20084 = vst [vmem:[#allocation135_spill] sm:$0xff] %v15073_v4  ;;  %v15090_v57 = vpack.i.bf16 %v4357_v10, %v4355_v0  ;;  %v4359_v44 = vrot.slane %v20092_v3, 2  ;;  %v4367_v6 = vsel %vm885_vm2, %v4364_v7, %v4366_v1  ;;  %v4374_v29 = vrot.slane %v20094_v61, 2  ;;  %v20097_v10 = vld [vmem:[#allocation242_spill] sm:$0xff]  ;;  %v20100_v1 = vld [vmem:[#allocation241_spill] sm:$0xff]  ;;  %v20101_v61 = vld [vmem:[#allocation179_spill] sm:$0xff] }
 0x3e4   :  { %v4358_v0 = vrot.slane %v20095_v25, 2  ;;  %v4373_v58 = vrot.slane %v20096_v35, 2  ;;  %v4371_v28 = vrot.slane %v20097_v10, 2  ;;  %v15106_v3 = vpack.i.bf16 %v4352_v63, %v4350_v26  ;;  %v20102_v10 = vld [vmem:[#allocation87_spill] sm:$0xff]  ;;  %v20103_v63 = vld [vmem:[#allocation178_spill] sm:$0xff] }
 0x3e5   :  { %8972 = vrot.lane.b32.xlu0 %v15070_v12, %s10010_s18  ;;  %20091 = vst [vmem:[#allocation134_spill] sm:$0xff] %v15090_v57  ;;  %v20093_v12 = vld [vmem:[#allocation240_spill] sm:$0xff]  ;;  %v4386_v38 = vrot.slane %v20101_v61, 2  ;;  %v4384_v26 = vrot.slane %v20102_v10, 2  ;;  %v4396_v10 = vrot.slane %v14781_v39, 2 }
 0x3e6   :  { %8987 = vrot.lane.b32.xlu1 %v15073_v4, %s10010_s18  ;;  %v4376_v41 = vrot.slane %v20093_v12, 2  ;;  %v4365_v4 = vsel %vm885_vm2, %v4363_v59, %v4364_v7  ;;  %20098 = vst [vmem:[#allocation272_spill] sm:$0xff] %v15106_v3  ;;  %v4362_v59 = vsel %vm885_vm2, %v4359_v44, %v4361_v13  ;;  %v4369_v7 = vrot.slane %v20100_v1, 2 }
 0x3e7   :  { %v15108_v12 = vpack.i.bf16 %v4367_v6, %v4365_v4  ;;  %v4368_v4 = vrot.slane %v20103_v63, 2  ;;  %v20104_v6 = vld [vmem:[#allocation244_spill] sm:$0xff] }
 0x3e8   :  { %v4377_v35 = vsel %vm885_vm2, %v4374_v29, %v4376_v41  ;;  %v4383_v13 = vrot.slane %v20104_v6, 2  ;;  %v20108_v41 = vld [vmem:[#allocation120_spill] sm:$0xff]  ;;  %v4387_v6 = vsel %vm885_vm2, %v4384_v26, %v4386_v38 }
 0x3e9   :  { %8982 = vrot.lane.b32.xlu0 %v15088_v43, %s10010_s18  ;;  %20099 = vst [vmem:[#allocation273_spill] sm:$0xff] %v15108_v12  ;;  %v4360_v43 = vsel %vm885_vm2, %v4358_v0, %v4359_v44  ;;  %v20105_v44 = vld [vmem:[#allocation84_spill] sm:$0xff] }
 0x3ea   :  { %8997 = vrot.lane.b32.xlu1 %v15090_v57, %s10010_s18  ;;  %v4375_v57 = vsel %vm885_vm2, %v4373_v58, %v4374_v29  ;;  %v4381_v0 = vrot.slane %v20105_v44, 2  ;;  %v15124_v1 = vpack.i.bf16 %v4362_v59, %v4360_v43  ;;  %v4372_v58 = vsel %vm885_vm2, %v4369_v7, %v4371_v28  ;;  %v20109_v59 = vld [vmem:[#allocation118_spill] sm:$0xff]  ;;  %v20110_v28 = vld [vmem:[#allocation249_spill] sm:$0xff]  ;;  %v20113_v38 = vld [vmem:[#allocation248_spill] sm:$0xff] }
 0x3eb   :  { %v15126_v61 = vpack.i.bf16 %v4377_v35, %v4375_v57  ;;  %v4379_v29 = vrot.slane %v20108_v41, 2  ;;  %v4394_v43 = vrot.slane %v14778_v42, 2  ;;  %v4378_v57 = vrot.slane %v20109_v59, 2 }
 0x3ec   :  { %20106 = vst [vmem:[#allocation274_spill] sm:$0xff] %v15124_v1  ;;  %v4393_v35 = vrot.slane %v14792_v8, 2 }
 0x3ed   :  { %8992 = vrot.lane.b32.xlu0 %v15106_v3, %s10010_s18  ;;  %20107 = vst [vmem:[#allocation275_spill] sm:$0xff] %v15126_v61  ;;  %v4370_v3 = vsel %vm885_vm2, %v4368_v4, %v4369_v7  ;;  %v4391_v7 = vrot.slane %v20110_v28, 2  ;;  %v4380_v44 = vsel %vm885_vm2, %v4378_v57, %v4379_v29  ;;  %v4397_v42 = vsel %vm885_vm2, %v4394_v43, %v4396_v10 }
 0x3ee   :  { %9007 = vrot.lane.b32.xlu1 %v15108_v12, %s10010_s18  ;;  %v4385_v12 = vsel %vm885_vm2, %v4383_v13, %v4384_v26  ;;  %v15142_v4 = vpack.i.bf16 %v4372_v58, %v4370_v3  ;;  %v4382_v13 = vsel %vm885_vm2, %v4379_v29, %v4381_v0  ;;  %v4389_v26 = vrot.slane %v20113_v38, 2 }
 0x3ef   :  { %v15144_v39 = vpack.i.bf16 %v4387_v6, %v4385_v12  ;;  %v4404_v3 = vrot.slane %v14827_v55, 2  ;;  %v4388_v12 = vrot.slane %v14795_v2, 2  ;;  %v20114_v6 = vld [vmem:[#allocation254_spill] sm:$0xff]  ;;  %v4401_v58 = vrot.slane %v14856_v11, 2 }
 0x3f0   :  { %20111 = vst [vmem:[#allocation276_spill] sm:$0xff] %v15142_v4  ;;  %v4403_v0 = vrot.slane %v20114_v6, 2  ;;  %v15160_v29 = vpack.i.bf16 %v4382_v13, %v4380_v44  ;;  %v4399_v10 = vrot.slane %v14849_v46, 2  ;;  %v4414_v11 = vrot.slane %v14871_v34, 2 }
 0x3f1   :  { %9002 = vrot.lane.b32.xlu0 %v15124_v1, %s10010_s18  ;;  %20112 = vst [vmem:[#allocation277_spill] sm:$0xff] %v15144_v39  ;;  %v4406_v1 = vrot.slane %v14830_v16, 2  ;;  %v4390_v57 = vsel %vm885_vm2, %v4388_v12, %v4389_v26 }
 0x3f2   :  { %9017 = vrot.lane.b32.xlu1 %v15126_v61, %s10010_s18  ;;  %v4395_v61 = vsel %vm885_vm2, %v4393_v35, %v4394_v43  ;;  %20115 = vst [vmem:[#allocation278_spill] sm:$0xff] %v15160_v29  ;;  %v4392_v35 = vsel %vm885_vm2, %v4389_v26, %v4391_v7  ;;  %v4416_v43 = vrot.slane %v14874_v49, 2  ;;  %v4405_v28 = vsel %vm885_vm2, %v4403_v0, %v4404_v3 }
 0x3f3   :  { %v15162_v16 = vpack.i.bf16 %v4397_v42, %v4395_v61  ;;  %v4398_v42 = vrot.slane %v14836_v21, 2  ;;  %v4413_v61 = vrot.slane %v14880_v36, 2  ;;  %v4411_v7 = vrot.slane %v14891_v32, 2  ;;  %v15190_v32 = vpop.permute.xlu1 %8767 }
 0x3f4   :  { %v15178_v44 = vpack.i.bf16 %v4392_v35, %v4390_v57  ;;  %v4402_v26 = vsel %vm885_vm2, %v4399_v10, %v4401_v58  ;;  %v4417_v0 = vsel %vm885_vm2, %v4414_v11, %v4416_v43  ;;  %v4418_v43 = vrot.slane %v14922_v5, 2 }
 0x3f5   :  { %9012 = vrot.lane.b32.xlu0 %v15142_v4, %s10010_s18  ;;  %20116 = vst [vmem:[#allocation279_spill] sm:$0xff] %v15162_v16  ;;  %v4400_v13 = vsel %vm885_vm2, %v4398_v42, %v4399_v10  ;;  %v4415_v12 = vsel %vm885_vm2, %v4413_v61, %v4414_v11  ;;  %v20124_v42 = vld [vmem:[#allocation212_spill] sm:$0xff] }
 0x3f6   :  { %9027 = vrot.lane.b32.xlu1 %v15144_v39, %s10010_s18  ;;  %v4407_v39 = vsel %vm885_vm2, %v4404_v3, %v4406_v1  ;;  %20117 = vst [vmem:[#allocation193_spill] sm:$0xff] %v15178_v44  ;;  %v20119_v1 = vld [vmem:[#allocation104_spill] sm:$0xff]  ;;  %v15195_v57 = vpack.i.bf16 %v4402_v26, %v4400_v13  ;;  %v15197_v58 = vpack.i.bf16 %v4417_v0, %v4415_v12  ;;  %v15220_v26 = vpop.permute.xlu0 %8772 }
 0x3f7   :  { %v15180_v49 = vpack.i.bf16 %v4407_v39, %v4405_v28  ;;  %v4409_v3 = vrot.slane %v20119_v1, 2  ;;  %v4421_v39 = vrot.slane %v14933_v14, 2  ;;  %v4419_v28 = vrot.slane %v14930_v47, 2  ;;  %v15205_v11 = vpop.permute.xlu1 %8777 }
 0x3f8   :  { %20121 = vst [vmem:[#allocation81_spill] sm:$0xff] %v15195_v57  ;;  %20122 = vst [vmem:[#allocation24_spill] sm:$0xff] %v15197_v58  ;;  %v9066_v61 = vpack.i.bf16 %v20124_v42, %v14212_v60 }
 0x3f9   :  { %9022 = vrot.lane.b32.xlu0 %v15160_v29, %s10010_s18  ;;  %20118 = vst [vmem:[#allocation280_spill] sm:$0xff] %v15180_v49  ;;  %v4412_v10 = vsel %vm885_vm2, %v4409_v3, %v4411_v7  ;;  %v4422_v7 = vsel %vm885_vm2, %v4419_v28, %v4421_v39 }
 0x3fa   :  { %9037 = vrot.lane.b32.xlu1 %v15162_v16, %s10010_s18  ;;  %v20120_v16 = vld [vmem:[#allocation260_spill] sm:$0xff]  ;;  %v15234_v39 = vpop.permute.xlu0 %8782 }
 0x3fb   :  { %v4408_v29 = vrot.slane %v20120_v16, 2  ;;  %v15217_v13 = vpop.permute.xlu1 %8787 }
 0x3fd   :  { %9032 = vrot.lane.b32.xlu0 %v15178_v44, %s10010_s18  ;;  %v4410_v35 = vsel %vm885_vm2, %v4408_v29, %v4409_v3  ;;  %v4420_v29 = vsel %vm885_vm2, %v4418_v43, %v4419_v28  ;;  %v15224_v3 = vpack.i.bf16 %v14267_v17, %v14286_v37  ;;  %v20128_v43 = vld [vmem:[#allocation163_spill] sm:$0xff] }
 0x3fe   :  { %9047 = vrot.lane.b32.xlu1 %v15180_v49, %s10010_s18  ;;  %v15209_v14 = vpack.i.bf16 %v4412_v10, %v4410_v35  ;;  %v15226_v12 = vpack.i.bf16 %v4422_v7, %v4420_v29  ;;  %v15238_v35 = vpack.i.bf16 %v14216_v51, %v14222_v23  ;;  %v15242_v10 = vpack.i.bf16 %v14309_v56, %v14314_v18  ;;  %v15252_v29 = vpop.permute.xlu0 %8792  ;;  %v20130_v49 = vld [vmem:[#allocation56_spill] sm:$0xff] }
 0x3ff   :  { %v15230_v0 = vpop.permute.xlu1 %8797  ;;  %v15256_v7 = vpack.i.bf16 %v14261_v50, %v14270_v19  ;;  %v15280_v56 = vpack.i.bf16 %v14399_v24, %v14407_v54  ;;  %v15298_v54 = vpack.i.bf16 %v14441_v33, %v20057_v62  ;;  %v15314_v62 = vpack.i.bf16 %v20060_v48, %v20063_v31  ;;  %v20149_v48 = vld [vmem:[#allocation65_spill] sm:$0xff] }
 0x400   :  { %20123 = vst [vmem:[#allocation281_spill] sm:$0xff] %v15209_v14  ;;  %20125 = vst [vmem:[#allocation32_spill] sm:$0xff] %v15226_v12 }
 0x401   :  { %9042 = vrot.lane.b32.xlu0 %v15195_v57, %s10010_s18  ;;  %20126 = vst [vmem:[#allocation107_spill] sm:$0xff] %v15230_v0  ;;  %v4800_v57 = vrot.slane %v20130_v49, 1 }
 0x402   :  { %9057 = vrot.lane.b32.xlu1 %v15197_v58, %s10010_s18  ;;  %v15271_v18 = vpop.permute.xlu0 %8802 }
 0x403   :  { %v15246_v28 = vpop.permute.xlu1 %8807 }
 0x404   :  { %20127 = vst [vmem:[#allocation183_spill] sm:$0xff] %v15246_v28 }
 0x405   :  { %9052 = vrot.lane.b32.xlu0 %v15209_v14, %s10010_s18  ;;  %v15262_v14 = vpack.i.bf16 %v14354_v9, %v14342_v40  ;;  %v5002_v40 = vrot.slane %v20130_v49, 2 }
 0x406   :  { %9067 = vrot.lane.b32.xlu1 %v9066_v61, %s10011_s19  ;;  %v3866_v61 = vsel %vm220_vm0, %v20128_v43, 0.0 }
 0x407   :  { %v4802_v44 = vrot.slane %v3866_v61, 1  ;;  %v15267_v43 = vpop.permute.xlu1 %8817  ;;  %v5004_v9 = vrot.slane %v3866_v61, 2  ;;  %v15294_v61 = vpack.i.bf16 %v14345_v22, %v14339_v20 }
 0x408   :  { %20131 = vst [vmem:[#allocation36_spill] sm:$0xff] %v15267_v43 }
 0x409   :  { %9062 = vrot.lane.b32.xlu0 %v15226_v12, %s10010_s18  ;;  %v20129_v12 = vld [vmem:[#allocation162_spill] sm:$0xff] }
 0x40a   :  { %9077 = vrot.lane.b32.xlu1 %v15224_v3, %s10011_s19  ;;  %v3834_v58 = vsel %vm220_vm0, 0.0, %v20129_v12  ;;  %v15275_v12 = vpack.i.bf16 %v14289_v27, %v14296_v15  ;;  %v4803_v15 = vsel %vm543_vm1, %v4800_v57, %v4802_v44  ;;  %v15290_v27 = vpop.permute.xlu0 %8812 }
 0x40b   :  { %v4799_v28 = vrot.slane %v3834_v58, 1  ;;  %v5001_v0 = vrot.slane %v3834_v58, 2  ;;  %v15284_v43 = vpop.permute.xlu1 %8827 }
 0x40c   :  { %20132 = vst [vmem:[#allocation169_spill] sm:$0xff] %v15284_v43  ;;  %v5005_v43 = vsel %vm885_vm2, %v5002_v40, %v5004_v9  ;;  %v15332_v9 = vpack.i.bf16 %v20068_v45, %v20071_v30  ;;  %v20144_v30 = vld [vmem:[#allocation66_spill] sm:$0xff]  ;;  %v20145_v45 = vld [vmem:[#allocation131_spill] sm:$0xff] }
 0x40d   :  { %9072 = vrot.lane.b32.xlu0 %v15238_v35, %s10011_s19  ;;  %v4801_v37 = vsel %vm543_vm1, %v4799_v28, %v4800_v57  ;;  %v5003_v24 = vsel %vm885_vm2, %v5001_v0, %v5002_v40  ;;  %v15320_v40 = vpack.i.bf16 %v20062_v53, %v20065_v52  ;;  %v20139_v0 = vld [vmem:[#allocation231_spill] sm:$0xff]  ;;  %v20141_v52 = vld [vmem:[#allocation261_spill] sm:$0xff]  ;;  %v15352_v31 = vpack.i.bf16 %v20145_v45, %v20144_v30 }
 0x40e   :  { %9087 = vrot.lane.b32.xlu1 %v15242_v10, %s10011_s19  ;;  %v15304_v28 = vpack.i.bf16 %v4803_v15, %v4801_v37  ;;  %v15310_v57 = vpop.permute.xlu0 %8822  ;;  %v15316_v33 = vpack.i.bf16 %v5005_v43, %v5003_v24  ;;  %20137 = vst [vmem:[#allocation42_spill] sm:$0xff] %v15332_v9  ;;  %v20138_v24 = vld [vmem:[#allocation166_spill] sm:$0xff]  ;;  %v15342_v53 = vsel %vm220_vm0, %v20141_v52, 0.0 }
 0x40f   :  { %v15306_v44 = vpop.permute.xlu1 %8837  ;;  %v15336_v43 = vpack.i.bf16 %v20139_v0, %v20138_v24  ;;  %20146 = vst [vmem:[#allocation283_spill] sm:$0xff] %v15352_v31  ;;  %v20147_v24 = vld [vmem:[#allocation109_spill] sm:$0xff]  ;;  %v20150_v52 = vld [vmem:[#allocation186_spill] sm:$0xff] }
 0x410   :  { %20133 = vst [vmem:[#allocation184_spill] sm:$0xff] %v15304_v28  ;;  %20134 = vst [vmem:[#allocation121_spill] sm:$0xff] %v15306_v44  ;;  %v15356_v0 = vsel %vm220_vm0, 0.0, %v20147_v24  ;;  %v4805_v20 = vrot.slane %v20150_v52, 1  ;;  %v15371_v24 = vpack.i.bf16 %v20130_v49, %v3834_v58  ;;  %v20158_v49 = vld [vmem:[#allocation72_spill] sm:$0xff]  ;;  %v20159_v58 = vld [vmem:[#allocation234_spill] sm:$0xff] }
 0x411   :  { %9082 = vrot.lane.b32.xlu0 %v15256_v7, %s10011_s19  ;;  %20140 = vst [vmem:[#allocation188_spill] sm:$0xff] %v15336_v43 }
 0x412   :  { %9097 = vrot.lane.b32.xlu1 %v15262_v14, %s10011_s19  ;;  %v15328_v15 = vpop.permute.xlu0 %8832  ;;  %20153 = vst [vmem:[#allocation191_spill] sm:$0xff] %v15371_v24 }
 0x413   :  { %v15324_v37 = vpop.permute.xlu1 %8847  ;;  %20136 = vst [vmem:[#allocation40_spill] sm:$0xff] %v15328_v15 }
 0x414   :  { %20135 = vst [vmem:[#allocation122_spill] sm:$0xff] %v15324_v37 }
 0x415   :  { %9092 = vrot.lane.b32.xlu0 %v15275_v12, %s10011_s19 }
 0x416   :  { %9107 = vrot.lane.b32.xlu1 %v15280_v56, %s10011_s19  ;;  %v15348_v44 = vpop.permute.xlu0 %8842 }
 0x417   :  { %v15344_v37 = vpop.permute.xlu1 %8857  ;;  %20143 = vst [vmem:[#allocation282_spill] sm:$0xff] %v15348_v44  ;;  %v4804_v44 = vrot.slane %v15356_v0, 1 }
 0x418   :  { %20142 = vst [vmem:[#allocation189_spill] sm:$0xff] %v15344_v37  ;;  %v4807_v37 = vrot.slane %v15342_v53, 1 }
 0x419   :  { %9102 = vrot.lane.b32.xlu0 %v15294_v61, %s10011_s19 }
 0x41a   :  { %9117 = vrot.lane.b32.xlu1 %v15298_v54, %s10011_s19  ;;  %v15368_v30 = vpop.permute.xlu0 %8852 }
 0x41b   :  { %20152 = vst [vmem:[#allocation48_spill] sm:$0xff] %v15368_v30  ;;  %v15389_v30 = vpack.i.bf16 %v20159_v58, %v20158_v49  ;;  %v20284_v49 = vld [vmem:[#allocation135_spill] sm:$0xff]  ;;  %v20287_v58 = vld [vmem:[#allocation133_spill] sm:$0xff] }
 0x41d   :  { %9112 = vrot.lane.b32.xlu0 %v15314_v62, %s10011_s19  ;;  %20160 = vst [vmem:[#allocation47_spill] sm:$0xff] %v15389_v30 }
 0x41e   :  { %9127 = vrot.lane.b32.xlu1 %v15320_v40, %s10011_s19 }
 0x421   :  { %9122 = vrot.lane.b32.xlu0 %v15332_v9, %s10011_s19  ;;  %v20148_v9 = vld [vmem:[#allocation232_spill] sm:$0xff] }
 0x422   :  { %9137 = vrot.lane.b32.xlu1 %v15336_v43, %s10011_s19  ;;  %v9146_v15 = vpack.i.bf16 %v20149_v48, %v20148_v9  ;;  %v15364_v43 = vpop.permute.xlu1 %8867  ;;  %v20154_v9 = vld [vmem:[#allocation176_spill] sm:$0xff] }
 0x423   :  { %20151 = vst [vmem:[#allocation170_spill] sm:$0xff] %v15364_v43  ;;  %v15375_v48 = vpack.i.bf16 %v20154_v9, %v20095_v25  ;;  %v4808_v43 = vsel %vm543_vm1, %v4805_v20, %v4807_v37  ;;  %v20161_v25 = vld [vmem:[#allocation241_spill] sm:$0xff]  ;;  %v20166_v37 = vld [vmem:[#allocation106_spill] sm:$0xff] }
 0x424   :  { %v15393_v9 = vpack.i.bf16 %v20161_v25, %v20103_v63  ;;  %v15411_v63 = vpack.i.bf16 %v20108_v41, %v20109_v59  ;;  %v15443_v41 = vpack.i.bf16 %v14849_v46, %v14836_v21 }
 0x425   :  { %9132 = vrot.lane.b32.xlu0 %v15352_v31, %s10011_s19  ;;  %20155 = vst [vmem:[#allocation192_spill] sm:$0xff] %v15375_v48  ;;  %v4806_v31 = vsel %vm543_vm1, %v4804_v44, %v4805_v20 }
 0x426   :  { %9147 = vrot.lane.b32.xlu1 %v9146_v15, %s10011_s19  ;;  %v15381_v45 = vpop.permute.xlu1 %8877  ;;  %v15385_v15 = vpop.permute.xlu0 %8862  ;;  %20162 = vst [vmem:[#allocation171_spill] sm:$0xff] %v15393_v9  ;;  %20169 = vst [vmem:[#allocation98_spill] sm:$0xff] %v15411_v63 }
 0x427   :  { %20156 = vst [vmem:[#allocation45_spill] sm:$0xff] %v15381_v45  ;;  %20157 = vst [vmem:[#allocation50_spill] sm:$0xff] %v15385_v15 }
 0x428   :  { %20181 = vst [vmem:[#allocation195_spill] sm:$0xff] %v15443_v41 }
 0x429   :  { %9142 = vrot.lane.b32.xlu0 %v15371_v24, %s10011_s19  ;;  %v15395_v24 = vpack.i.bf16 %v4808_v43, %v4806_v31 }
 0x42a   :  { %9157 = vrot.lane.b32.xlu1 %v15375_v48, %s10011_s19  ;;  %v15399_v20 = vpop.permute.xlu1 %8887  ;;  %v15403_v44 = vpop.permute.xlu0 %8872  ;;  %v20167_v48 = vld [vmem:[#allocation175_spill] sm:$0xff] }
 0x42b   :  { %20163 = vst [vmem:[#allocation137_spill] sm:$0xff] %v15395_v24  ;;  %20164 = vst [vmem:[#allocation138_spill] sm:$0xff] %v15399_v20  ;;  %v15407_v45 = vpack.i.bf16 %v20167_v48, %v20166_v37  ;;  %v20280_v37 = vld [vmem:[#allocation271_spill] sm:$0xff] }
 0x42c   :  { %20165 = vst [vmem:[#allocation51_spill] sm:$0xff] %v15403_v44  ;;  %v15427_v44 = vpack.i.bf16 %v20113_v38, %v14795_v2  ;;  %v15459_v2 = vpack.i.bf16 %v20119_v1, %v20120_v16  ;;  %v20222_v38 = vld [vmem:[#allocation233_spill] sm:$0xff] }
 0x42d   :  { %9152 = vrot.lane.b32.xlu0 %v15389_v30, %s10011_s19  ;;  %20168 = vst [vmem:[#allocation52_spill] sm:$0xff] %v15407_v45  ;;  %v20173_v30 = vld [vmem:[#allocation239_spill] sm:$0xff] }
 0x42e   :  { %9167 = vrot.lane.b32.xlu1 %v15393_v9, %s10011_s19  ;;  %v15415_v31 = vpop.permute.xlu1 %8897  ;;  %v15419_v43 = vpop.permute.xlu0 %8882  ;;  %v20172_v9 = vld [vmem:[#allocation74_spill] sm:$0xff]  ;;  %20175 = vst [vmem:[#allocation144_spill] sm:$0xff] %v15427_v44  ;;  %20186 = vst [vmem:[#allocation54_spill] sm:$0xff] %v15459_v2 }
 0x42f   :  { %20170 = vst [vmem:[#allocation142_spill] sm:$0xff] %v15415_v31  ;;  %20171 = vst [vmem:[#allocation143_spill] sm:$0xff] %v15419_v43  ;;  %v15423_v20 = vpack.i.bf16 %v20173_v30, %v20172_v9  ;;  %v20179_v43 = vld [vmem:[#allocation87_spill] sm:$0xff]  ;;  %v20276_v9 = vld [vmem:[#allocation129_spill] sm:$0xff] }
 0x431   :  { %9162 = vrot.lane.b32.xlu0 %v15407_v45, %s10011_s19  ;;  %20174 = vst [vmem:[#allocation57_spill] sm:$0xff] %v15423_v20 }
 0x432   :  { %9177 = vrot.lane.b32.xlu1 %v15411_v63, %s10011_s19  ;;  %v20178_v63 = vld [vmem:[#allocation244_spill] sm:$0xff] }
 0x433   :  { %v15435_v31 = vpop.permute.xlu0 %8892  ;;  %v15439_v59 = vpack.i.bf16 %v20179_v43, %v20178_v63 }
 0x434   :  { %20177 = vst [vmem:[#allocation53_spill] sm:$0xff] %v15435_v31 }
 0x435   :  { %9172 = vrot.lane.b32.xlu0 %v15423_v20, %s10011_s19  ;;  %20180 = vst [vmem:[#allocation194_spill] sm:$0xff] %v15439_v59 }
 0x436   :  { %9187 = vrot.lane.b32.xlu1 %v15427_v44, %s10011_s19 }
 0x438   :  { %v15433_v45 = vpop.permute.xlu1 %8907 }
 0x439   :  { %20176 = vst [vmem:[#allocation100_spill] sm:$0xff] %v15433_v45  ;;  %9182 = vrot.lane.b32.xlu0 %v15439_v59, %s10011_s19  ;;  %v15449_v20 = vpop.permute.xlu0 %8902  ;;  %v20183_v45 = vld [vmem:[#allocation247_spill] sm:$0xff]  ;;  %v15475_v59 = vpack.i.bf16 %v14930_v47, %v14922_v5  ;;  %v20194_v5 = vld [vmem:[#allocation213_spill] sm:$0xff] }
 0x43a   :  { %9197 = vrot.lane.b32.xlu1 %v15443_v41, %s10011_s19  ;;  %20182 = vst [vmem:[#allocation83_spill] sm:$0xff] %v15449_v20  ;;  %v15453_v44 = vpack.i.bf16 %v20183_v45, %v14792_v8  ;;  %v15469_v20 = vpack.i.bf16 %v14827_v55, %v20114_v6  ;;  %v20214_v6 = vld [vmem:[#allocation227_spill] sm:$0xff] }
 0x43b   :  { %20190 = vst [vmem:[#allocation30_spill] sm:$0xff] %v15475_v59  ;;  %v20226_v45 = vld [vmem:[#allocation71_spill] sm:$0xff] }
 0x43c   :  { %20184 = vst [vmem:[#allocation88_spill] sm:$0xff] %v15453_v44  ;;  %v15455_v31 = vpop.permute.xlu1 %8917  ;;  %20188 = vst [vmem:[#allocation18_spill] sm:$0xff] %v15469_v20 }
 0x43d   :  { %20185 = vst [vmem:[#allocation145_spill] sm:$0xff] %v15455_v31  ;;  %9192 = vrot.lane.b32.xlu0 %v15453_v44, %s10011_s19  ;;  %v20218_v31 = vld [vmem:[#allocation172_spill] sm:$0xff] }
 0x43e   :  { %9207 = vrot.lane.b32.xlu1 %v15459_v2, %s10011_s19  ;;  %v20202_v2 = vld [vmem:[#allocation108_spill] sm:$0xff] }
 0x43f   :  { %v15465_v21 = vpop.permute.xlu0 %8912 }
 0x440   :  { %20187 = vst [vmem:[#allocation62_spill] sm:$0xff] %v15465_v21  ;;  %v15471_v41 = vpop.permute.xlu1 %8927  ;;  %v15485_v21 = vpack.i.bf16 %v14871_v34, %v14880_v36  ;;  %v20198_v36 = vld [vmem:[#allocation153_spill] sm:$0xff] }
 0x441   :  { %20189 = vst [vmem:[#allocation13_spill] sm:$0xff] %v15471_v41  ;;  %9202 = vrot.lane.b32.xlu0 %v15469_v20, %s10011_s19  ;;  %v15497_v20 = vpack.i.bf16 %v20150_v52, %v15356_v0 }
 0x442   :  { %9217 = vrot.lane.b32.xlu1 %v15475_v59, %s10011_s19  ;;  %20192 = vst [vmem:[#allocation68_spill] sm:$0xff] %v15485_v21 }
 0x443   :  { %v15481_v16 = vpop.permute.xlu0 %8922  ;;  %20196 = vst [vmem:[#allocation20_spill] sm:$0xff] %v15497_v20 }
 0x444   :  { %20191 = vst [vmem:[#allocation61_spill] sm:$0xff] %v15481_v16  ;;  %v15487_v1 = vpop.permute.xlu1 %8937  ;;  %v20210_v16 = vld [vmem:[#allocation223_spill] sm:$0xff] }
 0x445   :  { %20193 = vst [vmem:[#allocation174_spill] sm:$0xff] %v15487_v1  ;;  %9212 = vrot.lane.b32.xlu0 %v15485_v21, %s10011_s19 }
 0x446   :  { %9227 = vrot.lane.b32.xlu1 %v20194_v5, %s10012_s0  ;;  %v20201_v5 = vld [vmem:[#allocation161_spill] sm:$0xff] }
 0x447   :  { %v15493_v47 = vpop.permute.xlu0 %8932 }
 0x448   :  { %20195 = vst [vmem:[#allocation70_spill] sm:$0xff] %v15493_v47  ;;  %v15499_v59 = vpop.permute.xlu1 %8947 }
 0x449   :  { %20197 = vst [vmem:[#allocation27_spill] sm:$0xff] %v15499_v59  ;;  %9222 = vrot.lane.b32.xlu0 %v15497_v20, %s10011_s19  ;;  %v20205_v59 = vld [vmem:[#allocation168_spill] sm:$0xff]  ;;  %v20206_v20 = vld [vmem:[#allocation217_spill] sm:$0xff] }
 0x44a   :  { %9237 = vrot.lane.b32.xlu1 %v20198_v36, %s10012_s0 }
 0x44b   :  { %v15505_v34 = vpop.permute.xlu0 %8942 }
 0x44c   :  { %20199 = vst [vmem:[#allocation146_spill] sm:$0xff] %v15505_v34  ;;  %v15507_v21 = vpop.permute.xlu1 %8957 }
 0x44d   :  { %20200 = vst [vmem:[#allocation147_spill] sm:$0xff] %v15507_v21  ;;  %9232 = vrot.lane.b32.xlu0 %v20201_v5, %s10012_s0  ;;  %v20209_v21 = vld [vmem:[#allocation214_spill] sm:$0xff] }
 0x44e   :  { %9247 = vrot.lane.b32.xlu1 %v20202_v2, %s10012_s0 }
 0x44f   :  { %v15513_v44 = vpop.permute.xlu0 %8952 }
 0x450   :  { %20203 = vst [vmem:[#allocation34_spill] sm:$0xff] %v15513_v44  ;;  %v15515_v47 = vpop.permute.xlu1 %8967 }
 0x451   :  { %20204 = vst [vmem:[#allocation35_spill] sm:$0xff] %v15515_v47  ;;  %9242 = vrot.lane.b32.xlu0 %v20205_v59, %s10012_s0  ;;  %v20213_v47 = vld [vmem:[#allocation111_spill] sm:$0xff] }
 0x452   :  { %9257 = vrot.lane.b32.xlu1 %v20206_v20, %s10012_s0 }
 0x453   :  { %v15521_v46 = vpop.permute.xlu0 %8962 }
 0x454   :  { %20207 = vst [vmem:[#allocation91_spill] sm:$0xff] %v15521_v46  ;;  %v15523_v34 = vpop.permute.xlu1 %8977 }
 0x455   :  { %20208 = vst [vmem:[#allocation177_spill] sm:$0xff] %v15523_v34  ;;  %9252 = vrot.lane.b32.xlu0 %v20209_v21, %s10012_s0  ;;  %v20217_v34 = vld [vmem:[#allocation222_spill] sm:$0xff] }
 0x456   :  { %9267 = vrot.lane.b32.xlu1 %v20210_v16, %s10012_s0 }
 0x457   :  { %v15529_v1 = vpop.permute.xlu0 %8972 }
 0x458   :  { %20211 = vst [vmem:[#allocation82_spill] sm:$0xff] %v15529_v1  ;;  %v15531_v44 = vpop.permute.xlu1 %8987 }
 0x459   :  { %20212 = vst [vmem:[#allocation148_spill] sm:$0xff] %v15531_v44  ;;  %9262 = vrot.lane.b32.xlu0 %v20213_v47, %s10012_s0  ;;  %v20221_v44 = vld [vmem:[#allocation225_spill] sm:$0xff] }
 0x45a   :  { %9277 = vrot.lane.b32.xlu1 %v20214_v6, %s10012_s0 }
 0x45b   :  { %v15537_v41 = vpop.permute.xlu0 %8982 }
 0x45c   :  { %20215 = vst [vmem:[#allocation149_spill] sm:$0xff] %v15537_v41  ;;  %v15539_v46 = vpop.permute.xlu1 %8997 }
 0x45d   :  { %20216 = vst [vmem:[#allocation103_spill] sm:$0xff] %v15539_v46  ;;  %9272 = vrot.lane.b32.xlu0 %v20217_v34, %s10012_s0  ;;  %v20225_v46 = vld [vmem:[#allocation230_spill] sm:$0xff] }
 0x45e   :  { %9287 = vrot.lane.b32.xlu1 %v20218_v31, %s10012_s0 }
 0x45f   :  { %v15545_v55 = vpop.permute.xlu0 %8992 }
 0x460   :  { %20219 = vst [vmem:[#allocation41_spill] sm:$0xff] %v15545_v55  ;;  %v15547_v1 = vpop.permute.xlu1 %9007 }
 0x461   :  { %20220 = vst [vmem:[#allocation196_spill] sm:$0xff] %v15547_v1  ;;  %9282 = vrot.lane.b32.xlu0 %v20221_v44, %s10012_s0  ;;  %v20229_v1 = vld [vmem:[#allocation237_spill] sm:$0xff] }
 0x462   :  { %9297 = vrot.lane.b32.xlu1 %v20222_v38, %s10012_s0  ;;  %v20272_v38 = vld [vmem:[#allocation130_spill] sm:$0xff] }
 0x463   :  { %v15553_v8 = vpop.permute.xlu0 %9002 }
 0x464   :  { %20223 = vst [vmem:[#allocation197_spill] sm:$0xff] %v15553_v8  ;;  %v15555_v41 = vpop.permute.xlu1 %9017 }
 0x465   :  { %20224 = vst [vmem:[#allocation198_spill] sm:$0xff] %v15555_v41  ;;  %9292 = vrot.lane.b32.xlu0 %v20225_v46, %s10012_s0  ;;  %v20232_v41 = vld [vmem:[#allocation243_spill] sm:$0xff]  ;;  %v20233_v46 = vld [vmem:[#allocation180_spill] sm:$0xff] }
 0x466   :  { %9307 = vrot.lane.b32.xlu1 %v20226_v45, %s10012_s0 }
 0x467   :  { %v15561_v63 = vpop.permute.xlu0 %9012 }
 0x468   :  { %20227 = vst [vmem:[#allocation78_spill] sm:$0xff] %v15561_v63  ;;  %v15563_v55 = vpop.permute.xlu1 %9027 }
 0x469   :  { %20228 = vst [vmem:[#allocation90_spill] sm:$0xff] %v15563_v55  ;;  %9302 = vrot.lane.b32.xlu0 %v15304_v28, %s10012_s0  ;;  %v20236_v55 = vld [vmem:[#allocation73_spill] sm:$0xff]  ;;  %v20237_v28 = vld [vmem:[#allocation252_spill] sm:$0xff] }
 0x46a   :  { %9317 = vrot.lane.b32.xlu1 %v20229_v1, %s10012_s0 }
 0x46b   :  { %v15569_v43 = vpop.permute.xlu0 %9022 }
 0x46c   :  { %20230 = vst [vmem:[#allocation203_spill] sm:$0xff] %v15569_v43  ;;  %v15571_v8 = vpop.permute.xlu1 %9037 }
 0x46d   :  { %20231 = vst [vmem:[#allocation204_spill] sm:$0xff] %v15571_v8  ;;  %9312 = vrot.lane.b32.xlu0 %v20232_v41, %s10012_s0  ;;  %v20240_v8 = vld [vmem:[#allocation245_spill] sm:$0xff] }
 0x46e   :  { %9327 = vrot.lane.b32.xlu1 %v20233_v46, %s10012_s0  ;;  %v20241_v41 = vld [vmem:[#allocation257_spill] sm:$0xff] }
 0x46f   :  { %v15577_v45 = vpop.permute.xlu0 %9032 }
 0x470   :  { %20234 = vst [vmem:[#allocation154_spill] sm:$0xff] %v15577_v45  ;;  %v15579_v63 = vpop.permute.xlu1 %9047 }
 0x471   :  { %20235 = vst [vmem:[#allocation9_spill] sm:$0xff] %v15579_v63  ;;  %9322 = vrot.lane.b32.xlu0 %v20236_v55, %s10012_s0  ;;  %v20244_v63 = vld [vmem:[#allocation246_spill] sm:$0xff] }
 0x472   :  { %9337 = vrot.lane.b32.xlu1 %v20237_v28, %s10012_s0  ;;  %v20245_v55 = vld [vmem:[#allocation110_spill] sm:$0xff] }
 0x473   :  { %v15585_v1 = vpop.permute.xlu0 %9042 }
 0x474   :  { %20238 = vst [vmem:[#allocation199_spill] sm:$0xff] %v15585_v1  ;;  %v15587_v43 = vpop.permute.xlu1 %9057 }
 0x475   :  { %20239 = vst [vmem:[#allocation150_spill] sm:$0xff] %v15587_v43  ;;  %9332 = vrot.lane.b32.xlu0 %v20240_v8, %s10012_s0  ;;  %v20248_v43 = vld [vmem:[#allocation256_spill] sm:$0xff]  ;;  %v20249_v8 = vld [vmem:[#allocation113_spill] sm:$0xff] }
 0x476   :  { %9347 = vrot.lane.b32.xlu1 %v20241_v41, %s10012_s0 }
 0x477   :  { %v15593_v46 = vpop.permute.xlu0 %9052 }
 0x478   :  { %20242 = vst [vmem:[#allocation89_spill] sm:$0xff] %v15593_v46  ;;  %v15595_v45 = vpop.permute.xlu1 %9067 }
 0x479   :  { %20243 = vst [vmem:[#allocation93_spill] sm:$0xff] %v15595_v45  ;;  %9342 = vrot.lane.b32.xlu0 %v20244_v63, %s10012_s0  ;;  %v20252_v45 = vld [vmem:[#allocation259_spill] sm:$0xff]  ;;  %v20253_v63 = vld [vmem:[#allocation264_spill] sm:$0xff] }
 0x47a   :  { %9357 = vrot.lane.b32.xlu1 %v20245_v55, %s10012_s0 }
 0x47b   :  { %v15601_v28 = vpop.permute.xlu0 %9062 }
 0x47c   :  { %20246 = vst [vmem:[#allocation21_spill] sm:$0xff] %v15601_v28  ;;  %v15603_v1 = vpop.permute.xlu1 %9077 }
 0x47d   :  { %20247 = vst [vmem:[#allocation75_spill] sm:$0xff] %v15603_v1  ;;  %9352 = vrot.lane.b32.xlu0 %v20248_v43, %s10012_s0  ;;  %v20256_v1 = vld [vmem:[#allocation262_spill] sm:$0xff]  ;;  %v20257_v43 = vld [vmem:[#allocation127_spill] sm:$0xff] }
 0x47e   :  { %9367 = vrot.lane.b32.xlu1 %v20249_v8, %s10012_s0 }
 0x47f   :  { %v15609_v41 = vpop.permute.xlu0 %9072 }
 0x480   :  { %20250 = vst [vmem:[#allocation63_spill] sm:$0xff] %v15609_v41  ;;  %v15611_v46 = vpop.permute.xlu1 %9087 }
 0x481   :  { %20251 = vst [vmem:[#allocation201_spill] sm:$0xff] %v15611_v46  ;;  %9362 = vrot.lane.b32.xlu0 %v20252_v45, %s10012_s0  ;;  %v20260_v45 = vld [vmem:[#allocation265_spill] sm:$0xff] }
 0x482   :  { %9377 = vrot.lane.b32.xlu1 %v20253_v63, %s10012_s0 }
 0x483   :  { %v15617_v55 = vpop.permute.xlu0 %9082 }
 0x484   :  { %20254 = vst [vmem:[#allocation7_spill] sm:$0xff] %v15617_v55  ;;  %v15619_v28 = vpop.permute.xlu1 %9097 }
 0x485   :  { %20255 = vst [vmem:[#allocation116_spill] sm:$0xff] %v15619_v28  ;;  %9372 = vrot.lane.b32.xlu0 %v20256_v1, %s10012_s0  ;;  %v20263_v28 = vld [vmem:[#allocation266_spill] sm:$0xff]  ;;  %v20264_v1 = vld [vmem:[#allocation187_spill] sm:$0xff] }
 0x486   :  { %9387 = vrot.lane.b32.xlu1 %v20257_v43, %s10013_s24 }
 0x487   :  { %v15625_v8 = vpop.permute.xlu0 %9092 }
 0x488   :  { %20258 = vst [vmem:[#allocation181_spill] sm:$0xff] %v15625_v8  ;;  %v15627_v41 = vpop.permute.xlu1 %9107 }
 0x489   :  { %20259 = vst [vmem:[#allocation95_spill] sm:$0xff] %v15627_v41  ;;  %9382 = vrot.lane.b32.xlu0 %v15395_v24, %s10012_s0  ;;  %v20267_v41 = vld [vmem:[#allocation267_spill] sm:$0xff]  ;;  %v20268_v24 = vld [vmem:[#allocation268_spill] sm:$0xff] }
 0x48a   :  { %9397 = vrot.lane.b32.xlu1 %v20260_v45, %s10013_s24 }
 0x48b   :  { %v15633_v63 = vpop.permute.xlu0 %9102 }
 0x48c   :  { %20261 = vst [vmem:[#allocation152_spill] sm:$0xff] %v15633_v63  ;;  %v15635_v55 = vpop.permute.xlu1 %9117 }
 0x48d   :  { %20262 = vst [vmem:[#allocation23_spill] sm:$0xff] %v15635_v55  ;;  %9392 = vrot.lane.b32.xlu0 %v20263_v28, %s10013_s24  ;;  %v20271_v55 = vld [vmem:[#allocation124_spill] sm:$0xff] }
 0x48e   :  { %9407 = vrot.lane.b32.xlu1 %v20264_v1, %s10013_s24 }
 0x48f   :  { %v15641_v43 = vpop.permute.xlu0 %9112 }
 0x490   :  { %20265 = vst [vmem:[#allocation202_spill] sm:$0xff] %v15641_v43  ;;  %v15643_v8 = vpop.permute.xlu1 %9127 }
 0x491   :  { %20266 = vst [vmem:[#allocation77_spill] sm:$0xff] %v15643_v8  ;;  %9402 = vrot.lane.b32.xlu0 %v20267_v41, %s10013_s24  ;;  %v20275_v8 = vld [vmem:[#allocation190_spill] sm:$0xff] }
 0x492   :  { %9417 = vrot.lane.b32.xlu1 %v20268_v24, %s10013_s24 }
 0x493   :  { %v15649_v46 = vpop.permute.xlu0 %9122 }
 0x494   :  { %20269 = vst [vmem:[#allocation205_spill] sm:$0xff] %v15649_v46  ;;  %v15651_v63 = vpop.permute.xlu1 %9137 }
 0x495   :  { %20270 = vst [vmem:[#allocation10_spill] sm:$0xff] %v15651_v63  ;;  %9412 = vrot.lane.b32.xlu0 %v20271_v55, %s10013_s24  ;;  %v20279_v63 = vld [vmem:[#allocation270_spill] sm:$0xff] }
 0x496   :  { %9427 = vrot.lane.b32.xlu1 %v20272_v38, %s10013_s24 }
 0x497   :  { %v15657_v25 = vpop.permute.xlu0 %9132 }
 0x498   :  { %20273 = vst [vmem:[#allocation69_spill] sm:$0xff] %v15657_v25  ;;  %v15659_v43 = vpop.permute.xlu1 %9147 }
 0x499   :  { %20274 = vst [vmem:[#allocation101_spill] sm:$0xff] %v15659_v43  ;;  %9422 = vrot.lane.b32.xlu0 %v20275_v8, %s10013_s24  ;;  %v20283_v43 = vld [vmem:[#allocation140_spill] sm:$0xff] }
 0x49a   :  { %9437 = vrot.lane.b32.xlu1 %v20276_v9, %s10013_s24 }
 0x49b   :  { %v15665_v30 = vpop.permute.xlu0 %9142 }
 0x49c   :  { %20277 = vst [vmem:[#allocation182_spill] sm:$0xff] %v15665_v30  ;;  %v15667_v46 = vpop.permute.xlu1 %9157 }
 0x49d   :  { %20278 = vst [vmem:[#allocation207_spill] sm:$0xff] %v15667_v46  ;;  %9432 = vrot.lane.b32.xlu0 %v20279_v63, %s10013_s24  ;;  %v10001_v46 = vld [vmem:[%s17930_s2] sm:$0xff]  }
 0x49e   :  { %9447 = vrot.lane.b32.xlu1 %v20280_v37, %s10013_s24  ;;  %7426 = vmatprep.subr.bf16.mxu1 %v10001_v46 }
 0x49f   :  { %v15673_v48 = vpop.permute.xlu0 %9152  ;;  %7427 = vmatpush3.bf16.msra.mxu1 %v10001_v46  ;;  %v10003_v46 = vld [vmem:[%s17930_s2 + $0x10] sm:$0xff]  }
 0x4a0   :  { %20281 = vst [vmem:[#allocation208_spill] sm:$0xff] %v15673_v48  ;;  %v15675_v25 = vpop.permute.xlu1 %9167  ;;  %v20288_v48 = vld [vmem:[#allocation272_spill] sm:$0xff] }
 0x4a1   :  { %20282 = vst [vmem:[#allocation200_spill] sm:$0xff] %v15675_v25  ;;  %9442 = vrot.lane.b32.xlu0 %v20283_v43, %s10013_s24 }
 0x4a2   :  { %9457 = vrot.lane.b32.xlu1 %v20284_v49, %s10013_s24 }
 0x4a3   :  { %v15681_v15 = vpop.permute.xlu0 %9162 }
 0x4a4   :  { %20285 = vst [vmem:[#allocation11_spill] sm:$0xff] %v15681_v15  ;;  %v15683_v30 = vpop.permute.xlu1 %9177  ;;  %v10002_v15 = vld [vmem:[%s17930_s2 + $0x8] sm:$0xff]  }
 0x4a5   :  { %20286 = vst [vmem:[#allocation158_spill] sm:$0xff] %v15683_v30  ;;  %9452 = vrot.lane.b32.xlu0 %v20287_v58, %s10013_s24  ;;  %7428 = vmatprep.subr.bf16.mxu1 %v10002_v15  ;;  %v20291_v30 = vld [vmem:[#allocation274_spill] sm:$0xff] }
 0x4a6   :  { %9467 = vrot.lane.b32.xlu1 %v20288_v48, %s10013_s24  ;;  %7429 = vmatpush3.bf16.msra.mxu1 %v10002_v15  ;;  %v10004_v15 = vld [vmem:[%s17930_s2 + $0x18] sm:$0xff]  }
 0x4a7   :  { %v15692_v25 = vpop.permute.xlu0 %9172  ;;  %7430 = vmatprep.subr.bf16.mxu1 %v10003_v46 }
 0x4a8   :  { %20289 = vst [vmem:[#allocation16_spill] sm:$0xff] %v15692_v25  ;;  %v15697_v49 = vpop.permute.xlu1 %9187  ;;  %v20294_v25 = vld [vmem:[#allocation134_spill] sm:$0xff] }
 0x4a9   :  { %20290 = vst [vmem:[#allocation102_spill] sm:$0xff] %v15697_v49  ;;  %9462 = vrot.lane.b32.xlu0 %v15316_v33, %s10013_s24 }
 0x4aa   :  { %9477 = vrot.lane.b32.xlu1 %v20291_v30, %s10013_s24  ;;  %7431 = vmatpush3.bf16.msra.mxu1 %v10003_v46  ;;  %v10005_v46 = vld [vmem:[%s17930_s2 + $0x20] ss:$0 sps:$4 sm:$0xff]  }
 0x4ab   :  { %v15703_v58 = vpop.permute.xlu0 %9182  ;;  %7432 = vmatprep.subr.bf16.mxu1 %v10004_v15 }
 0x4ac   :  { %20292 = vst [vmem:[#allocation126_spill] sm:$0xff] %v15703_v58  ;;  %v15708_v48 = vpop.permute.xlu1 %9197  ;;  %v20297_v58 = vld [vmem:[#allocation273_spill] sm:$0xff] }
 0x4ad   :  { %20293 = vst [vmem:[#allocation209_spill] sm:$0xff] %v15708_v48  ;;  %9472 = vrot.lane.b32.xlu0 %v20294_v25, %s10013_s24 }
 0x4ae   :  { %9487 = vrot.lane.b32.xlu1 %v15142_v4, %s10013_s24  ;;  %7433 = vmatpush3.bf16.msra.mxu1 %v10004_v15  ;;  %v20443_v4 = vld [vmem:[#allocation146_spill] sm:$0xff] }
 0x4af   :  { %v15714_v49 = vpop.permute.xlu0 %9192  ;;  %7501 = vmatprep.subr.msk.bf16.mxu1 %vm3066_vm5, %v10005_v46 }
 0x4b0   :  { %20295 = vst [vmem:[#allocation8_spill] sm:$0xff] %v15714_v49  ;;  %v15716_v30 = vpop.permute.xlu1 %9207 }
 0x4b1   :  { %20296 = vst [vmem:[#allocation14_spill] sm:$0xff] %v15716_v30  ;;  %9482 = vrot.lane.b32.xlu0 %v20297_v58, %s10013_s24 }
 0x4b2   :  { %9497 = vrot.lane.b32.xlu1 %v15224_v3, %s10014_s25  ;;  %v6412_v3 = vsel %vm3066_vm5, %v10005_v46, 0 }
 0x4b3   :  { %v15725_v48 = vpop.permute.xlu0 %9202  ;;  %7435 = vmatpush3.bf16.msra.mxu1 %v6412_v3  ;;  %v8795_v3 = vunpack.i.h.bf16 %v15252_v29 }
 0x4b4   :  { %20298 = vst [vmem:[#allocation22_spill] sm:$0xff] %v15725_v48  ;;  %v15730_v49 = vpop.permute.xlu1 %9217 }
 0x4b5   :  { %20299 = vst [vmem:[#allocation206_spill] sm:$0xff] %v15730_v49  ;;  %9492 = vrot.lane.b32.xlu0 %v15238_v35, %s10014_s25  ;;  %v8769_v49 = vunpack.i.l.bf16 %v15190_v32 }
 0x4b6   :  { %9507 = vrot.lane.b32.xlu1 %v20198_v36, %s10015_s26 }
 0x4b7   :  { %v15737_v30 = vpop.permute.xlu0 %9212 }
 0x4b8   :  { %20300 = vst [vmem:[#allocation160_spill] sm:$0xff] %v15737_v30  ;;  %v15740_v48 = vpop.permute.xlu1 %9227  ;;  %v8785_v30 = vunpack.i.h.bf16 %v15234_v39 }
 0x4b9   :  { %9502 = vrot.lane.b32.xlu0 %v20201_v5, %s10015_s26 }
 0x4ba   :  { %9517 = vrot.lane.b32.xlu1 %v20260_v45, %s10016_s1 }
 0x4bb   :  { %v15746_v15 = vpop.permute.xlu0 %9222 }
 0x4bc   :  { %20301 = vst [vmem:[#allocation128_spill] sm:$0xff] %v15746_v15  ;;  %v15748_v35 = vpop.permute.xlu1 %9237  ;;  %v8770_v15 = vunpack.i.h.bf16 %v15190_v32 }
 0x4bd   :  { %20302 = vst [vmem:[#allocation211_spill] sm:$0xff] %v15748_v35  ;;  %9512 = vrot.lane.b32.xlu0 %v20263_v28, %s10016_s1 }
 0x4be   :  { %9527 = vrot.lane.b32.xlu1 %v15242_v10, %s10014_s25 }
 0x4bf   :  { %v15754_v36 = vpop.permute.xlu0 %9232 }
 0x4c0   :  { %v15756_v46 = vpop.permute.xlu1 %9247 }
 0x4c1   :  { %20303 = vst [vmem:[#allocation92_spill] sm:$0xff] %v15756_v46  ;;  %9522 = vrot.lane.b32.xlu0 %v15256_v7, %s10014_s25 }
 0x4c2   :  { %9537 = vrot.lane.b32.xlu1 %v20202_v2, %s10015_s26 }
 0x4c3   :  { %v15762_v5 = vpop.permute.xlu0 %9242 }
 0x4c4   :  { %20304 = vst [vmem:[#allocation86_spill] sm:$0xff] %v15762_v5  ;;  %v15764_v45 = vpop.permute.xlu1 %9257 }
 0x4c5   :  { %20305 = vst [vmem:[#allocation238_spill] sm:$0xff] %v15764_v45  ;;  %9532 = vrot.lane.b32.xlu0 %v20205_v59, %s10015_s26  ;;  %v20365_v45 = vld [vmem:[#allocation234_spill] sm:$0xff] }
 0x4c6   :  { %9547 = vrot.lane.b32.xlu1 %v20264_v1, %s10016_s1 }
 0x4c7   :  { %v15770_v10 = vpop.permute.xlu0 %9252 }
 0x4c8   :  { %20306 = vst [vmem:[#allocation269_spill] sm:$0xff] %v15770_v10  ;;  %v15772_v28 = vpop.permute.xlu1 %9267 }
 0x4c9   :  { %20307 = vst [vmem:[#allocation218_spill] sm:$0xff] %v15772_v28  ;;  %9542 = vrot.lane.b32.xlu0 %v20267_v41, %s10016_s1 }
 0x4ca   :  { %9557 = vrot.lane.b32.xlu1 %v15262_v14, %s10014_s25 }
 0x4cb   :  { %v15778_v2 = vpop.permute.xlu0 %9262 }
 0x4cc   :  { %20308 = vst [vmem:[#allocation228_spill] sm:$0xff] %v15778_v2  ;;  %v15780_v7 = vpop.permute.xlu1 %9277 }
 0x4cd   :  { %20309 = vst [vmem:[#allocation221_spill] sm:$0xff] %v15780_v7  ;;  %9552 = vrot.lane.b32.xlu0 %v15275_v12, %s10014_s25  ;;  %v20360_v7 = vld [vmem:[#allocation170_spill] sm:$0xff] }
 0x4ce   :  { %9567 = vrot.lane.b32.xlu1 %v20206_v20, %s10015_s26  ;;  %v8869_v2 = vunpack.i.l.bf16 %v20360_v7 }
 0x4cf   :  { %v15786_v59 = vpop.permute.xlu0 %9272 }
 0x4d0   :  { %20310 = vst [vmem:[#allocation165_spill] sm:$0xff] %v15786_v59  ;;  %v15788_v1 = vpop.permute.xlu1 %9287  ;;  %v8870_v59 = vunpack.i.h.bf16 %v20360_v7  ;;  %v20370_v7 = vld [vmem:[#allocation232_spill] sm:$0xff] }
 0x4d1   :  { %20311 = vst [vmem:[#allocation159_spill] sm:$0xff] %v15788_v1  ;;  %9562 = vrot.lane.b32.xlu0 %v20209_v21, %s10015_s26  ;;  %v20357_v1 = vld [vmem:[#allocation282_spill] sm:$0xff] }
 0x4d2   :  { %9577 = vrot.lane.b32.xlu1 %v20268_v24, %s10016_s1 }
 0x4d3   :  { %v15794_v41 = vpop.permute.xlu0 %9282 }
 0x4d4   :  { %20312 = vst [vmem:[#allocation235_spill] sm:$0xff] %v15794_v41  ;;  %v15796_v14 = vpop.permute.xlu1 %9297  ;;  %v8844_v41 = vunpack.i.l.bf16 %v20357_v1 }
 0x4d5   :  { %20313 = vst [vmem:[#allocation58_spill] sm:$0xff] %v15796_v14  ;;  %9572 = vrot.lane.b32.xlu0 %v20271_v55, %s10016_s1 }
 0x4d6   :  { %9587 = vrot.lane.b32.xlu1 %v15280_v56, %s10014_s25 }
 0x4d7   :  { %v15802_v12 = vpop.permute.xlu0 %9292 }
 0x4d8   :  { %20314 = vst [vmem:[#allocation64_spill] sm:$0xff] %v15802_v12  ;;  %v15804_v20 = vpop.permute.xlu1 %9307 }
 0x4d9   :  { %20315 = vst [vmem:[#allocation112_spill] sm:$0xff] %v15804_v20  ;;  %9582 = vrot.lane.b32.xlu0 %v15294_v61, %s10014_s25 }
 0x4da   :  { %9597 = vrot.lane.b32.xlu1 %v20210_v16, %s10015_s26  ;;  %v8775_v16 = vunpack.i.h.bf16 %v15220_v26 }
 0x4db   :  { %v15810_v21 = vpop.permute.xlu0 %9302 }
 0x4dc   :  { %20316 = vst [vmem:[#allocation240_spill] sm:$0xff] %v15810_v21  ;;  %v15812_v24 = vpop.permute.xlu1 %9317  ;;  %v15847_v32 = vsel %vm2385_vm3, %v14216_v51, %v8775_v16  ;;  %v15864_v51 = vsel %vm2385_vm3, %v20124_v42, %v8770_v15  ;;  %v15872_v16 = vsel %vm2385_vm3, %v14261_v50, %v8785_v30  ;;  %v20324_v42 = vld [vmem:[#allocation164_spill] sm:$0xff]  ;;  %v20326_v50 = vld [vmem:[#allocation37_spill] sm:$0xff]  ;;  %v20327_v30 = vld [vmem:[#allocation107_spill] sm:$0xff] }
 0x4dd   :  { %20317 = vst [vmem:[#allocation242_spill] sm:$0xff] %v15812_v24  ;;  %9592 = vrot.lane.b32.xlu0 %v20213_v47, %s10015_s26  ;;  %v8805_v24 = vunpack.i.h.bf16 %v15271_v18 }
 0x4de   :  { %9607 = vrot.lane.b32.xlu1 %v20272_v38, %s10016_s1  ;;  %v8774_v38 = vunpack.i.l.bf16 %v15220_v26  ;;  %v20335_v26 = vld [vmem:[#allocation216_spill] sm:$0xff] }
 0x4df   :  { %v15818_v56 = vpop.permute.xlu0 %9312 }
 0x4e0   :  { %20318 = vst [vmem:[#allocation179_spill] sm:$0xff] %v15818_v56  ;;  %v15820_v55 = vpop.permute.xlu1 %9327 }
 0x4e1   :  { %20319 = vst [vmem:[#allocation84_spill] sm:$0xff] %v15820_v55  ;;  %9602 = vrot.lane.b32.xlu0 %v20275_v8, %s10016_s1  ;;  %v8780_v8 = vunpack.i.h.bf16 %v15205_v11  ;;  %v8779_v55 = vunpack.i.l.bf16 %v15205_v11  ;;  %v8789_v11 = vunpack.i.l.bf16 %v15217_v13 }
 0x4e2   :  { %9617 = vrot.lane.b32.xlu1 %v15298_v54, %s10014_s25  ;;  %v8784_v54 = vunpack.i.l.bf16 %v15234_v39 }
 0x4e3   :  { %v15827_v61 = vpop.permute.xlu0 %9322  ;;  %v15886_v15 = vsel %vm2385_vm3, %v20324_v42, %v8779_v55  ;;  %v20329_v55 = vld [vmem:[#allocation132_spill] sm:$0xff] }
 0x4e4   :  { %20320 = vst [vmem:[#allocation249_spill] sm:$0xff] %v15827_v61  ;;  %v15830_v47 = vpop.permute.xlu1 %9337  ;;  %v8790_v61 = vunpack.i.h.bf16 %v15217_v13  ;;  %v15878_v13 = vsel %vm2385_vm3, %v14270_v19, %v8784_v54  ;;  %v8804_v19 = vunpack.i.l.bf16 %v15271_v18  ;;  %v8815_v18 = vunpack.i.h.bf16 %v15290_v27 }
 0x4e5   :  { %20321 = vst [vmem:[#allocation212_spill] sm:$0xff] %v15830_v47  ;;  %9612 = vrot.lane.b32.xlu0 %v15314_v62, %s10014_s25  ;;  %v8794_v47 = vunpack.i.l.bf16 %v15252_v29  ;;  %v15868_v29 = vsel %vm2385_vm3, %v14212_v60, %v8769_v49  ;;  %v20325_v60 = vld [vmem:[#allocation167_spill] sm:$0xff] }
 0x4e6   :  { %9627 = vrot.lane.b32.xlu1 %v20214_v6, %s10015_s26  ;;  %v15860_v6 = vsel %vm2385_vm3, %v14222_v23, %v8774_v38  ;;  %v15882_v23 = vsel %vm2385_vm3, %v14267_v17, %v8780_v8  ;;  %v15890_v49 = vsel %vm2385_vm3, %v20325_v60, %v8795_v3  ;;  %v8800_v17 = vunpack.i.h.bf16 %v20327_v30  ;;  %v20330_v3 = vld [vmem:[#allocation96_spill] sm:$0xff] }
 0x4e7   :  { %v15850_v62 = vpop.permute.xlu0 %9332  ;;  %v8799_v38 = vunpack.i.l.bf16 %v20327_v30  ;;  %v15905_v8 = vsel %vm2385_vm3, %v20329_v55, %v8790_v61  ;;  %v15909_v42 = vsel %vm2385_vm3, %v20330_v3, %v8789_v11  ;;  %v8814_v60 = vunpack.i.l.bf16 %v15290_v27  ;;  %v20333_v55 = vld [vmem:[#allocation36_spill] sm:$0xff] }
 0x4e8   :  { %20322 = vst [vmem:[#allocation163_spill] sm:$0xff] %v15850_v62  ;;  %v15856_v56 = vpop.permute.xlu1 %9347  ;;  %v8825_v61 = vunpack.i.h.bf16 %v15310_v57  ;;  %v8824_v11 = vunpack.i.l.bf16 %v15310_v57  ;;  %v20334_v3 = vld [vmem:[#allocation136_spill] sm:$0xff]  ;;  %v20339_v62 = vld [vmem:[#allocation169_spill] sm:$0xff] }
 0x4e9   :  { %20323 = vst [vmem:[#allocation162_spill] sm:$0xff] %v15856_v56  ;;  %9622 = vrot.lane.b32.xlu0 %v20217_v34, %s10015_s26  ;;  %v15896_v34 = vsel %vm2385_vm3, %v20326_v50, %v8794_v47  ;;  %v20332_v50 = vld [vmem:[#allocation183_spill] sm:$0xff]  ;;  %v15931_v27 = vsel %vm2385_vm3, %v20334_v3, %v8804_v19  ;;  %v20338_v56 = vld [vmem:[#allocation40_spill] sm:$0xff]  ;;  %v20341_v19 = vld [vmem:[#allocation141_spill] sm:$0xff] }
 0x4ea   :  { %9637 = vrot.lane.b32.xlu1 %v20276_v9, %s10016_s1  ;;  %v15913_v9 = vsel %vm2385_vm3, %v14345_v22, %v8805_v24  ;;  %v8810_v30 = vunpack.i.h.bf16 %v20332_v50  ;;  %v8809_v39 = vunpack.i.l.bf16 %v20332_v50  ;;  %v8820_v22 = vunpack.i.h.bf16 %v20333_v55 }
 0x4eb   :  { %v15901_v54 = vpop.permute.xlu0 %9342  ;;  %v8819_v24 = vunpack.i.l.bf16 %v20333_v55  ;;  %v15935_v50 = vsel %vm2385_vm3, %v20335_v26, %v8800_v17  ;;  %v8834_v55 = vunpack.i.l.bf16 %v20338_v56  ;;  %v15950_v3 = vsel %vm2385_vm3, %v20341_v19, %v8815_v18  ;;  %v20342_v26 = vld [vmem:[#allocation156_spill] sm:$0xff]  ;;  %v20347_v18 = vld [vmem:[#allocation123_spill] sm:$0xff] }
 0x4ec   :  { %20328 = vst [vmem:[#allocation56_spill] sm:$0xff] %v15901_v54  ;;  %v15915_v47 = vpop.permute.xlu1 %9357  ;;  %v8835_v54 = vunpack.i.h.bf16 %v20338_v56  ;;  %v15954_v17 = vsel %vm2385_vm3, %v20342_v26, %v8814_v60  ;;  %v20345_v56 = vld [vmem:[#allocation42_spill] sm:$0xff]  ;;  %v15972_v19 = vsel %vm2385_vm3, %v20347_v18, %v8824_v11  ;;  %v20348_v60 = vld [vmem:[#allocation157_spill] sm:$0xff]  ;;  %v20352_v11 = vld [vmem:[#allocation131_spill] sm:$0xff] }
 0x4ed   :  { %20331 = vst [vmem:[#allocation261_spill] sm:$0xff] %v15915_v47  ;;  %9632 = vrot.lane.b32.xlu0 %v20279_v63, %s10016_s1  ;;  %v20336_v63 = vld [vmem:[#allocation215_spill] sm:$0xff]  ;;  %v15976_v26 = vsel %vm2385_vm3, %v20348_v60, %v8820_v22  ;;  %v20353_v22 = vld [vmem:[#allocation66_spill] sm:$0xff] }
 0x4ee   :  { %9647 = vrot.lane.b32.xlu1 %v15320_v40, %s10014_s25  ;;  %v15939_v47 = vsel %vm2385_vm3, %v20336_v63, %v8799_v38  ;;  %v8830_v40 = vunpack.i.h.bf16 %v20339_v62  ;;  %v20343_v38 = vld [vmem:[#allocation155_spill] sm:$0xff]  ;;  %v15991_v18 = vsel %vm2385_vm3, %v20352_v11, %v8835_v54  ;;  %v15995_v60 = vsel %vm2385_vm3, %v20353_v22, %v8834_v55  ;;  %v20358_v54 = vld [vmem:[#allocation189_spill] sm:$0xff]  ;;  %v20359_v22 = vld [vmem:[#allocation48_spill] sm:$0xff] }
 0x4ef   :  { %v15941_v57 = vpop.permute.xlu0 %9352  ;;  %v15958_v63 = vsel %vm2385_vm3, %v20343_v38, %v8810_v30  ;;  %v20349_v30 = vld [vmem:[#allocation224_spill] sm:$0xff]  ;;  %v8860_v11 = vunpack.i.h.bf16 %v20358_v54  ;;  %v8859_v55 = vunpack.i.l.bf16 %v20358_v54 }
 0x4f0   :  { %20337 = vst [vmem:[#allocation109_spill] sm:$0xff] %v15941_v57  ;;  %v15946_v20 = vpop.permute.xlu1 %9367  ;;  %v20344_v57 = vld [vmem:[#allocation219_spill] sm:$0xff]  ;;  %v15980_v38 = vsel %vm2385_vm3, %v20349_v30, %v8819_v24  ;;  %v20354_v24 = vld [vmem:[#allocation226_spill] sm:$0xff] }
 0x4f1   :  { %20340 = vst [vmem:[#allocation186_spill] sm:$0xff] %v15946_v20  ;;  %v15962_v14 = vsel %vm2385_vm3, %v20344_v57, %v8809_v39  ;;  %9642 = vrot.lane.b32.xlu0 %v20345_v56, %s10014_s25  ;;  %v20346_v20 = vld [vmem:[#allocation220_spill] sm:$0xff]  ;;  %v8829_v39 = vunpack.i.l.bf16 %v20339_v62  ;;  %v20350_v57 = vld [vmem:[#allocation121_spill] sm:$0xff]  ;;  %v15999_v30 = vsel %vm2385_vm3, %v20354_v24, %v8830_v40  ;;  %v8855_v40 = vunpack.i.h.bf16 %v20359_v22 }
 0x4f2   :  { %v15968_v21 = vsel %vm2385_vm3, %v20346_v20, %v8825_v61  ;;  %9657 = vrot.lane.b32.xlu1 %v20218_v31, %s10015_s26  ;;  %v8840_v20 = vunpack.i.h.bf16 %v20350_v57  ;;  %v8839_v61 = vunpack.i.l.bf16 %v20350_v57  ;;  %v20355_v31 = vld [vmem:[#allocation122_spill] sm:$0xff]  ;;  %v8854_v24 = vunpack.i.l.bf16 %v20359_v22 }
 0x4f3   :  { %v15987_v56 = vpop.permute.xlu0 %9362  ;;  %v8850_v62 = vunpack.i.h.bf16 %v20355_v31  ;;  %v8849_v57 = vunpack.i.l.bf16 %v20355_v31  ;;  %v20361_v31 = vld [vmem:[#allocation229_spill] sm:$0xff] }
 0x4f4   :  { %20351 = vst [vmem:[#allocation213_spill] sm:$0xff] %v15987_v56  ;;  %v16002_v12 = vpop.permute.xlu1 %9377  ;;  %v8845_v56 = vunpack.i.h.bf16 %v20357_v1  ;;  %v20362_v1 = vld [vmem:[#allocation231_spill] sm:$0xff] }
 0x4f5   :  { %20356 = vst [vmem:[#allocation153_spill] sm:$0xff] %v16002_v12  ;;  %9652 = vrot.lane.b32.xlu0 %v20221_v44, %s10015_s26  ;;  %v16018_v12 = vsel %vm2385_vm3, %v20361_v31, %v8829_v39  ;;  %v16022_v28 = vsel %vm2385_vm3, %v20362_v1, %v8840_v20  ;;  %v20363_v44 = vld [vmem:[#allocation166_spill] sm:$0xff]  ;;  %v16033_v10 = vsel %vm2385_vm3, %v20365_v45, %v8850_v62  ;;  %v20368_v20 = vld [vmem:[#allocation72_spill] sm:$0xff]  ;;  %v20371_v45 = vld [vmem:[#allocation175_spill] sm:$0xff] }
 0x4f6   :  { %9667 = vrot.lane.b32.xlu1 %v20280_v37, %s10016_s1  ;;  %v16026_v54 = vsel %vm2385_vm3, %v20363_v44, %v8839_v61  ;;  %v20366_v37 = vld [vmem:[#allocation50_spill] sm:$0xff]  ;;  %v16041_v1 = vsel %vm2385_vm3, %v20368_v20, %v8849_v57  ;;  %v20369_v61 = vld [vmem:[#allocation65_spill] sm:$0xff]  ;;  %v16053_v62 = vsel %vm2385_vm3, %v20371_v45, %v8860_v11  ;;  %v20375_v57 = vld [vmem:[#allocation176_spill] sm:$0xff] }
 0x4f7   :  { %v16029_v22 = vpop.permute.xlu0 %9372  ;;  %v8865_v46 = vunpack.i.h.bf16 %v20366_v37  ;;  %v8864_v39 = vunpack.i.l.bf16 %v20366_v37  ;;  %v16045_v44 = vsel %vm2385_vm3, %v20369_v61, %v8845_v56  ;;  %20372 = vst [vmem:[#allocation168_spill] sm:$0xff] %v16053_v62  ;;  %v20373_v37 = vld [vmem:[#allocation106_spill] sm:$0xff]  ;;  %v16063_v20 = vsel %vm2385_vm3, %v20375_v57, %v8855_v40  ;;  %v20376_v56 = vld [vmem:[#allocation236_spill] sm:$0xff] }
 0x4f8   :  { %20364 = vst [vmem:[#allocation161_spill] sm:$0xff] %v16029_v22  ;;  %v16037_v31 = vpop.permute.xlu1 %9387  ;;  %v16049_v22 = vsel %vm2385_vm3, %v20370_v7, %v8844_v41  ;;  %v16059_v5 = vsel %vm2385_vm3, %v20373_v37, %v8859_v55  ;;  %v16067_v61 = vsel %vm2385_vm3, %v20376_v56, %v8854_v24  ;;  %v20377_v41 = vld [vmem:[#allocation239_spill] sm:$0xff]  ;;  %v20379_v11 = vld [vmem:[#allocation188_spill] sm:$0xff]  ;;  %v20382_v55 = vld [vmem:[#allocation45_spill] sm:$0xff] }
 0x4f9   :  { %20367 = vst [vmem:[#allocation108_spill] sm:$0xff] %v16037_v31  ;;  %9662 = vrot.lane.b32.xlu0 %v20283_v43, %s10016_s1  ;;  %20374 = vst [vmem:[#allocation217_spill] sm:$0xff] %v16059_v5  ;;  %v16071_v7 = vsel %vm2385_vm3, %v20377_v41, %v8870_v59  ;;  %v20380_v43 = vld [vmem:[#allocation74_spill] sm:$0xff]  ;;  %v8880_v37 = vunpack.i.h.bf16 %v20382_v55  ;;  %v8879_v40 = vunpack.i.l.bf16 %v20382_v55  ;;  %v20384_v5 = vld [vmem:[#allocation241_spill] sm:$0xff] }
 0x4fa   :  { %20378 = vst [vmem:[#allocation214_spill] sm:$0xff] %v16071_v7  ;;  %9677 = vrot.lane.b32.xlu1 %v20379_v11, %s10014_s25  ;;  %v16077_v45 = vsel %vm2385_vm3, %v20380_v43, %v8869_v2  ;;  %v16085_v24 = vsel %vm2385_vm3, %v20384_v5, %v8865_v46  ;;  %v20386_v56 = vld [vmem:[#allocation178_spill] sm:$0xff]  ;;  %v20389_v11 = vld [vmem:[#allocation51_spill] sm:$0xff]  ;;  %v20391_v55 = vld [vmem:[#allocation233_spill] sm:$0xff] }
 0x4fb   :  { %20381 = vst [vmem:[#allocation223_spill] sm:$0xff] %v16077_v45  ;;  %v16081_v57 = vpop.permute.xlu0 %9382  ;;  %20385 = vst [vmem:[#allocation227_spill] sm:$0xff] %v16085_v24  ;;  %v16089_v59 = vsel %vm2385_vm3, %v20386_v56, %v8864_v39  ;;  %v8875_v7 = vunpack.i.h.bf16 %v20389_v11  ;;  %v8874_v2 = vunpack.i.l.bf16 %v20389_v11  ;;  %v20390_v43 = vld [vmem:[#allocation283_spill] sm:$0xff]  ;;  %v20394_v5 = vld [vmem:[#allocation244_spill] sm:$0xff] }
 0x4fc   :  { %20383 = vst [vmem:[#allocation111_spill] sm:$0xff] %v16081_v57  ;;  %20387 = vst [vmem:[#allocation222_spill] sm:$0xff] %v16089_v59  ;;  %v16091_v41 = vpop.permute.xlu1 %9397  ;;  %v20392_v57 = vld [vmem:[#allocation87_spill] sm:$0xff]  ;;  %v16105_v39 = vsel %vm2385_vm3, %v20394_v5, %v8879_v40  ;;  %v20398_v59 = vld [vmem:[#allocation120_spill] sm:$0xff] }
 0x4fd   :  { %20388 = vst [vmem:[#allocation172_spill] sm:$0xff] %v16091_v41  ;;  %9672 = vrot.lane.b32.xlu0 %v20390_v43, %s10014_s25  ;;  %v16101_v46 = vsel %vm2385_vm3, %v20392_v57, %v8880_v37  ;;  %20395 = vst [vmem:[#allocation71_spill] sm:$0xff] %v16105_v39  ;;  %v16113_v11 = vsel %vm2385_vm3, %v20398_v59, %v8875_v7  ;;  %v20400_v43 = vld [vmem:[#allocation118_spill] sm:$0xff]  ;;  %v20404_v57 = vld [vmem:[#allocation135_spill] sm:$0xff] }
 0x4fe   :  { %9687 = vrot.lane.b32.xlu1 %v20391_v55, %s10015_s26  ;;  %20393 = vst [vmem:[#allocation225_spill] sm:$0xff] %v16101_v46  ;;  %20399 = vst [vmem:[#allocation266_spill] sm:$0xff] %v16113_v11  ;;  %v16117_v24 = vsel %vm2385_vm3, %v20400_v43, %v8874_v2  ;;  %v20402_v55 = vld [vmem:[#allocation138_spill] sm:$0xff]  ;;  %v20405_v5 = vld [vmem:[#allocation143_spill] sm:$0xff] }
 0x4ff   :  { %v16107_v56 = vpop.permute.xlu0 %9392  ;;  %20401 = vst [vmem:[#allocation187_spill] sm:$0xff] %v16117_v24  ;;  %v8890_v62 = vunpack.i.h.bf16 %v20402_v55  ;;  %v20403_v37 = vld [vmem:[#allocation230_spill] sm:$0xff]  ;;  %v8889_v40 = vunpack.i.l.bf16 %v20402_v55  ;;  %v8885_v39 = vunpack.i.h.bf16 %v20405_v5  ;;  %v8884_v46 = vunpack.i.l.bf16 %v20405_v5  ;;  %v20408_v2 = vld [vmem:[#allocation247_spill] sm:$0xff] }
 0x500   :  { %20396 = vst [vmem:[#allocation127_spill] sm:$0xff] %v16107_v56  ;;  %v16109_v45 = vpop.permute.xlu1 %9407  ;;  %v20410_v24 = vld [vmem:[#allocation142_spill] sm:$0xff]  ;;  %v20415_v5 = vrot.slane %v20150_v52, 2 }
 0x501   :  { %20397 = vst [vmem:[#allocation265_spill] sm:$0xff] %v16109_v45  ;;  %9682 = vrot.lane.b32.xlu0 %v20403_v37, %s10015_s26  ;;  %v16133_v43 = vsel %vm2385_vm3, %v20408_v2, %v8890_v62  ;;  %v8900_v11 = vunpack.i.h.bf16 %v20410_v24  ;;  %v20411_v37 = vld [vmem:[#allocation133_spill] sm:$0xff]  ;;  %v20412_v55 = vld [vmem:[#allocation250_spill] sm:$0xff]  ;;  %v20414_v45 = vld [vmem:[#allocation184_spill] sm:$0xff]  ;;  %v20417_v62 = vrot.slane %v15342_v53, 2 }
 0x502   :  { %9697 = vrot.lane.b32.xlu1 %v20404_v57, %s10016_s1  ;;  %20409 = vst [vmem:[#allocation124_spill] sm:$0xff] %v16133_v43  ;;  %v16140_v57 = vsel %vm2385_vm3, %v20412_v55, %v8889_v40  ;;  %v20418_v2 = vmov %v20415_v5  ;;  %v20421_v40 = vld [vmem:[#allocation251_spill] sm:$0xff]  ;;  %v20426_v53 = vld [vmem:[#allocation253_spill] sm:$0xff]  ;;  %v20440_v56 = vld [vmem:[#allocation70_spill] sm:$0xff] }
 0x503   :  { %v16127_v7 = vpop.permute.xlu0 %9402  ;;  %20413 = vst [vmem:[#allocation130_spill] sm:$0xff] %v16140_v57  ;;  %v5010_v43 = vsel %vm885_vm2, %v20418_v2, %v20417_v62  ;;  %v16160_v55 = vsel %vm2385_vm3, %v20421_v40, %v8884_v46  ;;  %v16170_v52 = vsel %vm2385_vm3, %v20426_v53, %v8900_v11  ;;  %v20428_v62 = vld [vmem:[#allocation191_spill] sm:$0xff]  ;;  %v20430_v2 = vld [vmem:[#allocation145_spill] sm:$0xff]  ;;  %v20435_v53 = vld [vmem:[#allocation174_spill] sm:$0xff]  ;;  %v8935_v31 = vunpack.i.h.bf16 %v20440_v56 }
 0x504   :  { %20406 = vst [vmem:[#allocation267_spill] sm:$0xff] %v16127_v7  ;;  %v16129_v59 = vpop.permute.xlu1 %9417  ;;  %20422 = vst [vmem:[#allocation129_spill] sm:$0xff] %v16160_v55  ;;  %v8920_v46 = vunpack.i.h.bf16 %v20430_v2 }
 0x505   :  { %20407 = vst [vmem:[#allocation268_spill] sm:$0xff] %v16129_v59  ;;  %9692 = vrot.lane.b32.xlu0 %v20411_v37, %s10016_s1  ;;  %v20416_v59 = vrot.slane %v15356_v0, 2  ;;  %v20419_v37 = vld [vmem:[#allocation248_spill] sm:$0xff]  ;;  %v20424_v0 = vld [vmem:[#allocation53_spill] sm:$0xff]  ;;  %20427 = vst [vmem:[#allocation140_spill] sm:$0xff] %v16170_v52  ;;  %v8940_v52 = vunpack.i.h.bf16 %v20435_v53 }
 0x506   :  { %9707 = vrot.lane.b32.xlu1 %v20414_v45, %s10015_s26  ;;  %v16156_v41 = vsel %vm2385_vm3, %v20419_v37, %v8885_v39  ;;  %v8899_v45 = vunpack.i.l.bf16 %v20410_v24  ;;  %v8919_v37 = vunpack.i.l.bf16 %v20430_v2  ;;  %v20431_v24 = vld [vmem:[#allocation13_spill] sm:$0xff]  ;;  %v20438_v2 = vld [vmem:[#allocation258_spill] sm:$0xff] }
 0x507   :  { %v5008_v7 = vsel %vm885_vm2, %v20416_v59, %v20415_v5  ;;  %20420 = vst [vmem:[#allocation190_spill] sm:$0xff] %v16156_v41  ;;  %v16163_v57 = vpop.permute.xlu0 %9412  ;;  %v8895_v59 = vunpack.i.h.bf16 %v20424_v0  ;;  %v8930_v40 = vunpack.i.h.bf16 %v20431_v24  ;;  %v8929_v55 = vunpack.i.l.bf16 %v20431_v24  ;;  %v20432_v41 = vld [vmem:[#allocation47_spill] sm:$0xff]  ;;  %v20456_v0 = vld [vmem:[#allocation149_spill] sm:$0xff] }
 0x508   :  { %20423 = vst [vmem:[#allocation270_spill] sm:$0xff] %v16163_v57  ;;  %v16166_v5 = vpop.permute.xlu1 %9427  ;;  %v16174_v39 = vpack.i.bf16 %v5010_v43, %v5008_v7 }
 0x509   :  { %20425 = vst [vmem:[#allocation271_spill] sm:$0xff] %v16166_v5  ;;  %9702 = vrot.lane.b32.xlu0 %v20428_v62, %s10014_s25  ;;  %v20433_v5 = vld [vmem:[#allocation254_spill] sm:$0xff]  ;;  %v20436_v62 = vld [vmem:[#allocation61_spill] sm:$0xff]  ;;  %v16193_v57 = vsel %vm2385_vm3, %v20438_v2, %v8895_v59  ;;  %v16208_v59 = vsel %vm2448_vm4, %v15864_v51, %v8920_v46  ;;  %v16216_v2 = vsel %vm2448_vm4, %v15882_v23, %v8930_v40  ;;  %v8944_v23 = vunpack.i.l.bf16 %v20443_v4  ;;  %v20448_v40 = vld [vmem:[#allocation35_spill] sm:$0xff] }
 0x50a   :  { %20429 = vst [vmem:[#allocation272_spill] sm:$0xff] %v16174_v39  ;;  %9717 = vrot.lane.b32.xlu1 %v20432_v41, %s10014_s25  ;;  %v16184_v11 = vsel %vm2385_vm3, %v20433_v5, %v8899_v45  ;;  %v8925_v7 = vunpack.i.h.bf16 %v20436_v62  ;;  %v8924_v43 = vunpack.i.l.bf16 %v20436_v62  ;;  %20439 = vst [vmem:[#allocation164_spill] sm:$0xff] %v16193_v57  ;;  %v8939_v41 = vunpack.i.l.bf16 %v20435_v53  ;;  %v20442_v5 = vld [vmem:[#allocation27_spill] sm:$0xff] }
 0x50b   :  { %20434 = vst [vmem:[#allocation134_spill] sm:$0xff] %v16184_v11  ;;  %v16189_v39 = vpop.permute.xlu0 %9422  ;;  %v8950_v11 = vunpack.i.h.bf16 %v20442_v5  ;;  %v8949_v35 = vunpack.i.l.bf16 %v20442_v5  ;;  %v8934_v62 = vunpack.i.l.bf16 %v20440_v56  ;;  %v16212_v53 = vsel %vm2448_vm4, %v15868_v29, %v8919_v37  ;;  %v20444_v5 = vld [vmem:[#allocation243_spill] sm:$0xff] }
 0x50c   :  { %20437 = vst [vmem:[#allocation273_spill] sm:$0xff] %v16189_v39  ;;  %v16198_v45 = vpop.permute.xlu1 %9437  ;;  %v8945_v39 = vunpack.i.h.bf16 %v20443_v4  ;;  %v16220_v56 = vsel %vm2448_vm4, %v15886_v15, %v8929_v55  ;;  %v16230_v51 = vsel %vm2448_vm4, %v15847_v32, %v8925_v7  ;;  %v16234_v29 = vsel %vm2448_vm4, %v15860_v6, %v8924_v43  ;;  %v20445_v55 = vld [vmem:[#allocation147_spill] sm:$0xff] }
 0x50d   :  { %20441 = vst [vmem:[#allocation167_spill] sm:$0xff] %v16198_v45  ;;  %9712 = vrot.lane.b32.xlu0 %v15316_v33, %s10016_s1  ;;  %v16226_v33 = vsel %vm2448_vm4, %v15905_v8, %v8940_v52  ;;  %v16241_v15 = vsel %vm2448_vm4, %v15909_v42, %v8939_v41  ;;  %v16245_v8 = vsel %vm2448_vm4, %v15872_v16, %v8935_v31  ;;  %v8960_v52 = vunpack.i.h.bf16 %v20445_v55  ;;  %v20447_v31 = vld [vmem:[#allocation192_spill] sm:$0xff] }
 0x50e   :  { %9727 = vrot.lane.b32.xlu1 %v20444_v5, %s10015_s26  ;;  %v8959_v32 = vunpack.i.l.bf16 %v20445_v55  ;;  %v16253_v6 = vsel %vm2448_vm4, %v15935_v50, %v8950_v11  ;;  %v16257_v4 = vsel %vm2448_vm4, %v15939_v47, %v8949_v35  ;;  %v16261_v42 = vsel %vm2448_vm4, %v15878_v13, %v8934_v62  ;;  %v20449_v11 = vld [vmem:[#allocation34_spill] sm:$0xff] }
 0x50f   :  { %v16237_v46 = vpop.permute.xlu0 %9432  ;;  %v16265_v16 = vsel %vm2448_vm4, %v15890_v49, %v8945_v39  ;;  %v8970_v7 = vunpack.i.h.bf16 %v20448_v40  ;;  %v8969_v50 = vunpack.i.l.bf16 %v20448_v40  ;;  %v8955_v43 = vunpack.i.h.bf16 %v20449_v11  ;;  %v20450_v49 = vld [vmem:[#allocation177_spill] sm:$0xff]  ;;  %v20451_v39 = vld [vmem:[#allocation91_spill] sm:$0xff] }
 0x510   :  { %v16249_v37 = vpop.permute.xlu1 %9447  ;;  %v8954_v35 = vunpack.i.l.bf16 %v20449_v11  ;;  %v16277_v13 = vsel %vm2448_vm4, %v15896_v34, %v8944_v23  ;;  %v8980_v47 = vunpack.i.h.bf16 %v20450_v49  ;;  %v8965_v41 = vunpack.i.h.bf16 %v20451_v39  ;;  %v20453_v34 = vld [vmem:[#allocation82_spill] sm:$0xff]  ;;  %v20455_v11 = vld [vmem:[#allocation148_spill] sm:$0xff] }
 0x511   :  { %20446 = vst [vmem:[#allocation37_spill] sm:$0xff] %v16249_v37  ;;  %9722 = vrot.lane.b32.xlu0 %v20447_v31, %s10014_s25  ;;  %v8964_v62 = vunpack.i.l.bf16 %v20451_v39  ;;  %v16286_v55 = vsel %vm2448_vm4, %v15958_v63, %v8960_v52  ;;  %v16290_v31 = vsel %vm2448_vm4, %v15962_v14, %v8959_v32  ;;  %v8975_v23 = vunpack.i.h.bf16 %v20453_v34  ;;  %v20457_v63 = vld [vmem:[#allocation237_spill] sm:$0xff] }
 0x512   :  { %9737 = vrot.lane.b32.xlu1 %v20294_v25, %s10016_s1  ;;  %v8979_v25 = vunpack.i.l.bf16 %v20450_v49  ;;  %v8990_v24 = vunpack.i.h.bf16 %v20455_v11  ;;  %v8989_v39 = vunpack.i.l.bf16 %v20455_v11  ;;  %v8974_v57 = vunpack.i.l.bf16 %v20453_v34  ;;  %v20458_v34 = vld [vmem:[#allocation52_spill] sm:$0xff] }
 0x513   :  { %v16282_v5 = vpop.permute.xlu0 %9442  ;;  %v8985_v37 = vunpack.i.h.bf16 %v20456_v0  ;;  %v16304_v14 = vsel %vm2448_vm4, %v15976_v26, %v8970_v7  ;;  %v16308_v52 = vsel %vm2448_vm4, %v15980_v38, %v8969_v50  ;;  %v16312_v32 = vsel %vm2448_vm4, %v15913_v9, %v8955_v43  ;;  %v20460_v50 = vld [vmem:[#allocation103_spill] sm:$0xff] }
 0x514   :  { %20452 = vst [vmem:[#allocation107_spill] sm:$0xff] %v16282_v5  ;;  %v16294_v40 = vpop.permute.xlu1 %9457  ;;  %v16316_v49 = vsel %vm2448_vm4, %v15931_v27, %v8954_v35  ;;  %v16322_v11 = vsel %vm2448_vm4, %v15999_v30, %v8980_v47  ;;  %v16326_v26 = vsel %vm2448_vm4, %v15950_v3, %v8965_v41  ;;  %v16330_v38 = vsel %vm2448_vm4, %v15954_v17, %v8964_v62  ;;  %v20464_v47 = vld [vmem:[#allocation274_spill] sm:$0xff]  ;;  %v20465_v41 = vld [vmem:[#allocation41_spill] sm:$0xff] }
 0x515   :  { %20454 = vst [vmem:[#allocation132_spill] sm:$0xff] %v16294_v40  ;;  %9732 = vrot.lane.b32.xlu0 %v20457_v63, %s10015_s26  ;;  %v8984_v9 = vunpack.i.l.bf16 %v20456_v0  ;;  %v16337_v27 = vsel %vm2448_vm4, %v16018_v12, %v8979_v25  ;;  %v16341_v30 = vsel %vm2448_vm4, %v15968_v21, %v8975_v23  ;;  %v9000_v43 = vunpack.i.h.bf16 %v20460_v50  ;;  %v20467_v23 = vld [vmem:[#allocation73_spill] sm:$0xff] }
 0x516   :  { %9747 = vrot.lane.b32.xlu1 %v20458_v34, %s10014_s25  ;;  %v8999_v3 = vunpack.i.l.bf16 %v20460_v50  ;;  %v16349_v17 = vsel %vm2448_vm4, %v16022_v28, %v8990_v24  ;;  %v16353_v0 = vsel %vm2448_vm4, %v16026_v54, %v8989_v39  ;;  %v16357_v12 = vsel %vm2448_vm4, %v15972_v19, %v8974_v57  ;;  %v20466_v24 = vld [vmem:[#allocation197_spill] sm:$0xff]  ;;  %v20469_v39 = vld [vmem:[#allocation75_spill] sm:$0xff] }
 0x517   :  { %v16333_v7 = vpop.permute.xlu0 %9452  ;;  %20462 = vst [vmem:[#allocation36_spill] sm:$0xff] %v16349_v17  ;;  %20463 = vst [vmem:[#allocation136_spill] sm:$0xff] %v16353_v0  ;;  %v16361_v21 = vsel %vm2448_vm4, %v15991_v18, %v8985_v37  ;;  %v8995_v62 = vunpack.i.h.bf16 %v20465_v41  ;;  %v8994_v28 = vunpack.i.l.bf16 %v20465_v41  ;;  %v9005_v25 = vunpack.i.h.bf16 %v20466_v24  ;;  %v20468_v18 = vld [vmem:[#allocation93_spill] sm:$0xff] }
 0x518   :  { %20459 = vst [vmem:[#allocation96_spill] sm:$0xff] %v16333_v7  ;;  %v16345_v35 = vpop.permute.xlu1 %9467  ;;  %v9004_v54 = vunpack.i.l.bf16 %v20466_v24  ;;  %v16373_v19 = vsel %vm2448_vm4, %v15995_v60, %v8984_v9  ;;  %v9070_v57 = vunpack.i.h.bf16 %v20468_v18  ;;  %v9069_v37 = vunpack.i.l.bf16 %v20468_v18  ;;  %v20473_v60 = vld [vmem:[#allocation63_spill] sm:$0xff]  ;;  %v20476_v40 = vld [vmem:[#allocation201_spill] sm:$0xff] }
 0x519   :  { %20461 = vst [vmem:[#allocation183_spill] sm:$0xff] %v16345_v35  ;;  %9742 = vrot.lane.b32.xlu0 %v20464_v47, %s10016_s1  ;;  %v9079_v63 = vunpack.i.l.bf16 %v20469_v39  ;;  %v16382_v50 = vsel %vm2448_vm4, %v16033_v10, %v9000_v43  ;;  %v16386_v47 = vsel %vm2448_vm4, %v16041_v1, %v8999_v3  ;;  %v9080_v41 = vunpack.i.h.bf16 %v20469_v39  ;;  %v20477_v10 = vld [vmem:[#allocation171_spill] sm:$0xff]  ;;  %v20490_v18 = vld [vmem:[#allocation181_spill] sm:$0xff] }
 0x51a   :  { %9757 = vrot.lane.b32.xlu1 %v20467_v23, %s10015_s26  ;;  %20471 = vst [vmem:[#allocation215_spill] sm:$0xff] %v16382_v50  ;;  %20472 = vst [vmem:[#allocation40_spill] sm:$0xff] %v16386_v47  ;;  %v9075_v9 = vunpack.i.h.bf16 %v20473_v60  ;;  %v9074_v7 = vunpack.i.l.bf16 %v20473_v60  ;;  %v16400_v1 = vsel %vm2448_vm4, %v16045_v44, %v8995_v62  ;;  %v16404_v43 = vsel %vm2448_vm4, %v16049_v22, %v8994_v28  ;;  %v20482_v60 = vld [vmem:[#allocation38_spill] sm:$0xff] }
 0x51b   :  { %v16378_v34 = vpop.permute.xlu0 %9462  ;;  %20478 = vst [vmem:[#allocation141_spill] sm:$0xff] %v16400_v1  ;;  %20479 = vst [vmem:[#allocation156_spill] sm:$0xff] %v16404_v43  ;;  %v16408_v3 = vsel %vm2448_vm4, %v16063_v20, %v9005_v25  ;;  %v16412_v39 = vsel %vm2448_vm4, %v16067_v61, %v9004_v54  ;;  %v20483_v44 = vld [vmem:[#allocation46_spill] sm:$0xff]  ;;  %v16422_v22 = vsel %vm2511_vm6, %v16234_v29, %v9079_v63  ;;  %v9090_v20 = vunpack.i.h.bf16 %v20476_v40  ;;  %v20485_v25 = vld [vmem:[#allocation7_spill] sm:$0xff] }
 0x51c   :  { %20470 = vst [vmem:[#allocation216_spill] sm:$0xff] %v16378_v34  ;;  %v16390_v24 = vpop.permute.xlu1 %9477  ;;  %v9089_v34 = vunpack.i.l.bf16 %v20476_v40  ;;  %20480 = vst [vmem:[#allocation155_spill] sm:$0xff] %v16408_v3  ;;  %v5863_v62 = vsel %vm2511_vm6, %v20483_v44, %v9069_v37  ;;  %v16429_v61 = vsel %vm2511_vm6, %v16230_v51, %v9080_v41  ;;  %v9085_v54 = vunpack.i.h.bf16 %v20485_v25  ;;  %v20487_v63 = vld [vmem:[#allocation116_spill] sm:$0xff] }
 0x51d   :  { %20474 = vst [vmem:[#allocation169_spill] sm:$0xff] %v16390_v24  ;;  %9752 = vrot.lane.b32.xlu0 %v20477_v10, %s10014_s25  ;;  %20481 = vst [vmem:[#allocation219_spill] sm:$0xff] %v16412_v39  ;;  %v5864_v10 = vsel %vm2511_vm6, %v20482_v60, %v9070_v57  ;;  %v9084_v57 = vunpack.i.l.bf16 %v20485_v25  ;;  %v5865_v40 = vsel %vm2511_vm6, %v16212_v53, %v9074_v7  ;;  %v9100_v35 = vunpack.i.h.bf16 %v20487_v63  ;;  %v20488_v41 = vld [vmem:[#allocation180_spill] sm:$0xff]  ;;  %v20492_v7 = vld [vmem:[#allocation23_spill] sm:$0xff] }
 0x51e   :  { %9767 = vrot.lane.b32.xlu1 %v20297_v58, %s10016_s1  ;;  %v5866_v58 = vsel %vm2511_vm6, %v16208_v59, %v9075_v9  ;;  %v16439_v29 = vsel %vm2511_vm6, %v16261_v42, %v9089_v34  ;;  %v9099_v51 = vunpack.i.l.bf16 %v20487_v63  ;;  %v20489_v59 = vld [vmem:[#allocation95_spill] sm:$0xff]  ;;  %v9094_v23 = vunpack.i.l.bf16 %v20490_v18  ;;  %v20493_v63 = vld [vmem:[#allocation152_spill] sm:$0xff] }
 0x51f   :  { %v16425_v28 = vpop.permute.xlu0 %9472  ;;  %v9110_v9 = vunpack.i.h.bf16 %v20489_v59  ;;  %v9109_v25 = vunpack.i.l.bf16 %v20489_v59  ;;  %v20491_v42 = vld [vmem:[#allocation275_spill] sm:$0xff]  ;;  %v16455_v53 = vsel %vm2511_vm6, %v16245_v8, %v9090_v20  ;;  %v9119_v34 = vunpack.i.l.bf16 %v20492_v7 }
 0x520   :  { %20484 = vst [vmem:[#allocation42_spill] sm:$0xff] %v16425_v28  ;;  %v16435_v37 = vpop.permute.xlu1 %9487  ;;  %v9105_v3 = vunpack.i.h.bf16 %v20493_v63  ;;  %v16464_v59 = vsel %vm2511_vm6, %v16216_v2, %v9085_v54  ;;  %v9230_v24 = vunpack.i.h.bf16 %v15740_v48  ;;  %v9229_v8 = vunpack.i.l.bf16 %v15740_v48 }
 0x521   :  { %20486 = vst [vmem:[#allocation220_spill] sm:$0xff] %v16435_v37  ;;  %9762 = vrot.lane.b32.xlu0 %v20488_v41, %s10015_s26  ;;  %v9095_v37 = vunpack.i.h.bf16 %v20490_v18  ;;  %v9104_v41 = vunpack.i.l.bf16 %v20493_v63  ;;  %v16468_v18 = vsel %vm2511_vm6, %v16220_v56, %v9084_v57  ;;  %v16474_v1 = vsel %vm2511_vm6, %v16277_v13, %v9099_v51  ;;  %v20495_v56 = vld [vmem:[#allocation276_spill] sm:$0xff] }
 0x522   :  { %9777 = vrot.lane.b32.xlu1 %v20491_v42, %s10013_s24  ;;  %v16478_v63 = vsel %vm2511_vm6, %v16265_v16, %v9100_v35  ;;  %v9235_v2 = vunpack.i.h.bf16 %v15754_v36  ;;  %v9234_v54 = vunpack.i.l.bf16 %v15754_v36  ;;  %v16486_v57 = vsel %vm2511_vm6, %v16316_v49, %v9109_v25  ;;  %v20496_v36 = vld [vmem:[#allocation98_spill] sm:$0xff] }
 0x523   :  { %v16460_v39 = vpop.permute.xlu0 %9482  ;;  %v16490_v48 = vsel %vm2511_vm6, %v16312_v32, %v9110_v9  ;;  %v16494_v13 = vsel %vm2511_vm6, %v16226_v33, %v9095_v37  ;;  %v16498_v16 = vsel %vm2511_vm6, %v16241_v15, %v9094_v23  ;;  %v9120_v35 = vunpack.i.h.bf16 %v20492_v7  ;;  %v20498_v15 = vld [vmem:[#allocation202_spill] sm:$0xff] }
 0x524   :  { %20494 = vst [vmem:[#allocation123_spill] sm:$0xff] %v16460_v39  ;;  %v9498_v20 = vpop.permute.xlu1 %9497  ;;  %v16505_v49 = vsel %vm2511_vm6, %v16330_v38, %v9119_v34  ;;  %v16509_v32 = vsel %vm2511_vm6, %v16253_v6, %v9105_v3  ;;  %v16513_v33 = vsel %vm2511_vm6, %v16257_v4, %v9104_v41  ;;  %v9115_v23 = vunpack.i.h.bf16 %v20498_v15  ;;  %v20499_v38 = vld [vmem:[#allocation211_spill] sm:$0xff]  ;;  %v20500_v4 = vld [vmem:[#allocation57_spill] sm:$0xff]  ;;  %v20501_v41 = vld [vmem:[#allocation108_spill] sm:$0xff] }
 0x525   :  { %9772 = vrot.lane.b32.xlu0 %v20495_v56, %s10016_s1  ;;  %20497 = vst [vmem:[#allocation157_spill] sm:$0xff] %v16505_v49  ;;  %v9114_v51 = vunpack.i.l.bf16 %v20498_v15  ;;  %v5928_v9 = vsel %vm2576_vm7, %v5864_v10, %v9230_v24  ;;  %v5927_v25 = vsel %vm2576_vm7, %v5863_v62, %v9229_v8  ;;  %v9240_v34 = vunpack.i.h.bf16 %v20499_v38  ;;  %v20502_v39 = vld [vmem:[#allocation127_spill] sm:$0xff]  ;;  %v20503_v62 = vld [vmem:[#allocation252_spill] sm:$0xff] }
 0x526   :  { %9787 = vrot.lane.b32.xlu1 %v20496_v36, %s10014_s25  ;;  %v9239_v56 = vunpack.i.l.bf16 %v20499_v38  ;;  %v5929_v6 = vsel %vm2576_vm7, %v5865_v40, %v9234_v54  ;;  %v5930_v3 = vsel %vm2576_vm7, %v5866_v58, %v9235_v2  ;;  %v9390_v36 = vunpack.i.h.bf16 %v20501_v41  ;;  %v20504_v58 = vld [vmem:[#allocation86_spill] sm:$0xff] }
 0x527   :  { %v9493_v37 = vpop.permute.xlu0 %9492  ;;  %v9389_v15 = vunpack.i.l.bf16 %v20501_v41  ;;  %v9395_v24 = vunpack.i.h.bf16 %v20502_v39  ;;  %v9394_v10 = vunpack.i.l.bf16 %v20502_v39  ;;  %v9500_v8 = vunpack.i.h.bf16 %v9498_v20  ;;  %v20505_v39 = vld [vmem:[#allocation245_spill] sm:$0xff] }
 0x528   :  { %v9508_v7 = vpop.permute.xlu1 %9507  ;;  %v9499_v38 = vunpack.i.l.bf16 %v9498_v20  ;;  %v9495_v43 = vunpack.i.h.bf16 %v9493_v37  ;;  %v9494_v40 = vunpack.i.l.bf16 %v9493_v37  ;;  %v9245_v2 = vunpack.i.h.bf16 %v20504_v58 }
 0x529   :  { %9782 = vrot.lane.b32.xlu0 %v20500_v4, %s10014_s25  ;;  %v9244_v4 = vunpack.i.l.bf16 %v20504_v58  ;;  %v9510_v50 = vunpack.i.h.bf16 %v9508_v7  ;;  %v9509_v28 = vunpack.i.l.bf16 %v9508_v7  ;;  %v5991_v20 = vsel %vm2641_vm8, %v5927_v25, %v9389_v15  ;;  %v20506_v58 = vld [vmem:[#allocation278_spill] sm:$0xff] }
 0x52a   :  { %9797 = vrot.lane.b32.xlu1 %v20503_v62, %s10015_s26  ;;  %v5992_v62 = vsel %vm2641_vm8, %v5928_v9, %v9390_v36  ;;  %v5993_v37 = vsel %vm2641_vm8, %v5929_v6, %v9394_v10  ;;  %v5994_v45 = vsel %vm2641_vm8, %v5930_v3, %v9395_v24 }
 0x52b   :  { %v9503_v54 = vpop.permute.xlu0 %9502  ;;  %v6057_v7 = vsel %vm2706_vm9, %v5993_v37, %v9499_v38 }
 0x52c   :  { %v9518_v47 = vpop.permute.xlu1 %9517  ;;  %v9505_v17 = vunpack.i.h.bf16 %v9503_v54  ;;  %v9504_v5 = vunpack.i.l.bf16 %v9503_v54  ;;  %v6055_v54 = vsel %vm2706_vm9, %v5991_v20, %v9494_v40  ;;  %v6121_v9 = vsel %vm2771_vm10, %v6057_v7, %v9509_v28  ;;  %v20507_v28 = vld [vmem:[#allocation77_spill] sm:$0xff]  ;;  %v20510_v7 = vld [vmem:[#allocation92_spill] sm:$0xff] }
 0x52d   :  { %v9520_v41 = vunpack.i.h.bf16 %v9518_v47  ;;  %v9519_v0 = vunpack.i.l.bf16 %v9518_v47  ;;  %9792 = vrot.lane.b32.xlu0 %v20505_v39, %s10015_s26  ;;  %v6058_v47 = vsel %vm2706_vm9, %v5994_v45, %v9500_v8  ;;  %v6056_v39 = vsel %vm2706_vm9, %v5992_v62, %v9495_v43  ;;  %v20508_v8 = vld [vmem:[#allocation277_spill] sm:$0xff] }
 0x52e   :  { %9807 = vrot.lane.b32.xlu1 %v20506_v58, %s10016_s1  ;;  %v6122_v25 = vsel %vm2771_vm10, %v6058_v47, %v9510_v50  ;;  %v6119_v45 = vsel %vm2771_vm10, %v6055_v54, %v9504_v5  ;;  %v6120_v10 = vsel %vm2771_vm10, %v6056_v39, %v9505_v17  ;;  %v16555_v43 = vsel %vm2511_vm6, %v16326_v26, %v9120_v35  ;;  %v20509_v35 = vld [vmem:[#allocation205_spill] sm:$0xff]  ;;  %v20513_v39 = vld [vmem:[#allocation144_spill] sm:$0xff] }
 0x52f   :  { %v9513_v49 = vpop.permute.xlu0 %9512  ;;  %v6185_v3 = vsel %vm2836_vm11, %v6121_v9, %v9519_v0  ;;  %v6186_v24 = vsel %vm2836_vm11, %v6122_v25, %v9520_v41  ;;  %v9130_v50 = vunpack.i.h.bf16 %v20507_v28  ;;  %v9129_v38 = vunpack.i.l.bf16 %v20507_v28  ;;  %v20514_v9 = vld [vmem:[#allocation269_spill] sm:$0xff] }
 0x530   :  { %v9528_v36 = vpop.permute.xlu1 %9527  ;;  %v9515_v6 = vunpack.i.h.bf16 %v9513_v49  ;;  %v9514_v15 = vunpack.i.l.bf16 %v9513_v49  ;;  %v16565_v5 = vsel %vm2511_vm6, %v16286_v55, %v9115_v23  ;;  %v16569_v17 = vsel %vm2511_vm6, %v16290_v31, %v9114_v51 }
 0x531   :  { %9802 = vrot.lane.b32.xlu0 %v20491_v42, %s10016_s1  ;;  %v9125_v40 = vunpack.i.h.bf16 %v20509_v35  ;;  %v5931_v41 = vsel %vm2576_vm7, %v16422_v22, %v9239_v56  ;;  %v5932_v62 = vsel %vm2576_vm7, %v16429_v61, %v9240_v34  ;;  %v6248_v20 = vpack.c.bf16 %v6186_v24, %v6185_v3  ;;  %v20511_v22 = vld [vmem:[#allocation172_spill] sm:$0xff]  ;;  %v20512_v34 = vld [vmem:[#allocation267_spill] sm:$0xff] }
 0x532   :  { %9817 = vrot.lane.b32.xlu1 %v20508_v8, %s10013_s24  ;;  %v6183_v0 = vsel %vm2836_vm11, %v6119_v45, %v9514_v15  ;;  %v6184_v49 = vsel %vm2836_vm11, %v6120_v10, %v9515_v6  ;;  %v9250_v47 = vunpack.i.h.bf16 %v20510_v7  ;;  %v9249_v55 = vunpack.i.l.bf16 %v20510_v7 }
 0x533   :  { %v9523_v26 = vpop.permute.xlu0 %9522  ;;  %v6247_v42 = vpack.c.bf16 %v6184_v49, %v6183_v0  ;;  %v5933_v31 = vsel %vm2576_vm7, %v16468_v18, %v9244_v4  ;;  %v5934_v23 = vsel %vm2576_vm7, %v16464_v59, %v9245_v2  ;;  %v9400_v51 = vunpack.i.h.bf16 %v20511_v22 }
 0x534   :  { %v9538_v37 = vpop.permute.xlu1 %9537  ;;  %v9399_v61 = vunpack.i.l.bf16 %v20511_v22  ;;  %v9405_v56 = vunpack.i.h.bf16 %v20512_v34  ;;  %v9404_v54 = vunpack.i.l.bf16 %v20512_v34  ;;  %v9530_v18 = vunpack.i.h.bf16 %v9528_v36  ;;  %v20516_v22 = vld [vmem:[#allocation257_spill] sm:$0xff] }
 0x535   :  { %9812 = vrot.lane.b32.xlu0 %v20506_v58, %s10013_s24  ;;  %7436 = vmatprep.mubr.msk.bf16.mxu1 %vm2969_vm12, %v6247_v42  ;;  %v9529_v59 = vunpack.i.l.bf16 %v9528_v36  ;;  %v9525_v2 = vunpack.i.h.bf16 %v9523_v26  ;;  %v9524_v4 = vunpack.i.l.bf16 %v9523_v26  ;;  %v9255_v25 = vunpack.i.h.bf16 %v20514_v9  ;;  %v20515_v42 = vld [vmem:[#allocation194_spill] sm:$0xff] }
 0x536   :  { %9827 = vrot.lane.b32.xlu1 %v20513_v39, %s10014_s25  ;;  %7437 = vmatmul.mubr.msk.bf16.vlgmr.msra.gmra.mrb[0].mxu1 %vm2969_vm12, %v6248_v20  ;;  %v9254_v6 = vunpack.i.l.bf16 %v20514_v9  ;;  %v9540_v15 = vunpack.i.h.bf16 %v9538_v37  ;;  %v9539_v3 = vunpack.i.l.bf16 %v9538_v37  ;;  %v5995_v20 = vsel %vm2641_vm8, %v5931_v41, %v9399_v61 }
 0x537   :  { %v9533_v58 = vpop.permute.xlu0 %9532  ;;  %v5996_v36 = vsel %vm2641_vm8, %v5932_v62, %v9400_v51  ;;  %v5997_v26 = vsel %vm2641_vm8, %v5933_v31, %v9404_v54  ;;  %v5998_v7 = vsel %vm2641_vm8, %v5934_v23, %v9405_v56  ;;  %v6059_v39 = vsel %vm2706_vm9, %v5995_v20, %v9524_v4 }
 0x538   :  { %v9548_v24 = vpop.permute.xlu1 %9547  ;;  %v9535_v0 = vunpack.i.h.bf16 %v9533_v58  ;;  %v9534_v49 = vunpack.i.l.bf16 %v9533_v58  ;;  %v6061_v37 = vsel %vm2706_vm9, %v5997_v26, %v9529_v59  ;;  %v6062_v34 = vsel %vm2706_vm9, %v5998_v7, %v9530_v18  ;;  %v20517_v59 = vld [vmem:[#allocation246_spill] sm:$0xff] }
 0x539   :  { %v9550_v45 = vunpack.i.h.bf16 %v9548_v24  ;;  %v9549_v10 = vunpack.i.l.bf16 %v9548_v24  ;;  %9822 = vrot.lane.b32.xlu0 %v20515_v42, %s10014_s25  ;;  %v6060_v58 = vsel %vm2706_vm9, %v5996_v36, %v9525_v2  ;;  %v6125_v41 = vsel %vm2771_vm10, %v6061_v37, %v9539_v3  ;;  %v20518_v24 = vld [vmem:[#allocation193_spill] sm:$0xff]  ;;  %v20520_v36 = vld [vmem:[#allocation238_spill] sm:$0xff]  ;;  %v20523_v37 = vld [vmem:[#allocation279_spill] sm:$0xff] }
 0x53a   :  { %9837 = vrot.lane.b32.xlu1 %v20516_v22, %s10015_s26  ;;  %v6126_v62 = vsel %vm2771_vm10, %v6062_v34, %v9540_v15  ;;  %v6123_v54 = vsel %vm2771_vm10, %v6059_v39, %v9534_v49  ;;  %v6124_v18 = vsel %vm2771_vm10, %v6060_v58, %v9535_v0  ;;  %v16616_v2 = vsel %vm2511_vm6, %v16357_v12, %v9129_v38  ;;  %v20524_v34 = vld [vmem:[#allocation228_spill] sm:$0xff] }
 0x53b   :  { %v9543_v9 = vpop.permute.xlu0 %9542  ;;  %v6189_v23 = vsel %vm2836_vm11, %v6125_v41, %v9549_v10  ;;  %v6190_v56 = vsel %vm2836_vm11, %v6126_v62, %v9550_v45  ;;  %v16622_v4 = vsel %vm2511_vm6, %v16341_v30, %v9130_v50  ;;  %v20519_v45 = vld [vmem:[#allocation10_spill] sm:$0xff]  ;;  %v9124_v12 = vunpack.i.l.bf16 %v20509_v35 }
 0x53c   :  { %v9558_v51 = vpop.permute.xlu1 %9557  ;;  %v9545_v31 = vunpack.i.h.bf16 %v9543_v9  ;;  %v9544_v61 = vunpack.i.l.bf16 %v9543_v9  ;;  %v9140_v10 = vunpack.i.h.bf16 %v20519_v45  ;;  %v9139_v0 = vunpack.i.l.bf16 %v20519_v45 }
 0x53d   :  { %9832 = vrot.lane.b32.xlu0 %v20517_v59, %s10015_s26  ;;  %v16635_v30 = vsel %vm2511_vm6, %v16304_v14, %v9125_v40  ;;  %v5935_v28 = vsel %vm2576_vm7, %v16439_v29, %v9249_v55  ;;  %v5936_v50 = vsel %vm2576_vm7, %v16455_v53, %v9250_v47  ;;  %v6250_v42 = vpack.c.bf16 %v6190_v56, %v6189_v23  ;;  %v20521_v14 = vld [vmem:[#allocation265_spill] sm:$0xff]  ;;  %v20522_v40 = vld [vmem:[#allocation270_spill] sm:$0xff] }
 0x53e   :  { %v6187_v15 = vsel %vm2836_vm11, %v6123_v54, %v9544_v61  ;;  %v6188_v3 = vsel %vm2836_vm11, %v6124_v18, %v9545_v31  ;;  %9847 = vrot.lane.b32.xlu1 %v20518_v24, %s10016_s1  ;;  %v9260_v26 = vunpack.i.h.bf16 %v20520_v36  ;;  %v9259_v7 = vunpack.i.l.bf16 %v20520_v36 }
 0x53f   :  { %v6249_v38 = vpack.c.bf16 %v6188_v3, %v6187_v15  ;;  %v9553_v49 = vpop.permute.xlu0 %9552  ;;  %v5937_v22 = vsel %vm2576_vm7, %v16498_v16, %v9254_v6  ;;  %v5938_v35 = vsel %vm2576_vm7, %v16494_v13, %v9255_v25  ;;  %v9410_v29 = vunpack.i.h.bf16 %v20521_v14  ;;  %v20525_v15 = vld [vmem:[#allocation195_spill] sm:$0xff] }
 0x540   :  { %v9568_v20 = vpop.permute.xlu1 %9567  ;;  %v9409_v53 = vunpack.i.l.bf16 %v20521_v14  ;;  %v9415_v47 = vunpack.i.h.bf16 %v20522_v40  ;;  %v9414_v55 = vunpack.i.l.bf16 %v20522_v40  ;;  %v9560_v16 = vunpack.i.h.bf16 %v9558_v51  ;;  %v20526_v40 = vld [vmem:[#allocation88_spill] sm:$0xff] }
 0x541   :  { %9842 = vrot.lane.b32.xlu0 %v20508_v8, %s10016_s1  ;;  %7440 = vmatprep.mubr.msk.bf16.mxu1 %vm2969_vm12, %v6249_v38  ;;  %v9559_v13 = vunpack.i.l.bf16 %v9558_v51  ;;  %v9555_v25 = vunpack.i.h.bf16 %v9553_v49  ;;  %v9554_v6 = vunpack.i.l.bf16 %v9553_v49  ;;  %v9265_v39 = vunpack.i.h.bf16 %v20524_v34 }
 0x542   :  { %9857 = vrot.lane.b32.xlu1 %v20523_v37, %s10013_s24  ;;  %7441 = vmatmul.mubr.msk.bf16.gmra.mrb[4].mxu1 %vm2969_vm12, %v6250_v42  ;;  %v9264_v58 = vunpack.i.l.bf16 %v20524_v34  ;;  %v9570_v9 = vunpack.i.h.bf16 %v9568_v20  ;;  %v9569_v41 = vunpack.i.l.bf16 %v9568_v20  ;;  %v5999_v54 = vsel %vm2641_vm8, %v5935_v28, %v9409_v53  ;;  %v20529_v34 = vld [vmem:[#allocation69_spill] sm:$0xff] }
 0x543   :  { %v9563_v8 = vpop.permute.xlu0 %9562  ;;  %v6000_v51 = vsel %vm2641_vm8, %v5936_v50, %v9410_v29  ;;  %v6001_v18 = vsel %vm2641_vm8, %v5937_v22, %v9414_v55  ;;  %v6002_v59 = vsel %vm2641_vm8, %v5938_v35, %v9415_v47  ;;  %v6063_v49 = vsel %vm2706_vm9, %v5999_v54, %v9554_v6  ;;  %v20528_v6 = vld [vmem:[#allocation101_spill] sm:$0xff] }
 0x544   :  { %v9578_v62 = vpop.permute.xlu1 %9577  ;;  %v9565_v23 = vunpack.i.h.bf16 %v9563_v8  ;;  %v9564_v56 = vunpack.i.l.bf16 %v9563_v8  ;;  %v6065_v3 = vsel %vm2706_vm9, %v6001_v18, %v9559_v13  ;;  %v6066_v38 = vsel %vm2706_vm9, %v6002_v59, %v9560_v16  ;;  %v20531_v59 = vld [vmem:[#allocation256_spill] sm:$0xff] }
 0x545   :  { %v9580_v31 = vunpack.i.h.bf16 %v9578_v62  ;;  %v9579_v61 = vunpack.i.l.bf16 %v9578_v62  ;;  %9852 = vrot.lane.b32.xlu0 %v20518_v24, %s10013_s24  ;;  %v6064_v42 = vsel %vm2706_vm9, %v6000_v51, %v9555_v25  ;;  %v6129_v28 = vsel %vm2771_vm10, %v6065_v3, %v9569_v41  ;;  %v20527_v25 = vld [vmem:[#allocation110_spill] sm:$0xff] }
 0x546   :  { %9867 = vrot.lane.b32.xlu1 %v20525_v15, %s10014_s25  ;;  %v6130_v50 = vsel %vm2771_vm10, %v6066_v38, %v9570_v9  ;;  %v6127_v29 = vsel %vm2771_vm10, %v6063_v49, %v9564_v56  ;;  %v6128_v53 = vsel %vm2771_vm10, %v6064_v42, %v9565_v23  ;;  %v16681_v47 = vsel %vm2511_vm6, %v16373_v19, %v9139_v0  ;;  %v20530_v23 = vld [vmem:[#allocation218_spill] sm:$0xff]  ;;  %v20534_v38 = vld [vmem:[#allocation81_spill] sm:$0xff] }
 0x547   :  { %v9573_v24 = vpop.permute.xlu0 %9572  ;;  %v6193_v35 = vsel %vm2836_vm11, %v6129_v28, %v9579_v61  ;;  %v6194_v14 = vsel %vm2836_vm11, %v6130_v50, %v9580_v31  ;;  %v16685_v55 = vsel %vm2511_vm6, %v16308_v52, %v9124_v12  ;;  %v9150_v8 = vunpack.i.h.bf16 %v20528_v6  ;;  %v20535_v42 = vld [vmem:[#allocation165_spill] sm:$0xff] }
 0x548   :  { %v9588_v20 = vpop.permute.xlu1 %9587  ;;  %v9575_v36 = vunpack.i.h.bf16 %v9573_v24  ;;  %v9574_v22 = vunpack.i.l.bf16 %v9573_v24  ;;  %v9135_v9 = vunpack.i.h.bf16 %v20529_v34  ;;  %v9134_v41 = vunpack.i.l.bf16 %v20529_v34 }
 0x549   :  { %9862 = vrot.lane.b32.xlu0 %v20526_v40, %s10014_s25  ;;  %v9149_v0 = vunpack.i.l.bf16 %v20528_v6  ;;  %v5939_v52 = vsel %vm2576_vm7, %v16474_v1, %v9259_v7  ;;  %v5940_v12 = vsel %vm2576_vm7, %v16478_v63, %v9260_v26  ;;  %v6252_v31 = vpack.c.bf16 %v6194_v14, %v6193_v35  ;;  %v20532_v1 = vld [vmem:[#allocation268_spill] sm:$0xff]  ;;  %v20533_v26 = vld [vmem:[#allocation273_spill] sm:$0xff] }
 0x54a   :  { %v6191_v16 = vsel %vm2836_vm11, %v6127_v29, %v9574_v22  ;;  %v6192_v13 = vsel %vm2836_vm11, %v6128_v53, %v9575_v36  ;;  %9877 = vrot.lane.b32.xlu1 %v20527_v25, %s10015_s26  ;;  %v9270_v56 = vunpack.i.h.bf16 %v20530_v23  ;;  %v9269_v54 = vunpack.i.l.bf16 %v20530_v23  ;;  %v20536_v25 = vld [vmem:[#allocation280_spill] sm:$0xff] }
 0x54b   :  { %v6251_v62 = vpack.c.bf16 %v6192_v13, %v6191_v16  ;;  %v9583_v19 = vpop.permute.xlu0 %9582  ;;  %v5941_v51 = vsel %vm2576_vm7, %v16513_v33, %v9264_v58  ;;  %v5942_v18 = vsel %vm2576_vm7, %v16509_v32, %v9265_v39  ;;  %v9420_v7 = vunpack.i.h.bf16 %v20532_v1 }
 0x54c   :  { %v9598_v61 = vpop.permute.xlu1 %9597  ;;  %v9419_v63 = vunpack.i.l.bf16 %v20532_v1  ;;  %v9425_v15 = vunpack.i.h.bf16 %v20533_v26  ;;  %v9424_v3 = vunpack.i.l.bf16 %v20533_v26  ;;  %v9590_v33 = vunpack.i.h.bf16 %v9588_v20 }
 0x54d   :  { %9872 = vrot.lane.b32.xlu0 %v20531_v59, %s10015_s26  ;;  %7444 = vmatprep.mubr.msk.bf16.mxu1 %vm2969_vm12, %v6251_v62  ;;  %v9589_v32 = vunpack.i.l.bf16 %v9588_v20  ;;  %v9585_v39 = vunpack.i.h.bf16 %v9583_v19  ;;  %v9584_v58 = vunpack.i.l.bf16 %v9583_v19  ;;  %v9275_v24 = vunpack.i.h.bf16 %v20535_v42 }
 0x54e   :  { %9887 = vrot.lane.b32.xlu1 %v20534_v38, %s10016_s1  ;;  %7445 = vmatmul.mubr.msk.bf16.gmra.mrb[8].mxu1 %vm2969_vm12, %v6252_v31  ;;  %v9274_v28 = vunpack.i.l.bf16 %v20535_v42  ;;  %v9600_v50 = vunpack.i.h.bf16 %v9598_v61  ;;  %v9599_v36 = vunpack.i.l.bf16 %v9598_v61  ;;  %v6003_v40 = vsel %vm2641_vm8, %v5939_v52, %v9419_v63 }
 0x54f   :  { %v9593_v49 = vpop.permute.xlu0 %9592  ;;  %v6004_v20 = vsel %vm2641_vm8, %v5940_v12, %v9420_v7  ;;  %v6005_v16 = vsel %vm2641_vm8, %v5941_v51, %v9424_v3  ;;  %v6006_v13 = vsel %vm2641_vm8, %v5942_v18, %v9425_v15  ;;  %v6067_v31 = vsel %vm2706_vm9, %v6003_v40, %v9584_v58 }
 0x550   :  { %v9608_v22 = vpop.permute.xlu1 %9607  ;;  %v9595_v29 = vunpack.i.h.bf16 %v9593_v49  ;;  %v9594_v53 = vunpack.i.l.bf16 %v9593_v49  ;;  %v6069_v62 = vsel %vm2706_vm9, %v6005_v16, %v9589_v32  ;;  %v6070_v19 = vsel %vm2706_vm9, %v6006_v13, %v9590_v33  ;;  %v20537_v32 = vld [vmem:[#allocation54_spill] sm:$0xff] }
 0x551   :  { %v9610_v35 = vunpack.i.h.bf16 %v9608_v22  ;;  %v9609_v14 = vunpack.i.l.bf16 %v9608_v22  ;;  %9882 = vrot.lane.b32.xlu0 %v20523_v37, %s10016_s1  ;;  %v6068_v61 = vsel %vm2706_vm9, %v6004_v20, %v9585_v39  ;;  %v6133_v52 = vsel %vm2771_vm10, %v6069_v62, %v9599_v36  ;;  %v20540_v49 = vld [vmem:[#allocation18_spill] sm:$0xff]  ;;  %v20543_v22 = vld [vmem:[#allocation235_spill] sm:$0xff] }
 0x552   :  { %9897 = vrot.lane.b32.xlu1 %v20536_v25, %s10013_s24  ;;  %v6134_v12 = vsel %vm2771_vm10, %v6070_v19, %v9600_v50  ;;  %v6131_v7 = vsel %vm2771_vm10, %v6067_v31, %v9594_v53  ;;  %v6132_v63 = vsel %vm2771_vm10, %v6068_v61, %v9595_v29  ;;  %v16741_v26 = vsel %vm2511_vm6, %v16361_v21, %v9140_v10  ;;  %v20542_v50 = vld [vmem:[#allocation113_spill] sm:$0xff]  ;;  %v20544_v62 = vld [vmem:[#allocation259_spill] sm:$0xff] }
 0x553   :  { %v9603_v37 = vpop.permute.xlu0 %9602  ;;  %v6197_v18 = vsel %vm2836_vm11, %v6133_v52, %v9609_v14  ;;  %v6198_v1 = vsel %vm2836_vm11, %v6134_v12, %v9610_v35  ;;  %v16745_v15 = vsel %vm2511_vm6, %v16322_v11, %v9135_v9  ;;  %v16755_v45 = vsel %vm2511_vm6, %v20482_v60, %v9150_v8  ;;  %v20545_v52 = vld [vmem:[#allocation281_spill] sm:$0xff] }
 0x554   :  { %v9618_v23 = vpop.permute.xlu1 %9617  ;;  %v9605_v51 = vunpack.i.h.bf16 %v9603_v37  ;;  %v9604_v59 = vunpack.i.l.bf16 %v9603_v37  ;;  %v16759_v21 = vsel %vm2511_vm6, %v20483_v44, %v9149_v0  ;;  %v16765_v11 = vsel %vm2511_vm6, %v16337_v27, %v9134_v41  ;;  %v20539_v44 = vld [vmem:[#allocation221_spill] sm:$0xff] }
 0x555   :  { %9892 = vrot.lane.b32.xlu0 %v20534_v38, %s10013_s24  ;;  %v20538_v38 = vld [vmem:[#allocation182_spill] sm:$0xff]  ;;  %v5943_v6 = vsel %vm2576_vm7, %v16486_v57, %v9269_v54  ;;  %v5944_v60 = vsel %vm2576_vm7, %v16490_v48, %v9270_v56  ;;  %v6254_v8 = vpack.c.bf16 %v6198_v1, %v6197_v18  ;;  %v9280_v0 = vunpack.i.h.bf16 %v20539_v44  ;;  %v20541_v57 = vld [vmem:[#allocation271_spill] sm:$0xff] }
 0x556   :  { %v6195_v3 = vsel %vm2836_vm11, %v6131_v7, %v9604_v59  ;;  %v6196_v33 = vsel %vm2836_vm11, %v6132_v63, %v9605_v51  ;;  %9907 = vrot.lane.b32.xlu1 %v20537_v32, %s10014_s25  ;;  %v9145_v39 = vunpack.i.h.bf16 %v20538_v38  ;;  %v9279_v34 = vunpack.i.l.bf16 %v20539_v44 }
 0x557   :  { %v6253_v10 = vpack.c.bf16 %v6196_v33, %v6195_v3  ;;  %v9613_v9 = vpop.permute.xlu0 %9612  ;;  %v5945_v27 = vsel %vm2576_vm7, %v16569_v17, %v9274_v28  ;;  %v5946_v41 = vsel %vm2576_vm7, %v16565_v5, %v9275_v24  ;;  %v9430_v54 = vunpack.i.h.bf16 %v20541_v57 }
 0x558   :  { %v9628_v58 = vpop.permute.xlu1 %9627  ;;  %v9429_v48 = vunpack.i.l.bf16 %v20541_v57  ;;  %v9435_v56 = vunpack.i.h.bf16 %v16237_v46  ;;  %v9434_v42 = vunpack.i.l.bf16 %v16237_v46  ;;  %v9620_v17 = vunpack.i.h.bf16 %v9618_v23 }
 0x559   :  { %9902 = vrot.lane.b32.xlu0 %v20540_v49, %s10014_s25  ;;  %7448 = vmatprep.mubr.msk.bf16.mxu1 %vm2969_vm12, %v6253_v10  ;;  %v9619_v5 = vunpack.i.l.bf16 %v9618_v23  ;;  %v9615_v24 = vunpack.i.h.bf16 %v9613_v9  ;;  %v9614_v28 = vunpack.i.l.bf16 %v9613_v9  ;;  %v9285_v35 = vunpack.i.h.bf16 %v20543_v22  ;;  %v20548_v49 = vld [vmem:[#allocation157_spill] sm:$0xff] }
 0x55a   :  { %9917 = vrot.lane.b32.xlu1 %v20542_v50, %s10015_s26  ;;  %7449 = vmatmul.mubr.msk.bf16.gmra.mrb[12].mxu1 %vm2969_vm12, %v6254_v8  ;;  %v9284_v14 = vunpack.i.l.bf16 %v20543_v22  ;;  %v9630_v29 = vunpack.i.h.bf16 %v9628_v58  ;;  %v9629_v53 = vunpack.i.l.bf16 %v9628_v58  ;;  %v6007_v19 = vsel %vm2641_vm8, %v5943_v6, %v9429_v48  ;;  %v20549_v48 = vld [vmem:[#allocation159_spill] sm:$0xff] }
 0x55b   :  { %v9623_v36 = vpop.permute.xlu0 %9622  ;;  %v6008_v31 = vsel %vm2641_vm8, %v5944_v60, %v9430_v54  ;;  %v6009_v61 = vsel %vm2641_vm8, %v5945_v27, %v9434_v42  ;;  %v6010_v37 = vsel %vm2641_vm8, %v5946_v41, %v9435_v56  ;;  %v6071_v51 = vsel %vm2706_vm9, %v6007_v19, %v9614_v28  ;;  %v20546_v60 = vld [vmem:[#allocation207_spill] sm:$0xff]  ;;  %v20547_v41 = vld [vmem:[#allocation24_spill] sm:$0xff] }
 0x55c   :  { %v9638_v40 = vpop.permute.xlu1 %9637  ;;  %v9625_v46 = vunpack.i.h.bf16 %v9623_v36  ;;  %v9624_v13 = vunpack.i.l.bf16 %v9623_v36  ;;  %v6073_v12 = vsel %vm2706_vm9, %v6009_v61, %v9619_v5  ;;  %v6074_v23 = vsel %vm2706_vm9, %v6010_v37, %v9620_v17  ;;  %v20550_v17 = vld [vmem:[#allocation167_spill] sm:$0xff] }
 0x55d   :  { %v9640_v20 = vunpack.i.h.bf16 %v9638_v40  ;;  %v9639_v16 = vunpack.i.l.bf16 %v9638_v40  ;;  %9912 = vrot.lane.b32.xlu0 %v20544_v62, %s10015_s26  ;;  %v6072_v59 = vsel %vm2706_vm9, %v6008_v31, %v9615_v24  ;;  %v6137_v1 = vsel %vm2771_vm10, %v6073_v12, %v9629_v53  ;;  %v20552_v53 = vld [vmem:[#allocation240_spill] sm:$0xff] }
 0x55e   :  { %9927 = vrot.lane.b32.xlu1 %v20545_v52, %s10016_s1  ;;  %v6138_v7 = vsel %vm2771_vm10, %v6074_v23, %v9630_v29  ;;  %v6135_v9 = vsel %vm2771_vm10, %v6071_v51, %v9624_v13  ;;  %v6136_v6 = vsel %vm2771_vm10, %v6072_v59, %v9625_v46  ;;  %v9159_v8 = vunpack.i.l.bf16 %v20546_v60  ;;  %v20551_v29 = vld [vmem:[#allocation64_spill] sm:$0xff] }
 0x55f   :  { %v9633_v18 = vpop.permute.xlu0 %9632  ;;  %v6201_v32 = vsel %vm2836_vm11, %v6137_v1, %v9639_v16  ;;  %v6202_v10 = vsel %vm2836_vm11, %v6138_v7, %v9640_v20  ;;  %v9144_v58 = vunpack.i.l.bf16 %v20538_v38  ;;  %v5947_v57 = vsel %vm2576_vm7, %v20548_v49, %v9279_v34  ;;  %v20553_v16 = vld [vmem:[#allocation107_spill] sm:$0xff]  ;;  %v20555_v1 = vld [vmem:[#allocation68_spill] sm:$0xff]  ;;  %v20556_v7 = vld [vmem:[#allocation37_spill] sm:$0xff] }
 0x560   :  { %v9648_v63 = vpop.permute.xlu1 %9647  ;;  %v9635_v3 = vunpack.i.h.bf16 %v9633_v18  ;;  %v9634_v33 = vunpack.i.l.bf16 %v9633_v18  ;;  %v5948_v54 = vsel %vm2576_vm7, %v16555_v43, %v9280_v0  ;;  %v9290_v56 = vunpack.i.h.bf16 %v20549_v48 }
 0x561   :  { %9922 = vrot.lane.b32.xlu0 %v20536_v25, %s10016_s1  ;;  %v9289_v50 = vunpack.i.l.bf16 %v20549_v48  ;;  %v9440_v5 = vunpack.i.h.bf16 %v20550_v17  ;;  %v9439_v24 = vunpack.i.l.bf16 %v20550_v17  ;;  %v6256_v28 = vpack.c.bf16 %v6202_v10, %v6201_v32  ;;  %v20557_v10 = vld [vmem:[#allocation264_spill] sm:$0xff] }
 0x562   :  { %v6199_v44 = vsel %vm2836_vm11, %v6135_v9, %v9634_v33  ;;  %v6200_v27 = vsel %vm2836_vm11, %v6136_v6, %v9635_v3  ;;  %9937 = vrot.lane.b32.xlu1 %v20547_v41, %s10013_s24  ;;  %v5949_v22 = vsel %vm2576_vm7, %v16685_v55, %v9284_v14  ;;  %v5950_v34 = vsel %vm2576_vm7, %v16635_v30, %v9285_v35  ;;  %v20554_v14 = vld [vmem:[#allocation30_spill] sm:$0xff] }
 0x563   :  { %v6255_v25 = vpack.c.bf16 %v6200_v27, %v6199_v44  ;;  %v9643_v42 = vpop.permute.xlu0 %9642  ;;  %v9295_v43 = vunpack.i.h.bf16 %v20551_v29  ;;  %v9294_v0 = vunpack.i.l.bf16 %v20551_v29  ;;  %v9305_v40 = vunpack.i.h.bf16 %v20552_v53  ;;  %v20560_v29 = vld [vmem:[#allocation136_spill] sm:$0xff] }
 0x564   :  { %v9658_v36 = vpop.permute.xlu1 %9657  ;;  %v9304_v20 = vunpack.i.l.bf16 %v20552_v53  ;;  %v9445_v46 = vunpack.i.h.bf16 %v20553_v16  ;;  %v9444_v55 = vunpack.i.l.bf16 %v20553_v16  ;;  %v9650_v30 = vunpack.i.h.bf16 %v9648_v63 }
 0x565   :  { %9932 = vrot.lane.b32.xlu0 %v20545_v52, %s10013_s24  ;;  %7452 = vmatprep.mubr.msk.bf16.mxu1 %vm2969_vm12, %v6255_v25  ;;  %v9649_v35 = vunpack.i.l.bf16 %v9648_v63  ;;  %v9645_v13 = vunpack.i.h.bf16 %v9643_v42  ;;  %v9644_v62 = vunpack.i.l.bf16 %v9643_v42  ;;  %v6011_v31 = vsel %vm2641_vm8, %v5947_v57, %v9439_v24 }
 0x566   :  { %9947 = vrot.lane.b32.xlu1 %v20554_v14, %s10014_s25  ;;  %7453 = vmatmul.mubr.msk.bf16.gmra.mrb[16].mxu1 %vm2969_vm12, %v6256_v28  ;;  %v6012_v61 = vsel %vm2641_vm8, %v5948_v54, %v9440_v5  ;;  %v9660_v37 = vunpack.i.h.bf16 %v9658_v36  ;;  %v9659_v52 = vunpack.i.l.bf16 %v9658_v36  ;;  %v9450_v3 = vunpack.i.h.bf16 %v20556_v7  ;;  %v20558_v36 = vld [vmem:[#allocation262_spill] sm:$0xff] }
 0x567   :  { %v9653_v19 = vpop.permute.xlu0 %9652  ;;  %v9449_v63 = vunpack.i.l.bf16 %v20556_v7  ;;  %v6013_v33 = vsel %vm2641_vm8, %v5949_v22, %v9444_v55  ;;  %v6014_v32 = vsel %vm2641_vm8, %v5950_v34, %v9445_v46  ;;  %v6075_v44 = vsel %vm2706_vm9, %v6011_v31, %v9644_v62  ;;  %v20559_v22 = vld [vmem:[#allocation36_spill] sm:$0xff] }
 0x568   :  { %v9668_v12 = vpop.permute.xlu1 %9667  ;;  %v9655_v59 = vunpack.i.h.bf16 %v9653_v19  ;;  %v9654_v18 = vunpack.i.l.bf16 %v9653_v19  ;;  %v6077_v9 = vsel %vm2706_vm9, %v6013_v33, %v9649_v35  ;;  %v6078_v6 = vsel %vm2706_vm9, %v6014_v32, %v9650_v30  ;;  %v20561_v55 = vld [vmem:[#allocation32_spill] sm:$0xff]  ;;  %v20562_v35 = vld [vmem:[#allocation58_spill] sm:$0xff] }
 0x569   :  { %v9670_v23 = vunpack.i.h.bf16 %v9668_v12  ;;  %v9669_v51 = vunpack.i.l.bf16 %v9668_v12  ;;  %9942 = vrot.lane.b32.xlu0 %v20555_v1, %s10014_s25  ;;  %v6076_v27 = vsel %vm2706_vm9, %v6012_v61, %v9645_v13  ;;  %v6141_v57 = vsel %vm2771_vm10, %v6077_v9, %v9659_v52  ;;  %v20565_v52 = vld [vmem:[#allocation272_spill] sm:$0xff] }
 0x56a   :  { %9957 = vrot.lane.b32.xlu1 %v20557_v10, %s10015_s26  ;;  %v6142_v54 = vsel %vm2771_vm10, %v6078_v6, %v9660_v37  ;;  %v6139_v24 = vsel %vm2771_vm10, %v6075_v44, %v9654_v18  ;;  %v6140_v28 = vsel %vm2771_vm10, %v6076_v27, %v9655_v59  ;;  %v5894_v34 = vsel %vm2511_vm6, %v20559_v22, %v9145_v39  ;;  %v20566_v59 = vld [vmem:[#allocation132_spill] sm:$0xff] }
 0x56b   :  { %v9663_v49 = vpop.permute.xlu0 %9662  ;;  %v6205_v17 = vsel %vm2836_vm11, %v6141_v57, %v9669_v51  ;;  %v6206_v5 = vsel %vm2836_vm11, %v6142_v54, %v9670_v23  ;;  %v5893_v53 = vsel %vm2511_vm6, %v20560_v29, %v9144_v58  ;;  %v5951_v14 = vsel %vm2576_vm7, %v16616_v2, %v9289_v50  ;;  %v20567_v57 = vld [vmem:[#allocation137_spill] sm:$0xff] }
 0x56c   :  { %v9678_v48 = vpop.permute.xlu1 %9677  ;;  %v9665_v25 = vunpack.i.h.bf16 %v9663_v49  ;;  %v9664_v42 = vunpack.i.l.bf16 %v9663_v49  ;;  %v5952_v30 = vsel %vm2576_vm7, %v16622_v4, %v9290_v56  ;;  %v9300_v39 = vunpack.i.h.bf16 %v20562_v35 }
 0x56d   :  { %9952 = vrot.lane.b32.xlu0 %v20558_v36, %s10015_s26  ;;  %v5953_v58 = vsel %vm2576_vm7, %v16765_v11, %v9294_v0  ;;  %v5954_v62 = vsel %vm2576_vm7, %v16745_v15, %v9295_v43  ;;  %v5957_v19 = vsel %vm2576_vm7, %v5893_v53, %v9304_v20  ;;  %v6258_v31 = vpack.c.bf16 %v6206_v5, %v6205_v17  ;;  %v20563_v11 = vld [vmem:[#allocation96_spill] sm:$0xff] }
 0x56e   :  { %v6203_v16 = vsel %vm2836_vm11, %v6139_v24, %v9664_v42  ;;  %v6204_v46 = vsel %vm2836_vm11, %v6140_v28, %v9665_v25  ;;  %9967 = vrot.lane.b32.xlu1 %v20561_v55, %s10016_s1  ;;  %v9299_v37 = vunpack.i.l.bf16 %v20562_v35  ;;  %v5958_v2 = vsel %vm2576_vm7, %v5894_v34, %v9305_v40  ;;  %v20564_v43 = vld [vmem:[#allocation216_spill] sm:$0xff] }
 0x56f   :  { %v6257_v13 = vpack.c.bf16 %v6204_v46, %v6203_v16  ;;  %v9673_v38 = vpop.permute.xlu0 %9672  ;;  %v6015_v4 = vsel %vm2641_vm8, %v5951_v14, %v9449_v63  ;;  %v6016_v56 = vsel %vm2641_vm8, %v5952_v30, %v9450_v3  ;;  %v9455_v50 = vunpack.i.h.bf16 %v20563_v11  ;;  %v20568_v46 = vld [vmem:[#allocation20_spill] sm:$0xff] }
 0x570   :  { %v9688_v61 = vpop.permute.xlu1 %9687  ;;  %v9454_v15 = vunpack.i.l.bf16 %v20563_v11  ;;  %v9465_v0 = vunpack.i.h.bf16 %v20564_v43  ;;  %v9464_v20 = vunpack.i.l.bf16 %v20564_v43  ;;  %v9680_v40 = vunpack.i.h.bf16 %v9678_v48  ;;  %v20570_v30 = vld [vmem:[#allocation28_spill] sm:$0xff] }
 0x571   :  { %9962 = vrot.lane.b32.xlu0 %v20547_v41, %s10016_s1  ;;  %7456 = vmatprep.mubr.msk.bf16.mxu1 %vm2969_vm12, %v6257_v13  ;;  %v9679_v12 = vunpack.i.l.bf16 %v9678_v48  ;;  %v9675_v23 = vunpack.i.h.bf16 %v9673_v38  ;;  %v9674_v51 = vunpack.i.l.bf16 %v9673_v38  ;;  %v9460_v18 = vunpack.i.h.bf16 %v20566_v59 }
 0x572   :  { %9977 = vrot.lane.b32.xlu1 %v20565_v52, %s10013_s24  ;;  %7457 = vmatmul.mubr.msk.bf16.gmra.mrb[20].mxu1 %vm2969_vm12, %v6258_v31  ;;  %v9459_v1 = vunpack.i.l.bf16 %v20566_v59  ;;  %v9690_v7 = vunpack.i.h.bf16 %v9688_v61  ;;  %v9689_v3 = vunpack.i.l.bf16 %v9688_v61  ;;  %v6017_v6 = vsel %vm2641_vm8, %v5953_v58, %v9454_v15  ;;  %v20571_v58 = vld [vmem:[#allocation40_spill] sm:$0xff] }
 0x573   :  { %v9683_v41 = vpop.permute.xlu0 %9682  ;;  %v6018_v44 = vsel %vm2641_vm8, %v5954_v62, %v9455_v50  ;;  %v6021_v27 = vsel %vm2641_vm8, %v5957_v19, %v9464_v20  ;;  %v6022_v49 = vsel %vm2641_vm8, %v5958_v2, %v9465_v0  ;;  %v6081_v54 = vsel %vm2706_vm9, %v6017_v6, %v9679_v12 }
 0x574   :  { %v9698_v63 = vpop.permute.xlu1 %9697  ;;  %v9685_v10 = vunpack.i.h.bf16 %v9683_v41  ;;  %v9684_v9 = vunpack.i.l.bf16 %v9683_v41  ;;  %v6082_v48 = vsel %vm2706_vm9, %v6018_v44, %v9680_v40  ;;  %v6079_v25 = vsel %vm2706_vm9, %v6015_v4, %v9674_v51 }
 0x575   :  { %v9700_v33 = vunpack.i.h.bf16 %v9698_v63  ;;  %v9699_v32 = vunpack.i.l.bf16 %v9698_v63  ;;  %9972 = vrot.lane.b32.xlu0 %v20561_v55, %s10013_s24  ;;  %v6080_v42 = vsel %vm2706_vm9, %v6016_v56, %v9675_v23  ;;  %v6145_v5 = vsel %vm2771_vm10, %v6081_v54, %v9689_v3  ;;  %v20569_v55 = vld [vmem:[#allocation210_spill] sm:$0xff]  ;;  %v20575_v23 = vld [vmem:[#allocation183_spill] sm:$0xff] }
 0x576   :  { %9987 = vrot.lane.b32.xlu1 %v20567_v57, %s10015_s26  ;;  %v6146_v24 = vsel %vm2771_vm10, %v6082_v48, %v9690_v7  ;;  %v6143_v53 = vsel %vm2771_vm10, %v6079_v25, %v9684_v9  ;;  %v6144_v16 = vsel %vm2771_vm10, %v6080_v42, %v9685_v10  ;;  %v6085_v14 = vsel %vm2706_vm9, %v6021_v27, %v20569_v55  ;;  %v20576_v63 = vld [vmem:[#allocation31_spill] sm:$0xff]  ;;  %v20578_v25 = vld [vmem:[#allocation208_spill] sm:$0xff] }
 0x577   :  { %v9693_v17 = vpop.permute.xlu0 %9692  ;;  %v6209_v34 = vsel %vm2836_vm11, %v6145_v5, %v9699_v32  ;;  %v6210_v29 = vsel %vm2836_vm11, %v6146_v24, %v9700_v33  ;;  %v6086_v35 = vsel %vm2706_vm9, %v6022_v49, %v20570_v30  ;;  %v16930_v62 = vsel %vm2511_vm6, %v20571_v58, %v9159_v8  ;;  %v20573_v8 = vld [vmem:[#allocation25_spill] sm:$0xff]  ;;  %v20577_v32 = vld [vmem:[#allocation139_spill] sm:$0xff] }
 0x578   :  { %v9708_v28 = vpop.permute.xlu1 %9707  ;;  %v9695_v36 = vunpack.i.h.bf16 %v9693_v17  ;;  %v9694_v22 = vunpack.i.l.bf16 %v9693_v17  ;;  %v5955_v19 = vsel %vm2576_vm7, %v16681_v47, %v9299_v37  ;;  %v5956_v31 = vsel %vm2576_vm7, %v16741_v26, %v9300_v39  ;;  %v20572_v47 = vld [vmem:[#allocation151_spill] sm:$0xff]  ;;  %v20574_v37 = vld [vmem:[#allocation112_spill] sm:$0xff] }
 0x579   :  { %9982 = vrot.lane.b32.xlu0 %v20568_v46, %s10014_s25  ;;  %v6019_v4 = vsel %vm2641_vm8, %v5955_v19, %v9459_v1  ;;  %v6260_v56 = vpack.c.bf16 %v6210_v29, %v6209_v34  ;;  %v9160_v43 = vunpack.i.h.bf16 %v20546_v60  ;;  %v6020_v0 = vsel %vm2641_vm8, %v5956_v31, %v9460_v18  ;;  %v20580_v19 = vld [vmem:[#allocation42_spill] sm:$0xff] }
 0x57a   :  { %v6207_v13 = vsel %vm2836_vm11, %v6143_v53, %v9694_v22  ;;  %v6208_v38 = vsel %vm2836_vm11, %v6144_v16, %v9695_v36  ;;  %v6149_v26 = vsel %vm2771_vm10, %v6085_v14, %v20572_v47  ;;  %v6150_v39 = vsel %vm2771_vm10, %v6086_v35, %v20573_v8 }
 0x57b   :  { %v6259_v61 = vpack.c.bf16 %v6208_v38, %v6207_v13  ;;  %v9703_v2 = vpop.permute.xlu0 %9702  ;;  %v9310_v20 = vunpack.i.h.bf16 %v20574_v37  ;;  %v9309_v40 = vunpack.i.l.bf16 %v20574_v37  ;;  %v9469_v51 = vunpack.i.l.bf16 %v20575_v23  ;;  %v20582_v37 = vld [vmem:[#allocation156_spill] sm:$0xff] }
 0x57c   :  { %v9718_v11 = vpop.permute.xlu1 %9717  ;;  %v9705_v50 = vunpack.i.h.bf16 %v9703_v2  ;;  %v9704_v15 = vunpack.i.l.bf16 %v9703_v2  ;;  %v9710_v41 = vunpack.i.h.bf16 %v9708_v28  ;;  %v9709_v59 = vunpack.i.l.bf16 %v9708_v28 }
 0x57d   :  { %9992 = vrot.lane.b32.xlu0 %v20565_v52, %s10016_s1  ;;  %7460 = vmatprep.mubr.msk.bf16.mxu1 %vm2969_vm12, %v6259_v61  ;;  %v9470_v52 = vunpack.i.h.bf16 %v20575_v23  ;;  %v6213_v33 = vsel %vm2836_vm11, %v6149_v26, %v20576_v63  ;;  %v6214_v10 = vsel %vm2836_vm11, %v6150_v39, %v20577_v32  ;;  %v9720_v9 = vunpack.i.h.bf16 %v9718_v11 }
 0x57e   :  { %v6083_v12 = vsel %vm2706_vm9, %v6019_v4, %v9704_v15  ;;  %v6084_v60 = vsel %vm2706_vm9, %v6020_v0, %v9705_v50  ;;  %7461 = vmatmul.mubr.msk.bf16.gmra.mrb[24].mxu1 %vm2969_vm12, %v6260_v56  ;;  %v9719_v6 = vunpack.i.l.bf16 %v9718_v11  ;;  %v9155_v42 = vunpack.i.h.bf16 %v20578_v25  ;;  %v20581_v11 = vld [vmem:[#allocation215_spill] sm:$0xff] }
 0x57f   :  { %v9713_v18 = vpop.permute.xlu0 %9712  ;;  %v6147_v44 = vsel %vm2771_vm10, %v6083_v12, %v9709_v59  ;;  %v6148_v27 = vsel %vm2771_vm10, %v6084_v60, %v9710_v41  ;;  %v5960_v17 = vsel %vm2576_vm7, %v16755_v45, %v9310_v20  ;;  %v5959_v5 = vsel %vm2576_vm7, %v16759_v21, %v9309_v40  ;;  %v20579_v45 = vld [vmem:[#allocation179_spill] sm:$0xff]  ;;  %v20583_v40 = vld [vmem:[#allocation141_spill] sm:$0xff] }
 0x580   :  { %v9728_v1 = vpop.permute.xlu1 %9727  ;;  %v9715_v7 = vunpack.i.h.bf16 %v9713_v18  ;;  %v9714_v3 = vunpack.i.l.bf16 %v9713_v18  ;;  %v9154_v36 = vunpack.i.l.bf16 %v20578_v25  ;;  %v6024_v22 = vsel %vm2641_vm8, %v5960_v17, %v9470_v52  ;;  %v20584_v52 = vld [vmem:[#allocation242_spill] sm:$0xff]  ;;  %v20585_v18 = vld [vmem:[#allocation169_spill] sm:$0xff] }
 0x581   :  { %v9730_v49 = vunpack.i.h.bf16 %v9728_v1  ;;  %v9729_v57 = vunpack.i.l.bf16 %v9728_v1  ;;  %v6023_v34 = vsel %vm2641_vm8, %v5959_v5, %v9469_v51  ;;  %v6262_v53 = vpack.c.bf16 %v6214_v10, %v6213_v33 }
 0x582   :  { %v6211_v54 = vsel %vm2836_vm11, %v6147_v44, %v9714_v3  ;;  %v6212_v48 = vsel %vm2836_vm11, %v6148_v27, %v9715_v7  ;;  %v6087_v16 = vsel %vm2706_vm9, %v6023_v34, %v9719_v6  ;;  %v6088_v46 = vsel %vm2706_vm9, %v6024_v22, %v9720_v9 }
 0x583   :  { %v6261_v24 = vpack.c.bf16 %v6212_v48, %v6211_v54  ;;  %v9723_v28 = vpop.permute.xlu0 %9722  ;;  %v9315_v21 = vunpack.i.h.bf16 %v20579_v45  ;;  %v9314_v13 = vunpack.i.l.bf16 %v20579_v45  ;;  %v6151_v38 = vsel %vm2771_vm10, %v6087_v16, %v9729_v57  ;;  %v20587_v16 = vld [vmem:[#allocation11_spill] sm:$0xff] }
 0x584   :  { %v9738_v29 = vpop.permute.xlu1 %9737  ;;  %v6152_v58 = vsel %vm2771_vm10, %v6088_v46, %v9730_v49  ;;  %v9475_v31 = vunpack.i.h.bf16 %v20580_v19  ;;  %v9474_v61 = vunpack.i.l.bf16 %v20580_v19  ;;  %v5900_v50 = vsel %vm2511_vm6, %v20581_v11, %v9160_v43 }
 0x585   :  { %v9740_v14 = vunpack.i.h.bf16 %v9738_v29  ;;  %v9739_v35 = vunpack.i.l.bf16 %v9738_v29  ;;  %7464 = vmatprep.mubr.msk.bf16.mxu1 %vm2969_vm12, %v6261_v24  ;;  %v9725_v0 = vunpack.i.h.bf16 %v9723_v28  ;;  %v9724_v26 = vunpack.i.l.bf16 %v9723_v28  ;;  %v20586_v28 = vld [vmem:[#allocation78_spill] sm:$0xff] }
 0x586   :  { %7465 = vmatmul.mubr.msk.bf16.gmra.mrb[28].mxu1 %vm2969_vm12, %v6262_v53  ;;  %v5897_v20 = vsel %vm2511_vm6, %v20582_v37, %v9154_v36  ;;  %v5898_v12 = vsel %vm2511_vm6, %v20583_v40, %v9155_v42  ;;  %v9320_v51 = vunpack.i.h.bf16 %v20584_v52  ;;  %v9319_v41 = vunpack.i.l.bf16 %v20584_v52  ;;  %v20591_v52 = vld [vmem:[#allocation155_spill] sm:$0xff] }
 0x587   :  { %v6215_v2 = vsel %vm2836_vm11, %v6151_v38, %v9739_v35  ;;  %v6216_v4 = vsel %vm2836_vm11, %v6152_v58, %v9740_v14  ;;  %v9733_v56 = vpop.permute.xlu0 %9732  ;;  %v5961_v59 = vsel %vm2576_vm7, %v5897_v20, %v9314_v13  ;;  %v5962_v43 = vsel %vm2576_vm7, %v5898_v12, %v9315_v21 }
 0x588   :  { %v6263_v15 = vpack.c.bf16 %v6216_v4, %v6215_v2  ;;  %v9748_v39 = vpop.permute.xlu1 %9747  ;;  %v9735_v60 = vunpack.i.h.bf16 %v9733_v56  ;;  %v9734_v23 = vunpack.i.l.bf16 %v9733_v56  ;;  %v9480_v1 = vunpack.i.h.bf16 %v20585_v18  ;;  %v20589_v56 = vld [vmem:[#allocation123_spill] sm:$0xff] }
 0x589   :  { %v9479_v7 = vunpack.i.l.bf16 %v20585_v18  ;;  %v6025_v3 = vsel %vm2641_vm8, %v5961_v59, %v9474_v61  ;;  %v6026_v33 = vsel %vm2641_vm8, %v5962_v43, %v9475_v31  ;;  %v9750_v57 = vunpack.i.h.bf16 %v9748_v39  ;;  %v20592_v43 = vld [vmem:[#allocation200_spill] sm:$0xff] }
 0x58a   :  { %7468 = vmatprep.mubr.msk.bf16.mxu1 %vm2969_vm12, %v6263_v15  ;;  %v6089_v9 = vsel %vm2706_vm9, %v6025_v3, %v9724_v26  ;;  %v6090_v6 = vsel %vm2706_vm9, %v6026_v33, %v9725_v0  ;;  %v9749_v54 = vunpack.i.l.bf16 %v9748_v39  ;;  %v9015_v36 = vunpack.i.h.bf16 %v20586_v28  ;;  %v20593_v33 = vld [vmem:[#allocation16_spill] sm:$0xff] }
 0x58b   :  { %v9743_v10 = vpop.permute.xlu0 %9742  ;;  %v6153_v48 = vsel %vm2771_vm10, %v6089_v9, %v9734_v23  ;;  %v6154_v25 = vsel %vm2771_vm10, %v6090_v6, %v9735_v60  ;;  %v5964_v22 = vsel %vm2576_vm7, %v5900_v50, %v9320_v51  ;;  %v5963_v34 = vsel %vm2576_vm7, %v16930_v62, %v9319_v41  ;;  %v20588_v62 = vld [vmem:[#allocation249_spill] sm:$0xff]  ;;  %v20590_v60 = vld [vmem:[#allocation219_spill] sm:$0xff] }
 0x58c   :  { %v9758_v44 = vpop.permute.xlu1 %9757  ;;  %v9745_v27 = vunpack.i.h.bf16 %v9743_v10  ;;  %v9744_v49 = vunpack.i.l.bf16 %v9743_v10  ;;  %v9165_v46 = vunpack.i.h.bf16 %v20587_v16  ;;  %v9164_v14 = vunpack.i.l.bf16 %v20587_v16  ;;  %v20598_v16 = vld [vmem:[#allocation168_spill] sm:$0xff] }
 0x58d   :  { %v9760_v42 = vunpack.i.h.bf16 %v9758_v44  ;;  %v9759_v17 = vunpack.i.l.bf16 %v9758_v44  ;;  %v6028_v35 = vsel %vm2641_vm8, %v5964_v22, %v9480_v1  ;;  %v6027_v45 = vsel %vm2641_vm8, %v5963_v34, %v9479_v7  ;;  %v20595_v22 = vld [vmem:[#allocation83_spill] sm:$0xff] }
 0x58e   :  { %v6217_v5 = vsel %vm2836_vm11, %v6153_v48, %v9744_v49  ;;  %v6218_v24 = vsel %vm2836_vm11, %v6154_v25, %v9745_v27  ;;  %v6091_v13 = vsel %vm2706_vm9, %v6027_v45, %v9749_v54  ;;  %v6092_v38 = vsel %vm2706_vm9, %v6028_v35, %v9750_v57 }
 0x58f   :  { %v6264_v29 = vpack.c.bf16 %v6218_v24, %v6217_v5  ;;  %v9753_v53 = vpop.permute.xlu0 %9752  ;;  %v9325_v31 = vunpack.i.h.bf16 %v20588_v62  ;;  %v9324_v61 = vunpack.i.l.bf16 %v20588_v62  ;;  %v6155_v2 = vsel %vm2771_vm10, %v6091_v13, %v9759_v17 }
 0x590   :  { %v9768_v21 = vpop.permute.xlu1 %9767  ;;  %v6156_v4 = vsel %vm2771_vm10, %v6092_v38, %v9760_v42  ;;  %v9485_v11 = vunpack.i.h.bf16 %v20589_v56  ;;  %v9484_v50 = vunpack.i.l.bf16 %v20589_v56  ;;  %v9014_v39 = vunpack.i.l.bf16 %v20586_v28  ;;  %v20594_v42 = vld [vmem:[#allocation84_spill] sm:$0xff]  ;;  %v20601_v38 = vld [vmem:[#allocation227_spill] sm:$0xff] }
 0x591   :  { %v9770_v58 = vunpack.i.h.bf16 %v9768_v21  ;;  %v9769_v19 = vunpack.i.l.bf16 %v9768_v21  ;;  %7469 = vmatmul.mubr.msk.bf16.gmra.mrb[32].mxu1 %vm2969_vm12, %v6264_v29  ;;  %v9755_v20 = vunpack.i.h.bf16 %v9753_v53  ;;  %v9754_v40 = vunpack.i.l.bf16 %v9753_v53  ;;  %v20596_v29 = vld [vmem:[#allocation196_spill] sm:$0xff]  ;;  %v20600_v21 = vld [vmem:[#allocation217_spill] sm:$0xff]  ;;  %v20603_v56 = vld [vmem:[#allocation163_spill] sm:$0xff] }
 0x592   :  { %v5901_v23 = vsel %vm2511_vm6, %v20590_v60, %v9164_v14  ;;  %v5902_v51 = vsel %vm2511_vm6, %v20591_v52, %v9165_v46  ;;  %v9170_v18 = vunpack.i.h.bf16 %v20592_v43  ;;  %v9169_v1 = vunpack.i.l.bf16 %v20592_v43 }
 0x593   :  { %v6219_v15 = vsel %vm2836_vm11, %v6155_v2, %v9769_v19  ;;  %v6220_v0 = vsel %vm2836_vm11, %v6156_v4, %v9770_v58  ;;  %v9763_v26 = vpop.permute.xlu0 %9762  ;;  %v5965_v7 = vsel %vm2576_vm7, %v5901_v23, %v9324_v61  ;;  %v5966_v3 = vsel %vm2576_vm7, %v5902_v51, %v9325_v31  ;;  %v20602_v19 = vld [vmem:[#allocation222_spill] sm:$0xff] }
 0x594   :  { %v6265_v37 = vpack.c.bf16 %v6220_v0, %v6219_v15  ;;  %v17022_v12 = vpop.permute.xlu1 %9777  ;;  %v9765_v41 = vunpack.i.h.bf16 %v9763_v26  ;;  %v9764_v59 = vunpack.i.l.bf16 %v9763_v26  ;;  %v9175_v10 = vunpack.i.h.bf16 %v20593_v33 }
 0x595   :  { %v9174_v9 = vunpack.i.l.bf16 %v20593_v33  ;;  %v6029_v6 = vsel %vm2641_vm8, %v5965_v7, %v9484_v50  ;;  %v6030_v44 = vsel %vm2641_vm8, %v5966_v3, %v9485_v11  ;;  %v9330_v17 = vunpack.i.h.bf16 %v20594_v42 }
 0x596   :  { %7472 = vmatprep.mubr.msk.bf16.mxu1 %vm2969_vm12, %v6265_v37  ;;  %v6093_v49 = vsel %vm2706_vm9, %v6029_v6, %v9754_v40  ;;  %v6094_v57 = vsel %vm2706_vm9, %v6030_v44, %v9755_v20  ;;  %v9329_v5 = vunpack.i.l.bf16 %v20594_v42  ;;  %v8905_v34 = vunpack.i.h.bf16 %v20595_v22 }
 0x597   :  { %v9773_v27 = vpop.permute.xlu0 %9772  ;;  %v6157_v24 = vsel %vm2771_vm10, %v6093_v49, %v9764_v59  ;;  %v6158_v28 = vsel %vm2771_vm10, %v6094_v57, %v9765_v41  ;;  %v20597_v53 = vunpack.i.h.bf16 %v20596_v29  ;;  %v20599_v45 = vunpack.i.l.bf16 %v20596_v29 }
 0x598   :  { %v9788_v54 = vpop.permute.xlu1 %9787  ;;  %v9775_v48 = vunpack.i.h.bf16 %v9773_v27  ;;  %v9774_v25 = vunpack.i.l.bf16 %v9773_v27  ;;  %v5842_v58 = vsel %vm2448_vm4, %v20601_v38, %v9015_v36  ;;  %v5841_v62 = vsel %vm2448_vm4, %v20602_v19, %v9014_v39  ;;  %v20604_v39 = vld [vmem:[#allocation220_spill] sm:$0xff] }
 0x599   :  { %v5840_v46 = vsel %vm2448_vm4, %v20598_v16, %v20597_v53  ;;  %v5839_v13 = vsel %vm2448_vm4, %v20600_v21, %v20599_v45  ;;  %v9335_v11 = vunpack.i.h.bf16 %v20603_v56  ;;  %v9334_v50 = vunpack.i.l.bf16 %v20603_v56  ;;  %v20605_v21 = vld [vmem:[#allocation198_spill] sm:$0xff]  ;;  %v20607_v56 = vld [vmem:[#allocation53_spill] sm:$0xff] }
 0x59a   :  { %v6221_v14 = vsel %vm2836_vm11, %v6157_v24, %v9774_v25  ;;  %v6222_v35 = vsel %vm2836_vm11, %v6158_v28, %v9775_v48  ;;  %v5903_v2 = vsel %vm2511_vm6, %v5839_v13, %v9169_v1  ;;  %v5904_v4 = vsel %vm2511_vm6, %v5840_v46, %v9170_v18 }
 0x59b   :  { %v6266_v31 = vpack.c.bf16 %v6222_v35, %v6221_v14  ;;  %v9783_v61 = vpop.permute.xlu0 %9782  ;;  %v5905_v0 = vsel %vm2511_vm6, %v5841_v62, %v9174_v9  ;;  %v5906_v26 = vsel %vm2511_vm6, %v5842_v58, %v9175_v10  ;;  %v5968_v36 = vsel %vm2576_vm7, %v5904_v4, %v9330_v17  ;;  %v20606_v62 = vld [vmem:[#allocation203_spill] sm:$0xff] }
 0x59c   :  { %v9798_v15 = vpop.permute.xlu1 %9797  ;;  %v5967_v37 = vsel %vm2576_vm7, %v5903_v2, %v9329_v5  ;;  %v9490_v20 = vunpack.i.h.bf16 %v20604_v39  ;;  %v9489_v40 = vunpack.i.l.bf16 %v20604_v39  ;;  %v9780_v60 = vunpack.i.h.bf16 %v17022_v12 }
 0x59d   :  { %7473 = vmatmul.mubr.msk.bf16.gmra.mrb[36].mxu1 %vm2969_vm12, %v6266_v31  ;;  %v9779_v23 = vunpack.i.l.bf16 %v17022_v12  ;;  %v9790_v52 = vunpack.i.h.bf16 %v9788_v54  ;;  %v9789_v51 = vunpack.i.l.bf16 %v9788_v54  ;;  %v9785_v41 = vunpack.i.h.bf16 %v9783_v61 }
 0x59e   :  { %v9784_v59 = vunpack.i.l.bf16 %v9783_v61  ;;  %v5969_v18 = vsel %vm2576_vm7, %v5905_v0, %v9334_v50  ;;  %v5970_v1 = vsel %vm2576_vm7, %v5906_v26, %v9335_v11  ;;  %v9800_v7 = vunpack.i.h.bf16 %v9798_v15  ;;  %v20609_v50 = vld [vmem:[#allocation255_spill] sm:$0xff]  ;;  %v20610_v0 = vld [vmem:[#allocation158_spill] sm:$0xff] }
 0x59f   :  { %v9793_v43 = vpop.permute.xlu0 %9792  ;;  %v9799_v3 = vunpack.i.l.bf16 %v9798_v15  ;;  %v6032_v27 = vsel %vm2641_vm8, %v5968_v36, %v9490_v20  ;;  %v6031_v12 = vsel %vm2641_vm8, %v5967_v37, %v9489_v40  ;;  %v6033_v49 = vsel %vm2641_vm8, %v5969_v18, %v9779_v23  ;;  %v20611_v20 = vld [vmem:[#allocation126_spill] sm:$0xff]  ;;  %v20612_v23 = vld [vmem:[#allocation212_spill] sm:$0xff] }
 0x5a0   :  { %v9808_v33 = vpop.permute.xlu1 %9807  ;;  %v9795_v6 = vunpack.i.h.bf16 %v9793_v43  ;;  %v9794_v44 = vunpack.i.l.bf16 %v9793_v43  ;;  %v6034_v57 = vsel %vm2641_vm8, %v5970_v1, %v9780_v60  ;;  %v6097_v54 = vsel %vm2706_vm9, %v6033_v49, %v9789_v51  ;;  %v20614_v18 = vld [vmem:[#allocation104_spill] sm:$0xff] }
 0x5a1   :  { %v9810_v10 = vunpack.i.h.bf16 %v9808_v33  ;;  %v9809_v9 = vunpack.i.l.bf16 %v9808_v33  ;;  %v6098_v48 = vsel %vm2706_vm9, %v6034_v57, %v9790_v52  ;;  %v6096_v25 = vsel %vm2706_vm9, %v6032_v27, %v9785_v41  ;;  %v20613_v41 = vld [vmem:[#allocation100_spill] sm:$0xff]  ;;  %v20616_v33 = vld [vmem:[#allocation214_spill] sm:$0xff] }
 0x5a2   :  { %v6095_v42 = vsel %vm2706_vm9, %v6031_v12, %v9784_v59  ;;  %v6161_v5 = vsel %vm2771_vm10, %v6097_v54, %v9799_v3  ;;  %v6162_v24 = vsel %vm2771_vm10, %v6098_v48, %v9800_v7  ;;  %v6160_v35 = vsel %vm2771_vm10, %v6096_v25, %v9795_v6  ;;  %v20615_v7 = vld [vmem:[#allocation260_spill] sm:$0xff] }
 0x5a3   :  { %v9803_v17 = vpop.permute.xlu0 %9802  ;;  %v6225_v16 = vsel %vm2836_vm11, %v6161_v5, %v9809_v9  ;;  %v6226_v46 = vsel %vm2836_vm11, %v6162_v24, %v9810_v10  ;;  %v6159_v14 = vsel %vm2771_vm10, %v6095_v42, %v9794_v44  ;;  %v8904_v45 = vunpack.i.l.bf16 %v20595_v22  ;;  %v20617_v9 = vld [vmem:[#allocation223_spill] sm:$0xff]  ;;  %v20618_v44 = vld [vmem:[#allocation266_spill] sm:$0xff]  ;;  %v20620_v54 = vld [vmem:[#allocation56_spill] sm:$0xff] }
 0x5a4   :  { %v17083_v28 = vpop.permute.xlu1 %9817  ;;  %v9805_v29 = vunpack.i.h.bf16 %v9803_v17  ;;  %v9804_v53 = vunpack.i.l.bf16 %v9803_v17  ;;  %v9020_v13 = vunpack.i.h.bf16 %v20605_v21  ;;  %v9019_v19 = vunpack.i.l.bf16 %v20605_v21  ;;  %v20619_v22 = vld [vmem:[#allocation187_spill] sm:$0xff] }
 0x5a5   :  { %v9025_v31 = vunpack.i.h.bf16 %v20606_v62  ;;  %v9024_v61 = vunpack.i.l.bf16 %v20606_v62  ;;  %v20608_v11 = vunpack.i.l.bf16 %v20607_v56  ;;  %v9180_v26 = vunpack.i.h.bf16 %v20610_v0 }
 0x5a6   :  { %v6223_v38 = vsel %vm2836_vm11, %v6159_v14, %v9804_v53  ;;  %v6224_v58 = vsel %vm2836_vm11, %v6160_v35, %v9805_v29  ;;  %v9179_v36 = vunpack.i.l.bf16 %v20610_v0  ;;  %v6268_v37 = vpack.c.bf16 %v6226_v46, %v6225_v16 }
 0x5a7   :  { %v6267_v2 = vpack.c.bf16 %v6224_v58, %v6223_v38  ;;  %v9813_v4 = vpop.permute.xlu0 %9812  ;;  %v17100_v15 = vsel %vm2385_vm3, %v20609_v50, %v20608_v11  ;;  %v9185_v40 = vunpack.i.h.bf16 %v20611_v20  ;;  %v9184_v60 = vunpack.i.l.bf16 %v20611_v20 }
 0x5a8   :  { %v9828_v39 = vpop.permute.xlu1 %9827  ;;  %v9340_v52 = vunpack.i.h.bf16 %v20612_v23  ;;  %v9339_v51 = vunpack.i.l.bf16 %v20612_v23  ;;  %v8910_v59 = vunpack.i.h.bf16 %v20613_v41  ;;  %v8909_v43 = vunpack.i.l.bf16 %v20613_v41 }
 0x5a9   :  { %7476 = vmatprep.mubr.msk.bf16.mxu1 %vm2969_vm12, %v6267_v2  ;;  %v17115_v1 = vsel %vm2385_vm3, %v20614_v18, %v8905_v34  ;;  %v17119_v3 = vsel %vm2385_vm3, %v20615_v7, %v8904_v45  ;;  %v5844_v10 = vsel %vm2448_vm4, %v20616_v33, %v9020_v13  ;;  %v5843_v6 = vsel %vm2448_vm4, %v20617_v9, %v9019_v19 }
 0x5aa   :  { %7477 = vmatmul.mubr.msk.bf16.gmra.mrb[40].mxu1 %vm2969_vm12, %v6268_v37  ;;  %v5846_v27 = vsel %vm2448_vm4, %v20618_v44, %v9025_v31  ;;  %v5845_v12 = vsel %vm2448_vm4, %v20619_v22, %v9024_v61  ;;  %v5907_v49 = vsel %vm2511_vm6, %v5843_v6, %v9179_v36  ;;  %v5908_v57 = vsel %vm2511_vm6, %v5844_v10, %v9180_v26  ;;  %v20621_v6 = vld [vmem:[#allocation90_spill] sm:$0xff] }
 0x5ab   :  { %v9823_v34 = vpop.permute.xlu0 %9822  ;;  %v9345_v48 = vunpack.i.h.bf16 %v20620_v54  ;;  %v9344_v25 = vunpack.i.l.bf16 %v20620_v54  ;;  %v5909_v17 = vsel %vm2511_vm6, %v5845_v12, %v9184_v60  ;;  %v5910_v5 = vsel %vm2511_vm6, %v5846_v27, %v9185_v40 }
 0x5ac   :  { %v9838_v42 = vpop.permute.xlu1 %9837  ;;  %v5972_v24 = vsel %vm2576_vm7, %v5908_v57, %v9340_v52  ;;  %v5971_v29 = vsel %vm2576_vm7, %v5907_v49, %v9339_v51  ;;  %v9820_v53 = vunpack.i.h.bf16 %v17083_v28  ;;  %v9819_v16 = vunpack.i.l.bf16 %v17083_v28  ;;  %v20623_v57 = vld [vmem:[#allocation154_spill] sm:$0xff] }
 0x5ad   :  { %v9815_v46 = vunpack.i.h.bf16 %v9813_v4  ;;  %v9814_v14 = vunpack.i.l.bf16 %v9813_v4  ;;  %v9830_v35 = vunpack.i.h.bf16 %v9828_v39  ;;  %v9829_v45 = vunpack.i.l.bf16 %v9828_v39 }
 0x5ae   :  { %v9825_v21 = vunpack.i.h.bf16 %v9823_v34  ;;  %v9824_v13 = vunpack.i.l.bf16 %v9823_v34  ;;  %v5973_v58 = vsel %vm2576_vm7, %v5909_v17, %v9344_v25  ;;  %v5974_v19 = vsel %vm2576_vm7, %v5910_v5, %v9345_v48  ;;  %v20622_v34 = vld [vmem:[#allocation62_spill] sm:$0xff] }
 0x5af   :  { %v9833_v38 = vpop.permute.xlu0 %9832  ;;  %v9840_v62 = vunpack.i.h.bf16 %v9838_v42  ;;  %v9839_v31 = vunpack.i.l.bf16 %v9838_v42  ;;  %v6037_v28 = vsel %vm2641_vm8, %v5973_v58, %v9819_v16  ;;  %v6038_v4 = vsel %vm2641_vm8, %v5974_v19, %v9820_v53  ;;  %v20624_v5 = vld [vmem:[#allocation102_spill] sm:$0xff]  ;;  %v20628_v19 = vld [vmem:[#allocation71_spill] sm:$0xff] }
 0x5b0   :  { %v9848_v61 = vpop.permute.xlu1 %9847  ;;  %v9835_v11 = vunpack.i.h.bf16 %v9833_v38  ;;  %v9834_v50 = vunpack.i.l.bf16 %v9833_v38  ;;  %v6036_v0 = vsel %vm2641_vm8, %v5972_v24, %v9815_v46  ;;  %v6035_v26 = vsel %vm2641_vm8, %v5971_v29, %v9814_v14  ;;  %v20625_v46 = vld [vmem:[#allocation8_spill] sm:$0xff]  ;;  %v20627_v38 = vld [vmem:[#allocation225_spill] sm:$0xff] }
 0x5b1   :  { %v9850_v2 = vunpack.i.h.bf16 %v9848_v61  ;;  %v9849_v56 = vunpack.i.l.bf16 %v9848_v61  ;;  %v6101_v36 = vsel %vm2706_vm9, %v6037_v28, %v9829_v45  ;;  %v6102_v37 = vsel %vm2706_vm9, %v6038_v4, %v9830_v35  ;;  %v20626_v45 = vld [vmem:[#allocation162_spill] sm:$0xff] }
 0x5b2   :  { %v6099_v39 = vsel %vm2706_vm9, %v6035_v26, %v9824_v13  ;;  %v6100_v20 = vsel %vm2706_vm9, %v6036_v0, %v9825_v21  ;;  %v6165_v60 = vsel %vm2771_vm10, %v6101_v36, %v9839_v31  ;;  %v6166_v23 = vsel %vm2771_vm10, %v6102_v37, %v9840_v62  ;;  %v20629_v31 = vld [vmem:[#allocation204_spill] sm:$0xff]  ;;  %v20631_v28 = vld [vmem:[#allocation190_spill] sm:$0xff]  ;;  %v20632_v0 = vld [vmem:[#allocation129_spill] sm:$0xff] }
 0x5b3   :  { %v9843_v40 = vpop.permute.xlu0 %9842  ;;  %v6229_v7 = vsel %vm2836_vm11, %v6165_v60, %v9849_v56  ;;  %v6230_v33 = vsel %vm2836_vm11, %v6166_v23, %v9850_v2  ;;  %v6163_v10 = vsel %vm2771_vm10, %v6099_v39, %v9834_v50  ;;  %v6164_v9 = vsel %vm2771_vm10, %v6100_v20, %v9835_v11  ;;  %v20630_v56 = vld [vmem:[#allocation9_spill] sm:$0xff] }
 0x5b4   :  { %v17152_v52 = vpop.permute.xlu1 %9857  ;;  %v9845_v51 = vunpack.i.h.bf16 %v9843_v40  ;;  %v9844_v18 = vunpack.i.l.bf16 %v9843_v40  ;;  %v9030_v44 = vunpack.i.h.bf16 %v20621_v6  ;;  %v9029_v27 = vunpack.i.l.bf16 %v20621_v6  ;;  %v20633_v20 = vld [vmem:[#allocation109_spill] sm:$0xff] }
 0x5b5   :  { %v8915_v49 = vunpack.i.h.bf16 %v20622_v34  ;;  %v9035_v54 = vunpack.i.h.bf16 %v20623_v57  ;;  %v9034_v48 = vunpack.i.l.bf16 %v20623_v57  ;;  %v8914_v17 = vunpack.i.l.bf16 %v20622_v34 }
 0x5b6   :  { %v6227_v22 = vsel %vm2836_vm11, %v6163_v10, %v9844_v18  ;;  %v6228_v12 = vsel %vm2836_vm11, %v6164_v9, %v9845_v51  ;;  %v9190_v24 = vunpack.i.h.bf16 %v20624_v5  ;;  %v9189_v29 = vunpack.i.l.bf16 %v20624_v5 }
 0x5b7   :  { %v6269_v25 = vpack.c.bf16 %v6228_v12, %v6227_v22  ;;  %v9853_v42 = vpop.permute.xlu0 %9852  ;;  %v6270_v53 = vpack.c.bf16 %v6230_v33, %v6229_v7  ;;  %v9195_v14 = vunpack.i.h.bf16 %v20625_v46  ;;  %v9194_v35 = vunpack.i.l.bf16 %v20625_v46 }
 0x5b8   :  { %v9868_v16 = vpop.permute.xlu1 %9867  ;;  %v9350_v21 = vunpack.i.h.bf16 %v20626_v45  ;;  %v9349_v13 = vunpack.i.l.bf16 %v20626_v45  ;;  %v5848_v58 = vsel %vm2448_vm4, %v20627_v38, %v9030_v44  ;;  %v5847_v62 = vsel %vm2448_vm4, %v20628_v19, %v9029_v27 }
 0x5b9   :  { %7480 = vmatprep.mubr.msk.bf16.mxu1 %vm2969_vm12, %v6269_v25  ;;  %v9040_v61 = vunpack.i.h.bf16 %v20629_v31  ;;  %v9039_v2 = vunpack.i.l.bf16 %v20629_v31  ;;  %v9050_v11 = vunpack.i.h.bf16 %v20630_v56  ;;  %v9049_v50 = vunpack.i.l.bf16 %v20630_v56 }
 0x5ba   :  { %7481 = vmatmul.mubr.msk.bf16.gmra.mrb[44].mxu1 %vm2969_vm12, %v6270_v53  ;;  %v5850_v4 = vsel %vm2448_vm4, %v20631_v28, %v9035_v54  ;;  %v5849_v26 = vsel %vm2448_vm4, %v20632_v0, %v9034_v48  ;;  %v5911_v37 = vsel %vm2511_vm6, %v5847_v62, %v9189_v29  ;;  %v5912_v39 = vsel %vm2511_vm6, %v5848_v58, %v9190_v24 }
 0x5bb   :  { %v9863_v36 = vpop.permute.xlu0 %9862  ;;  %v9355_v40 = vunpack.i.h.bf16 %v20633_v20  ;;  %v9354_v60 = vunpack.i.l.bf16 %v20633_v20  ;;  %v5913_v51 = vsel %vm2511_vm6, %v5849_v26, %v9194_v35  ;;  %v5914_v18 = vsel %vm2511_vm6, %v5850_v4, %v9195_v14  ;;  %v20634_v20 = vld [vmem:[#allocation199_spill] sm:$0xff] }
 0x5bc   :  { %v9878_v23 = vpop.permute.xlu1 %9877  ;;  %v5976_v7 = vsel %vm2576_vm7, %v5912_v39, %v9350_v21  ;;  %v5975_v33 = vsel %vm2576_vm7, %v5911_v37, %v9349_v13  ;;  %v9860_v10 = vunpack.i.h.bf16 %v17152_v52  ;;  %v9859_v9 = vunpack.i.l.bf16 %v17152_v52 }
 0x5bd   :  { %v9855_v6 = vunpack.i.h.bf16 %v9853_v42  ;;  %v9854_v44 = vunpack.i.l.bf16 %v9853_v42  ;;  %v9870_v27 = vunpack.i.h.bf16 %v9868_v16  ;;  %v9869_v22 = vunpack.i.l.bf16 %v9868_v16 }
 0x5be   :  { %v9865_v12 = vunpack.i.h.bf16 %v9863_v36  ;;  %v9864_v57 = vunpack.i.l.bf16 %v9863_v36  ;;  %v5977_v48 = vsel %vm2576_vm7, %v5913_v51, %v9354_v60  ;;  %v5978_v25 = vsel %vm2576_vm7, %v5914_v18, %v9355_v40  ;;  %v20635_v18 = vld [vmem:[#allocation263_spill] sm:$0xff] }
 0x5bf   :  { %v9873_v54 = vpop.permute.xlu0 %9872  ;;  %v9880_v5 = vunpack.i.h.bf16 %v9878_v23  ;;  %v9879_v24 = vunpack.i.l.bf16 %v9878_v23  ;;  %v6041_v52 = vsel %vm2641_vm8, %v5977_v48, %v9859_v9  ;;  %v6042_v42 = vsel %vm2641_vm8, %v5978_v25, %v9860_v10  ;;  %v20637_v9 = vld [vmem:[#allocation124_spill] sm:$0xff] }
 0x5c0   :  { %v9888_v29 = vpop.permute.xlu1 %9887  ;;  %v9875_v14 = vunpack.i.h.bf16 %v9873_v54  ;;  %v9874_v35 = vunpack.i.l.bf16 %v9873_v54  ;;  %v6040_v16 = vsel %vm2641_vm8, %v5976_v7, %v9855_v6  ;;  %v6039_v45 = vsel %vm2641_vm8, %v5975_v33, %v9854_v44  ;;  %v20636_v33 = vld [vmem:[#allocation115_spill] sm:$0xff] }
 0x5c1   :  { %v9890_v53 = vunpack.i.h.bf16 %v9888_v29  ;;  %v9889_v46 = vunpack.i.l.bf16 %v9888_v29  ;;  %v6105_v21 = vsel %vm2706_vm9, %v6041_v52, %v9869_v22  ;;  %v6106_v13 = vsel %vm2706_vm9, %v6042_v42, %v9870_v27  ;;  %v20638_v22 = vld [vmem:[#allocation130_spill] sm:$0xff] }
 0x5c2   :  { %v6103_v38 = vsel %vm2706_vm9, %v6039_v45, %v9864_v57  ;;  %v6104_v58 = vsel %vm2706_vm9, %v6040_v16, %v9865_v12  ;;  %v6169_v62 = vsel %vm2771_vm10, %v6105_v21, %v9879_v24  ;;  %v6170_v31 = vsel %vm2771_vm10, %v6106_v13, %v9880_v5  ;;  %v20639_v57 = vld [vmem:[#allocation209_spill] sm:$0xff]  ;;  %v20640_v5 = vld [vmem:[#allocation22_spill] sm:$0xff] }
 0x5c3   :  { %v9883_v19 = vpop.permute.xlu0 %9882  ;;  %v6233_v26 = vsel %vm2836_vm11, %v6169_v62, %v9889_v46  ;;  %v6234_v36 = vsel %vm2836_vm11, %v6170_v31, %v9890_v53  ;;  %v6167_v37 = vsel %vm2771_vm10, %v6103_v38, %v9874_v35  ;;  %v6168_v39 = vsel %vm2771_vm10, %v6104_v58, %v9875_v14  ;;  %v20643_v46 = vld [vmem:[#allocation134_spill] sm:$0xff]  ;;  %v20644_v35 = vld [vmem:[#allocation164_spill] sm:$0xff]  ;;  %v20645_v16 = vld [vmem:[#allocation89_spill] sm:$0xff] }
 0x5c4   :  { %v17208_v28 = vpop.permute.xlu1 %9897  ;;  %v9885_v4 = vunpack.i.h.bf16 %v9883_v19  ;;  %v9884_v0 = vunpack.i.l.bf16 %v9883_v19  ;;  %v9045_v40 = vunpack.i.h.bf16 %v20634_v20  ;;  %v9044_v60 = vunpack.i.l.bf16 %v20634_v20  ;;  %v20647_v19 = vld [vmem:[#allocation213_spill] sm:$0xff] }
 0x5c5   :  { %v17222_v7 = vsel %vm2385_vm3, %v20635_v18, %v8915_v49  ;;  %v17228_v10 = vsel %vm2385_vm3, %v20636_v33, %v8914_v17  ;;  %v5852_v6 = vsel %vm2448_vm4, %v20637_v9, %v9040_v61  ;;  %v5851_v12 = vsel %vm2448_vm4, %v20638_v22, %v9039_v2  ;;  %v20641_v17 = vld [vmem:[#allocation261_spill] sm:$0xff]  ;;  %v20642_v61 = vld [vmem:[#allocation140_spill] sm:$0xff] }
 0x5c6   :  { %v6231_v23 = vsel %vm2836_vm11, %v6167_v37, %v9884_v0  ;;  %v6232_v51 = vsel %vm2836_vm11, %v6168_v39, %v9885_v4  ;;  %v9200_v54 = vunpack.i.h.bf16 %v20639_v57  ;;  %v9199_v48 = vunpack.i.l.bf16 %v20639_v57 }
 0x5c7   :  { %v6271_v44 = vpack.c.bf16 %v6232_v51, %v6231_v23  ;;  %v9893_v27 = vpop.permute.xlu0 %9892  ;;  %v6272_v49 = vpack.c.bf16 %v6234_v36, %v6233_v26  ;;  %v9205_v34 = vunpack.i.h.bf16 %v20640_v5  ;;  %v9204_v24 = vunpack.i.l.bf16 %v20640_v5 }
 0x5c8   :  { %v9908_v25 = vpop.permute.xlu1 %9907  ;;  %v9360_v29 = vunpack.i.h.bf16 %v20641_v17  ;;  %v9359_v53 = vunpack.i.l.bf16 %v20641_v17  ;;  %v17245_v2 = vsel %vm2448_vm4, %v20642_v61, %v9050_v11  ;;  %v17251_v14 = vsel %vm2448_vm4, %v20643_v46, %v9049_v50  ;;  %v20646_v11 = vld [vmem:[#allocation21_spill] sm:$0xff] }
 0x5c9   :  { %7484 = vmatprep.mubr.msk.bf16.mxu1 %vm2969_vm12, %v6271_v44  ;;  %v5854_v52 = vsel %vm2448_vm4, %v20644_v35, %v9045_v40  ;;  %v5853_v42 = vsel %vm2448_vm4, %v17100_v15, %v9044_v60  ;;  %v9055_v45 = vunpack.i.h.bf16 %v20645_v16  ;;  %v9054_v21 = vunpack.i.l.bf16 %v20645_v16 }
 0x5ca   :  { %7485 = vmatmul.mubr.msk.bf16.gmra.mrb[48].mxu1 %vm2969_vm12, %v6272_v49  ;;  %v9065_v13 = vunpack.i.h.bf16 %v20646_v11  ;;  %v9064_v56 = vunpack.i.l.bf16 %v20646_v11  ;;  %v5915_v50 = vsel %vm2511_vm6, %v5851_v12, %v9199_v48  ;;  %v5916_v58 = vsel %vm2511_vm6, %v5852_v6, %v9200_v54 }
 0x5cb   :  { %v9903_v38 = vpop.permute.xlu0 %9902  ;;  %v9365_v62 = vunpack.i.h.bf16 %v20647_v19  ;;  %v9364_v31 = vunpack.i.l.bf16 %v20647_v19  ;;  %v5917_v4 = vsel %vm2511_vm6, %v5853_v42, %v9204_v24  ;;  %v5918_v0 = vsel %vm2511_vm6, %v5854_v52, %v9205_v34 }
 0x5cc   :  { %v9918_v15 = vpop.permute.xlu1 %9917  ;;  %v5980_v26 = vsel %vm2576_vm7, %v5916_v58, %v9360_v29  ;;  %v5979_v36 = vsel %vm2576_vm7, %v5915_v50, %v9359_v53  ;;  %v9900_v37 = vunpack.i.h.bf16 %v17208_v28  ;;  %v9899_v39 = vunpack.i.l.bf16 %v17208_v28 }
 0x5cd   :  { %v9895_v20 = vunpack.i.h.bf16 %v9893_v27  ;;  %v9894_v40 = vunpack.i.l.bf16 %v9893_v27  ;;  %v9910_v60 = vunpack.i.h.bf16 %v9908_v25  ;;  %v9909_v23 = vunpack.i.l.bf16 %v9908_v25 }
 0x5ce   :  { %v9905_v51 = vunpack.i.h.bf16 %v9903_v38  ;;  %v9904_v18 = vunpack.i.l.bf16 %v9903_v38  ;;  %v5981_v9 = vsel %vm2576_vm7, %v5917_v4, %v9364_v31  ;;  %v5982_v6 = vsel %vm2576_vm7, %v5918_v0, %v9365_v62  ;;  %v20648_v62 = vld [vmem:[#allocation14_spill] sm:$0xff] }
 0x5cf   :  { %v9913_v33 = vpop.permute.xlu0 %9912  ;;  %v9920_v44 = vunpack.i.h.bf16 %v9918_v15  ;;  %v9919_v22 = vunpack.i.l.bf16 %v9918_v15  ;;  %v6045_v28 = vsel %vm2641_vm8, %v5981_v9, %v9899_v39  ;;  %v6046_v27 = vsel %vm2641_vm8, %v5982_v6, %v9900_v37  ;;  %v20650_v37 = vld [vmem:[#allocation160_spill] sm:$0xff] }
 0x5d0   :  { %v9928_v12 = vpop.permute.xlu1 %9927  ;;  %v9915_v48 = vunpack.i.h.bf16 %v9913_v33  ;;  %v9914_v49 = vunpack.i.l.bf16 %v9913_v33  ;;  %v6044_v25 = vsel %vm2641_vm8, %v5980_v26, %v9895_v20  ;;  %v6043_v5 = vsel %vm2641_vm8, %v5979_v36, %v9894_v40  ;;  %v20649_v26 = vld [vmem:[#allocation150_spill] sm:$0xff] }
 0x5d1   :  { %v9930_v57 = vunpack.i.h.bf16 %v9928_v12  ;;  %v9929_v54 = vunpack.i.l.bf16 %v9928_v12  ;;  %v6109_v34 = vsel %vm2706_vm9, %v6045_v28, %v9909_v23  ;;  %v6110_v24 = vsel %vm2706_vm9, %v6046_v27, %v9910_v60  ;;  %v20652_v12 = vld [vmem:[#allocation161_spill] sm:$0xff] }
 0x5d2   :  { %v6107_v17 = vsel %vm2706_vm9, %v6043_v5, %v9904_v18  ;;  %v6108_v29 = vsel %vm2706_vm9, %v6044_v25, %v9905_v51  ;;  %v6173_v61 = vsel %vm2771_vm10, %v6109_v34, %v9919_v22  ;;  %v6174_v46 = vsel %vm2771_vm10, %v6110_v24, %v9920_v44  ;;  %v20651_v51 = vld [vmem:[#allocation186_spill] sm:$0xff] }
 0x5d3   :  { %v9923_v53 = vpop.permute.xlu0 %9922  ;;  %v6237_v38 = vsel %vm2836_vm11, %v6173_v61, %v9929_v54  ;;  %v6238_v50 = vsel %vm2836_vm11, %v6174_v46, %v9930_v57  ;;  %v6171_v58 = vsel %vm2771_vm10, %v6107_v17, %v9914_v49  ;;  %v6172_v19 = vsel %vm2771_vm10, %v6108_v29, %v9915_v48 }
 0x5d4   :  { %v9938_v35 = vpop.permute.xlu1 %9937  ;;  %v9925_v52 = vunpack.i.h.bf16 %v9923_v53  ;;  %v9924_v42 = vunpack.i.l.bf16 %v9923_v53  ;;  %v9210_v31 = vunpack.i.h.bf16 %v20648_v62  ;;  %v9209_v15 = vunpack.i.l.bf16 %v20648_v62 }
 0x5d5   :  { %v9060_v36 = vunpack.i.h.bf16 %v20649_v26  ;;  %v9215_v39 = vunpack.i.h.bf16 %v20650_v37  ;;  %v9214_v20 = vunpack.i.l.bf16 %v20650_v37  ;;  %v9059_v23 = vunpack.i.l.bf16 %v20649_v26 }
 0x5d6   :  { %v6235_v4 = vsel %vm2836_vm11, %v6171_v58, %v9924_v42  ;;  %v6236_v0 = vsel %vm2836_vm11, %v6172_v19, %v9925_v52  ;;  %v9370_v18 = vunpack.i.h.bf16 %v20651_v51  ;;  %v9369_v33 = vunpack.i.l.bf16 %v20651_v51  ;;  %v20655_v58 = vld [vmem:[#allocation111_spill] sm:$0xff] }
 0x5d7   :  { %v6273_v40 = vpack.c.bf16 %v6236_v0, %v6235_v4  ;;  %v9933_v60 = vpop.permute.xlu0 %9932  ;;  %v6274_v9 = vpack.c.bf16 %v6238_v50, %v6237_v38  ;;  %v5858_v44 = vsel %vm2448_vm4, %v17115_v1, %v9055_v45  ;;  %v5857_v22 = vsel %vm2448_vm4, %v17119_v3, %v9054_v21  ;;  %v20653_v45 = vld [vmem:[#allocation206_spill] sm:$0xff] }
 0x5d8   :  { %v9948_v6 = vpop.permute.xlu1 %9947  ;;  %v9375_v57 = vunpack.i.h.bf16 %v20652_v12  ;;  %v9374_v54 = vunpack.i.l.bf16 %v20652_v12  ;;  %v5861_v48 = vsel %vm2448_vm4, %v17228_v10, %v9064_v56  ;;  %v5862_v1 = vsel %vm2448_vm4, %v17222_v7, %v9065_v13  ;;  %v20654_v56 = vld [vmem:[#allocation128_spill] sm:$0xff] }
 0x5d9   :  { %7488 = vmatprep.mubr.msk.bf16.mxu1 %vm2969_vm12, %v6273_v40  ;;  %v5920_v16 = vsel %vm2511_vm6, %v17245_v2, %v9210_v31  ;;  %v5919_v3 = vsel %vm2511_vm6, %v17251_v14, %v9209_v15  ;;  %v9220_v21 = vunpack.i.h.bf16 %v20653_v45  ;;  %v9219_v49 = vunpack.i.l.bf16 %v20653_v45 }
 0x5da   :  { %7489 = vmatmul.mubr.msk.bf16.gmra.mrb[52].mxu1 %vm2969_vm12, %v6274_v9  ;;  %v5921_v28 = vsel %vm2511_vm6, %v5857_v22, %v9214_v20  ;;  %v5922_v10 = vsel %vm2511_vm6, %v5858_v44, %v9215_v39  ;;  %v9225_v27 = vunpack.i.h.bf16 %v20654_v56  ;;  %v9224_v7 = vunpack.i.l.bf16 %v20654_v56 }
 0x5db   :  { %v9943_v11 = vpop.permute.xlu0 %9942  ;;  %v5984_v2 = vsel %vm2576_vm7, %v5920_v16, %v9370_v18  ;;  %v5983_v13 = vsel %vm2576_vm7, %v5919_v3, %v9369_v33  ;;  %v5985_v25 = vsel %vm2576_vm7, %v5921_v28, %v9374_v54  ;;  %v5986_v5 = vsel %vm2576_vm7, %v5922_v10, %v9375_v57 }
 0x5dc   :  { %v9958_v14 = vpop.permute.xlu1 %9957  ;;  %v9940_v34 = vunpack.i.h.bf16 %v9938_v35  ;;  %v9939_v24 = vunpack.i.l.bf16 %v9938_v35  ;;  %v9950_v17 = vunpack.i.h.bf16 %v9948_v6  ;;  %v9949_v29 = vunpack.i.l.bf16 %v9948_v6 }
 0x5dd   :  { %v9935_v53 = vunpack.i.h.bf16 %v9933_v60  ;;  %v9934_v61 = vunpack.i.l.bf16 %v9933_v60  ;;  %v9960_v46 = vunpack.i.h.bf16 %v9958_v14  ;;  %v9959_v52 = vunpack.i.l.bf16 %v9958_v14 }
 0x5de   :  { %v9945_v42 = vunpack.i.h.bf16 %v9943_v11  ;;  %v9944_v38 = vunpack.i.l.bf16 %v9943_v11  ;;  %v9385_v19 = vunpack.i.h.bf16 %v20655_v58  ;;  %v9384_v62 = vunpack.i.l.bf16 %v20655_v58 }
 0x5df   :  { %v9953_v50 = vpop.permute.xlu0 %9952  ;;  %v6049_v0 = vsel %vm2641_vm8, %v5985_v25, %v9939_v24  ;;  %v6050_v35 = vsel %vm2641_vm8, %v5986_v5, %v9940_v34  ;;  %v6048_v60 = vsel %vm2641_vm8, %v5984_v2, %v9935_v53  ;;  %v6047_v51 = vsel %vm2641_vm8, %v5983_v13, %v9934_v61  ;;  %v20656_v25 = vld [vmem:[#allocation153_spill] sm:$0xff] }
 0x5e0   :  { %v9968_v31 = vpop.permute.xlu1 %9967  ;;  %v9955_v15 = vunpack.i.h.bf16 %v9953_v50  ;;  %v9954_v4 = vunpack.i.l.bf16 %v9953_v50  ;;  %v6113_v20 = vsel %vm2706_vm9, %v6049_v0, %v9949_v29  ;;  %v6114_v40 = vsel %vm2706_vm9, %v6050_v35, %v9950_v17 }
 0x5e1   :  { %v9970_v37 = vunpack.i.h.bf16 %v9968_v31  ;;  %v9969_v39 = vunpack.i.l.bf16 %v9968_v31  ;;  %v6177_v18 = vsel %vm2771_vm10, %v6113_v20, %v9959_v52  ;;  %v6178_v33 = vsel %vm2771_vm10, %v6114_v40, %v9960_v46 }
 0x5e2   :  { %v6111_v9 = vsel %vm2706_vm9, %v6047_v51, %v9944_v38  ;;  %v6112_v6 = vsel %vm2706_vm9, %v6048_v60, %v9945_v42  ;;  %v5925_v56 = vsel %vm2511_vm6, %v5861_v48, %v9224_v7  ;;  %v5926_v2 = vsel %vm2511_vm6, %v5862_v1, %v9225_v27  ;;  %v20657_v1 = vld [vmem:[#allocation6_spill] sm:$0xff] }
 0x5e3   :  { %v9963_v44 = vpop.permute.xlu0 %9962  ;;  %v6175_v22 = vsel %vm2771_vm10, %v6111_v9, %v9954_v4  ;;  %v6176_v12 = vsel %vm2771_vm10, %v6112_v6, %v9955_v15  ;;  %v6241_v3 = vsel %vm2836_vm11, %v6177_v18, %v9969_v39  ;;  %v6242_v28 = vsel %vm2836_vm11, %v6178_v33, %v9970_v37  ;;  %v20658_v7 = vld [vmem:[#allocation2_spill] sm:$0xff] }
 0x5e4   :  { %v9978_v57 = vpop.permute.xlu1 %9977  ;;  %v9965_v54 = vunpack.i.h.bf16 %v9963_v44  ;;  %v9964_v16 = vunpack.i.l.bf16 %v9963_v44  ;;  %v9380_v5 = vunpack.i.h.bf16 %v20656_v25  ;;  %v5989_v34 = vsel %vm2576_vm7, %v5925_v56, %v9384_v62  ;;  %v17407_v6 = vld [vmem:[%s17931_s5] ss:$0 sm:$0xff] }
 0x5e5   :  { %v9980_v10 = vunpack.i.h.bf16 %v9978_v57  ;;  %v9979_v11 = vunpack.i.l.bf16 %v9978_v57  ;;  %v5990_v24 = vsel %vm2576_vm7, %v5926_v2, %v9385_v19  ;;  %v9379_v53 = vunpack.i.l.bf16 %v20656_v25 }
 0x5e6   :  { %v6239_v13 = vsel %vm2836_vm11, %v6175_v22, %v9964_v16  ;;  %v6240_v14 = vsel %vm2836_vm11, %v6176_v12, %v9965_v54  ;;  %v6276_v61 = vpack.c.bf16 %v6242_v28, %v6241_v3  ;;  %v5800_v27 = vsel %vm2385_vm3, %v20657_v1, %v8910_v59 }
 0x5e7   :  { %v6275_v17 = vpack.c.bf16 %v6240_v14, %v6239_v13  ;;  %v9973_v29 = vpop.permute.xlu0 %9972  ;;  %v6053_v46 = vsel %vm2641_vm8, %v5989_v34, %v9979_v11  ;;  %v6054_v48 = vsel %vm2641_vm8, %v5990_v24, %v9980_v10  ;;  %v5799_v52 = vsel %vm2385_vm3, %v20658_v7, %v8909_v43  ;;  %v20659_v11 = vld [vmem:[#allocation3_spill] sm:$0xff]  ;;  %v20661_v14 = vld [vmem:[#allocation4_spill] sm:$0xff] }
 0x5e8   :  { %v9975_v42 = vunpack.i.h.bf16 %v9973_v29  ;;  %v9974_v38 = vunpack.i.l.bf16 %v9973_v29  ;;  %v5859_v50 = vsel %vm2448_vm4, %v5799_v52, %v9059_v23  ;;  %v5860_v58 = vsel %vm2448_vm4, %v5800_v27, %v9060_v36  ;;  %v9988_v62 = vpop.permute.xlu1 %9987 }
 0x5e9   :  { %7492 = vmatprep.mubr.msk.bf16.mxu1 %vm2969_vm12, %v6275_v17  ;;  %v5924_v41 = vsel %vm2511_vm6, %v5860_v58, %v9220_v21  ;;  %v5923_v59 = vsel %vm2511_vm6, %v5859_v50, %v9219_v49  ;;  %v6117_v43 = vsel %vm2706_vm9, %v6053_v46, %v20569_v55  ;;  %v6118_v23 = vsel %vm2706_vm9, %v6054_v48, %v20570_v30 }
 0x5ea   :  { %7493 = vmatmul.mubr.msk.bf16.gmra.mrb[56].mxu1 %vm2969_vm12, %v6276_v61  ;;  %v5988_v26 = vsel %vm2576_vm7, %v5924_v41, %v9380_v5  ;;  %v5987_v36 = vsel %vm2576_vm7, %v5923_v59, %v9379_v53  ;;  %v6181_v55 = vsel %vm2771_vm10, %v6117_v43, %v20572_v47  ;;  %v6182_v30 = vsel %vm2771_vm10, %v6118_v23, %v20573_v8  ;;  %v20665_v23 = vld [vmem:[#allocation12_spill] sm:$0xff] }
 0x5eb   :  { %v9983_v19 = vpop.permute.xlu0 %9982  ;;  %v6052_v21 = vsel %vm2641_vm8, %v5988_v26, %v9975_v42  ;;  %v6051_v45 = vsel %vm2641_vm8, %v5987_v36, %v9974_v38  ;;  %v9990_v0 = vunpack.i.h.bf16 %v9988_v62  ;;  %v9989_v35 = vunpack.i.l.bf16 %v9988_v62  ;;  %v20667_v62 = vld [vmem:[#allocation5_spill] sm:$0xff] }
 0x5ec   :  { %v9985_v31 = vunpack.i.h.bf16 %v9983_v19  ;;  %v9984_v15 = vunpack.i.l.bf16 %v9983_v19  ;;  %v6245_v51 = vsel %vm2836_vm11, %v6181_v55, %v20576_v63  ;;  %v6246_v18 = vsel %vm2836_vm11, %v6182_v30, %v20577_v32  ;;  %v17412_v63 = vld [vmem:[%s17932_s6] ss:$0 sm:$0xff] }
 0x5ed   :  { %v6278_v9 = vpack.c.bf16 %v6246_v18, %v6245_v51  ;;  %v20660_v56 = vunpack.c.l.bf16 %v20659_v11  ;;  %v20662_v25 = vunpack.c.l.bf16 %v20661_v14  ;;  %v20663_v17 = vunpack.c.h.bf16 %v20659_v11 }
 0x5ee   :  { %v6115_v49 = vsel %vm2706_vm9, %v6051_v45, %v9984_v15  ;;  %v6116_v4 = vsel %vm2706_vm9, %v6052_v21, %v9985_v31  ;;  %v20664_v61 = vunpack.c.h.bf16 %v20661_v14  ;;  %v20666_v19 = vunpack.c.l.bf16 %v20665_v23 }
 0x5ef   :  { %v9993_v37 = vpop.permute.xlu0 %9992  ;;  %v6179_v40 = vsel %vm2771_vm10, %v6115_v49, %v9989_v35  ;;  %v6180_v60 = vsel %vm2771_vm10, %v6116_v4, %v9990_v0  ;;  %v20668_v31 = vunpack.c.l.bf16 %v20667_v62  ;;  %v20669_v49 = vunpack.c.h.bf16 %v20665_v23 }
 0x5f0   :  { %v9995_v39 = vunpack.i.h.bf16 %v9993_v37  ;;  %v9994_v20 = vunpack.i.l.bf16 %v9993_v37  ;;  %v20670_v30 = vunpack.c.h.bf16 %v20667_v62 }
 0x5f2   :  { %v6243_v47 = vsel %vm2836_vm11, %v6179_v40, %v9994_v20  ;;  %v6244_v33 = vsel %vm2836_vm11, %v6180_v60, %v9995_v39 }
 0x5f3   :  { %v6277_v8 = vpack.c.bf16 %v6244_v33, %v6243_v47 }
 0x5f5   :  { %7496 = vmatprep.mubr.msk.bf16.mxu1 %vm2969_vm12, %v6277_v8 }
 0x5f6   :  { %7497 = vmatmul.mubr.msk.bf16.gmra.mrb[60].mxu1 %vm2969_vm12, %v6278_v9 }
 0x609   :  { %v7438_v44 = vpop.f32.mrb[0].mxu1 }
 0x60a   :  { %v6712_v32 = vmul.f32 %v7438_v44, %v17407_v6  ;;  %v6448_v22 = vpop.f32.mrb[1].mxu1  ;;  %v20671_v44 = vld [vmem:[#allocation17_spill] sm:$0xff] }
 0x60b   :  { %v6710_v12 = vmul.f32 %v17407_v6, %v6448_v22  ;;  %v7439_v57 = vpop.f32.mrb[2].mxu1 }
 0x60c   :  { %v6783_v54 = vadd.f32 %v17412_v63, %v6712_v32  ;;  %v6713_v16 = vmul.f32 %v7439_v57, %v17407_v6  ;;  %v6451_v3 = vpop.f32.mrb[3].mxu1  ;;  %v20672_v32 = vunpack.c.l.bf16 %v20671_v44  ;;  %v20673_v57 = vld [vmem:[#allocation15_spill] sm:$0xff] }
 0x60d   :  { %v6781_v28 = vadd.f32 %v17412_v63, %v6710_v12  ;;  %v6711_v10 = vmul.f32 %v17407_v6, %v6451_v3 }
 0x60e   :  { %v6847_v2 = vadd.f32 %v20660_v56, %v6783_v54  ;;  %v6784_v13 = vadd.f32 %v17412_v63, %v6713_v16  ;;  %v20674_v54 = vunpack.c.l.bf16 %v20673_v57 }
 0x60f   :  { %v6845_v5 = vadd.f32 %v20662_v25, %v6781_v28  ;;  %v6782_v34 = vadd.f32 %v17412_v63, %v6711_v10  ;;  %v20675_v10 = vunpack.c.h.bf16 %v20671_v44 }
 0x610   :  { %v6911_v24 = vmax.f32 %v6847_v2, 0.0  ;;  %v6848_v29 = vadd.f32 %v20663_v17, %v6784_v13  ;;  %v20676_v2 = vunpack.c.h.bf16 %v20673_v57 }
 0x611   :  { %v6909_v53 = vmax.f32 %v6845_v5, 0.0  ;;  %v6846_v46 = vadd.f32 %v20664_v61, %v6782_v34 }
 0x612   :  { %6975 = vst.msk [vmem:[%s17933_s7 + $0x10] sm:$0xff] %vm2385_vm3, %v6911_v24  ;;  %v6912_v48 = vmax.f32 %v6848_v29, 0.0 }
 0x613   :  { %6973 = vst.msk [vmem:[%s17933_s7] sm:$0xff] %vm2385_vm3, %v6909_v53  ;;  %v6910_v1 = vmax.f32 %v6846_v46, 0.0 }
 0x614   :  { %6976 = vst.msk [vmem:[%s17933_s7 + $0x18] sm:$0xff] %vm2385_vm3, %v6912_v48 }
 0x615   :  { %6974 = vst.msk [vmem:[%s17933_s7 + $0x8] sm:$0xff] %vm2385_vm3, %v6910_v1  ;;  %v7442_v27 = vpop.f32.mrb[4].mxu1 }
 0x616   :  { %v6716_v7 = vmul.f32 %v7442_v27, %v17407_v6  ;;  %v6464_v52 = vpop.f32.mrb[5].mxu1  ;;  %v20677_v27 = vld [vmem:[#allocation26_spill] sm:$0xff] }
 0x617   :  { %v6714_v42 = vmul.f32 %v17407_v6, %v6464_v52  ;;  %v7443_v38 = vpop.f32.mrb[6].mxu1 }
 0x618   :  { %v6787_v50 = vadd.f32 %v17412_v63, %v6716_v7  ;;  %v6717_v58 = vmul.f32 %v7443_v38, %v17407_v6  ;;  %v6467_v41 = vpop.f32.mrb[7].mxu1  ;;  %v20678_v7 = vunpack.c.l.bf16 %v20677_v27  ;;  %v20679_v38 = vld [vmem:[#allocation19_spill] sm:$0xff] }
 0x619   :  { %v6785_v59 = vadd.f32 %v17412_v63, %v6714_v42  ;;  %v6715_v43 = vmul.f32 %v17407_v6, %v6467_v41 }
 0x61a   :  { %v6851_v26 = vadd.f32 %v20666_v19, %v6787_v50  ;;  %v6788_v36 = vadd.f32 %v17412_v63, %v6717_v58  ;;  %v20680_v50 = vunpack.c.l.bf16 %v20679_v38 }
 0x61b   :  { %v6849_v15 = vadd.f32 %v20668_v31, %v6785_v59  ;;  %v6786_v21 = vadd.f32 %v17412_v63, %v6715_v43  ;;  %v20681_v43 = vunpack.c.h.bf16 %v20677_v27 }
 0x61c   :  { %v6915_v45 = vmax.f32 %v6851_v26, 0.0  ;;  %v6852_v4 = vadd.f32 %v20669_v49, %v6788_v36  ;;  %v20682_v26 = vunpack.c.h.bf16 %v20679_v38 }
 0x61d   :  { %v6913_v55 = vmax.f32 %v6849_v15, 0.0  ;;  %v6850_v0 = vadd.f32 %v20670_v30, %v6786_v21 }
 0x61e   :  { %6979 = vst.msk [vmem:[%s17933_s7 + $0x30] sm:$0xff] %vm2385_vm3, %v6915_v45  ;;  %v6916_v35 = vmax.f32 %v6852_v4, 0.0 }
 0x61f   :  { %6977 = vst.msk [vmem:[%s17933_s7 + $0x20] sm:$0xff] %vm2385_vm3, %v6913_v55  ;;  %v6914_v37 = vmax.f32 %v6850_v0, 0.0 }
 0x620   :  { %6980 = vst.msk [vmem:[%s17933_s7 + $0x38] sm:$0xff] %vm2385_vm3, %v6916_v35 }
 0x621   :  { %6978 = vst.msk [vmem:[%s17933_s7 + $0x28] sm:$0xff] %vm2385_vm3, %v6914_v37  ;;  %v7446_v39 = vpop.f32.mrb[8].mxu1 }
 0x622   :  { %v6720_v20 = vmul.f32 %v7446_v39, %v17407_v6  ;;  %v6480_v40 = vpop.f32.mrb[9].mxu1  ;;  %v20683_v39 = vld [vmem:[#allocation33_spill] sm:$0xff] }
 0x623   :  { %v6718_v60 = vmul.f32 %v17407_v6, %v6480_v40  ;;  %v7447_v51 = vpop.f32.mrb[10].mxu1 }
 0x624   :  { %v6791_v18 = vadd.f32 %v17412_v63, %v6720_v20  ;;  %v6721_v47 = vmul.f32 %v7447_v51, %v17407_v6  ;;  %v6483_v33 = vpop.f32.mrb[11].mxu1  ;;  %v20684_v20 = vunpack.c.l.bf16 %v20683_v39  ;;  %v20685_v51 = vld [vmem:[#allocation29_spill] sm:$0xff] }
 0x625   :  { %v6789_v8 = vadd.f32 %v17412_v63, %v6718_v60  ;;  %v6719_v9 = vmul.f32 %v17407_v6, %v6483_v33 }
 0x626   :  { %v6855_v22 = vadd.f32 %v20672_v32, %v6791_v18  ;;  %v6792_v12 = vadd.f32 %v17412_v63, %v6721_v47  ;;  %v20686_v18 = vunpack.c.l.bf16 %v20685_v51 }
 0x627   :  { %v6853_v16 = vadd.f32 %v20674_v54, %v6789_v8  ;;  %v6790_v3 = vadd.f32 %v17412_v63, %v6719_v9  ;;  %v20687_v9 = vunpack.c.h.bf16 %v20683_v39 }
 0x628   :  { %v6919_v28 = vmax.f32 %v6855_v22, 0.0  ;;  %v6856_v11 = vadd.f32 %v20675_v10, %v6792_v12  ;;  %v20688_v22 = vunpack.c.h.bf16 %v20685_v51 }
 0x629   :  { %v6917_v56 = vmax.f32 %v6853_v16, 0.0  ;;  %v6854_v13 = vadd.f32 %v20676_v2, %v6790_v3 }
 0x62a   :  { %6983 = vst.msk [vmem:[%s17933_s7 + $0x50] sm:$0xff] %vm2385_vm3, %v6919_v28  ;;  %v6920_v14 = vmax.f32 %v6856_v11, 0.0 }
 0x62b   :  { %6981 = vst.msk [vmem:[%s17933_s7 + $0x40] sm:$0xff] %vm2385_vm3, %v6917_v56  ;;  %v6918_v25 = vmax.f32 %v6854_v13, 0.0 }
 0x62c   :  { %6984 = vst.msk [vmem:[%s17933_s7 + $0x58] sm:$0xff] %vm2385_vm3, %v6920_v14 }
 0x62d   :  { %6982 = vst.msk [vmem:[%s17933_s7 + $0x48] sm:$0xff] %vm2385_vm3, %v6918_v25  ;;  %v7450_v5 = vpop.f32.mrb[12].mxu1 }
 0x62e   :  { %v6724_v34 = vmul.f32 %v7450_v5, %v17407_v6  ;;  %v6496_v24 = vpop.f32.mrb[13].mxu1  ;;  %v20689_v5 = vld [vmem:[#allocation43_spill] sm:$0xff] }
 0x62f   :  { %v6722_v17 = vmul.f32 %v17407_v6, %v6496_v24  ;;  %v7451_v29 = vpop.f32.mrb[14].mxu1 }
 0x630   :  { %v6795_v53 = vadd.f32 %v17412_v63, %v6724_v34  ;;  %v6725_v61 = vmul.f32 %v7451_v29, %v17407_v6  ;;  %v6499_v46 = vpop.f32.mrb[15].mxu1  ;;  %v20690_v34 = vunpack.c.l.bf16 %v20689_v5  ;;  %v20691_v29 = vld [vmem:[#allocation39_spill] sm:$0xff] }
 0x631   :  { %v6793_v48 = vadd.f32 %v17412_v63, %v6722_v17  ;;  %v6723_v1 = vmul.f32 %v17407_v6, %v6499_v46 }
 0x632   :  { %v6859_v52 = vadd.f32 %v20678_v7, %v6795_v53  ;;  %v6796_v42 = vadd.f32 %v17412_v63, %v6725_v61  ;;  %v20692_v53 = vunpack.c.l.bf16 %v20691_v29 }
 0x633   :  { %v6857_v58 = vadd.f32 %v20680_v50, %v6793_v48  ;;  %v6794_v41 = vadd.f32 %v17412_v63, %v6723_v1  ;;  %v20693_v1 = vunpack.c.h.bf16 %v20689_v5 }
 0x634   :  { %v6923_v59 = vmax.f32 %v6859_v52, 0.0  ;;  %v6860_v23 = vadd.f32 %v20681_v43, %v6796_v42  ;;  %v20694_v52 = vunpack.c.h.bf16 %v20691_v29 }
 0x635   :  { %v6921_v19 = vmax.f32 %v6857_v58, 0.0  ;;  %v6858_v36 = vadd.f32 %v20682_v26, %v6794_v41 }
 0x636   :  { %6987 = vst.msk [vmem:[%s17933_s7 + $0x70] sm:$0xff] %vm2385_vm3, %v6923_v59  ;;  %v6924_v62 = vmax.f32 %v6860_v23, 0.0 }
 0x637   :  { %6985 = vst.msk [vmem:[%s17933_s7 + $0x60] sm:$0xff] %vm2385_vm3, %v6921_v19  ;;  %v6922_v31 = vmax.f32 %v6858_v36, 0.0 }
 0x638   :  { %6988 = vst.msk [vmem:[%s17933_s7 + $0x78] sm:$0xff] %vm2385_vm3, %v6924_v62 }
 0x639   :  { %6986 = vst.msk [vmem:[%s17933_s7 + $0x68] sm:$0xff] %vm2385_vm3, %v6922_v31  ;;  %v7454_v15 = vpop.f32.mrb[16].mxu1 }
 0x63a   :  { %v6728_v21 = vmul.f32 %v7454_v15, %v17407_v6  ;;  %v6512_v45 = vpop.f32.mrb[17].mxu1  ;;  %v20695_v15 = vld [vmem:[#allocation49_spill] sm:$0xff] }
 0x63b   :  { %v6726_v49 = vmul.f32 %v17407_v6, %v6512_v45  ;;  %v7455_v4 = vpop.f32.mrb[18].mxu1 }
 0x63c   :  { %v6799_v55 = vadd.f32 %v17412_v63, %v6728_v21  ;;  %v6729_v30 = vmul.f32 %v7455_v4, %v17407_v6  ;;  %v6515_v0 = vpop.f32.mrb[19].mxu1  ;;  %v20696_v21 = vunpack.c.l.bf16 %v20695_v15  ;;  %v20697_v4 = vld [vmem:[#allocation44_spill] sm:$0xff] }
 0x63d   :  { %v6797_v35 = vadd.f32 %v17412_v63, %v6726_v49  ;;  %v6727_v37 = vmul.f32 %v17407_v6, %v6515_v0 }
 0x63e   :  { %v6863_v40 = vadd.f32 %v20684_v20, %v6799_v55  ;;  %v6800_v60 = vadd.f32 %v17412_v63, %v6729_v30  ;;  %v20698_v55 = vunpack.c.l.bf16 %v20697_v4 }
 0x63f   :  { %v6861_v47 = vadd.f32 %v20686_v18, %v6797_v35  ;;  %v6798_v33 = vadd.f32 %v17412_v63, %v6727_v37  ;;  %v20699_v37 = vunpack.c.h.bf16 %v20695_v15 }
 0x640   :  { %v6927_v8 = vmax.f32 %v6863_v40, 0.0  ;;  %v6864_v44 = vadd.f32 %v20687_v9, %v6800_v60  ;;  %v20700_v40 = vunpack.c.h.bf16 %v20697_v4 }
 0x641   :  { %v6925_v32 = vmax.f32 %v6861_v47, 0.0  ;;  %v6862_v12 = vadd.f32 %v20688_v22, %v6798_v33 }
 0x642   :  { %6991 = vst.msk [vmem:[%s17933_s7 + $0x90] sm:$0xff] %vm2385_vm3, %v6927_v8  ;;  %v6928_v57 = vmax.f32 %v6864_v44, 0.0 }
 0x643   :  { %6989 = vst.msk [vmem:[%s17933_s7 + $0x80] sm:$0xff] %vm2385_vm3, %v6925_v32  ;;  %v6926_v54 = vmax.f32 %v6862_v12, 0.0 }
 0x644   :  { %6992 = vst.msk [vmem:[%s17933_s7 + $0x98] sm:$0xff] %vm2385_vm3, %v6928_v57 }
 0x645   :  { %6990 = vst.msk [vmem:[%s17933_s7 + $0x88] sm:$0xff] %vm2385_vm3, %v6926_v54  ;;  %v7458_v16 = vpop.f32.mrb[20].mxu1 }
 0x646   :  { %v6732_v3 = vmul.f32 %v7458_v16, %v17407_v6  ;;  %v6528_v28 = vpop.f32.mrb[21].mxu1  ;;  %v20701_v16 = vld [vmem:[#allocation173_spill] sm:$0xff] }
 0x647   :  { %v6730_v10 = vmul.f32 %v17407_v6, %v6528_v28  ;;  %v7459_v11 = vpop.f32.mrb[22].mxu1 }
 0x648   :  { %v6803_v56 = vadd.f32 %v17412_v63, %v6732_v3  ;;  %v6733_v2 = vmul.f32 %v7459_v11, %v17407_v6  ;;  %v6531_v13 = vpop.f32.mrb[23].mxu1  ;;  %v20702_v3 = vunpack.c.l.bf16 %v20701_v16  ;;  %v20703_v11 = vld [vmem:[#allocation55_spill] sm:$0xff] }
 0x649   :  { %v6801_v14 = vadd.f32 %v17412_v63, %v6730_v10  ;;  %v6731_v25 = vmul.f32 %v17407_v6, %v6531_v13 }
 0x64a   :  { %v6867_v24 = vadd.f32 %v20690_v34, %v6803_v56  ;;  %v6804_v17 = vadd.f32 %v17412_v63, %v6733_v2  ;;  %v20704_v56 = vunpack.c.l.bf16 %v20703_v11 }
 0x64b   :  { %v6865_v61 = vadd.f32 %v20692_v53, %v6801_v14  ;;  %v6802_v46 = vadd.f32 %v17412_v63, %v6731_v25  ;;  %v20705_v25 = vunpack.c.h.bf16 %v20701_v16 }
 0x64c   :  { %v6931_v48 = vmax.f32 %v6867_v24, 0.0  ;;  %v6868_v27 = vadd.f32 %v20693_v1, %v6804_v17  ;;  %v20706_v24 = vunpack.c.h.bf16 %v20703_v11 }
 0x64d   :  { %v6929_v7 = vmax.f32 %v6865_v61, 0.0  ;;  %v6866_v42 = vadd.f32 %v20694_v52, %v6802_v46 }
 0x64e   :  { %6995 = vst.msk [vmem:[%s17933_s7 + $0xb0] sm:$0xff] %vm2385_vm3, %v6931_v48  ;;  %v6932_v38 = vmax.f32 %v6868_v27, 0.0 }
 0x64f   :  { %6993 = vst.msk [vmem:[%s17933_s7 + $0xa0] sm:$0xff] %vm2385_vm3, %v6929_v7  ;;  %v6930_v50 = vmax.f32 %v6866_v42, 0.0 }
 0x650   :  { %6996 = vst.msk [vmem:[%s17933_s7 + $0xb8] sm:$0xff] %vm2385_vm3, %v6932_v38 }
 0x651   :  { %6994 = vst.msk [vmem:[%s17933_s7 + $0xa8] sm:$0xff] %vm2385_vm3, %v6930_v50  ;;  %v7462_v58 = vpop.f32.mrb[24].mxu1 }
 0x652   :  { %v6736_v41 = vmul.f32 %v7462_v58, %v17407_v6  ;;  %v6544_v59 = vpop.f32.mrb[25].mxu1  ;;  %v20707_v58 = vld [vmem:[#allocation60_spill] sm:$0xff] }
 0x653   :  { %v6734_v43 = vmul.f32 %v17407_v6, %v6544_v59  ;;  %v7463_v23 = vpop.f32.mrb[26].mxu1 }
 0x654   :  { %v6807_v19 = vadd.f32 %v17412_v63, %v6736_v41  ;;  %v6737_v26 = vmul.f32 %v7463_v23, %v17407_v6  ;;  %v6547_v36 = vpop.f32.mrb[27].mxu1  ;;  %v20708_v41 = vunpack.c.l.bf16 %v20707_v58  ;;  %v20709_v23 = vld [vmem:[#allocation59_spill] sm:$0xff] }
 0x655   :  { %v6805_v62 = vadd.f32 %v17412_v63, %v6734_v43  ;;  %v6735_v31 = vmul.f32 %v17407_v6, %v6547_v36 }
 0x656   :  { %v6871_v45 = vadd.f32 %v20696_v21, %v6807_v19  ;;  %v6808_v49 = vadd.f32 %v17412_v63, %v6737_v26  ;;  %v20710_v19 = vunpack.c.l.bf16 %v20709_v23 }
 0x657   :  { %v6869_v30 = vadd.f32 %v20698_v55, %v6805_v62  ;;  %v6806_v0 = vadd.f32 %v17412_v63, %v6735_v31  ;;  %v20711_v31 = vunpack.c.h.bf16 %v20707_v58 }
 0x658   :  { %v6935_v35 = vmax.f32 %v6871_v45, 0.0  ;;  %v6872_v39 = vadd.f32 %v20699_v37, %v6808_v49  ;;  %v20712_v45 = vunpack.c.h.bf16 %v20709_v23 }
 0x659   :  { %v6933_v20 = vmax.f32 %v6869_v30, 0.0  ;;  %v6870_v60 = vadd.f32 %v20700_v40, %v6806_v0  ;;  %v7466_v51 = vpop.f32.mrb[28].mxu1 }
 0x65a   :  { %6999 = vst.msk [vmem:[%s17933_s7 + $0xd0] sm:$0xff] %vm2385_vm3, %v6935_v35  ;;  %v6936_v18 = vmax.f32 %v6872_v39, 0.0  ;;  %v6740_v47 = vmul.f32 %v7466_v51, %v17407_v6  ;;  %v6560_v33 = vpop.f32.mrb[29].mxu1 }
 0x65b   :  { %6997 = vst.msk [vmem:[%s17933_s7 + $0xc0] sm:$0xff] %vm2385_vm3, %v6933_v20  ;;  %v6934_v8 = vmax.f32 %v6870_v60, 0.0  ;;  %v6738_v9 = vmul.f32 %v17407_v6, %v6560_v33  ;;  %v7467_v44 = vpop.f32.mrb[30].mxu1 }
 0x65c   :  { %7000 = vst.msk [vmem:[%s17933_s7 + $0xd8] sm:$0xff] %vm2385_vm3, %v6936_v18  ;;  %v6811_v32 = vadd.f32 %v17412_v63, %v6740_v47  ;;  %v6741_v22 = vmul.f32 %v7467_v44, %v17407_v6  ;;  %v6563_v12 = vpop.f32.mrb[31].mxu1  ;;  %v20713_v47 = vld [vmem:[#allocation76_spill] sm:$0xff]  ;;  %v20715_v44 = vld [vmem:[#allocation67_spill] sm:$0xff] }
 0x65d   :  { %6998 = vst.msk [vmem:[%s17933_s7 + $0xc8] sm:$0xff] %vm2385_vm3, %v6934_v8  ;;  %v6809_v57 = vadd.f32 %v17412_v63, %v6738_v9  ;;  %v6739_v54 = vmul.f32 %v17407_v6, %v6563_v12  ;;  %v20714_v33 = vunpack.c.l.bf16 %v20713_v47 }
 0x65e   :  { %v6875_v28 = vadd.f32 %v20702_v3, %v6811_v32  ;;  %v6812_v10 = vadd.f32 %v17412_v63, %v6741_v22  ;;  %v20716_v32 = vunpack.c.l.bf16 %v20715_v44 }
 0x65f   :  { %v6873_v2 = vadd.f32 %v20704_v56, %v6809_v57  ;;  %v6810_v13 = vadd.f32 %v17412_v63, %v6739_v54  ;;  %v20717_v54 = vunpack.c.h.bf16 %v20713_v47 }
 0x660   :  { %v6939_v14 = vmax.f32 %v6875_v28, 0.0  ;;  %v6876_v5 = vadd.f32 %v20705_v25, %v6812_v10  ;;  %v20718_v28 = vunpack.c.h.bf16 %v20715_v44 }
 0x661   :  { %v6937_v34 = vmax.f32 %v6873_v2, 0.0  ;;  %v6874_v17 = vadd.f32 %v20706_v24, %v6810_v13 }
 0x662   :  { %7003 = vst.msk [vmem:[%s17933_s7 + $0xf0] sm:$0xff] %vm2385_vm3, %v6939_v14  ;;  %v6940_v29 = vmax.f32 %v6876_v5, 0.0 }
 0x663   :  { %7001 = vst.msk [vmem:[%s17933_s7 + $0xe0] sm:$0xff] %vm2385_vm3, %v6937_v34  ;;  %v6938_v53 = vmax.f32 %v6874_v17, 0.0 }
 0x664   :  { %7004 = vst.msk [vmem:[%s17933_s7 + $0xf8] sm:$0xff] %vm2385_vm3, %v6940_v29  ;;  %v7470_v61 = vpop.f32.mrb[32].mxu1 }
 0x665   :  { %7002 = vst.msk [vmem:[%s17933_s7 + $0xe8] sm:$0xff] %vm2385_vm3, %v6938_v53  ;;  %v6744_v46 = vmul.f32 %v7470_v61, %v17407_v6  ;;  %v6576_v48 = vpop.f32.mrb[33].mxu1  ;;  %v20719_v61 = vld [vmem:[#allocation80_spill] sm:$0xff] }
 0x666   :  { %v6742_v1 = vmul.f32 %v17407_v6, %v6576_v48  ;;  %v7471_v27 = vpop.f32.mrb[34].mxu1 }
 0x667   :  { %v6815_v7 = vadd.f32 %v17412_v63, %v6744_v46  ;;  %v6745_v52 = vmul.f32 %v7471_v27, %v17407_v6  ;;  %v6579_v42 = vpop.f32.mrb[35].mxu1  ;;  %v20720_v46 = vunpack.c.l.bf16 %v20719_v61  ;;  %v20721_v27 = vld [vmem:[#allocation79_spill] sm:$0xff] }
 0x668   :  { %v6813_v38 = vadd.f32 %v17412_v63, %v6742_v1  ;;  %v6743_v50 = vmul.f32 %v17407_v6, %v6579_v42 }
 0x669   :  { %v6879_v59 = vadd.f32 %v20708_v41, %v6815_v7  ;;  %v6816_v43 = vadd.f32 %v17412_v63, %v6745_v52  ;;  %v20722_v7 = vunpack.c.l.bf16 %v20721_v27 }
 0x66a   :  { %v6877_v26 = vadd.f32 %v20710_v19, %v6813_v38  ;;  %v6814_v36 = vadd.f32 %v17412_v63, %v6743_v50  ;;  %v20723_v50 = vunpack.c.h.bf16 %v20719_v61 }
 0x66b   :  { %v6943_v62 = vmax.f32 %v6879_v59, 0.0  ;;  %v6880_v15 = vadd.f32 %v20711_v31, %v6816_v43  ;;  %v20724_v59 = vunpack.c.h.bf16 %v20721_v27 }
 0x66c   :  { %v6941_v21 = vmax.f32 %v6877_v26, 0.0  ;;  %v6878_v49 = vadd.f32 %v20712_v45, %v6814_v36 }
 0x66d   :  { %7007 = vst.msk [vmem:[%s17933_s7 + $0x110] sm:$0xff] %vm2385_vm3, %v6943_v62  ;;  %v6944_v4 = vmax.f32 %v6880_v15, 0.0 }
 0x66e   :  { %7005 = vst.msk [vmem:[%s17933_s7 + $0x100] sm:$0xff] %vm2385_vm3, %v6941_v21  ;;  %v6942_v55 = vmax.f32 %v6878_v49, 0.0 }
 0x66f   :  { %7008 = vst.msk [vmem:[%s17933_s7 + $0x118] sm:$0xff] %vm2385_vm3, %v6944_v4 }
 0x670   :  { %7006 = vst.msk [vmem:[%s17933_s7 + $0x108] sm:$0xff] %vm2385_vm3, %v6942_v55  ;;  %v7474_v30 = vpop.f32.mrb[36].mxu1 }
 0x671   :  { %v6748_v0 = vmul.f32 %v7474_v30, %v17407_v6  ;;  %v6592_v35 = vpop.f32.mrb[37].mxu1  ;;  %v20725_v30 = vld [vmem:[#allocation94_spill] sm:$0xff] }
 0x672   :  { %v6746_v37 = vmul.f32 %v17407_v6, %v6592_v35  ;;  %v7475_v39 = vpop.f32.mrb[38].mxu1 }
 0x673   :  { %v6819_v20 = vadd.f32 %v17412_v63, %v6748_v0  ;;  %v6749_v40 = vmul.f32 %v7475_v39, %v17407_v6  ;;  %v6595_v60 = vpop.f32.mrb[39].mxu1  ;;  %v20726_v0 = vunpack.c.l.bf16 %v20725_v30  ;;  %v20727_v39 = vld [vmem:[#allocation85_spill] sm:$0xff] }
 0x674   :  { %v6817_v51 = vadd.f32 %v17412_v63, %v6746_v37  ;;  %v6747_v18 = vmul.f32 %v17407_v6, %v6595_v60 }
 0x675   :  { %v6883_v8 = vadd.f32 %v20714_v33, %v6819_v20  ;;  %v6820_v9 = vadd.f32 %v17412_v63, %v6749_v40  ;;  %v20728_v20 = vunpack.c.l.bf16 %v20727_v39 }
 0x676   :  { %v6881_v22 = vadd.f32 %v20716_v32, %v6817_v51  ;;  %v6818_v12 = vadd.f32 %v17412_v63, %v6747_v18  ;;  %v20729_v18 = vunpack.c.h.bf16 %v20725_v30 }
 0x677   :  { %v6947_v57 = vmax.f32 %v6883_v8, 0.0  ;;  %v6884_v16 = vadd.f32 %v20717_v54, %v6820_v9  ;;  %v20730_v8 = vunpack.c.h.bf16 %v20727_v39 }
 0x678   :  { %v6945_v3 = vmax.f32 %v6881_v22, 0.0  ;;  %v6882_v10 = vadd.f32 %v20718_v28, %v6818_v12 }
 0x679   :  { %7011 = vst.msk [vmem:[%s17933_s7 + $0x130] sm:$0xff] %vm2385_vm3, %v6947_v57  ;;  %v6948_v11 = vmax.f32 %v6884_v16, 0.0 }
 0x67a   :  { %7009 = vst.msk [vmem:[%s17933_s7 + $0x120] sm:$0xff] %vm2385_vm3, %v6945_v3  ;;  %v6946_v56 = vmax.f32 %v6882_v10, 0.0 }
 0x67b   :  { %7012 = vst.msk [vmem:[%s17933_s7 + $0x138] sm:$0xff] %vm2385_vm3, %v6948_v11 }
 0x67c   :  { %7010 = vst.msk [vmem:[%s17933_s7 + $0x128] sm:$0xff] %vm2385_vm3, %v6946_v56 }
 0x67d   :  { %v7478_v2 = vpop.f32.mrb[40].mxu1 }
 0x67e   :  { %v6752_v13 = vmul.f32 %v7478_v2, %v17407_v6  ;;  %v6608_v14 = vpop.f32.mrb[41].mxu1  ;;  %v20731_v2 = vld [vmem:[#allocation99_spill] sm:$0xff] }
 0x67f   :  { %v6750_v25 = vmul.f32 %v17407_v6, %v6608_v14  ;;  %v7479_v5 = vpop.f32.mrb[42].mxu1 }
 0x680   :  { %v6823_v34 = vadd.f32 %v17412_v63, %v6752_v13  ;;  %v6753_v24 = vmul.f32 %v7479_v5, %v17407_v6  ;;  %v6611_v17 = vpop.f32.mrb[43].mxu1  ;;  %v20732_v13 = vunpack.c.l.bf16 %v20731_v2  ;;  %v20733_v5 = vld [vmem:[#allocation97_spill] sm:$0xff] }
 0x681   :  { %v6821_v29 = vadd.f32 %v17412_v63, %v6750_v25  ;;  %v6751_v53 = vmul.f32 %v17407_v6, %v6611_v17 }
 0x682   :  { %v6887_v48 = vadd.f32 %v20720_v46, %v6823_v34  ;;  %v6824_v1 = vadd.f32 %v17412_v63, %v6753_v24  ;;  %v20734_v34 = vunpack.c.l.bf16 %v20733_v5 }
 0x683   :  { %v6885_v52 = vadd.f32 %v20722_v7, %v6821_v29  ;;  %v6822_v42 = vadd.f32 %v17412_v63, %v6751_v53  ;;  %v20735_v53 = vunpack.c.h.bf16 %v20731_v2 }
 0x684   :  { %v6951_v38 = vmax.f32 %v6887_v48, 0.0  ;;  %v6888_v58 = vadd.f32 %v20723_v50, %v6824_v1  ;;  %v20736_v48 = vunpack.c.h.bf16 %v20733_v5 }
 0x685   :  { %v6949_v41 = vmax.f32 %v6885_v52, 0.0  ;;  %v6886_v43 = vadd.f32 %v20724_v59, %v6822_v42 }
 0x686   :  { %7015 = vst.msk [vmem:[%s17933_s7 + $0x150] sm:$0xff] %vm2385_vm3, %v6951_v38  ;;  %v6952_v23 = vmax.f32 %v6888_v58, 0.0 }
 0x687   :  { %7013 = vst.msk [vmem:[%s17933_s7 + $0x140] sm:$0xff] %vm2385_vm3, %v6949_v41  ;;  %v6950_v19 = vmax.f32 %v6886_v43, 0.0 }
 0x688   :  { %7016 = vst.msk [vmem:[%s17933_s7 + $0x158] sm:$0xff] %vm2385_vm3, %v6952_v23 }
 0x689   :  { %7014 = vst.msk [vmem:[%s17933_s7 + $0x148] sm:$0xff] %vm2385_vm3, %v6950_v19 }
 0x68d   :  { %v7482_v26 = vpop.f32.mrb[44].mxu1 }
 0x68e   :  { %v6756_v36 = vmul.f32 %v7482_v26, %v17407_v6  ;;  %v6624_v62 = vpop.f32.mrb[45].mxu1  ;;  %v20737_v26 = vld [vmem:[#allocation114_spill] sm:$0xff] }
 0x68f   :  { %v6754_v31 = vmul.f32 %v17407_v6, %v6624_v62  ;;  %v7483_v15 = vpop.f32.mrb[46].mxu1 }
 0x690   :  { %v6827_v21 = vadd.f32 %v17412_v63, %v6756_v36  ;;  %v6757_v45 = vmul.f32 %v7483_v15, %v17407_v6  ;;  %v6627_v49 = vpop.f32.mrb[47].mxu1  ;;  %v20738_v36 = vunpack.c.l.bf16 %v20737_v26  ;;  %v20739_v15 = vld [vmem:[#allocation105_spill] sm:$0xff] }
 0x691   :  { %v6825_v4 = vadd.f32 %v17412_v63, %v6754_v31  ;;  %v6755_v55 = vmul.f32 %v17407_v6, %v6627_v49 }
 0x692   :  { %v6891_v35 = vadd.f32 %v20726_v0, %v6827_v21  ;;  %v6828_v37 = vadd.f32 %v17412_v63, %v6757_v45  ;;  %v20740_v21 = vunpack.c.l.bf16 %v20739_v15 }
 0x693   :  { %v6889_v40 = vadd.f32 %v20728_v20, %v6825_v4  ;;  %v6826_v60 = vadd.f32 %v17412_v63, %v6755_v55  ;;  %v20741_v55 = vunpack.c.h.bf16 %v20737_v26 }
 0x694   :  { %v6955_v51 = vmax.f32 %v6891_v35, 0.0  ;;  %v6892_v47 = vadd.f32 %v20729_v18, %v6828_v37  ;;  %v20742_v35 = vunpack.c.h.bf16 %v20739_v15 }
 0x695   :  { %v6953_v33 = vmax.f32 %v6889_v40, 0.0  ;;  %v6890_v9 = vadd.f32 %v20730_v8, %v6826_v60 }
 0x696   :  { %7019 = vst.msk [vmem:[%s17933_s7 + $0x170] sm:$0xff] %vm2385_vm3, %v6955_v51  ;;  %v6956_v44 = vmax.f32 %v6892_v47, 0.0 }
 0x697   :  { %7017 = vst.msk [vmem:[%s17933_s7 + $0x160] sm:$0xff] %vm2385_vm3, %v6953_v33  ;;  %v6954_v32 = vmax.f32 %v6890_v9, 0.0 }
 0x698   :  { %7020 = vst.msk [vmem:[%s17933_s7 + $0x178] sm:$0xff] %vm2385_vm3, %v6956_v44 }
 0x699   :  { %7018 = vst.msk [vmem:[%s17933_s7 + $0x168] sm:$0xff] %vm2385_vm3, %v6954_v32 }
 0x69d   :  { %v7486_v22 = vpop.f32.mrb[48].mxu1 }
 0x69e   :  { %v6760_v12 = vmul.f32 %v7486_v22, %v17407_v6  ;;  %v6640_v57 = vpop.f32.mrb[49].mxu1  ;;  %v20743_v22 = vld [vmem:[#allocation119_spill] sm:$0xff] }
 0x69f   :  { %v6758_v54 = vmul.f32 %v17407_v6, %v6640_v57  ;;  %v7487_v16 = vpop.f32.mrb[50].mxu1 }
 0x6a0   :  { %v6831_v3 = vadd.f32 %v17412_v63, %v6760_v12  ;;  %v6761_v28 = vmul.f32 %v7487_v16, %v17407_v6  ;;  %v6643_v10 = vpop.f32.mrb[51].mxu1  ;;  %v20744_v12 = vunpack.c.l.bf16 %v20743_v22  ;;  %v20745_v16 = vld [vmem:[#allocation117_spill] sm:$0xff] }
 0x6a1   :  { %v6829_v11 = vadd.f32 %v17412_v63, %v6758_v54  ;;  %v6759_v56 = vmul.f32 %v17407_v6, %v6643_v10 }
 0x6a2   :  { %v6895_v14 = vadd.f32 %v20732_v13, %v6831_v3  ;;  %v6832_v25 = vadd.f32 %v17412_v63, %v6761_v28  ;;  %v20746_v3 = vunpack.c.l.bf16 %v20745_v16 }
 0x6a3   :  { %v6893_v24 = vadd.f32 %v20734_v34, %v6829_v11  ;;  %v6830_v17 = vadd.f32 %v17412_v63, %v6759_v56  ;;  %v20747_v56 = vunpack.c.h.bf16 %v20743_v22 }
 0x6a4   :  { %v6959_v29 = vmax.f32 %v6895_v14, 0.0  ;;  %v6896_v61 = vadd.f32 %v20735_v53, %v6832_v25  ;;  %v20748_v14 = vunpack.c.h.bf16 %v20745_v16 }
 0x6a5   :  { %v6957_v46 = vmax.f32 %v6893_v24, 0.0  ;;  %v6894_v1 = vadd.f32 %v20736_v48, %v6830_v17 }
 0x6a6   :  { %7023 = vst.msk [vmem:[%s17933_s7 + $0x190] sm:$0xff] %vm2385_vm3, %v6959_v29  ;;  %v6960_v27 = vmax.f32 %v6896_v61, 0.0 }
 0x6a7   :  { %7021 = vst.msk [vmem:[%s17933_s7 + $0x180] sm:$0xff] %vm2385_vm3, %v6957_v46  ;;  %v6958_v7 = vmax.f32 %v6894_v1, 0.0 }
 0x6a8   :  { %7024 = vst.msk [vmem:[%s17933_s7 + $0x198] sm:$0xff] %vm2385_vm3, %v6960_v27 }
 0x6a9   :  { %7022 = vst.msk [vmem:[%s17933_s7 + $0x188] sm:$0xff] %vm2385_vm3, %v6958_v7 }
 0x6ad   :  { %v7490_v52 = vpop.f32.mrb[52].mxu1 }
 0x6ae   :  { %v6764_v42 = vmul.f32 %v7490_v52, %v17407_v6  ;;  %v6656_v38 = vpop.f32.mrb[53].mxu1  ;;  %v20749_v52 = vld [vmem:[#allocation185_spill] sm:$0xff] }
 0x6af   :  { %v6762_v50 = vmul.f32 %v17407_v6, %v6656_v38  ;;  %v7491_v58 = vpop.f32.mrb[54].mxu1 }
 0x6b0   :  { %v6835_v41 = vadd.f32 %v17412_v63, %v6764_v42  ;;  %v6765_v59 = vmul.f32 %v7491_v58, %v17407_v6  ;;  %v6659_v43 = vpop.f32.mrb[55].mxu1  ;;  %v20750_v42 = vunpack.c.l.bf16 %v20749_v52  ;;  %v20751_v58 = vld [vmem:[#allocation125_spill] sm:$0xff] }
 0x6b1   :  { %v6833_v23 = vadd.f32 %v17412_v63, %v6762_v50  ;;  %v6763_v19 = vmul.f32 %v17407_v6, %v6659_v43 }
 0x6b2   :  { %v6899_v62 = vadd.f32 %v20738_v36, %v6835_v41  ;;  %v6836_v31 = vadd.f32 %v17412_v63, %v6765_v59  ;;  %v20752_v41 = vunpack.c.l.bf16 %v20751_v58 }
 0x6b3   :  { %v6897_v45 = vadd.f32 %v20740_v21, %v6833_v23  ;;  %v6834_v49 = vadd.f32 %v17412_v63, %v6763_v19  ;;  %v20753_v19 = vunpack.c.h.bf16 %v20749_v52 }
 0x6b4   :  { %v6963_v4 = vmax.f32 %v6899_v62, 0.0  ;;  %v6900_v30 = vadd.f32 %v20741_v55, %v6836_v31  ;;  %v20754_v62 = vunpack.c.h.bf16 %v20751_v58 }
 0x6b5   :  { %v6961_v0 = vmax.f32 %v6897_v45, 0.0  ;;  %v6898_v37 = vadd.f32 %v20742_v35, %v6834_v49 }
 0x6b6   :  { %7027 = vst.msk [vmem:[%s17933_s7 + $0x1b0] sm:$0xff] %vm2385_vm3, %v6963_v4  ;;  %v6964_v39 = vmax.f32 %v6900_v30, 0.0 }
 0x6b7   :  { %7025 = vst.msk [vmem:[%s17933_s7 + $0x1a0] sm:$0xff] %vm2385_vm3, %v6961_v0  ;;  %v6962_v20 = vmax.f32 %v6898_v37, 0.0 }
 0x6b8   :  { %7028 = vst.msk [vmem:[%s17933_s7 + $0x1b8] sm:$0xff] %vm2385_vm3, %v6964_v39 }
 0x6b9   :  { %7026 = vst.msk [vmem:[%s17933_s7 + $0x1a8] sm:$0xff] %vm2385_vm3, %v6962_v20 }
 0x6bd   :  { %v7494_v40 = vpop.f32.mrb[56].mxu1 }
 0x6be   :  { %v6768_v60 = vmul.f32 %v7494_v40, %v17407_v6  ;;  %v6672_v51 = vpop.f32.mrb[57].mxu1 }
 0x6bf   :  { %v6766_v18 = vmul.f32 %v17407_v6, %v6672_v51  ;;  %v7495_v47 = vpop.f32.mrb[58].mxu1 }
 0x6c0   :  { %v6839_v33 = vadd.f32 %v17412_v63, %v6768_v60  ;;  %v6769_v8 = vmul.f32 %v7495_v47, %v17407_v6  ;;  %v6675_v9 = vpop.f32.mrb[59].mxu1 }
 0x6c1   :  { %v6837_v44 = vadd.f32 %v17412_v63, %v6766_v18  ;;  %v6767_v32 = vmul.f32 %v17407_v6, %v6675_v9 }
 0x6c2   :  { %v6903_v57 = vadd.f32 %v20744_v12, %v6839_v33  ;;  %v6840_v54 = vadd.f32 %v17412_v63, %v6769_v8 }
 0x6c3   :  { %v6901_v28 = vadd.f32 %v20746_v3, %v6837_v44  ;;  %v6838_v10 = vadd.f32 %v17412_v63, %v6767_v32 }
 0x6c4   :  { %v6967_v11 = vmax.f32 %v6903_v57, 0.0  ;;  %v6904_v2 = vadd.f32 %v20747_v56, %v6840_v54 }
 0x6c5   :  { %v6965_v13 = vmax.f32 %v6901_v28, 0.0  ;;  %v6902_v25 = vadd.f32 %v20748_v14, %v6838_v10 }
 0x6c6   :  { %7031 = vst.msk [vmem:[%s17933_s7 + $0x1d0] sm:$0xff] %vm2385_vm3, %v6967_v11  ;;  %v6968_v5 = vmax.f32 %v6904_v2, 0.0 }
 0x6c7   :  { %7029 = vst.msk [vmem:[%s17933_s7 + $0x1c0] sm:$0xff] %vm2385_vm3, %v6965_v13  ;;  %v6966_v34 = vmax.f32 %v6902_v25, 0.0 }
 0x6c8   :  { %7032 = vst.msk [vmem:[%s17933_s7 + $0x1d8] sm:$0xff] %vm2385_vm3, %v6968_v5 }
 0x6c9   :  { %7030 = vst.msk [vmem:[%s17933_s7 + $0x1c8] sm:$0xff] %vm2385_vm3, %v6966_v34  ;;  %v7498_v24 = vpop.f32.mrb[60].mxu1 }
 0x6ca   :  { %v6772_v17 = vmul.f32 %v7498_v24, %v17407_v6  ;;  %v6688_v29 = vpop.f32.mrb[61].mxu1 }
 0x6cb   :  { %v6770_v53 = vmul.f32 %v17407_v6, %v6688_v29  ;;  %v7499_v61 = vpop.f32.mrb[62].mxu1 }
 0x6cc   :  { %v6843_v46 = vadd.f32 %v17412_v63, %v6772_v17  ;;  %v6773_v48 = vmul.f32 %v7499_v61, %v17407_v6  ;;  %v6691_v1 = vpop.f32.mrb[63].mxu1 }
 0x6cd   :  { %v6841_v27 = vadd.f32 %v17412_v63, %v6770_v53  ;;  %v6771_v7 = vmul.f32 %v17407_v6, %v6691_v1 }
 0x6ce   :  { %v6907_v38 = vadd.f32 %v20750_v42, %v6843_v46  ;;  %v6844_v50 = vadd.f32 %v17412_v63, %v6773_v48 }
 0x6cf   :  { %v6905_v59 = vadd.f32 %v20752_v41, %v6841_v27  ;;  %v6842_v43 = vadd.f32 %v17412_v63, %v6771_v7 }
 0x6d0   :  { %v6971_v23 = vmax.f32 %v6907_v38, 0.0  ;;  %v6908_v26 = vadd.f32 %v20753_v19, %v6844_v50 }
 0x6d1   :  { %v6969_v36 = vmax.f32 %v6905_v59, 0.0  ;;  %v6906_v31 = vadd.f32 %v20754_v62, %v6842_v43 }
 0x6d2   :  { %7035 = vst.msk [vmem:[%s17933_s7 + $0x1f0] sm:$0xff] %vm2385_vm3, %v6971_v23  ;;  %v6972_v6 = vmax.f32 %v6908_v26, 0.0 }
 0x6d3   :  { %7033 = vst.msk [vmem:[%s17933_s7 + $0x1e0] sm:$0xff] %vm2385_vm3, %v6969_v36  ;;  %v6970_v63 = vmax.f32 %v6906_v31, 0.0 }
 0x6d4   :  { %7036 = vst.msk [vmem:[%s17933_s7 + $0x1f8] sm:$0xff] %vm2385_vm3, %v6972_v6 }
 0x6d5   :  { %7034 = vst.msk [vmem:[%s17933_s7 + $0x1e8] sm:$0xff] %vm2385_vm3, %v6970_v63 }

</bundles_post_ra>
